<compile_context>
chip_gen: v5e
topology: v5e:2x2
jax: 0.10.0
libtpu: 0.0.40
codegen_flags: <defaults>
</compile_context>

<pallas_src>
import jax
import jax.numpy as jnp
from jax.experimental import pallas as pl
from jax.experimental.pallas import tpu as pltpu


# ---------------------------------------------------------------------------
# Fused Inception kernel (one grid step = B images)
# ---------------------------------------------------------------------------

def _inception_kernel(x_ref, w1_ref, t1_ref,
                      w3_ref, t3_ref,
                      w5a_ref, t5a_ref,
                      w5b_ref, t5b_ref,
                      wp_ref, tp_ref,
                      o_ref, halo_ref, pool_ref):
    B, H, W, Cin = x_ref.shape
    M = H * W
    f32, bf16 = jnp.float32, jnp.bfloat16

    ch3x3r = w3_ref.shape[1] // 3
    ch5x5r = w5a_ref.shape[1] // 3
    ch5x5 = w5b_ref.shape[1] // 3
    ch1x1 = w1_ref.shape[1] - ch3x3r - ch5x5r

    # --- border-only halo init (every grid step: megacore-safe, scratch is
    # per-core; interiors are overwritten per image / per conv) -------------
    cmax = halo_ref.shape[2]
    neg = jnp.finfo(pool_ref.dtype).min
    halo_ref[0:1, :, :] = jnp.zeros((1, W + 2, cmax), halo_ref.dtype)
    halo_ref[H + 1:H + 2, :, :] = jnp.zeros((1, W + 2, cmax), halo_ref.dtype)
    halo_ref[:, 0:1, :] = jnp.zeros((H + 2, 1, cmax), halo_ref.dtype)
    halo_ref[:, W + 1:W + 2, :] = jnp.zeros((H + 2, 1, cmax), halo_ref.dtype)
    pool_ref[0:1, :, :] = jnp.full((1, W + 2, Cin), neg, pool_ref.dtype)
    pool_ref[H + 1:H + 2, :, :] = jnp.full((1, W + 2, Cin), neg, pool_ref.dtype)
    pool_ref[:, 0:1, :] = jnp.full((H + 2, 1, Cin), neg, pool_ref.dtype)
    pool_ref[:, W + 1:W + 2, :] = jnp.full((H + 2, 1, Cin), neg, pool_ref.dtype)

    x4 = x_ref[...]                                   # [B, H, W, Cin] bf16
    x2 = x4.reshape(B * M, Cin)

    # --- fused 1x1 convs (b1 / b3.reduce / b5.reduce); BN scale pre-folded
    # into w1 on the host, only the additive shift remains ------------------
    r = jnp.dot(x2, w1_ref[...], preferred_element_type=f32)
    r = jnp.maximum(r + t1_ref[...], 0.0)             # [B*M, ch1+ch3r+ch5r]
    b1 = r[:, :ch1x1]
    a3 = r[:, ch1x1:ch1x1 + ch3x3r]
    a5 = r[:, ch1x1 + ch3x3r:ch1x1 + ch3x3r + ch5x5r]

    # --- pool branch: separable 3x3 max-pool per image, batched 1x1 proj ---
    pooled_imgs = []
    for b in range(B):
        pool_ref[1:H + 1, 1:W + 1, :] = x4[b]
        rowmax = jnp.maximum(jnp.maximum(pool_ref[:, 0:W, :],
                                         pool_ref[:, 1:W + 1, :]),
                             pool_ref[:, 2:W + 2, :])           # [H+2, W, Cin]
        pooled = jnp.maximum(jnp.maximum(rowmax[0:H], rowmax[1:H + 1]),
                             rowmax[2:H + 2])                   # [H, W, Cin]
        pooled_imgs.append(pooled.reshape(M, Cin))
    pooled_all = (jnp.concatenate(pooled_imgs, axis=0)
                  if B > 1 else pooled_imgs[0])
    bp = jnp.dot(pooled_all, wp_ref[...], preferred_element_type=f32)
    bp = jnp.maximum(bp + tp_ref[...], 0.0)

    # --- 3x3 conv (pad=1): width-direction im2col + 3 matmuls (K = 3*C) ----
    def conv3x3(act_img, C, w_ref_, t_ref_):
        cout = w_ref_.shape[2]
        halo_ref[1:H + 1, 1:W + 1, :C] = act_img.astype(bf16).reshape(H, W, C)
        col = jnp.concatenate([halo_ref[:, kx:kx + W, :C] for kx in range(3)],
                              axis=-1)                          # [H+2, W, 3C]
        acc = jnp.zeros((M, cout), f32)
        for ky in range(3):
            acc = acc + jnp.dot(col[ky:ky + H].reshape(M, 3 * C), w_ref_[ky],
                                preferred_element_type=f32)
        return jnp.maximum(acc + t_ref_[...], 0.0)

    # --- per-image 3x3 branches; in-kernel concat; one lane-dense store ----
    for b in range(B):
        rows = slice(b * M, (b + 1) * M)
        b3 = conv3x3(a3[rows], ch3x3r, w3_ref, t3_ref)
        b5 = conv3x3(conv3x3(a5[rows], ch5x5r, w5a_ref, t5a_ref),
                     ch5x5, w5b_ref, t5b_ref)
        o_ref[b, :, :] = jnp.concatenate([b1[rows], b3, b5, bp[rows]],
                                         axis=-1).astype(o_ref.dtype)


# ---------------------------------------------------------------------------
# Wrapper: layout plumbing + weight fusion / BN-scale folding, one pallas_call
# ---------------------------------------------------------------------------

def _pick_batch_block(n):
    # B images per grid step; keep the parallel grid extent >= 2 so both v7x
    # TensorCores get work, while amortizing per-step overhead when N is big.
    for b in (8, 4, 2, 1):
        if n % b == 0 and n // b >= 2:
            return b
    return 1


def inception_forward(x_nchw, params, batch_block=None):
    N, Cin, H, W = x_nchw.shape
    x = jnp.transpose(x_nchw, (0, 2, 3, 1)).astype(jnp.bfloat16)  # NHWC bf16

    w_b1, s_b1, t_b1 = params["b1"]
    w_3r, s_3r, t_3r = params["b3"]["reduce"]
    w_3c, s_3c, t_3c = params["b3"]["conv3"]
    w_5r, s_5r, t_5r = params["b5"]["reduce"]
    w_5a, s_5a, t_5a = params["b5"]["conv3a"]
    w_5b, s_5b, t_5b = params["b5"]["conv3b"]
    w_pp, s_pp, t_pp = params["bp"]["proj"]

    ch1x1, ch3x3r, ch3x3 = w_b1.shape[1], w_3r.shape[1], w_3c.shape[1]
    ch5x5r, ch5x5, poolp = w_5r.shape[1], w_5b.shape[1], w_pp.shape[1]
    Ctot = ch1x1 + ch3x3 + ch5x5 + poolp

    bf16 = jnp.bfloat16
    row = lambda v: v.reshape(1, -1).astype(jnp.float32)

    def fold1x1(w, s):                    # BN scale folded into MXU weights
        return (w * s[None, :]).astype(bf16)

    def fold3x3(w, s, cin):
        # (9*cin, cout) -> (3 ky, 3*cin kx-major, cout), BN scale folded.
        w4 = w.reshape(3, 3, cin, -1) * s[None, None, None, :]
        return w4.reshape(3, 3 * cin, -1).astype(bf16)

    # Fuse the three 1x1 convs that consume x into one lane-dense matmul.
    w1 = jnp.concatenate([fold1x1(w_b1, s_b1), fold1x1(w_3r, s_3r),
                          fold1x1(w_5r, s_5r)], axis=1)
    t1 = row(jnp.concatenate([t_b1, t_3r, t_5r]))
    w3, t3 = fold3x3(w_3c, s_3c, ch3x3r), row(t_3c)
    w5a, t5a = fold3x3(w_5a, s_5a, ch5x5r), row(t_5a)
    w5b, t5b = fold3x3(w_5b, s_5b, ch5x5), row(t_5b)
    wp, tp = fold1x1(w_pp, s_pp), row(t_pp)

    B = _pick_batch_block(N) if batch_block is None else batch_block
    assert N % B == 0

    def full(arr):
        nd = arr.ndim
        return pl.BlockSpec(arr.shape, lambda n, _nd=nd: (0,) * _nd)

    in_specs = [pl.BlockSpec((B, H, W, Cin), lambda n: (n, 0, 0, 0))]
    operands = [x]
    for a in (w1, t1, w3, t3, w5a, t5a, w5b, t5b, wp, tp):
        in_specs.append(full(a))
        operands.append(a)

    cmax = max(ch3x3r, ch5x5r, ch5x5)
    out = pl.pallas_call(
        _inception_kernel,
        grid=(N // B,),
        in_specs=in_specs,
        out_specs=pl.BlockSpec((B, H * W, Ctot), lambda n: (n, 0, 0)),
        out_shape=jax.ShapeDtypeStruct((N, H * W, Ctot), jnp.float32),
        scratch_shapes=[
            pltpu.VMEM((H + 2, W + 2, cmax), bf16),   # zero-padded conv halo
            pltpu.VMEM((H + 2, W + 2, Cin), bf16),    # -inf padded pool halo
        ],
        compiler_params=pltpu.CompilerParams(
            dimension_semantics=("parallel",),
            vmem_limit_bytes=32 * 1024 * 1024,
        ),
    )(*operands)

    return jnp.transpose(out.reshape(N, H, W, Ctot), (0, 3, 1, 2)).astype(jnp.float32)


# ---------------------------------------------------------------------------
# Pure-JAX f32 reference (for correctness checking only)
# ---------------------------------------------------------------------------

def _reference_forward(x_nchw, params):
    x = jnp.transpose(x_nchw, (0, 2, 3, 1))
    hi = jax.lax.Precision.HIGHEST

    def cbr1(x_, w, s, t):
        y = jnp.einsum("nhwc,cd->nhwd", x_, w, precision=hi)
        return jax.nn.relu(y * s + t)

    def cbr3(x_, w, s, t):
        k = w.reshape(3, 3, x_.shape[-1], -1)
        y = jax.lax.conv_general_dilated(
            x_, k, (1, 1), "SAME",
            dimension_numbers=("NHWC", "HWIO", "NHWC"), precision=hi)
        return jax.nn.relu(y * s + t)

    b1 = cbr1(x, *params["b1"])
    b3 = cbr3(cbr1(x, *params["b3"]["reduce"]), *params["b3"]["conv3"])
    b5 = cbr3(cbr3(cbr1(x, *params["b5"]["reduce"]), *params["b5"]["conv3a"]),
              *params["b5"]["conv3b"])
    pooled = jax.lax.reduce_window(x, -jnp.inf, jax.lax.max,
                                   (1, 3, 3, 1), (1, 1, 1, 1), "SAME")
    bp = cbr1(pooled, *params["bp"]["proj"])
    out = jnp.concatenate([b1, b3, b5, bp], axis=-1)
    return jnp.transpose(out, (0, 3, 1, 2))


# ---------------------------------------------------------------------------
# Deterministic parameter construction (conv + folded eval-mode BN)
# ---------------------------------------------------------------------------

def _fold_bn(conv_bias, gamma, beta, mean, var, eps=1e-5):
    scale = gamma / jnp.sqrt(var + eps)
    shift = beta + (conv_bias - mean) * scale
    return scale, shift


def _conv_bn_params(key, cin, cout, ksize):
    kw, kb, kg, kbt, km, kv = jax.random.split(key, 6)
    fan = cin * ksize * ksize
    w = jax.random.normal(kw, (ksize * ksize * cin, cout), jnp.float32) * fan ** -0.5
    b = 0.1 * jax.random.normal(kb, (cout,), jnp.float32)
    gamma = 1.0 + 0.1 * jax.random.normal(kg, (cout,), jnp.float32)
    beta = 0.1 * jax.random.normal(kbt, (cout,), jnp.float32)
    mean = 0.1 * jax.random.normal(km, (cout,), jnp.float32)
    var = 0.5 + jax.random.uniform(kv, (cout,), jnp.float32)
    scale, shift = _fold_bn(b, gamma, beta, mean, var)
    return (w, scale, shift)


def _conv_params(key, cin, cout, ksize):
    # Conv with bias but no BatchNorm (second conv of branch3x3 in the spec).
    kw, kb = jax.random.split(key, 2)
    fan = cin * ksize * ksize
    w = jax.random.normal(kw, (ksize * ksize * cin, cout), jnp.float32) * fan ** -0.5
    b = 0.1 * jax.random.normal(kb, (cout,), jnp.float32)
    return (w, jnp.ones((cout,), jnp.float32), b)


def init_params(key, in_channels, ch1x1, ch3x3reduc, ch3x3,
                ch5x5reduc, ch5x5, pool_proj):
    ks = jax.random.split(key, 7)
    return {
        "b1": _conv_bn_params(ks[0], in_channels, ch1x1, 1),
        "b3": {
            "reduce": _conv_bn_params(ks[1], in_channels, ch3x3reduc, 1),
            "conv3": _conv_params(ks[2], ch3x3reduc, ch3x3, 3),
        },
        "b5": {
            "reduce": _conv_bn_params(ks[3], in_channels, ch5x5reduc, 1),
            "conv3a": _conv_bn_params(ks[4], ch5x5reduc, ch5x5, 3),
            "conv3b": _conv_bn_params(ks[5], ch5x5, ch5x5, 3),
        },
        "bp": {"proj": _conv_bn_params(ks[6], in_channels, pool_proj, 1)},
    }


if __name__ == "__main__":
    key = jax.random.PRNGKey(0)
    k_x, k_p = jax.random.split(key)

    N, Cin, H, W = 2, 4, 16, 16
    ch1x1, ch3x3reduc, ch3x3 = 8, 4, 8
    ch5x5reduc, ch5x5, pool_proj = 4, 8, 8

    x = jax.random.normal(k_x, (N, Cin, H, W), jnp.float32)
    params = init_params(k_p, Cin, ch1x1, ch3x3reduc, ch3x3,
                         ch5x5reduc, ch5x5, pool_proj)

    fwd = jax.jit(inception_forward)
    out = jax.block_until_ready(fwd(x, params))

    assert out.shape == (N, ch1x1 + ch3x3 + ch5x5 + pool_proj, H, W), out.shape
    assert bool(jnp.all(jnp.isfinite(out)))
    assert bool(jnp.all(out >= 0.0))          # every branch ends in ReLU

    ref = _reference_forward(x, params)
    ok = bool(jnp.all(jnp.abs(out - ref) <= 0.08 + 0.05 * jnp.abs(ref)))
    assert ok, float(jnp.max(jnp.abs(out - ref)))
    print("KERNEL_OK")
</pallas_src>

<mosaic_0001>
module attributes {stable_mosaic.version = 11 : i64} {
  func.func @_inception_kernel(%arg0: i32, %arg1: memref<1x16x16x4xbf16, #tpu.memory_space<vmem>>, %arg2: memref<4x16xbf16, #tpu.memory_space<vmem>>, %arg3: memref<1x16xf32, #tpu.memory_space<vmem>>, %arg4: memref<3x12x8xbf16, #tpu.memory_space<vmem>>, %arg5: memref<1x8xf32, #tpu.memory_space<vmem>>, %arg6: memref<3x12x8xbf16, #tpu.memory_space<vmem>>, %arg7: memref<1x8xf32, #tpu.memory_space<vmem>>, %arg8: memref<3x24x8xbf16, #tpu.memory_space<vmem>>, %arg9: memref<1x8xf32, #tpu.memory_space<vmem>>, %arg10: memref<4x8xbf16, #tpu.memory_space<vmem>>, %arg11: memref<1x8xf32, #tpu.memory_space<vmem>>, %arg12: memref<1x256x32xf32, #tpu.memory_space<vmem>>, %arg13: memref<18x18x8xbf16, #tpu.memory_space<vmem>>, %arg14: memref<18x18x4xbf16, #tpu.memory_space<vmem>>) attributes {dimension_semantics = [#tpu.dimension_semantics<parallel>], iteration_bounds = array<i64: 2>, scalar_prefetch = 0 : i64, scratch_operands = 2 : i64, tpu.core_type = #tpu.core_type<tc>, window_params = [{transform_indices = @transform_0, window_bounds = array<i64: 1, 16, 16, 4>}, {pipeline_mode = #tpu.pipeline_mode<synchronous>, transform_indices = @transform_1, window_bounds = array<i64: 4, 16>}, {pipeline_mode = #tpu.pipeline_mode<synchronous>, transform_indices = @transform_2, window_bounds = array<i64: 1, 16>}, {pipeline_mode = #tpu.pipeline_mode<synchronous>, transform_indices = @transform_3, window_bounds = array<i64: 3, 12, 8>}, {pipeline_mode = #tpu.pipeline_mode<synchronous>, transform_indices = @transform_4, window_bounds = array<i64: 1, 8>}, {pipeline_mode = #tpu.pipeline_mode<synchronous>, transform_indices = @transform_5, window_bounds = array<i64: 3, 12, 8>}, {pipeline_mode = #tpu.pipeline_mode<synchronous>, transform_indices = @transform_6, window_bounds = array<i64: 1, 8>}, {pipeline_mode = #tpu.pipeline_mode<synchronous>, transform_indices = @transform_7, window_bounds = array<i64: 3, 24, 8>}, {pipeline_mode = #tpu.pipeline_mode<synchronous>, transform_indices = @transform_8, window_bounds = array<i64: 1, 8>}, {pipeline_mode = #tpu.pipeline_mode<synchronous>, transform_indices = @transform_9, window_bounds = array<i64: 4, 8>}, {pipeline_mode = #tpu.pipeline_mode<synchronous>, transform_indices = @transform_10, window_bounds = array<i64: 1, 8>}, {transform_indices = @transform_11, window_bounds = array<i64: 1, 256, 32>}]} {
    %cst = arith.constant 0.000000e+00 : bf16
    %0 = vector.broadcast %cst : bf16 to vector<1x18x8xbf16>
    %c0 = arith.constant 0 : index
    %c0_0 = arith.constant 0 : index
    %c0_1 = arith.constant 0 : index
    %1 = vector.load %arg13[%c0, %c0_0, %c0_1] : memref<18x18x8xbf16, #tpu.memory_space<vmem>>, vector<1x18x8xbf16>
    tpu.vector_store %arg13[%c0, %c0_0, %c0_1], %0 {strides = array<i32>} : memref<18x18x8xbf16, #tpu.memory_space<vmem>>, vector<1x18x8xbf16>,
    %cst_2 = arith.constant 0.000000e+00 : bf16
    %2 = vector.broadcast %cst_2 : bf16 to vector<1x18x8xbf16>
    %c17 = arith.constant 17 : index
    %c0_3 = arith.constant 0 : index
    %c0_4 = arith.constant 0 : index
    %3 = vector.load %arg13[%c17, %c0_3, %c0_4] : memref<18x18x8xbf16, #tpu.memory_space<vmem>>, vector<1x18x8xbf16>
    tpu.vector_store %arg13[%c17, %c0_3, %c0_4], %2 {strides = array<i32>} : memref<18x18x8xbf16, #tpu.memory_space<vmem>>, vector<1x18x8xbf16>,
    %cst_5 = arith.constant 0.000000e+00 : bf16
    %4 = vector.broadcast %cst_5 : bf16 to vector<18x1x8xbf16>
    %c0_6 = arith.constant 0 : index
    %c0_7 = arith.constant 0 : index
    %c0_8 = arith.constant 0 : index
    %5 = vector.load %arg13[%c0_6, %c0_7, %c0_8] : memref<18x18x8xbf16, #tpu.memory_space<vmem>>, vector<18x1x8xbf16>
    tpu.vector_store %arg13[%c0_6, %c0_7, %c0_8], %4 {strides = array<i32>} : memref<18x18x8xbf16, #tpu.memory_space<vmem>>, vector<18x1x8xbf16>,
    %cst_9 = arith.constant 0.000000e+00 : bf16
    %6 = vector.broadcast %cst_9 : bf16 to vector<18x1x8xbf16>
    %c0_10 = arith.constant 0 : index
    %c17_11 = arith.constant 17 : index
    %c0_12 = arith.constant 0 : index
    %7 = vector.load %arg13[%c0_10, %c17_11, %c0_12] : memref<18x18x8xbf16, #tpu.memory_space<vmem>>, vector<18x1x8xbf16>
    tpu.vector_store %arg13[%c0_10, %c17_11, %c0_12], %6 {strides = array<i32>} : memref<18x18x8xbf16, #tpu.memory_space<vmem>>, vector<18x1x8xbf16>,
    %cst_13 = arith.constant -3.389530e+38 : bf16
    %8 = vector.broadcast %cst_13 : bf16 to vector<1x18x4xbf16>
    %c0_14 = arith.constant 0 : index
    %c0_15 = arith.constant 0 : index
    %c0_16 = arith.constant 0 : index
    %9 = vector.load %arg14[%c0_14, %c0_15, %c0_16] : memref<18x18x4xbf16, #tpu.memory_space<vmem>>, vector<1x18x4xbf16>
    tpu.vector_store %arg14[%c0_14, %c0_15, %c0_16], %8 {strides = array<i32>} : memref<18x18x4xbf16, #tpu.memory_space<vmem>>, vector<1x18x4xbf16>,
    %cst_17 = arith.constant -3.389530e+38 : bf16
    %10 = vector.broadcast %cst_17 : bf16 to vector<1x18x4xbf16>
    %c17_18 = arith.constant 17 : index
    %c0_19 = arith.constant 0 : index
    %c0_20 = arith.constant 0 : index
    %11 = vector.load %arg14[%c17_18, %c0_19, %c0_20] : memref<18x18x4xbf16, #tpu.memory_space<vmem>>, vector<1x18x4xbf16>
    tpu.vector_store %arg14[%c17_18, %c0_19, %c0_20], %10 {strides = array<i32>} : memref<18x18x4xbf16, #tpu.memory_space<vmem>>, vector<1x18x4xbf16>,
    %cst_21 = arith.constant -3.389530e+38 : bf16
    %12 = vector.broadcast %cst_21 : bf16 to vector<18x1x4xbf16>
    %c0_22 = arith.constant 0 : index
    %c0_23 = arith.constant 0 : index
    %c0_24 = arith.constant 0 : index
    %13 = vector.load %arg14[%c0_22, %c0_23, %c0_24] : memref<18x18x4xbf16, #tpu.memory_space<vmem>>, vector<18x1x4xbf16>
    tpu.vector_store %arg14[%c0_22, %c0_23, %c0_24], %12 {strides = array<i32>} : memref<18x18x4xbf16, #tpu.memory_space<vmem>>, vector<18x1x4xbf16>,
    %cst_25 = arith.constant -3.389530e+38 : bf16
    %14 = vector.broadcast %cst_25 : bf16 to vector<18x1x4xbf16>
    %c0_26 = arith.constant 0 : index
    %c17_27 = arith.constant 17 : index
    %c0_28 = arith.constant 0 : index
    %15 = vector.load %arg14[%c0_26, %c17_27, %c0_28] : memref<18x18x4xbf16, #tpu.memory_space<vmem>>, vector<18x1x4xbf16>
    tpu.vector_store %arg14[%c0_26, %c17_27, %c0_28], %14 {strides = array<i32>} : memref<18x18x4xbf16, #tpu.memory_space<vmem>>, vector<18x1x4xbf16>,
    %c0_29 = arith.constant 0 : index
    %c0_30 = arith.constant 0 : index
    %c0_31 = arith.constant 0 : index
    %c0_32 = arith.constant 0 : index
    %16 = vector.load %arg1[%c0_29, %c0_30, %c0_31, %c0_32] : memref<1x16x16x4xbf16, #tpu.memory_space<vmem>>, vector<1x16x16x4xbf16>
    %17 = vector.shape_cast %16 : vector<1x16x16x4xbf16> to vector<256x4xbf16>
    %c0_33 = arith.constant 0 : index
    %c0_34 = arith.constant 0 : index
    %18 = vector.load %arg2[%c0_33, %c0_34] : memref<4x16xbf16, #tpu.memory_space<vmem>>, vector<4x16xbf16>
    %cst_35 = arith.constant dense<0.000000e+00> : vector<256x16xf32>
    %19 = tpu.matmul %17, %18, %cst_35 {dimension_numbers = #tpu.dot_dimension_numbers<[1], [0], [0], [1], [0, 0, 1, 1], [], []>} : vector<256x4xbf16>, vector<4x16xbf16>, vector<256x16xf32> -> vector<256x16xf32>
    %c0_36 = arith.constant 0 : index
    %c0_37 = arith.constant 0 : index
    %20 = vector.load %arg3[%c0_36, %c0_37] : memref<1x16xf32, #tpu.memory_space<vmem>>, vector<1x16xf32>
    %21 = vector.broadcast %20 : vector<1x16xf32> to vector<256x16xf32>
    %22 = arith.addf %19, %21 : vector<256x16xf32>
    %cst_38 = arith.constant 0.000000e+00 : f32
    %23 = vector.broadcast %cst_38 : f32 to vector<256x16xf32>
    %24 = arith.maximumf %22, %23 : vector<256x16xf32>
    %25 = vector.extract_strided_slice %24 {offsets = [0, 0], sizes = [256, 8], strides = [1, 1]} : vector<256x16xf32> to vector<256x8xf32>
    %26 = vector.extract_strided_slice %24 {offsets = [0, 8], sizes = [256, 4], strides = [1, 1]} : vector<256x16xf32> to vector<256x4xf32>
    %27 = vector.extract_strided_slice %24 {offsets = [0, 12], sizes = [256, 4], strides = [1, 1]} : vector<256x16xf32> to vector<256x4xf32>
    %28 = vector.shape_cast %16 : vector<1x16x16x4xbf16> to vector<16x16x4xbf16>
    %c1 = arith.constant 1 : index
    %c1_39 = arith.constant 1 : index
    %c0_40 = arith.constant 0 : index
    %29 = vector.load %arg14[%c1, %c1_39, %c0_40] : memref<18x18x4xbf16, #tpu.memory_space<vmem>>, vector<16x16x4xbf16>
    tpu.vector_store %arg14[%c1, %c1_39, %c0_40], %28 {strides = array<i32>} : memref<18x18x4xbf16, #tpu.memory_space<vmem>>, vector<16x16x4xbf16>,
    %c0_41 = arith.constant 0 : index
    %c0_42 = arith.constant 0 : index
    %c0_43 = arith.constant 0 : index
    %30 = vector.load %arg14[%c0_41, %c0_42, %c0_43] : memref<18x18x4xbf16, #tpu.memory_space<vmem>>, vector<18x16x4xbf16>
    %c0_44 = arith.constant 0 : index
    %c1_45 = arith.constant 1 : index
    %c0_46 = arith.constant 0 : index
    %31 = vector.load %arg14[%c0_44, %c1_45, %c0_46] : memref<18x18x4xbf16, #tpu.memory_space<vmem>>, vector<18x16x4xbf16>
    %32 = arith.maximumf %30, %31 : vector<18x16x4xbf16>
    %c0_47 = arith.constant 0 : index
    %c2 = arith.constant 2 : index
    %c0_48 = arith.constant 0 : index
    %33 = vector.load %arg14[%c0_47, %c2, %c0_48] : memref<18x18x4xbf16, #tpu.memory_space<vmem>>, vector<18x16x4xbf16>
    %34 = arith.maximumf %32, %33 : vector<18x16x4xbf16>
    %35 = vector.extract_strided_slice %34 {offsets = [0, 0, 0], sizes = [16, 16, 4], strides = [1, 1, 1]} : vector<18x16x4xbf16> to vector<16x16x4xbf16>
    %36 = vector.extract_strided_slice %34 {offsets = [1, 0, 0], sizes = [16, 16, 4], strides = [1, 1, 1]} : vector<18x16x4xbf16> to vector<16x16x4xbf16>
    %37 = arith.maximumf %35, %36 : vector<16x16x4xbf16>
    %38 = vector.extract_strided_slice %34 {offsets = [2, 0, 0], sizes = [16, 16, 4], strides = [1, 1, 1]} : vector<18x16x4xbf16> to vector<16x16x4xbf16>
    %39 = arith.maximumf %37, %38 : vector<16x16x4xbf16>
    %40 = vector.shape_cast %39 : vector<16x16x4xbf16> to vector<256x4xbf16>
    %c0_49 = arith.constant 0 : index
    %c0_50 = arith.constant 0 : index
    %41 = vector.load %arg10[%c0_49, %c0_50] : memref<4x8xbf16, #tpu.memory_space<vmem>>, vector<4x8xbf16>
    %cst_51 = arith.constant dense<0.000000e+00> : vector<256x8xf32>
    %42 = tpu.matmul %40, %41, %cst_51 {dimension_numbers = #tpu.dot_dimension_numbers<[1], [0], [0], [1], [0, 0, 1, 1], [], []>} : vector<256x4xbf16>, vector<4x8xbf16>, vector<256x8xf32> -> vector<256x8xf32>
    %c0_52 = arith.constant 0 : index
    %c0_53 = arith.constant 0 : index
    %43 = vector.load %arg11[%c0_52, %c0_53] : memref<1x8xf32, #tpu.memory_space<vmem>>, vector<1x8xf32>
    %44 = vector.broadcast %43 : vector<1x8xf32> to vector<256x8xf32>
    %45 = arith.addf %42, %44 : vector<256x8xf32>
    %cst_54 = arith.constant 0.000000e+00 : f32
    %46 = vector.broadcast %cst_54 : f32 to vector<256x8xf32>
    %47 = arith.maximumf %45, %46 : vector<256x8xf32>
    %48 = arith.truncf %26 : vector<256x4xf32> to vector<256x4xbf16>
    %49 = vector.shape_cast %48 : vector<256x4xbf16> to vector<16x16x4xbf16>
    %c1_55 = arith.constant 1 : index
    %c1_56 = arith.constant 1 : index
    %c0_57 = arith.constant 0 : index
    %50 = vector.load %arg13[%c1_55, %c1_56, %c0_57] : memref<18x18x8xbf16, #tpu.memory_space<vmem>>, vector<16x16x4xbf16>
    tpu.vector_store %arg13[%c1_55, %c1_56, %c0_57], %49 {strides = array<i32>} : memref<18x18x8xbf16, #tpu.memory_space<vmem>>, vector<16x16x4xbf16>,
    %c0_58 = arith.constant 0 : index
    %c0_59 = arith.constant 0 : index
    %c0_60 = arith.constant 0 : index
    %51 = vector.load %arg13[%c0_58, %c0_59, %c0_60] : memref<18x18x8xbf16, #tpu.memory_space<vmem>>, vector<18x16x4xbf16>
    %c0_61 = arith.constant 0 : index
    %c1_62 = arith.constant 1 : index
    %c0_63 = arith.constant 0 : index
    %52 = vector.load %arg13[%c0_61, %c1_62, %c0_63] : memref<18x18x8xbf16, #tpu.memory_space<vmem>>, vector<18x16x4xbf16>
    %c0_64 = arith.constant 0 : index
    %c2_65 = arith.constant 2 : index
    %c0_66 = arith.constant 0 : index
    %53 = vector.load %arg13[%c0_64, %c2_65, %c0_66] : memref<18x18x8xbf16, #tpu.memory_space<vmem>>, vector<18x16x4xbf16>
    %54 = tpu.concatenate %51, %52, %53 in 2 : vector<18x16x4xbf16>, vector<18x16x4xbf16>, vector<18x16x4xbf16> -> vector<18x16x12xbf16>
    %cst_67 = arith.constant 0.000000e+00 : f32
    %55 = vector.broadcast %cst_67 : f32 to vector<256x8xf32>
    %56 = vector.extract_strided_slice %54 {offsets = [0, 0, 0], sizes = [16, 16, 12], strides = [1, 1, 1]} : vector<18x16x12xbf16> to vector<16x16x12xbf16>
    %57 = vector.shape_cast %56 : vector<16x16x12xbf16> to vector<256x12xbf16>
    %c0_68 = arith.constant 0 : index
    %c0_69 = arith.constant 0 : index
    %c0_70 = arith.constant 0 : index
    %58 = vector.load %arg4[%c0_68, %c0_69, %c0_70] : memref<3x12x8xbf16, #tpu.memory_space<vmem>>, vector<1x12x8xbf16>
    %59 = vector.shape_cast %58 : vector<1x12x8xbf16> to vector<12x8xbf16>
    %cst_71 = arith.constant dense<0.000000e+00> : vector<256x8xf32>
    %60 = tpu.matmul %57, %59, %cst_71 {dimension_numbers = #tpu.dot_dimension_numbers<[1], [0], [0], [1], [0, 0, 1, 1], [], []>} : vector<256x12xbf16>, vector<12x8xbf16>, vector<256x8xf32> -> vector<256x8xf32>
    %61 = arith.addf %55, %60 : vector<256x8xf32>
    %62 = vector.extract_strided_slice %54 {offsets = [1, 0, 0], sizes = [16, 16, 12], strides = [1, 1, 1]} : vector<18x16x12xbf16> to vector<16x16x12xbf16>
    %63 = vector.shape_cast %62 : vector<16x16x12xbf16> to vector<256x12xbf16>
    %c1_72 = arith.constant 1 : index
    %c0_73 = arith.constant 0 : index
    %c0_74 = arith.constant 0 : index
    %64 = vector.load %arg4[%c1_72, %c0_73, %c0_74] : memref<3x12x8xbf16, #tpu.memory_space<vmem>>, vector<1x12x8xbf16>
    %65 = vector.shape_cast %64 : vector<1x12x8xbf16> to vector<12x8xbf16>
    %cst_75 = arith.constant dense<0.000000e+00> : vector<256x8xf32>
    %66 = tpu.matmul %63, %65, %cst_75 {dimension_numbers = #tpu.dot_dimension_numbers<[1], [0], [0], [1], [0, 0, 1, 1], [], []>} : vector<256x12xbf16>, vector<12x8xbf16>, vector<256x8xf32> -> vector<256x8xf32>
    %67 = arith.addf %61, %66 : vector<256x8xf32>
    %68 = vector.extract_strided_slice %54 {offsets = [2, 0, 0], sizes = [16, 16, 12], strides = [1, 1, 1]} : vector<18x16x12xbf16> to vector<16x16x12xbf16>
    %69 = vector.shape_cast %68 : vector<16x16x12xbf16> to vector<256x12xbf16>
    %c2_76 = arith.constant 2 : index
    %c0_77 = arith.constant 0 : index
    %c0_78 = arith.constant 0 : index
    %70 = vector.load %arg4[%c2_76, %c0_77, %c0_78] : memref<3x12x8xbf16, #tpu.memory_space<vmem>>, vector<1x12x8xbf16>
    %71 = vector.shape_cast %70 : vector<1x12x8xbf16> to vector<12x8xbf16>
    %cst_79 = arith.constant dense<0.000000e+00> : vector<256x8xf32>
    %72 = tpu.matmul %69, %71, %cst_79 {dimension_numbers = #tpu.dot_dimension_numbers<[1], [0], [0], [1], [0, 0, 1, 1], [], []>} : vector<256x12xbf16>, vector<12x8xbf16>, vector<256x8xf32> -> vector<256x8xf32>
    %73 = arith.addf %67, %72 : vector<256x8xf32>
    %c0_80 = arith.constant 0 : index
    %c0_81 = arith.constant 0 : index
    %74 = vector.load %arg5[%c0_80, %c0_81] : memref<1x8xf32, #tpu.memory_space<vmem>>, vector<1x8xf32>
    %75 = vector.broadcast %74 : vector<1x8xf32> to vector<256x8xf32>
    %76 = arith.addf %73, %75 : vector<256x8xf32>
    %cst_82 = arith.constant 0.000000e+00 : f32
    %77 = vector.broadcast %cst_82 : f32 to vector<256x8xf32>
    %78 = arith.maximumf %76, %77 : vector<256x8xf32>
    %79 = arith.truncf %27 : vector<256x4xf32> to vector<256x4xbf16>
    %80 = vector.shape_cast %79 : vector<256x4xbf16> to vector<16x16x4xbf16>
    %c1_83 = arith.constant 1 : index
    %c1_84 = arith.constant 1 : index
    %c0_85 = arith.constant 0 : index
    %81 = vector.load %arg13[%c1_83, %c1_84, %c0_85] : memref<18x18x8xbf16, #tpu.memory_space<vmem>>, vector<16x16x4xbf16>
    tpu.vector_store %arg13[%c1_83, %c1_84, %c0_85], %80 {strides = array<i32>} : memref<18x18x8xbf16, #tpu.memory_space<vmem>>, vector<16x16x4xbf16>,
    %c0_86 = arith.constant 0 : index
    %c0_87 = arith.constant 0 : index
    %c0_88 = arith.constant 0 : index
    %82 = vector.load %arg13[%c0_86, %c0_87, %c0_88] : memref<18x18x8xbf16, #tpu.memory_space<vmem>>, vector<18x16x4xbf16>
    %c0_89 = arith.constant 0 : index
    %c1_90 = arith.constant 1 : index
    %c0_91 = arith.constant 0 : index
    %83 = vector.load %arg13[%c0_89, %c1_90, %c0_91] : memref<18x18x8xbf16, #tpu.memory_space<vmem>>, vector<18x16x4xbf16>
    %c0_92 = arith.constant 0 : index
    %c2_93 = arith.constant 2 : index
    %c0_94 = arith.constant 0 : index
    %84 = vector.load %arg13[%c0_92, %c2_93, %c0_94] : memref<18x18x8xbf16, #tpu.memory_space<vmem>>, vector<18x16x4xbf16>
    %85 = tpu.concatenate %82, %83, %84 in 2 : vector<18x16x4xbf16>, vector<18x16x4xbf16>, vector<18x16x4xbf16> -> vector<18x16x12xbf16>
    %cst_95 = arith.constant 0.000000e+00 : f32
    %86 = vector.broadcast %cst_95 : f32 to vector<256x8xf32>
    %87 = vector.extract_strided_slice %85 {offsets = [0, 0, 0], sizes = [16, 16, 12], strides = [1, 1, 1]} : vector<18x16x12xbf16> to vector<16x16x12xbf16>
    %88 = vector.shape_cast %87 : vector<16x16x12xbf16> to vector<256x12xbf16>
    %c0_96 = arith.constant 0 : index
    %c0_97 = arith.constant 0 : index
    %c0_98 = arith.constant 0 : index
    %89 = vector.load %arg6[%c0_96, %c0_97, %c0_98] : memref<3x12x8xbf16, #tpu.memory_space<vmem>>, vector<1x12x8xbf16>
    %90 = vector.shape_cast %89 : vector<1x12x8xbf16> to vector<12x8xbf16>
    %cst_99 = arith.constant dense<0.000000e+00> : vector<256x8xf32>
    %91 = tpu.matmul %88, %90, %cst_99 {dimension_numbers = #tpu.dot_dimension_numbers<[1], [0], [0], [1], [0, 0, 1, 1], [], []>} : vector<256x12xbf16>, vector<12x8xbf16>, vector<256x8xf32> -> vector<256x8xf32>
    %92 = arith.addf %86, %91 : vector<256x8xf32>
    %93 = vector.extract_strided_slice %85 {offsets = [1, 0, 0], sizes = [16, 16, 12], strides = [1, 1, 1]} : vector<18x16x12xbf16> to vector<16x16x12xbf16>
    %94 = vector.shape_cast %93 : vector<16x16x12xbf16> to vector<256x12xbf16>
    %c1_100 = arith.constant 1 : index
    %c0_101 = arith.constant 0 : index
    %c0_102 = arith.constant 0 : index
    %95 = vector.load %arg6[%c1_100, %c0_101, %c0_102] : memref<3x12x8xbf16, #tpu.memory_space<vmem>>, vector<1x12x8xbf16>
    %96 = vector.shape_cast %95 : vector<1x12x8xbf16> to vector<12x8xbf16>
    %cst_103 = arith.constant dense<0.000000e+00> : vector<256x8xf32>
    %97 = tpu.matmul %94, %96, %cst_103 {dimension_numbers = #tpu.dot_dimension_numbers<[1], [0], [0], [1], [0, 0, 1, 1], [], []>} : vector<256x12xbf16>, vector<12x8xbf16>, vector<256x8xf32> -> vector<256x8xf32>
    %98 = arith.addf %92, %97 : vector<256x8xf32>
    %99 = vector.extract_strided_slice %85 {offsets = [2, 0, 0], sizes = [16, 16, 12], strides = [1, 1, 1]} : vector<18x16x12xbf16> to vector<16x16x12xbf16>
    %100 = vector.shape_cast %99 : vector<16x16x12xbf16> to vector<256x12xbf16>
    %c2_104 = arith.constant 2 : index
    %c0_105 = arith.constant 0 : index
    %c0_106 = arith.constant 0 : index
    %101 = vector.load %arg6[%c2_104, %c0_105, %c0_106] : memref<3x12x8xbf16, #tpu.memory_space<vmem>>, vector<1x12x8xbf16>
    %102 = vector.shape_cast %101 : vector<1x12x8xbf16> to vector<12x8xbf16>
    %cst_107 = arith.constant dense<0.000000e+00> : vector<256x8xf32>
    %103 = tpu.matmul %100, %102, %cst_107 {dimension_numbers = #tpu.dot_dimension_numbers<[1], [0], [0], [1], [0, 0, 1, 1], [], []>} : vector<256x12xbf16>, vector<12x8xbf16>, vector<256x8xf32> -> vector<256x8xf32>
    %104 = arith.addf %98, %103 : vector<256x8xf32>
    %c0_108 = arith.constant 0 : index
    %c0_109 = arith.constant 0 : index
    %105 = vector.load %arg7[%c0_108, %c0_109] : memref<1x8xf32, #tpu.memory_space<vmem>>, vector<1x8xf32>
    %106 = vector.broadcast %105 : vector<1x8xf32> to vector<256x8xf32>
    %107 = arith.addf %104, %106 : vector<256x8xf32>
    %cst_110 = arith.constant 0.000000e+00 : f32
    %108 = vector.broadcast %cst_110 : f32 to vector<256x8xf32>
    %109 = arith.maximumf %107, %108 : vector<256x8xf32>
    %110 = arith.truncf %109 : vector<256x8xf32> to vector<256x8xbf16>
    %111 = vector.shape_cast %110 : vector<256x8xbf16> to vector<16x16x8xbf16>
    %c1_111 = arith.constant 1 : index
    %c1_112 = arith.constant 1 : index
    %c0_113 = arith.constant 0 : index
    %112 = vector.load %arg13[%c1_111, %c1_112, %c0_113] : memref<18x18x8xbf16, #tpu.memory_space<vmem>>, vector<16x16x8xbf16>
    tpu.vector_store %arg13[%c1_111, %c1_112, %c0_113], %111 {strides = array<i32>} : memref<18x18x8xbf16, #tpu.memory_space<vmem>>, vector<16x16x8xbf16>,
    %c0_114 = arith.constant 0 : index
    %c0_115 = arith.constant 0 : index
    %c0_116 = arith.constant 0 : index
    %113 = vector.load %arg13[%c0_114, %c0_115, %c0_116] : memref<18x18x8xbf16, #tpu.memory_space<vmem>>, vector<18x16x8xbf16>
    %c0_117 = arith.constant 0 : index
    %c1_118 = arith.constant 1 : index
    %c0_119 = arith.constant 0 : index
    %114 = vector.load %arg13[%c0_117, %c1_118, %c0_119] : memref<18x18x8xbf16, #tpu.memory_space<vmem>>, vector<18x16x8xbf16>
    %c0_120 = arith.constant 0 : index
    %c2_121 = arith.constant 2 : index
    %c0_122 = arith.constant 0 : index
    %115 = vector.load %arg13[%c0_120, %c2_121, %c0_122] : memref<18x18x8xbf16, #tpu.memory_space<vmem>>, vector<18x16x8xbf16>
    %116 = tpu.concatenate %113, %114, %115 in 2 : vector<18x16x8xbf16>, vector<18x16x8xbf16>, vector<18x16x8xbf16> -> vector<18x16x24xbf16>
    %cst_123 = arith.constant 0.000000e+00 : f32
    %117 = vector.broadcast %cst_123 : f32 to vector<256x8xf32>
    %118 = vector.extract_strided_slice %116 {offsets = [0, 0, 0], sizes = [16, 16, 24], strides = [1, 1, 1]} : vector<18x16x24xbf16> to vector<16x16x24xbf16>
    %119 = vector.shape_cast %118 : vector<16x16x24xbf16> to vector<256x24xbf16>
    %c0_124 = arith.constant 0 : index
    %c0_125 = arith.constant 0 : index
    %c0_126 = arith.constant 0 : index
    %120 = vector.load %arg8[%c0_124, %c0_125, %c0_126] : memref<3x24x8xbf16, #tpu.memory_space<vmem>>, vector<1x24x8xbf16>
    %121 = vector.shape_cast %120 : vector<1x24x8xbf16> to vector<24x8xbf16>
    %cst_127 = arith.constant dense<0.000000e+00> : vector<256x8xf32>
    %122 = tpu.matmul %119, %121, %cst_127 {dimension_numbers = #tpu.dot_dimension_numbers<[1], [0], [0], [1], [0, 0, 1, 1], [], []>} : vector<256x24xbf16>, vector<24x8xbf16>, vector<256x8xf32> -> vector<256x8xf32>
    %123 = arith.addf %117, %122 : vector<256x8xf32>
    %124 = vector.extract_strided_slice %116 {offsets = [1, 0, 0], sizes = [16, 16, 24], strides = [1, 1, 1]} : vector<18x16x24xbf16> to vector<16x16x24xbf16>
    %125 = vector.shape_cast %124 : vector<16x16x24xbf16> to vector<256x24xbf16>
    %c1_128 = arith.constant 1 : index
    %c0_129 = arith.constant 0 : index
    %c0_130 = arith.constant 0 : index
    %126 = vector.load %arg8[%c1_128, %c0_129, %c0_130] : memref<3x24x8xbf16, #tpu.memory_space<vmem>>, vector<1x24x8xbf16>
    %127 = vector.shape_cast %126 : vector<1x24x8xbf16> to vector<24x8xbf16>
    %cst_131 = arith.constant dense<0.000000e+00> : vector<256x8xf32>
    %128 = tpu.matmul %125, %127, %cst_131 {dimension_numbers = #tpu.dot_dimension_numbers<[1], [0], [0], [1], [0, 0, 1, 1], [], []>} : vector<256x24xbf16>, vector<24x8xbf16>, vector<256x8xf32> -> vector<256x8xf32>
    %129 = arith.addf %123, %128 : vector<256x8xf32>
    %130 = vector.extract_strided_slice %116 {offsets = [2, 0, 0], sizes = [16, 16, 24], strides = [1, 1, 1]} : vector<18x16x24xbf16> to vector<16x16x24xbf16>
    %131 = vector.shape_cast %130 : vector<16x16x24xbf16> to vector<256x24xbf16>
    %c2_132 = arith.constant 2 : index
    %c0_133 = arith.constant 0 : index
    %c0_134 = arith.constant 0 : index
    %132 = vector.load %arg8[%c2_132, %c0_133, %c0_134] : memref<3x24x8xbf16, #tpu.memory_space<vmem>>, vector<1x24x8xbf16>
    %133 = vector.shape_cast %132 : vector<1x24x8xbf16> to vector<24x8xbf16>
    %cst_135 = arith.constant dense<0.000000e+00> : vector<256x8xf32>
    %134 = tpu.matmul %131, %133, %cst_135 {dimension_numbers = #tpu.dot_dimension_numbers<[1], [0], [0], [1], [0, 0, 1, 1], [], []>} : vector<256x24xbf16>, vector<24x8xbf16>, vector<256x8xf32> -> vector<256x8xf32>
    %135 = arith.addf %129, %134 : vector<256x8xf32>
    %c0_136 = arith.constant 0 : index
    %c0_137 = arith.constant 0 : index
    %136 = vector.load %arg9[%c0_136, %c0_137] : memref<1x8xf32, #tpu.memory_space<vmem>>, vector<1x8xf32>
    %137 = vector.broadcast %136 : vector<1x8xf32> to vector<256x8xf32>
    %138 = arith.addf %135, %137 : vector<256x8xf32>
    %cst_138 = arith.constant 0.000000e+00 : f32
    %139 = vector.broadcast %cst_138 : f32 to vector<256x8xf32>
    %140 = arith.maximumf %138, %139 : vector<256x8xf32>
    %141 = tpu.concatenate %25, %78, %140, %47 in 1 : vector<256x8xf32>, vector<256x8xf32>, vector<256x8xf32>, vector<256x8xf32> -> vector<256x32xf32>
    %c0_139 = arith.constant 0 : index
    %c0_140 = arith.constant 0 : index
    %c0_141 = arith.constant 0 : index
    %142 = vector.load %arg12[%c0_139, %c0_140, %c0_141] : memref<1x256x32xf32, #tpu.memory_space<vmem>>, vector<1x256x32xf32>
    %143 = vector.shape_cast %142 : vector<1x256x32xf32> to vector<256x32xf32>
    %144 = vector.shape_cast %141 : vector<256x32xf32> to vector<1x256x32xf32>
    tpu.vector_store %arg12[%c0_139, %c0_140, %c0_141], %144 {strides = array<i32>} : memref<1x256x32xf32, #tpu.memory_space<vmem>>, vector<1x256x32xf32>,
    return
  }
  func.func @transform_0(%arg0: i32) -> (i32, i32, i32, i32) {
    %c0_i32 = arith.constant 0 : i32
    %c0_i32_0 = arith.constant 0 : i32
    %c0_i32_1 = arith.constant 0 : i32
    %c0_i32_2 = arith.constant 0 : i32
    return %arg0, %c0_i32, %c0_i32_0, %c0_i32_1 : i32, i32, i32, i32
  }
  func.func @transform_1(%arg0: i32) -> (i32, i32) {
    %c0_i32 = arith.constant 0 : i32
    %c0_i32_0 = arith.constant 0 : i32
    %c0_i32_1 = arith.constant 0 : i32
    return %c0_i32, %c0_i32_0 : i32, i32
  }
  func.func @transform_2(%arg0: i32) -> (i32, i32) {
    %c0_i32 = arith.constant 0 : i32
    %c0_i32_0 = arith.constant 0 : i32
    %c0_i32_1 = arith.constant 0 : i32
    return %c0_i32, %c0_i32_0 : i32, i32
  }
  func.func @transform_3(%arg0: i32) -> (i32, i32, i32) {
    %c0_i32 = arith.constant 0 : i32
    %c0_i32_0 = arith.constant 0 : i32
    %c0_i32_1 = arith.constant 0 : i32
    %c0_i32_2 = arith.constant 0 : i32
    return %c0_i32, %c0_i32_0, %c0_i32_1 : i32, i32, i32
  }
  func.func @transform_4(%arg0: i32) -> (i32, i32) {
    %c0_i32 = arith.constant 0 : i32
    %c0_i32_0 = arith.constant 0 : i32
    %c0_i32_1 = arith.constant 0 : i32
    return %c0_i32, %c0_i32_0 : i32, i32
  }
  func.func @transform_5(%arg0: i32) -> (i32, i32, i32) {
    %c0_i32 = arith.constant 0 : i32
    %c0_i32_0 = arith.constant 0 : i32
    %c0_i32_1 = arith.constant 0 : i32
    %c0_i32_2 = arith.constant 0 : i32
    return %c0_i32, %c0_i32_0, %c0_i32_1 : i32, i32, i32
  }
  func.func @transform_6(%arg0: i32) -> (i32, i32) {
    %c0_i32 = arith.constant 0 : i32
    %c0_i32_0 = arith.constant 0 : i32
    %c0_i32_1 = arith.constant 0 : i32
    return %c0_i32, %c0_i32_0 : i32, i32
  }
  func.func @transform_7(%arg0: i32) -> (i32, i32, i32) {
    %c0_i32 = arith.constant 0 : i32
    %c0_i32_0 = arith.constant 0 : i32
    %c0_i32_1 = arith.constant 0 : i32
    %c0_i32_2 = arith.constant 0 : i32
    return %c0_i32, %c0_i32_0, %c0_i32_1 : i32, i32, i32
  }
  func.func @transform_8(%arg0: i32) -> (i32, i32) {
    %c0_i32 = arith.constant 0 : i32
    %c0_i32_0 = arith.constant 0 : i32
    %c0_i32_1 = arith.constant 0 : i32
    return %c0_i32, %c0_i32_0 : i32, i32
  }
  func.func @transform_9(%arg0: i32) -> (i32, i32) {
    %c0_i32 = arith.constant 0 : i32
    %c0_i32_0 = arith.constant 0 : i32
    %c0_i32_1 = arith.constant 0 : i32
    return %c0_i32, %c0_i32_0 : i32, i32
  }
  func.func @transform_10(%arg0: i32) -> (i32, i32) {
    %c0_i32 = arith.constant 0 : i32
    %c0_i32_0 = arith.constant 0 : i32
    %c0_i32_1 = arith.constant 0 : i32
    return %c0_i32, %c0_i32_0 : i32, i32
  }
  func.func @transform_11(%arg0: i32) -> (i32, i32, i32) {
    %c0_i32 = arith.constant 0 : i32
    %c0_i32_0 = arith.constant 0 : i32
    %c0_i32_1 = arith.constant 0 : i32
    return %arg0, %c0_i32, %c0_i32_0 : i32, i32, i32
  }
}

</mosaic_0001>

<bundles_post_ra>
// kernel: inception_forward.1
= control target key start
LH: loop header
LB: loop body
LE: loop exit
PB: predicated region body
PF: predicated region fallthrough
CT: control target
= control target key end

     0   :  { %s12326_s0 = inlined_call_operand.vmem [shape: bf16[2,16,16,4], index: 0, kind: input, shape index: {}]   ;;  %s12327_s1 = inlined_call_operand.vmem [shape: bf16[4,16], index: 1, kind: input, shape index: {}]   ;;  %s12328_s2 = inlined_call_operand.vmem [shape: f32[1,16], index: 2, kind: input, shape index: {}]   ;;  %s12329_s3 = inlined_call_operand.vmem [shape: bf16[3,12,8], index: 3, kind: input, shape index: {}]   ;;  %s12330_s4 = inlined_call_operand.vmem [shape: f32[1,8], index: 4, kind: input, shape index: {}]   ;;  %s12331_s5 = inlined_call_operand.vmem [shape: bf16[3,12,8], index: 5, kind: input, shape index: {}]   ;;  %s12332_s6 = inlined_call_operand.vmem [shape: f32[1,8], index: 6, kind: input, shape index: {}]   ;;  %s12333_s7 = inlined_call_operand.vmem [shape: bf16[3,24,8], index: 7, kind: input, shape index: {}]   ;;  %s12334_s8 = inlined_call_operand.vmem [shape: f32[1,8], index: 8, kind: input, shape index: {}]   ;;  %s12335_s9 = inlined_call_operand.vmem [shape: bf16[4,8], index: 9, kind: input, shape index: {}]   ;;  %s12336_s10 = inlined_call_operand.vmem [shape: f32[1,8], index: 10, kind: input, shape index: {}]   ;;  %s12337_s11 = inlined_call_operand.hbm [shape: f32[2,256,32], index: 11, kind: output, shape index: {}]  }
   0x1   :  { %12420 = sst [smem:[#allocation128_spill]] %s12326_s0 }
   0x2   :  { %16 = vsyncpa [#allocation5], 0 }
   0x3   :  { %18 = vsyncpa [#allocation5 + $0x1], 0  ;;  %s8576_s17 = smov 0   ;;  %s8578_s18 = smov 0  }
   0x4   :  { %s8580_s19 = smov 0   ;;  %s8582_s20 = smov 0  }
   0x5 LB: > { %s8597_s21 = sadd.s32 4294967295, %s8505_s20   ;;  %s7713_s22 = sadd.s32 4294967294, %s8505_s20   ;;  %s8505_s20 = sphi %s8582_s20, %s12776_s20   ;;  %s8501_s19 = sphi %s8580_s19, %s12775_s19   ;;  %s8497_s18 = sphi %s8578_s18, %s12774_s18   ;;  %s8493_s17 = sphi %s8576_s17, %s12773_s17  }
   0x6   : > { %s8601_s23 = sadd.s32 1, %s8505_s20   ;;  %s267_s24 = sadd.s32 1, %s8501_s19 }
   0x7   : > { %s264_s25 = ssub.s32 %s8505_s20, %s8601_s23  ;;  %p277_p0 = scmp.ne.s32.totalorder %s8501_s19, %s8497_s18 }
   0x8   : > { %p265_p1 = scmp.eq.s32.totalorder %s264_s25, 0  ;;  %p278_p2 = scmp.eq.s32.totalorder %s8597_s21, 1 }
   0x9   : > { %p283_p3 = scmp.ne.s32.totalorder %s8497_s18, %s8493_s17  ;;  %p284_p4 = scmp.eq.s32.totalorder %s7713_s22, 1 }
   0xa   : > { %s8612_s26 = scalar_select %p265_p1, %s8501_s19, %s267_s24  }
   0xb   : > { %p8614_p5 = por %p278_p2, %p277_p0  ;;  %p8618_p6 = por %p284_p4, %p283_p3 }
   0xc   : > { %p7716_p7 = scmp.ge.s32.totalorder %s8505_s20, 1  ;;  %p340_p8 = scmp.lt.s32.totalorder %s8505_s20, 3 }
   0xe   : > { %p341_p9 = pnand %p7716_p7, %p340_p8 }
  0x10   : > { %344 = sbr.rel (%p341_p9) target bundleno = 2115 (0x843), region = 64 }
  0x15   : > { %v661_v0 = vld [vmem:[%s12327_s1] sm:$0x3]  ;;  %vm795_vm0 = vcmask 1041408   ;;  %p380_p10 = scmp.lt.s32.totalorder %s8597_s21, 1  ;;  %s12423_s0 = sld [smem:[#allocation128_spill]]  ;;  %vm746_vm1 = vcmask 31744  }
  0x16   : > { %v797_v1 = vsel %vm795_vm0, %v661_v0, 0  ;;  %v8648_v7 = vld [vmem:[%s12328_s2] ss:$0 sm:$0xff]  ;;  %s8507_s25 = smov 120   ;;  %vm397_vm2 = vsmask.f32 256 }
  0x17   : > { %8299 = vmatpush.bf16.msra.mxu3 %v797_v1  ;;  %s381_s12 = scalar_select %p380_p10, %s8597_s21, 1  ;;  %806 = vmatpush.bf16.msra.mxu0 %v797_v1  ;;  %vm920_vm3 = vsmask.f32 4368  ;;  %vm390_vm5 = vcmask 57344   ;;  %v441_v54 = vld [vmem:[#allocation2 + $0xa8] sm:$0x1] }
  0x18   : > { %vm8670_vm4 = vmor %vm397_vm2, %vm920_vm3  ;;  %v12437_v56 = vmov 0  ;;  %vm453_vm7 = vsmask.f32 7938  ;;  %vm509_vm9 = vcmask 27648   ;;  %vm512_vm11 = vcmask 24576   ;;  %s12419_s29 = smov 8  }
  0x19   : > { %s8015_s13 = sshll.u32 %s381_s12, 7  ;;  %vm8721_vm6 = vmand %vm390_vm5, %vm397_vm2  ;;  %vm1519_vm13 = vcmask 1046528   ;;  %vm3237_vm15 = vsmask.f32 7424  ;;  %s8509_s30 = smov 4   ;;  %vm3671_vm3 = vcmask 64512  }
  0x1a   : > { %v12438_v56 = vsel %vm8721_vm6, 4294967295, %v12437_v56  ;;  %v442_v58 = vsel %vm8721_vm6, 0, %v441_v54  ;;  %vm8781_vm8 = vmand %vm390_vm5, %vm453_vm7  ;;  %s8513_s15 = smov 16   ;;  %s377_s22 = sand.u32 1, %s8497_s18  }
  0x1b   : > { %s8633_s16 = scalar_lea.vmem %s12423_s0, %s8015_s13  ;;  %12439 = vst [vmem:[#allocation18_spill] sm:$0xff] %v12438_v56  ;;  %vm8793_vm10 = vmand %vm509_vm9, %vm453_vm7  ;;  %s7717_s24 = sshll.u32 %s377_s22, 8 }
  0x1c   : > { %v8028_v2 = vld [vmem:[%s8633_s16 + $0x60] sm:$0xff]  ;;  %v8029_v3 = vld [vmem:[%s8633_s16 + $0x68] sm:$0xff]  ;;  %v8030_v4 = vld [vmem:[%s8633_s16 + $0x70] sm:$0xff]  ;;  %443 = vst [vmem:[#allocation2 + $0xa8] sm:$0x1] %v442_v58  ;;  %s12006_s12 = scalar_lea.vmem [#allocation4], %s7717_s24 }
  0x1d   : > { %7796 = vmatmul.msk.bf16.vlgmr.msra.gmra.mxu3 %vm746_vm1, %v8028_v2  ;;  %v8031_v5 = vld [vmem:[%s8633_s16 + $0x78] sm:$0xff]  ;;  %v8016_v6 = vld [vmem:[%s8633_s16] sm:$0xff]  ;;  %v8017_v11 = vld [vmem:[%s8633_s16 + $0x8] sm:$0xff] }
  0x1e   : > { %7784 = vmatmul.msk.bf16.vlgmr.msra.gmra.mxu0 %vm746_vm1, %v8016_v6  ;;  %v8018_v33 = vld [vmem:[%s8633_s16 + $0x10] sm:$0xff]  ;;  %v8019_v53 = vld [vmem:[%s8633_s16 + $0x18] sm:$0xff]  ;;  %vm8823_vm12 = vmand %vm512_vm11, %vm397_vm2  ;;  %vm387_vm2 = vcmask 60416  }
  0x1f   : > { %vm8861_vm14 = vmand %vm512_vm11, %vm453_vm7 }
  0x2d   : > { %7797 = vmatmul.msk.bf16.gmra.mxu3 %vm746_vm1, %v8029_v3 }
  0x2e   : > { %7785 = vmatmul.msk.bf16.gmra.mxu0 %vm746_vm1, %v8017_v11 }
  0x3d   : > { %7798 = vmatmul.msk.bf16.gmra.mxu3 %vm746_vm1, %v8030_v4 }
  0x3e   : > { %7786 = vmatmul.msk.bf16.gmra.mxu0 %vm746_vm1, %v8018_v33 }
  0x4d   : > { %7799 = vmatmul.msk.bf16.gmra.mxu3 %vm746_vm1, %v8031_v5 }
  0x4e   : > { %7787 = vmatmul.msk.bf16.gmra.mxu0 %vm746_vm1, %v8019_v53  ;;  %v3000_v53 = vld [vmem:[#allocation2 + $0xa8] sm:$0xf] }
  0xa0   : > { %v868_v8 = vpop.f32.mrf.mxu3 }
  0xa1   : > { %v869_v9 = vadd.f32 %v8648_v7, %v868_v8 }
  0xa3   : > { %v8651_v10 = vmax.f32 %v869_v9, 0.0 }
  0xa5   : > { %12424 = vst [vmem:[#allocation7_spill] sm:$0xff] %v8651_v10  ;;  %v2484_v12 = vpack.c.bf16 %v8651_v10, %v8651_v10 }
  0xa7   : > { %v2697_v13 = vshrl.u32 %v2484_v12, 16  ;;  %v2700_v17 = vshll.u32 %v2484_v12, 16 }
  0xa8   : > { %v870_v14 = vpop.f32.mrf.mxu3 }
  0xa9   : > { %v871_v15 = vadd.f32 %v8648_v7, %v870_v14  ;;  %v2699_v16 = vrot.slane %v2697_v13, 7 }
  0xab   : > { %v8658_v18 = vmax.f32 %v871_v15, 0.0  ;;  %v8660_v19 = vor.u32 %v2700_v17, %v2699_v16  ;;  %v2703_v27 = vrot.slane %v2699_v16, 4 }
  0xad   : > { %12425 = vst [vmem:[#allocation8_spill] sm:$0xff] %v8658_v18  ;;  %v2485_v20 = vpack.c.bf16 %v8658_v18, %v8658_v18  ;;  %2836 = vrot.lane.b32.xlu0 %v8660_v19, %s8507_s25 }
  0xae   : > { %12426 = vst [vmem:[#allocation9_spill] sm:$0xff] %v8660_v19 }
  0xaf   : > { %v2705_v21 = vshrl.u32 %v2485_v20, 16  ;;  %v2708_v23 = vshll.u32 %v2485_v20, 16 }
  0xb0   : > { %v873_v22 = vpop.f32.mrf.mxu3 }
  0xb1   : > { %v874_v24 = vadd.f32 %v8648_v7, %v873_v22  ;;  %v8667_v25 = vrot.slane %v2705_v21, 7 }
  0xb3   : > { %12427 = vst [vmem:[#allocation10_spill] sm:$0xff] %v8667_v25  ;;  %v8674_v28 = vmax.f32 %v874_v24, 0.0  ;;  %v12341_v29 = vrot.slane %v8667_v25, 4  ;;  %v2710_v30 = vor.u32 %v2708_v23, %v8667_v25  ;;  %v423_v25 = vld [vmem:[#allocation2 + $0x60] sm:$0x1] }
  0xb5   : > { %12430 = vst [vmem:[#allocation11_spill] sm:$0xff] %v8674_v28  ;;  %v2486_v31 = vpack.c.bf16 %v8674_v28, %v8674_v28  ;;  %2840 = vrot.lane.b32.xlu1 %v12341_v29, %s8507_s25  ;;  %v8685_v32 = vsel %vm8670_vm4, %v2703_v27, %v2710_v30 }
  0xb6   : > { %12431 = vst [vmem:[#allocation12_spill] sm:$0xff] %v8685_v32  ;;  %2838 = vrot.lane.b32.xlu0 %v8685_v32, %s8507_s25 }
  0xb7   : > { %v2714_v34 = vshrl.u32 %v2486_v31, 16  ;;  %v2717_v38 = vshll.u32 %v2486_v31, 16 }
  0xb8   : > { %v875_v35 = vpop.f32.mrf.mxu3 }
  0xb9   : > { %v876_v36 = vadd.f32 %v8648_v7, %v875_v35  ;;  %v2716_v37 = vrot.slane %v2714_v34, 7 }
  0xbb   : > { %v8692_v39 = vmax.f32 %v876_v36, 0.0  ;;  %v8694_v40 = vor.u32 %v2717_v38, %v2716_v37  ;;  %v2720_v47 = vrot.slane %v2716_v37, 4  ;;  %v438_v36 = vld [vmem:[#allocation2 + $0x9c] sm:$0x1]  ;;  %v12449_v38 = vmov 0 }
  0xbc   : > { %v439_v37 = vsel %vm8721_vm6, 0, %v438_v36  ;;  %v12450_v38 = vsel %vm8781_vm8, 4294967295, %v12449_v38 }
  0xbd   : > { %12432 = vst [vmem:[#allocation13_spill] sm:$0xff] %v8692_v39  ;;  %v2487_v41 = vpack.c.bf16 %v8692_v39, %v8692_v39  ;;  %2842 = vrot.lane.b32.xlu2 %v8694_v40, %s8507_s25 }
  0xbe   : > { %12433 = vst [vmem:[#allocation14_spill] sm:$0xff] %v8694_v40 }
  0xbf   : > { %v2722_v42 = vshrl.u32 %v2487_v41, 16  ;;  %v2725_v44 = vshll.u32 %v2487_v41, 16  ;;  %440 = vst [vmem:[#allocation2 + $0x9c] sm:$0x1] %v439_v37  ;;  %v494_v41 = vld [vmem:[#allocation2 + $0xa4] sm:$0x1] }
  0xc0   : > { %v878_v43 = vpop.f32.mrf.mxu3  ;;  %12451 = vst [vmem:[#allocation28_spill] sm:$0xff] %v12450_v38 }
  0xc1   : > { %v879_v45 = vadd.f32 %v8648_v7, %v878_v43  ;;  %v8701_v46 = vrot.slane %v2722_v42, 7  ;;  %v495_v42 = vsel %vm8781_vm8, 0, %v494_v41  ;;  %v500_v43 = vld [vmem:[#allocation2 + $0xbc] sm:$0x1] }
  0xc2   : > { %496 = vst [vmem:[#allocation2 + $0xa4] sm:$0x1] %v495_v42 }
  0xc3   : > { %12434 = vst [vmem:[#allocation15_spill] sm:$0xff] %v8701_v46  ;;  %v8703_v48 = vmax.f32 %v879_v45, 0.0  ;;  %v12340_v49 = vrot.slane %v8701_v46, 4  ;;  %v2727_v50 = vor.u32 %v2725_v44, %v8701_v46  ;;  %v501_v44 = vsel %vm8781_vm8, 0, %v500_v43  ;;  %v497_v45 = vld [vmem:[#allocation2 + $0xb0] sm:$0x1] }
  0xc4   : > { %502 = vst [vmem:[#allocation2 + $0xbc] sm:$0x1] %v501_v44 }
  0xc5   : > { %12435 = vst [vmem:[#allocation16_spill] sm:$0xff] %v8703_v48  ;;  %v2488_v51 = vpack.c.bf16 %v8703_v48, %v8703_v48  ;;  %2846 = vrot.lane.b32.xlu1 %v12340_v49, %s8507_s25  ;;  %v8714_v52 = vsel %vm8670_vm4, %v2720_v47, %v2727_v50  ;;  %v498_v47 = vsel %vm8781_vm8, 0, %v497_v45  ;;  %v808_v50 = vpop.f32.mrf.mxu0  ;;  %v447_v45 = vld [vmem:[#allocation2 + $0xc0] sm:$0x1] }
  0xc6   : > { %12436 = vst [vmem:[#allocation17_spill] sm:$0xff] %v8714_v52  ;;  %2844 = vrot.lane.b32.xlu2 %v8714_v52, %s8507_s25 }
  0xc7   : > { %v2731_v55 = vshrl.u32 %v2488_v51, 16  ;;  %v2734_v60 = vshll.u32 %v2488_v51, 16  ;;  %499 = vst [vmem:[#allocation2 + $0xb0] sm:$0x1] %v498_v47 }
  0xc8   : > { %v880_v57 = vpop.f32.mrf.mxu3 }
  0xc9   : > { %v2733_v59 = vrot.slane %v2731_v55, 7  ;;  %v881_v61 = vadd.f32 %v8648_v7, %v880_v57  ;;  %v444_v55 = vld [vmem:[#allocation2 + $0xb4] sm:$0x1] }
  0xca   : > { %v445_v58 = vsel %vm8721_vm6, 0, %v444_v55 }
  0xcb   : > { %v8729_v62 = vmax.f32 %v881_v61, 0.0  ;;  %v8731_v63 = vor.u32 %v2734_v60, %v2733_v59  ;;  %v2737_v9 = vrot.slane %v2733_v59, 4  ;;  %446 = vst [vmem:[#allocation2 + $0xb4] sm:$0x1] %v445_v58  ;;  %v809_v59 = vadd.f32 %v8648_v7, %v808_v50  ;;  %v3011_v41 = vld [vmem:[#allocation2 + $0xbc] sm:$0x1] }
  0xcd   : > { %12440 = vst [vmem:[#allocation19_spill] sm:$0xff] %v8729_v62  ;;  %v2489_v0 = vpack.c.bf16 %v8729_v62, %v8729_v62  ;;  %2848 = vrot.lane.b32.xlu0 %v8731_v63, %s8507_s25  ;;  %v810_v60 = vpop.f32.mrf.mxu0 }
  0xce   : > { %12441 = vst [vmem:[#allocation20_spill] sm:$0xff] %v8731_v63  ;;  %v811_v61 = vadd.f32 %v8648_v7, %v810_v60 }
  0xcf   : > { %v2739_v1 = vshrl.u32 %v2489_v0, 16  ;;  %v2742_v3 = vshll.u32 %v2489_v0, 16  ;;  %v2993_v0 = vld [vmem:[#allocation2 + $0x9c] sm:$0xf] }
  0xd0   : > { %v883_v2 = vpop.f32.mrf.mxu3 }
  0xd1   : > { %v884_v4 = vadd.f32 %v8648_v7, %v883_v2  ;;  %v8738_v5 = vrot.slane %v2739_v1, 7  ;;  %v8803_v2 = vmax.f32 %v809_v59, 0.0  ;;  %v556_v59 = vld [vmem:[#allocation3 + $0x90] sm:$0x1] }
  0xd3   : > { %12442 = vst [vmem:[#allocation21_spill] sm:$0xff] %v8738_v5  ;;  %v8740_v6 = vmax.f32 %v884_v4, 0.0  ;;  %v12339_v8 = vrot.slane %v8738_v5, 4  ;;  %v2744_v11 = vor.u32 %v2742_v3, %v8738_v5 }
  0xd4   : > { %12454 = vst [vmem:[#allocation29_spill] sm:$0xff] %v8803_v2 }
  0xd5   : > { %12443 = vst [vmem:[#allocation22_spill] sm:$0xff] %v8740_v6  ;;  %v2490_v12 = vpack.c.bf16 %v8740_v6, %v8740_v6  ;;  %2852 = vrot.lane.b32.xlu2 %v12339_v8, %s8507_s25  ;;  %v8751_v13 = vsel %vm8670_vm4, %v2737_v9, %v2744_v11  ;;  %v8807_v9 = vmax.f32 %v811_v61, 0.0  ;;  %v8020_v11 = vld [vmem:[%s8633_s16 + $0x20] sm:$0xff] }
  0xd6   : > { %12444 = vst [vmem:[#allocation23_spill] sm:$0xff] %v8751_v13  ;;  %2850 = vrot.lane.b32.xlu1 %v8751_v13, %s8507_s25  ;;  %7788 = vmatmul.msk.bf16.gmra.mxu0 %vm746_vm1, %v8020_v11  ;;  %v562_v11 = vld [vmem:[#allocation3 + $0xa8] sm:$0x1] }
  0xd7   : > { %v2748_v14 = vshrl.u32 %v2490_v12, 16  ;;  %v2751_v15 = vshll.u32 %v2490_v12, 16  ;;  %12455 = vst [vmem:[#allocation30_spill] sm:$0xff] %v8807_v9  ;;  %v8813_v12 = vpack.c.bf16 %v8803_v2, %v8803_v2 }
  0xd8   : > { %v885_v16 = vpop.f32.mrf.mxu3 }
  0xd9   : > { %v2750_v17 = vrot.slane %v2748_v14, 7  ;;  %v886_v20 = vadd.f32 %v8648_v7, %v885_v16  ;;  %v813_v14 = vpop.f32.mrf.mxu0  ;;  %v2496_v43 = vshll.u32 %v8813_v12, 16 }
  0xda   : > { %v814_v16 = vadd.f32 %v8648_v7, %v813_v14 }
  0xdb   : > { %v8756_v21 = vmax.f32 %v886_v20, 0.0  ;;  %v8758_v22 = vor.u32 %v2751_v15, %v2750_v17  ;;  %v2754_v33 = vrot.slane %v2750_v17, 4  ;;  %v8817_v15 = vpack.c.bf16 %v8807_v9, %v8807_v9  ;;  %v2997_v20 = vld [vmem:[#allocation2 + $0xa4] sm:$0x1] }
  0xdd   : > { %12445 = vst [vmem:[#allocation24_spill] sm:$0xff] %v8756_v21  ;;  %v2491_v23 = vpack.c.bf16 %v8756_v21, %v8756_v21  ;;  %v2501_v36 = vshrl.u32 %v8817_v15, 16  ;;  %v2504_v50 = vshll.u32 %v8817_v15, 16  ;;  %v503_v15 = vld [vmem:[#allocation2 + $0xc8] sm:$0x1] }
  0xde   : > { %12446 = vst [vmem:[#allocation25_spill] sm:$0xff] %v8758_v22  ;;  %2854 = vrot.lane.b32.xlu1 %v8758_v22, %s8507_s25 }
  0xdf   : > { %v2756_v24 = vshrl.u32 %v2491_v23, 16  ;;  %v2759_v27 = vshll.u32 %v2491_v23, 16  ;;  %v8827_v23 = vmax.f32 %v814_v16, 0.0  ;;  %v8845_v55 = vrot.slane %v2501_v36, 7 }
  0xe0   : > { %v563_v36 = vsel %vm8823_vm12, 4286578559, %v562_v11 }
  0xe1   : > { %v8764_v30 = vrot.slane %v2756_v24, 7  ;;  %12458 = vst [vmem:[#allocation31_spill] sm:$0xff] %v8827_v23  ;;  %v8836_v37 = vpack.c.bf16 %v8827_v23, %v8827_v23  ;;  %v815_v44 = vpop.f32.mrf.mxu0 }
  0xe2   : > { %564 = vst [vmem:[#allocation3 + $0xa8] sm:$0x1] %v563_v36 }
  0xe3   : > { %12447 = vst [vmem:[#allocation26_spill] sm:$0xff] %v8764_v30  ;;  %v12338_v31 = vrot.slane %v8764_v30, 4  ;;  %v2761_v34 = vor.u32 %v2759_v27, %v8764_v30  ;;  %v2493_v27 = vshrl.u32 %v8813_v12, 16  ;;  %v2510_v60 = vshrl.u32 %v8836_v37, 16 }
  0xe5   : > { %2858 = vrot.lane.b32.xlu0 %v12338_v31, %s8507_s25  ;;  %v8773_v35 = vsel %vm8670_vm4, %v2754_v33, %v2761_v34  ;;  %v8838_v42 = vrot.slane %v2493_v27, 7 }
  0xe6   : > { %12448 = vst [vmem:[#allocation27_spill] sm:$0xff] %v8773_v35  ;;  %2856 = vrot.lane.b32.xlu2 %v8773_v35, %s8507_s25 }
 0x117   : > { %v2843_v54 = vpop.permute.xlu2 %2842 }
 0x118   : > { %v3001_v57 = vsel %vm8793_vm10, %v2843_v54, %v3000_v53  ;;  %v816_v53 = vadd.f32 %v8648_v7, %v815_v44  ;;  %v448_v54 = vsel %vm8721_vm6, 0, %v447_v45  ;;  %v8021_v45 = vld [vmem:[%s8633_s16 + $0x28] sm:$0xff] }
 0x119   : > { %3002 = vst [vmem:[#allocation2 + $0xa8] sm:$0xf] %v3001_v57  ;;  %7789 = vmatmul.msk.bf16.gmra.mxu0 %vm746_vm1, %v8021_v45 }
 0x11a   : > { %449 = vst [vmem:[#allocation2 + $0xc0] sm:$0x1] %v448_v54  ;;  %v8851_v61 = vmax.f32 %v816_v53, 0.0  ;;  %v3004_v53 = vld [vmem:[#allocation2 + $0xb0] sm:$0x1] }
 0x11c   : > { %12459 = vst [vmem:[#allocation32_spill] sm:$0xff] %v8851_v61 }
 0x11f   : > { %v2837_v1 = vpop.permute.xlu0 %2836 }
 0x120   : > { %v2994_v3 = vsel %vm8793_vm10, %v2837_v1, %v2993_v0  ;;  %v2845_v4 = vpop.permute.xlu2 %2844  ;;  %v557_v0 = vsel %vm8823_vm12, 4286578559, %v556_v59  ;;  %v559_v1 = vld [vmem:[#allocation3 + $0x9c] sm:$0x1]  ;;  %v611_v59 = vld [vmem:[#allocation3 + $0x98] sm:$0x1] }
 0x121   : > { %2995 = vst [vmem:[#allocation2 + $0x9c] sm:$0xf] %v2994_v3 }
 0x122   : > { %3003 = vst.msk [vmem:[#allocation2 + $0xac] sm:$0xf] %vm509_vm9, %v2845_v4  ;;  %v560_v4 = vsel %vm8823_vm12, 4286578559, %v559_v1 }
 0x123   : > { %558 = vst [vmem:[#allocation3 + $0x90] sm:$0x1] %v557_v0  ;;  %v614_v0 = vld [vmem:[#allocation3 + $0xa4] sm:$0x1] }
 0x124   : > { %561 = vst [vmem:[#allocation3 + $0x9c] sm:$0x1] %v560_v4  ;;  %v8224_v4 = vld [vmem:[#allocation2 + $0xa8] sm:$0xe]  ;;  %v615_v11 = vsel %vm8861_vm14, 4286578559, %v614_v0 }
 0x125   : > { %616 = vst [vmem:[#allocation3 + $0xa4] sm:$0x1] %v615_v11 }
 0x127   : > { %v2841_v24 = vpop.permute.xlu1 %2840 }
 0x128   : > { %v2998_v33 = vsel %vm8823_vm12, %v2841_v24, %v2997_v20  ;;  %v2839_v34 = vpop.permute.xlu0 %2838  ;;  %v8465_v47 = vld [vmem:[#allocation2 + $0x9c] sm:$0xe] }
 0x129   : > { %2999 = vst [vmem:[#allocation2 + $0xa4] sm:$0x1] %v2998_v33  ;;  %v8847_v57 = vld [vmem:[#allocation2 + $0xa8] sm:$0xff]   ;;  %v8869_v33 = vpack.c.bf16 %v8851_v61, %v8851_v61 }
 0x12a   : > { %2996 = vst.msk [vmem:[#allocation2 + $0xa0] sm:$0xf] %vm509_vm9, %v2839_v34  ;;  %v504_v34 = vsel %vm8781_vm8, 0, %v503_v15  ;;  %v3409_v44 = vshll.u32 %v8847_v57, 16  ;;  %v8884_v15 = vor.u32 %v2496_v43, %v8838_v42 }
 0x12b   : > { %505 = vst [vmem:[#allocation2 + $0xc8] sm:$0x1] %v504_v34  ;;  %v8888_v34 = vor.u32 %v2504_v50, %v8845_v55  ;;  %v8896_v50 = vld [vmem:[%s8633_s16 + $0x58] sm:$0xf]  ;;  %v1329_v9 = vld [vmem:[#allocation3 + $0x9c] sm:$0xf] }
 0x12c   : > { %v3411_v49 = vrot.slane %v3409_v44, 1  ;;  %v8904_v44 = vrot.slane %v2510_v60, 7 }
 0x12f   : > { %v2853_v3 = vpop.permute.xlu2 %2852 }
 0x130   : > { %v3012_v12 = vsel %vm8823_vm12, %v2853_v3, %v3011_v41  ;;  %v3070_v14 = vld [vmem:[#allocation2 + $0xa4] sm:$0x1]  ;;  %v8223_v3 = vld [vmem:[#allocation2 + $0xa8] sm:$0xf0] }
 0x131   : > { %3013 = vst [vmem:[#allocation2 + $0xbc] sm:$0x1] %v3012_v12  ;;  %v8865_v20 = vld [vmem:[#allocation2 + $0x9c] sm:$0xff]   ;;  %v3214_v27 = vunpack.c.l.b16 %v3070_v14  ;;  %v612_v12 = vsel %vm8861_vm14, 4286578559, %v611_v59  ;;  %v8225_v8 = vor.u32 %v8224_v4, %v8223_v3  ;;  %v3407_v3 = vshrl.u32 %v8847_v57, 16 }
 0x132   : > { %v8464_v24 = vld [vmem:[#allocation2 + $0x9c] sm:$0xf0]  ;;  %613 = vst [vmem:[#allocation3 + $0x98] sm:$0x1] %v612_v12  ;;  %v3397_v45 = vshll.u32 %v8865_v20, 16  ;;  %v3395_v43 = vshrl.u32 %v8865_v20, 16 }
 0x133   : > { %v3232_v54 = vpack.c.b16 %v3214_v27, %v3214_v27  ;;  %v8466_v1 = vor.u32 %v8465_v47, %v8464_v24  ;;  %v2518_v27 = vshrl.u32 %v8869_v33, 16  ;;  %v818_v47 = vpop.f32.mrf.mxu0  ;;  %v617_v24 = vld [vmem:[#allocation3 + $0xb0] sm:$0x1]  ;;  %v1110_v57 = vshrl.u32 %v8896_v50, 16 }
 0x134   : > { %v819_v31 = vadd.f32 %v8648_v7, %v818_v47  ;;  %v618_v29 = vsel %vm8861_vm14, 4286578559, %v617_v24 }
 0x135   : > { %v3585_v14 = vrot.slane %v3232_v54, 1  ;;  %v3584_v36 = vrot.slane %v8466_v1, 1  ;;  %v3402_v59 = vshll.u32 %v3232_v54, 16  ;;  %v3399_v54 = vrot.slane %v3397_v45, 1  ;;  %619 = vst [vmem:[#allocation3 + $0xb0] sm:$0x1] %v618_v29 }
 0x136   : > { %v8901_v41 = vmax.f32 %v819_v31, 0.0  ;;  %v8912_v24 = vrot.slane %v2518_v27, 7  ;;  %v652_v29 = vld [vmem:[%s8633_s16 + $0x5c] sm:$0xf]  ;;  %v8917_v45 = vor.u32 %v3411_v49, %v3407_v3  ;;  %v655_v27 = vld [vmem:[%s8633_s16 + $0x68] sm:$0xf] }
 0x137   : > { %v2847_v0 = vpop.permute.xlu1 %2846  ;;  %v3586_v1 = vsel %vm1519_vm13, %v3584_v36, %v3585_v14  ;;  %v3400_v47 = vor.u32 %v3399_v54, %v3395_v43  ;;  %v3404_v14 = vrot.slane %v3402_v59, 1  ;;  %v8915_v36 = vrot.slane %v8225_v8, 1  ;;  %v3007_v8 = vld [vmem:[#allocation2 + $0xb4] sm:$0xf] }
 0x138   : > { %v3005_v12 = vsel %vm8823_vm12, %v2847_v0, %v3004_v53  ;;  %12462 = vst [vmem:[#allocation33_spill] sm:$0xff] %v8901_v41  ;;  %v3072_v11 = vld [vmem:[#allocation2 + $0xbc] sm:$0x1]  ;;  %3625 = vrot.lane.b32.xlu1 %v3586_v1, %s12419_s29  ;;  %v8910_v31 = vpack.c.bf16 %v8901_v41, %v8901_v41  ;;  %v653_v0 = vld [vmem:[%s8633_s16 + $0x60] sm:$0xf]  ;;  %v1118_v1 = vshrl.u32 %v652_v29, 16 }
 0x139   : > { %3006 = vst [vmem:[#allocation2 + $0xb0] sm:$0x1] %v3005_v12  ;;  %v3216_v53 = vunpack.c.l.b16 %v3072_v11  ;;  %v3405_v43 = vsel %vm3237_vm15, %v3400_v47, %v3404_v14  ;;  %v1112_v54 = vrot.slane %v1110_v57, 7  ;;  %v1113_v11 = vshll.u32 %v8896_v50, 16  ;;  %v654_v14 = vld [vmem:[%s8633_s16 + $0x64] sm:$0xf] }
 0x13a   : > { %3480 = vrot.lane.b32.xlu0 %v3405_v43, %s8509_s30  ;;  %v1121_v3 = vshll.u32 %v652_v29, 16  ;;  %v1120_v12 = vrot.slane %v1118_v1, 7  ;;  %v1127_v4 = vshrl.u32 %v653_v0, 16  ;;  %v1130_v48 = vshll.u32 %v653_v0, 16 }
 0x13b   : > { %v8919_v60 = vpack.c.b16 %v3216_v53, %v3216_v53  ;;  %v820_v49 = vpop.f32.mrf.mxu0  ;;  %v2527_v53 = vshrl.u32 %v8910_v31, 16  ;;  %v1116_v57 = vrot.slane %v1112_v54, 4  ;;  %v1135_v62 = vshrl.u32 %v654_v14, 16 }
 0x13c   : > { %v821_v47 = vadd.f32 %v8648_v7, %v820_v49  ;;  %v656_v49 = vld [vmem:[%s8633_s16 + $0x6c] sm:$0xf]  ;;  %v1123_v1 = vor.u32 %v1121_v3, %v1120_v12  ;;  %v1129_v43 = vrot.slane %v1127_v4, 7  ;;  %v1138_v28 = vshll.u32 %v654_v14, 16 }
 0x13d   : > { %v8944_v18 = vrot.slane %v2527_v53, 7  ;;  %v1147_v39 = vshll.u32 %v655_v27, 16  ;;  %v1115_v0 = vor.u32 %v1113_v11, %v1112_v54  ;;  %v1137_v10 = vrot.slane %v1135_v62, 7  ;;  %v1326_v54 = vld [vmem:[#allocation3 + $0x98] sm:$0x1] }
 0x13e   : > { %v8938_v6 = vmax.f32 %v821_v47, 0.0  ;;  %v1144_v47 = vshrl.u32 %v655_v27, 16  ;;  %v1125_v4 = vrot.slane %v1120_v12, 4  ;;  %v1152_v14 = vshrl.u32 %v656_v49, 16 }
 0x13f   : > { %v2849_v58 = vpop.permute.xlu0 %2848  ;;  %v1140_v27 = vor.u32 %v1138_v28, %v1137_v10  ;;  %v1142_v11 = vrot.slane %v1137_v10, 4  ;;  %v12474_v30 = vrot.slane %v8919_v60, 1 }
 0x140   : > { %v3008_v50 = vsel %vm8793_vm10, %v2849_v58, %v3007_v8  ;;  %v2857_v29 = vpop.permute.xlu2 %2856  ;;  %v3071_v21 = vld [vmem:[#allocation2 + $0xb0] sm:$0x1]  ;;  %12463 = vst [vmem:[#allocation34_spill] sm:$0xff] %v8938_v6  ;;  %2764 = vrot.lane.b32.xlu1 %v8884_v15, %s8507_s25  ;;  %v1124_v8 = vsel %vm8670_vm4, %v1116_v57, %v1123_v1  ;;  %v1146_v53 = vrot.slane %v1144_v47, 7  ;;  %v1132_v1 = vor.u32 %v1130_v48, %v1129_v43 }
 0x141   : > { %3009 = vst [vmem:[#allocation2 + $0xb4] sm:$0xf] %v3008_v50  ;;  %v3215_v59 = vunpack.c.l.b16 %v3071_v21  ;;  %v8022_v58 = vld [vmem:[%s8633_s16 + $0x30] sm:$0xff]  ;;  %v1133_v50 = vrot.slane %v1129_v43, 4  ;;  %v8952_v21 = vpack.c.bf16 %v8938_v6, %v8938_v6  ;;  %v1154_v47 = vrot.slane %v1152_v14, 7 }
 0x142   : > { %3017 = vst.msk [vmem:[#allocation2 + $0xc4] sm:$0xf] %vm509_vm9, %v2857_v29  ;;  %7790 = vmatmul.msk.bf16.gmra.mxu0 %vm746_vm1, %v8022_v58  ;;  %v1150_v41 = vrot.slane %v1146_v53, 4  ;;  %v1155_v48 = vshll.u32 %v656_v49, 16  ;;  %v1330_v49 = vsel %vm8793_vm10, %v1132_v1, %v1329_v9  ;;  %v8984_v14 = vld [vmem:[#allocation3 + $0xb4] sm:$0x1] }
 0x143   : > { %v3233_v3 = vpack.c.b16 %v3215_v59, %v3215_v59  ;;  %1325 = vst.msk [vmem:[#allocation3 + $0x94] sm:$0xf] %vm509_vm9, %v1124_v8  ;;  %v823_v57 = vpop.f32.mrf.mxu0  ;;  %v1322_v59 = vld [vmem:[#allocation3 + $0x90] sm:$0xf]  ;;  %v1149_v8 = vor.u32 %v1147_v39, %v1146_v53  ;;  %v1141_v12 = vsel %vm8670_vm4, %v1133_v50, %v1140_v27  ;;  %v1327_v39 = vsel %vm8823_vm12, %v1125_v4, %v1326_v54  ;;  %v8993_v1 = vld [vmem:[%s8633_s16 + $0x70] sm:$0xf] }
 0x144   : > { %v824_v62 = vadd.f32 %v8648_v7, %v823_v57  ;;  %v1323_v10 = vsel %vm8793_vm10, %v1115_v0, %v1322_v59  ;;  %1332 = vst.msk [vmem:[#allocation3 + $0xa0] sm:$0xf] %vm509_vm9, %v1141_v12  ;;  %v1159_v43 = vrot.slane %v1154_v47, 4  ;;  %v1340_v50 = vld [vmem:[#allocation3 + $0xb0] sm:$0x1]  ;;  %v12465_v0 = vshll.u32 %v8919_v60, 16 }
 0x145   : > { %v3588_v29 = vrot.slane %v3233_v3, 1  ;;  %v3414_v23 = vshll.u32 %v3233_v3, 16  ;;  %v1333_v3 = vld [vmem:[#allocation3 + $0xa4] sm:$0x1]  ;;  %v1157_v53 = vor.u32 %v1155_v48, %v1154_v47  ;;  %1324 = vst [vmem:[#allocation3 + $0x90] sm:$0xf] %v1323_v10 }
 0x146   : > { %v8961_v28 = vmax.f32 %v824_v62, 0.0  ;;  %v8977_v4 = vrot.slane %v12465_v0, 1  ;;  %1328 = vst [vmem:[#allocation3 + $0x98] sm:$0x1] %v1327_v39  ;;  %v1334_v9 = vsel %vm8823_vm12, %v1142_v11, %v1333_v3  ;;  %v8990_v57 = vld [vmem:[#allocation3 + $0xbc] sm:$0x1]  ;;  %v1341_v48 = vsel %vm8823_vm12, %v1159_v43, %v1340_v50 }
 0x147   : > { %v3589_v6 = vsel %vm1519_vm13, %v8915_v36, %v3588_v29  ;;  %v3416_v58 = vrot.slane %v3414_v23, 1  ;;  %v1336_v23 = vld [vmem:[#allocation3 + $0xa8] sm:$0xf]  ;;  %v12466_v59 = vshll.u32 %v8869_v33, 16  ;;  %1331 = vst [vmem:[#allocation3 + $0x9c] sm:$0xf] %v1330_v49 }
 0x148   : > { %v2851_v61 = vpop.permute.xlu1 %2850  ;;  %3627 = vrot.lane.b32.xlu0 %v3589_v6, %s12419_s29  ;;  %12464 = vst [vmem:[#allocation35_spill] sm:$0xff] %v8961_v28  ;;  %v2535_v6 = vshrl.u32 %v8952_v21, 16  ;;  %v1337_v29 = vsel %vm8793_vm10, %v1149_v8, %v1336_v23  ;;  %v3014_v27 = vld [vmem:[#allocation2 + $0xc0] sm:$0xf]  ;;  %v9004_v11 = vld [vmem:[%s8633_s16 + $0x74] sm:$0xf] }
 0x149   : > { %3010 = vst.msk [vmem:[#allocation2 + $0xb8] sm:$0xf] %vm509_vm9, %v2851_v61  ;;  %v3417_v36 = vsel %vm3237_vm15, %v8917_v45, %v3416_v58  ;;  %v8982_v45 = vpack.c.bf16 %v8961_v28, %v8961_v28  ;;  %v2523_v54 = vor.u32 %v12466_v59, %v8912_v24  ;;  %v2203_v62 = vld [vmem:[%s12335_s9] sm:$0x3]  ;;  %v1158_v58 = vsel %vm8670_vm4, %v1150_v41, %v1157_v53  ;;  %v8363_v47 = vld [vmem:[#allocation2 + $0xb4] sm:$0xe] }
 0x14a   : > { %3482 = vrot.lane.b32.xlu2 %v3417_v36, %s8509_s30  ;;  %v12467_v8 = vrot.slane %v8838_v42, 4  ;;  %v9013_v33 = vrot.slane %v2535_v6, 7  ;;  %v2337_v3 = vsel %vm795_vm0, %v2203_v62, 0  ;;  %1335 = vst [vmem:[#allocation3 + $0xa4] sm:$0x1] %v1334_v9  ;;  %v1161_v42 = vshrl.u32 %v8993_v1, 16 }
 0x14b   : > { %8300 = vmatpush.bf16.msrb.mxu3 %v2337_v3  ;;  %1338 = vst [vmem:[#allocation3 + $0xa8] sm:$0xf] %v1337_v29  ;;  %2346 = vmatpush.bf16.msra.mxu1 %v2337_v3  ;;  %v825_v23 = vpop.f32.mrf.mxu0  ;;  %v1169_v6 = vshrl.u32 %v9004_v11, 16  ;;  %v12469_v49 = vrot.slane %v8845_v55, 4  ;;  %v8023_v41 = vld [vmem:[%s8633_s16 + $0x38] sm:$0xff]  ;;  %vm1808_vm0 = vcmask 1045504  }
 0x14c   : > { %v9011_v12 = vsel %vm8670_vm4, %v12467_v8, %v8888_v34  ;;  %v12468_v34 = vshll.u32 %v8836_v37, 16  ;;  %1339 = vst.msk [vmem:[#allocation3 + $0xac] sm:$0xf] %vm509_vm9, %v1158_v58  ;;  %v12470_v37 = vrot.slane %v8904_v44, 4  ;;  %v8191_v62 = vld [vmem:[#allocation3 + $0x90] sm:$0xff]   ;;  %v826_v58 = vadd.f32 %v8648_v7, %v825_v23 }
 0x14d   : > { %1342 = vst [vmem:[#allocation3 + $0xb0] sm:$0x1] %v1341_v48  ;;  %v12355_v8 = vmov 0   ;;  %v9055_v3 = vld [vmem:[#allocation3 + $0x98] sm:$0x1]  ;;  %v9057_v48 = vrot.slane %v1161_v42, 7 }
 0x14e   : > { %v9024_v39 = vor.u32 %v12468_v34, %v8904_v44  ;;  %v9040_v53 = vsel %vm8670_vm4, %v12470_v37, %v2523_v54  ;;  %388 = vst.msk [vmem:[#allocation2] sm:$0xf] %vm387_vm2, %v12355_v8  ;;  %v8068_v44 = vunpack.c.l.bf16 %v8191_v62  ;;  %v9053_v54 = vunpack.c.h.bf16 %v8191_v62  ;;  %v3018_v34 = vld [vmem:[#allocation2 + $0xc8] sm:$0x1]  ;;  %v1383_v23 = vld [vmem:[#allocation3 + $0x9c] sm:$0xff]  }
 0x14f   : > { %389 = vst.msk [vmem:[#allocation2 + $0x4] sm:$0xf] %vm387_vm2, %v12355_v8  ;;  %v9067_v62 = vunpack.c.h.bf16 %v1383_v23  ;;  %v1730_v29 = vld [vmem:[#allocation3 + $0x90] sm:$0xe] }
 0x150   : > { %v2855_v43 = vpop.permute.xlu1 %2854  ;;  %2768 = vrot.lane.b32.xlu0 %v12469_v49, %s8507_s25  ;;  %v9034_v50 = vld [vmem:[#allocation2 + $0xb4] sm:$0xff]   ;;  %v9063_v49 = vrot.slane %v1169_v6, 7  ;;  %v1580_v10 = vrot.slane %v8068_v44, 1  ;;  %v1581_v42 = vrot.slane %v9053_v54, 1  ;;  %v12471_v6 = vshll.u32 %v8910_v31, 16 }
 0x151   : > { %v8362_v0 = vld [vmem:[#allocation2 + $0xb4] sm:$0xf0]  ;;  %v3015_v59 = vsel %vm8793_vm10, %v2855_v43, %v3014_v27  ;;  %v12361_v43 = vunpack.c.l.bf16 %v9055_v3  ;;  %v9065_v37 = vld [vmem:[#allocation3 + $0xa4] sm:$0x1]  ;;  %v1586_v28 = vrot.slane %v9067_v62, 1 }
 0x152   : > { %3016 = vst [vmem:[#allocation2 + $0xc0] sm:$0xf] %v3015_v59  ;;  %2766 = vrot.lane.b32.xlu2 %v9011_v12, %s8507_s25  ;;  %v8364_v7 = vor.u32 %v8363_v47, %v8362_v0  ;;  %v1437_v59 = vunpack.c.l.bf16 %v1383_v23  ;;  %v3419_v47 = vshrl.u32 %v9034_v50, 16  ;;  %v3421_v0 = vshll.u32 %v9034_v50, 16  ;;  %7791 = vmatmul.msk.bf16.gmra.mxu0 %vm746_vm1, %v8023_v41 }
 0x153   : > { %v1460_v27 = vunpack.c.l.bf16 %v9065_v37  ;;  %v9077_v9 = vor.u32 %v12471_v6, %v8944_v18  ;;  %v8192_v36 = vld [vmem:[#allocation3 + $0xa8] sm:$0xff]   ;;  %v1583_v23 = vrot.slane %v12361_v43, 1  ;;  %v1582_v6 = vsel %vm1519_vm13, %v1580_v10, %v1581_v42 }
 0x154   : > { %v3590_v61 = vrot.slane %v8364_v7, 1  ;;  %v1585_v8 = vrot.slane %v1437_v59, 1  ;;  %v12472_v7 = vmov 0   ;;  %v3423_v2 = vrot.slane %v3421_v0, 1  ;;  %v1407_v31 = vld [vmem:[#allocation3 + $0xb0] sm:$0x1] }
 0x155   : > { %391 = vst.msk [vmem:[#allocation2 + $0x8] sm:$0x1] %vm390_vm5, %v12472_v7  ;;  %v8072_v35 = vunpack.c.l.bf16 %v8192_v36  ;;  %v9085_v22 = vunpack.c.h.bf16 %v8192_v36  ;;  %v12473_v41 = vrot.slane %v8912_v24, 4  ;;  %v1461_v13 = vunpack.c.l.bf16 %v1407_v31  ;;  %v1732_v31 = vld [vmem:[#allocation3 + $0xa8] sm:$0xe] }
 0x156   : > { %393 = vst.msk [vmem:[#allocation2 + $0xcc] sm:$0xf] %vm387_vm2, %v12472_v7  ;;  %v3592_v0 = vsel %vm1519_vm13, %v3590_v61, %v12474_v30  ;;  %v9098_v36 = vmax.f32 %v826_v58, 0.0  ;;  %v3424_v10 = vor.u32 %v3423_v2, %v3419_v47  ;;  %v1588_v63 = vrot.slane %v1460_v27, 1  ;;  %v1731_v58 = vld [vmem:[#allocation3 + $0x9c] sm:$0xe] }
 0x157   : > { %v2859_v37 = vpop.permute.xlu0 %2858  ;;  %394 = vst.msk [vmem:[#allocation2 + $0xd0] sm:$0xf] %vm387_vm2, %v12472_v7  ;;  %v1590_v30 = vrot.slane %v8072_v35, 1  ;;  %v1670_v61 = vmax.f32 %v8068_v44, %v1582_v6  ;;  %v1591_v47 = vrot.slane %v9085_v22, 1 }
 0x158   : > { %v3019_v43 = vsel %vm8823_vm12, %v2859_v37, %v3018_v34  ;;  %2774 = vrot.lane.b32.xlu0 %v12473_v41, %s8507_s25  ;;  %12475 = vst [vmem:[#allocation36_spill] sm:$0xff] %v9098_v36  ;;  %v1584_v34 = vsel %vm1519_vm13, %v1581_v42, %v1583_v23  ;;  %v1587_v37 = vsel %vm1519_vm13, %v1585_v8, %v1586_v28  ;;  %v1784_v41 = vunpack.c.l.bf16 %v1730_v29 }
 0x159   : > { %3020 = vst [vmem:[#allocation2 + $0xc8] sm:$0x1] %v3019_v43  ;;  %v9102_v5 = vld [vmem:[#allocation2 + $0xc0] sm:$0xff]   ;;  %v3429_v43 = vsel %vm3237_vm15, %v3424_v10, %v8977_v4  ;;  %v1589_v2 = vsel %vm1519_vm13, %v1586_v28, %v1588_v63  ;;  %v1593_v42 = vrot.slane %v1461_v13, 1  ;;  %v1671_v44 = vmax.f32 %v9053_v54, %v1584_v34 }
 0x15a   : > { %3629 = vrot.lane.b32.xlu2 %v3592_v0, %s12419_s29  ;;  %v3433_v60 = vshll.u32 %v9102_v5, 16  ;;  %395 = vst.msk [vmem:[#allocation2 + $0xd4] sm:$0x1] %vm390_vm5, %v12472_v7  ;;  %3484 = vrot.lane.b32.xlu1 %v3429_v43, %s8509_s30  ;;  %v3431_v8 = vshrl.u32 %v9102_v5, 16  ;;  %v1672_v6 = vmax.f32 %v1437_v59, %v1587_v37  ;;  %v12476_v4 = vsel %vm8823_vm12, 4286578559, %v8984_v14 }
 0x15b   : > { %567 = vst [vmem:[#allocation3 + $0xb4] sm:$0x1] %v12476_v4  ;;  %v1592_v63 = vsel %vm1519_vm13, %v1590_v30, %v1591_v47  ;;  %v1594_v28 = vsel %vm1519_vm13, %v1591_v47, %v1593_v42  ;;  %v1785_v29 = vunpack.c.l.bf16 %v1731_v58  ;;  %v1786_v0 = vunpack.c.l.bf16 %v1732_v31 }
 0x15c   : > { %v3435_v23 = vrot.slane %v3433_v60, 1  ;;  %v12477_v7 = vsel %vm8861_vm14, 4286578559, %v8990_v57  ;;  %v1673_v10 = vmax.f32 %v9067_v62, %v1589_v2  ;;  %v1674_v34 = vmax.f32 %v8072_v35, %v1592_v63  ;;  %v8227_v2 = vld [vmem:[#allocation2 + $0xc0] sm:$0xe] }
 0x15d   : > { %622 = vst [vmem:[#allocation3 + $0xbc] sm:$0x1] %v12477_v7  ;;  %v1675_v59 = vmax.f32 %v9085_v22, %v1594_v28  ;;  %v1869_v37 = vrot.slane %v1784_v41, 2  ;;  %v1870_v14 = vrot.slane %v9053_v54, 2  ;;  %v12478_v60 = vunpack.c.l.bf16 %v9055_v3  ;;  %v455_v63 = vld [vmem:[#allocation2 + $0x8] sm:$0x1] }
 0x15e   : > { %v1874_v43 = vrot.slane %v1785_v29, 2  ;;  %v1875_v58 = vrot.slane %v9067_v62, 2  ;;  %v1877_v47 = vrot.slane %v1460_v27, 2  ;;  %v1879_v42 = vrot.slane %v1786_v0, 2  ;;  %v8226_v28 = vld [vmem:[#allocation2 + $0xc0] sm:$0xf0] }
 0x15f   : > { %v1872_v30 = vrot.slane %v12478_v60, 2  ;;  %v1880_v57 = vrot.slane %v9085_v22, 2  ;;  %v1882_v4 = vrot.slane %v1461_v13, 2  ;;  %v1871_v35 = vsel %vm1808_vm0, %v1869_v37, %v1870_v14 }
 0x160   : > { %v3073_v31 = vld [vmem:[#allocation2 + $0xc8] sm:$0x1]  ;;  %v1876_v54 = vsel %vm1808_vm0, %v1874_v43, %v1875_v58  ;;  %v1878_v3 = vsel %vm1808_vm0, %v1875_v58, %v1877_v47  ;;  %v9142_v22 = vmax.f32 %v1670_v61, %v1871_v35  ;;  %v8228_v60 = vor.u32 %v8227_v2, %v8226_v28  ;;  %v659_v28 = vld [vmem:[%s8633_s16 + $0x78] sm:$0xf] }
 0x161   : > { %v3217_v7 = vunpack.c.l.b16 %v3073_v31  ;;  %v1873_v41 = vsel %vm1808_vm0, %v1870_v14, %v1872_v30  ;;  %v1881_v27 = vsel %vm1808_vm0, %v1879_v42, %v1880_v57  ;;  %v1883_v62 = vsel %vm1808_vm0, %v1880_v57, %v1882_v4  ;;  %v399_v14 = vld [vmem:[#allocation2] sm:$0x1] }
 0x162   : > { %2772 = vrot.lane.b32.xlu2 %v9040_v53, %s8507_s25  ;;  %12479 = vst [vmem:[#allocation37_spill] sm:$0xff] %v9142_v22  ;;  %v9144_v29 = vmax.f32 %v1671_v44, %v1873_v41  ;;  %v9146_v0 = vmax.f32 %v1672_v6, %v1876_v54  ;;  %v9148_v37 = vmax.f32 %v1673_v10, %v1878_v3  ;;  %v456_v61 = vsel %vm8781_vm8, 0, %v455_v63  ;;  %v1343_v35 = vld [vmem:[#allocation3 + $0xb4] sm:$0xf] }
 0x163   : > { %v3235_v13 = vpack.c.b16 %v3217_v7, %v3217_v7  ;;  %2770 = vrot.lane.b32.xlu1 %v9024_v39, %s8507_s25  ;;  %v9152_v30 = vmax.f32 %v1674_v34, %v1881_v27  ;;  %v9154_v43 = vmax.f32 %v1675_v59, %v1883_v62  ;;  %v2547_v58 = vshll.u32 %v8982_v45, 16  ;;  %457 = vst [vmem:[#allocation2 + $0x8] sm:$0x1] %v456_v61  ;;  %v623_v61 = vld [vmem:[#allocation3 + $0xc8] sm:$0x1] }
 0x164   : > { %12480 = vst [vmem:[#allocation38_spill] sm:$0xff] %v9144_v29  ;;  %v2065_v6 = vmax.f32 %v9142_v22, %v9146_v0  ;;  %v2066_v10 = vmax.f32 %v9144_v29, %v9148_v37  ;;  %v3436_v31 = vor.u32 %v3435_v23, %v3431_v8  ;;  %v12366_v47 = vrot.slane %v9013_v33, 4  ;;  %v1347_v63 = vld [vmem:[#allocation3 + $0xbc] sm:$0x1] }
 0x165   : > { %12481 = vst [vmem:[#allocation39_spill] sm:$0xff] %v9146_v0  ;;  %v3438_v44 = vshll.u32 %v3235_v13, 16  ;;  %v400_v34 = vsel %vm8721_vm6, 0, %v399_v14  ;;  %v12483_v59 = vshll.u32 %v8993_v1, 16  ;;  %v3594_v4 = vrot.slane %v3235_v13, 1 }
 0x166   : > { %12482 = vst [vmem:[#allocation40_spill] sm:$0xff] %v9148_v37  ;;  %v2163_v7 = vmax.f32 %v2065_v6, %v9152_v30  ;;  %v2164_v2 = vmax.f32 %v2066_v10, %v9154_v43  ;;  %v3593_v41 = vrot.slane %v8228_v60, 1  ;;  %v9173_v8 = vpack.c.bf16 %v9098_v36, %v9098_v36  ;;  %v8203_v14 = vld [vmem:[#allocation2] sm:$0xe]  ;;  %v568_v60 = vld [vmem:[#allocation3 + $0xc0] sm:$0x1] }
 0x167   : > { %v1166_v42 = vor.u32 %v12483_v59, %v9057_v48  ;;  %v3440_v57 = vrot.slane %v3438_v44, 1  ;;  %401 = vst [vmem:[#allocation2] sm:$0x1] %v400_v34  ;;  %v1167_v23 = vrot.slane %v9057_v48, 4  ;;  %v12484_v1 = vshll.u32 %v9004_v11, 16 }
 0x168   : > { %v2195_v27 = vpack.c.bf16 %v2163_v7, %v2163_v7  ;;  %v2196_v62 = vpack.c.bf16 %v2164_v2, %v2164_v2  ;;  %v1176_v13 = vrot.slane %v9063_v49, 4  ;;  %v3595_v44 = vsel %vm1519_vm13, %v3593_v41, %v3594_v4  ;;  %v660_v34 = vld [vmem:[%s8633_s16 + $0x7c] sm:$0xf] }
 0x169   : > { %v1174_v54 = vor.u32 %v12484_v1, %v9063_v49  ;;  %v3441_v3 = vsel %vm3237_vm15, %v3436_v31, %v3440_v57  ;;  %v1344_v11 = vsel %vm8793_vm10, %v1166_v42, %v1343_v35  ;;  %v8202_v49 = vld [vmem:[#allocation2] sm:$0xf0]  ;;  %v2552_v59 = vshrl.u32 %v9173_v8, 16 }
 0x16a   : > { %3486 = vrot.lane.b32.xlu0 %v3441_v3, %s8509_s30  ;;  %2776 = vrot.lane.b32.xlu2 %v9077_v9, %s8507_s25  ;;  %v2264_v6 = vunpack.c.l.b16 %v2195_v27  ;;  %v2265_v10 = vunpack.c.l.b16 %v2196_v62  ;;  %1345 = vst [vmem:[#allocation3 + $0xb4] sm:$0xf] %v1344_v11  ;;  %v1348_v31 = vsel %vm8823_vm12, %v1176_v13, %v1347_v63  ;;  %v12485_v57 = vshll.u32 %v8952_v21, 16  ;;  %v3057_v7 = vld [vmem:[#allocation2 + $0x8] sm:$0x1] }
 0x16b   : > { %v1175_v48 = vsel %vm8670_vm4, %v1167_v23, %v1174_v54  ;;  %3631 = vrot.lane.b32.xlu1 %v3595_v44, %s12419_s29  ;;  %v1178_v4 = vshrl.u32 %v659_v28, 16  ;;  %v3201_v35 = vunpack.c.l.b16 %v3057_v7  ;;  %1349 = vst [vmem:[#allocation3 + $0xbc] sm:$0x1] %v1348_v31  ;;  %v569_v41 = vsel %vm8823_vm12, 4286578559, %v568_v60 }
 0x16c   : > { %v2540_v42 = vor.u32 %v12485_v57, %v9013_v33  ;;  %1346 = vst.msk [vmem:[#allocation3 + $0xb8] sm:$0xf] %vm509_vm9, %v1175_v48  ;;  %v2284_v2 = vpack.c.b16 %v2265_v10, %v2264_v6  ;;  %v624_v23 = vsel %vm8861_vm14, 4286578559, %v623_v61  ;;  %v8204_v1 = vor.u32 %v8203_v14, %v8202_v49 }
 0x16d   : > { %570 = vst [vmem:[#allocation3 + $0xc0] sm:$0x1] %v569_v41  ;;  %v1180_v63 = vrot.slane %v1178_v4, 7  ;;  %v1181_v21 = vshll.u32 %v659_v28, 16  ;;  %v1186_v3 = vshrl.u32 %v660_v34, 16  ;;  %v3219_v27 = vpack.c.b16 %v3201_v35, %v3201_v35 }
 0x16e   : > { %v9203_v54 = vld [vmem:[#allocation2] sm:$0xff]   ;;  %7812 = vmatmul.msk.bf16.vlgmr.msrb.gmra.mxu3 %vm746_vm1, %v2284_v2  ;;  %625 = vst [vmem:[#allocation3 + $0xc8] sm:$0x1] %v624_v23  ;;  %v1189_v48 = vshll.u32 %v660_v34, 16  ;;  %v12486_v11 = vshrl.u32 %v8982_v45, 16  ;;  %v12487_v44 = vrot.slane %v8944_v18, 4 }
 0x16f   : > { %v3239_v62 = vshrl.u32 %v9203_v54, 16  ;;  %v3241_v13 = vshll.u32 %v9203_v54, 16  ;;  %v1184_v14 = vrot.slane %v1180_v63, 4  ;;  %v1188_v61 = vrot.slane %v1186_v3, 7 }
 0x170   : > { %v9210_v60 = vrot.slane %v12486_v11, 7  ;;  %v9216_v28 = vsel %vm8670_vm4, %v12487_v44, %v2540_v42  ;;  %v3246_v10 = vshll.u32 %v3219_v27, 16  ;;  %v9218_v49 = vrot.slane %v2552_v59, 7 }
 0x171   : > { %v3243_v6 = vrot.slane %v3241_v13, 1  ;;  %v8511_v31 = vmov 4286578559   ;;  %v3545_v34 = vrot.slane %v8204_v1, 1  ;;  %v3546_v57 = vrot.slane %v3219_v27, 1 }
 0x172   : > { %515 = vst.msk [vmem:[#allocation3 + $0xcc] sm:$0xf] %vm509_vm9, %v8511_v31  ;;  %2778 = vrot.lane.b32.xlu0 %v9216_v28, %s8507_s25  ;;  %v1733_v7 = vld [vmem:[#allocation3 + $0xb4] sm:$0xe]  ;;  %v1183_v4 = vor.u32 %v1181_v21, %v1180_v63  ;;  %v1191_v2 = vor.u32 %v1189_v48, %v1188_v61  ;;  %v3248_v42 = vrot.slane %v3246_v10, 1  ;;  %v1193_v23 = vrot.slane %v1188_v61, 4 }
 0x173   : > { %516 = vst.msk [vmem:[#allocation3 + $0xd0] sm:$0xf] %vm509_vm9, %v8511_v31  ;;  %v3244_v18 = vor.u32 %v3243_v6, %v3239_v62  ;;  %v1387_v35 = vld [vmem:[#allocation3 + $0xb4] sm:$0xff]   ;;  %v1787_v41 = vunpack.c.l.bf16 %v1733_v7  ;;  %v2555_v59 = vshll.u32 %v9173_v8, 16  ;;  %2780 = vrot.lane.b32.xlu1 %v12366_v47, %s8507_s25  ;;  %v1408_v1 = vld [vmem:[#allocation3 + $0xbc] sm:$0x1]  ;;  %v3547_v10 = vsel %vm1519_vm13, %v3545_v34, %v3546_v57 }
 0x174   : > { %517 = vst.msk [vmem:[#allocation3 + $0xd4] sm:$0x1] %vm512_vm11, %v8511_v31  ;;  %v1441_v3 = vunpack.c.l.bf16 %v1387_v35  ;;  %v1442_v27 = vunpack.c.h.bf16 %v1387_v35  ;;  %v1192_v63 = vsel %vm8670_vm4, %v1184_v14, %v1191_v2  ;;  %v12367_v62 = vrot.slane %v9218_v49, 4  ;;  %v1350_v11 = vld [vmem:[#allocation3 + $0xc0] sm:$0xf] }
 0x175   : > { %510 = vst.msk [vmem:[#allocation3] sm:$0xf] %vm509_vm9, %v8511_v31  ;;  %v3249_v21 = vsel %vm3237_vm15, %v3244_v18, %v3248_v42  ;;  %v1462_v13 = vunpack.c.l.bf16 %v1408_v1  ;;  %v1884_v48 = vrot.slane %v1787_v41, 2  ;;  %v1351_v6 = vsel %vm8793_vm10, %v1183_v4, %v1350_v11  ;;  %v1354_v14 = vld [vmem:[#allocation3 + $0xc8] sm:$0x1] }
 0x176   : > { %1353 = vst.msk [vmem:[#allocation3 + $0xc4] sm:$0xf] %vm509_vm9, %v1192_v63  ;;  %3454 = vrot.lane.b32.xlu2 %v3249_v21, %s8509_s30  ;;  %v1595_v8 = vrot.slane %v1441_v3, 1  ;;  %v1596_v61 = vrot.slane %v1442_v27, 1  ;;  %v1885_v44 = vrot.slane %v1442_v27, 2  ;;  %v1355_v18 = vsel %vm8823_vm12, %v1193_v23, %v1354_v14 }
 0x177   : > { %v1598_v7 = vrot.slane %v1462_v13, 1  ;;  %v1887_v2 = vrot.slane %v1462_v13, 2  ;;  %1352 = vst [vmem:[#allocation3 + $0xc0] sm:$0xf] %v1351_v6  ;;  %v2067_v41 = vmax.f32 %v9146_v0, %v9152_v30  ;;  %v2068_v1 = vmax.f32 %v9148_v37, %v9154_v43 }
 0x178   : > { %v1597_v42 = vsel %vm1519_vm13, %v1595_v8, %v1596_v61  ;;  %v1886_v35 = vsel %vm1808_vm0, %v1884_v48, %v1885_v44  ;;  %1356 = vst [vmem:[#allocation3 + $0xc8] sm:$0x1] %v1355_v18  ;;  %v2550_v13 = vrot.slane %v9210_v60, 4  ;;  %v2557_v48 = vor.u32 %v2555_v59, %v9218_v49 }
 0x179   : > { %v571_v4 = vld [vmem:[#allocation3 + $0xcc] sm:$0x1]  ;;  %v1599_v34 = vsel %vm1519_vm13, %v1596_v61, %v1598_v7  ;;  %v1676_v57 = vmax.f32 %v1441_v3, %v1597_v42  ;;  %v1888_v63 = vsel %vm1808_vm0, %v1885_v44, %v1887_v2  ;;  %511 = vst.msk [vmem:[#allocation3 + $0x4] sm:$0xf] %vm509_vm9, %v8511_v31  ;;  %v9258_v11 = vor.u32 %v2547_v58, %v9210_v60 }
 0x17a   : > { %v572_v23 = vsel %vm8823_vm12, 4286578559, %v571_v4  ;;  %3599 = vrot.lane.b32.xlu0 %v3547_v10, %s12419_s29  ;;  %v1677_v21 = vmax.f32 %v1442_v27, %v1599_v34  ;;  %513 = vst.msk [vmem:[#allocation3 + $0x8] sm:$0x1] %vm512_vm11, %v8511_v31  ;;  %v9274_v60 = vsel %vm8670_vm4, %v2550_v13, %v2557_v48  ;;  %vm3718_vm5 = vcmask 97280   ;;  %vm10735_vm11 = vmand %vm387_vm2, %vm453_vm7 }
 0x17b   : > { %573 = vst [vmem:[#allocation3 + $0xcc] sm:$0x1] %v572_v23  ;;  %v626_v3 = vld [vmem:[#allocation3 + $0xd4] sm:$0x1]  ;;  %v9260_v8 = vmax.f32 %v1676_v57, %v1886_v35  ;;  %2786 = vrot.lane.b32.xlu1 %v12367_v62, %s8507_s25  ;;  %vm6719_vm7 = vcmask 1043456  }
 0x17c   : > { %v627_v61 = vsel %vm8861_vm14, 4286578559, %v626_v3  ;;  %v9268_v27 = vmax.f32 %v1677_v21, %v1888_v63 }
 0x17d   : > { %628 = vst [vmem:[#allocation3 + $0xd4] sm:$0x1] %v627_v61  ;;  %v2165_v45 = vmax.f32 %v2067_v41, %v9260_v8  ;;  %v2069_v13 = vmax.f32 %v9152_v30, %v9260_v8 }
 0x17e   : > { %v2166_v58 = vmax.f32 %v2068_v1, %v9268_v27  ;;  %2782 = vrot.lane.b32.xlu2 %v9258_v11, %s8507_s25  ;;  %v8193_v59 = vld [vmem:[#allocation3 + $0xc0] sm:$0xff]  }
 0x17f   : > { %v1734_v31 = vld [vmem:[#allocation3 + $0xc0] sm:$0xe]  ;;  %v2197_v44 = vpack.c.bf16 %v2165_v45, %v2165_v45  ;;  %v8076_v6 = vunpack.c.l.bf16 %v8193_v59  ;;  %v8077_v14 = vunpack.c.h.bf16 %v8193_v59  ;;  %v1409_v10 = vld [vmem:[#allocation3 + $0xc8] sm:$0x1]  ;;  %v1735_v45 = vld [vmem:[#allocation3 + $0xcc] sm:$0xe] }
 0x180   : > { %v1788_v7 = vunpack.c.l.bf16 %v1734_v31  ;;  %v2198_v2 = vpack.c.bf16 %v2166_v58, %v2166_v58  ;;  %v1463_v18 = vunpack.c.l.bf16 %v1409_v10 }
 0x181   : > { %v2266_v42 = vunpack.c.l.b16 %v2197_v44  ;;  %v1600_v35 = vrot.slane %v8076_v6, 1  ;;  %v1601_v41 = vrot.slane %v8077_v14, 1  ;;  %v1890_v63 = vrot.slane %v8077_v14, 2 }
 0x182   : > { %v1889_v1 = vrot.slane %v1788_v7, 2  ;;  %v1391_v4 = vld [vmem:[#allocation3 + $0xcc] sm:$0xff]   ;;  %v2267_v34 = vunpack.c.l.b16 %v2198_v2  ;;  %2784 = vrot.lane.b32.xlu0 %v9274_v60, %s8507_s25  ;;  %v1603_v57 = vrot.slane %v1463_v18, 1  ;;  %v1892_v23 = vrot.slane %v1463_v18, 2 }
 0x183   : > { %v1602_v21 = vsel %vm1519_vm13, %v1600_v35, %v1601_v41  ;;  %v1445_v3 = vunpack.c.l.bf16 %v1391_v4  ;;  %v1446_v61 = vunpack.c.h.bf16 %v1391_v4  ;;  %v2070_v2 = vmax.f32 %v9154_v43, %v9268_v27 }
 0x184   : > { %v1410_v48 = vld [vmem:[#allocation3 + $0xd4] sm:$0x1]  ;;  %v2285_v58 = vpack.c.b16 %v2267_v34, %v2266_v42  ;;  %v1604_v59 = vsel %vm1519_vm13, %v1601_v41, %v1603_v57  ;;  %v1678_v31 = vmax.f32 %v8076_v6, %v1602_v21  ;;  %v1891_v44 = vsel %vm1808_vm0, %v1889_v1, %v1890_v63 }
 0x185   : > { %v1679_v10 = vmax.f32 %v8077_v14, %v1604_v59  ;;  %v1893_v7 = vsel %vm1808_vm0, %v1890_v63, %v1892_v23  ;;  %v1464_v18 = vunpack.c.l.bf16 %v1410_v48  ;;  %v1605_v35 = vrot.slane %v1445_v3, 1  ;;  %v7820_v48 = vld [vmem:[%s12329_s3 + $0x8] sm:$0xf] }
 0x186   : > { %7813 = vmatmul.msk.bf16.gmra.mxu3 %vm746_vm1, %v2285_v58  ;;  %v1967_v30 = vmax.f32 %v1678_v31, %v1891_v44  ;;  %v1606_v47 = vrot.slane %v1446_v61, 1  ;;  %v1789_v4 = vunpack.c.l.bf16 %v1735_v45  ;;  %v1895_v23 = vrot.slane %v1446_v61, 2  ;;  %v8033_v45 = vld [vmem:[%s12329_s3 + $0x8] sm:$0x30] }
 0x187   : > { %v1968_v62 = vmax.f32 %v1679_v10, %v1893_v7  ;;  %v1608_v42 = vrot.slane %v1464_v18, 1  ;;  %v1897_v43 = vrot.slane %v1464_v18, 2  ;;  %v7821_v31 = vor.u32 %v8033_v45, %v7820_v48  ;;  %v402_v44 = vld [vmem:[#allocation2 + $0xc] sm:$0x1]  ;;  %v461_v45 = vld [vmem:[#allocation2 + $0x20] sm:$0x1] }
 0x188   : > { %v2167_v34 = vmax.f32 %v2069_v13, %v1967_v30  ;;  %v1607_v1 = vsel %vm1519_vm13, %v1605_v35, %v1606_v47  ;;  %v1894_v14 = vrot.slane %v1789_v4, 2 }
 0x189   : > { %v2168_v41 = vmax.f32 %v2070_v2, %v1968_v62  ;;  %v1609_v63 = vsel %vm1519_vm13, %v1606_v47, %v1608_v42  ;;  %v1680_v21 = vmax.f32 %v1445_v3, %v1607_v1  ;;  %v1898_v47 = vsel %vm1808_vm0, %v1895_v23, %v1897_v43 }
 0x18a   : > { %v2199_v6 = vpack.c.bf16 %v2167_v34, %v2167_v34  ;;  %v1681_v59 = vmax.f32 %v1446_v61, %v1609_v63  ;;  %v1896_v10 = vsel %vm1808_vm0, %v1894_v14, %v1895_v23  ;;  %v403_v3 = vsel %vm8721_vm6, 0, %v402_v44 }
 0x18b   : > { %v2200_v57 = vpack.c.bf16 %v2168_v41, %v2168_v41  ;;  %v3752_v7 = vsel %vm1808_vm0, %v7821_v31, 0  ;;  %404 = vst [vmem:[#allocation2 + $0xc] sm:$0x1] %v403_v3  ;;  %v2071_v2 = vmax.f32 %v9260_v8, %v1967_v30  ;;  %v1969_v35 = vmax.f32 %v1680_v21, %v1896_v10  ;;  %v408_v8 = vld [vmem:[#allocation2 + $0x24] sm:$0x1]  ;;  %v828_v30 = vpop.f32.mrf.mxu0 }
 0x18c   : > { %v2268_v13 = vunpack.c.l.b16 %v2199_v6  ;;  %8301 = vmatpush.bf16.msra.mxu3 %v3752_v7  ;;  %3761 = vmatpush.bf16.msra.mxu2 %v3752_v7  ;;  %v1970_v4 = vmax.f32 %v1681_v59, %v1898_v47  ;;  %v2072_v61 = vmax.f32 %v9268_v27, %v1968_v62  ;;  %v409_v23 = vsel %vm8721_vm6, 0, %v408_v8  ;;  %v9312_v62 = vld [vmem:[%s12328_s2] ss:$0 sm:$0xff] }
 0x18d   : > { %v2269_v58 = vunpack.c.l.b16 %v2200_v57  ;;  %v2169_v42 = vmax.f32 %v2071_v2, %v1969_v35  ;;  %v458_v57 = vld [vmem:[#allocation2 + $0x14] sm:$0x1]  ;;  %v829_v27 = vadd.f32 %v9312_v62, %v828_v30  ;;  %410 = vst [vmem:[#allocation2 + $0x24] sm:$0x1] %v409_v23  ;;  %v8024_v47 = vld [vmem:[%s8633_s16 + $0x40] sm:$0xff]  ;;  %v8025_v30 = vld [vmem:[%s8633_s16 + $0x48] sm:$0xff] }
 0x18e   : > { %v2170_v34 = vmax.f32 %v2072_v61, %v1970_v4  ;;  %v459_v63 = vsel %vm8781_vm8, 0, %v458_v57  ;;  %7792 = vmatmul.msk.bf16.gmra.mxu0 %vm746_vm1, %v8024_v47  ;;  %v405_v4 = vld [vmem:[#allocation2 + $0x18] sm:$0x1]  ;;  %v8356_v47 = vld [vmem:[#allocation2 + $0xa8] sm:$0xff]  }
 0x18f   : > { %v2286_v18 = vpack.c.b16 %v2269_v58, %v2268_v13  ;;  %v2201_v41 = vpack.c.bf16 %v2169_v42, %v2169_v42  ;;  %460 = vst [vmem:[#allocation2 + $0x14] sm:$0x1] %v459_v63  ;;  %v9316_v48 = vmax.f32 %v829_v27, 0.0  ;;  %v462_v13 = vsel %vm8781_vm8, 0, %v461_v45 }
 0x190   : > { %v2202_v6 = vpack.c.bf16 %v2170_v34, %v2170_v34  ;;  %463 = vst [vmem:[#allocation2 + $0x20] sm:$0x1] %v462_v13  ;;  %v406_v34 = vsel %vm8721_vm6, 0, %v405_v4 }
 0x191   : > { %v2270_v1 = vunpack.c.l.b16 %v2201_v41  ;;  %12488 = vst [vmem:[#allocation41_spill] sm:$0xff] %v9316_v48  ;;  %v2468_v58 = vpack.c.bf16 %v9316_v48, %v9316_v48 }
 0x192   : > { %v2271_v14 = vunpack.c.l.b16 %v2202_v6  ;;  %v2909_v7 = vld [vmem:[#allocation2 + $0xc] sm:$0xf]  ;;  %407 = vst [vmem:[#allocation2 + $0x18] sm:$0x1] %v406_v34 }
 0x193   : > { %v2561_v44 = vshrl.u32 %v2468_v58, 16  ;;  %v830_v35 = vpop.f32.mrf.mxu0 }
 0x194   : > { %v2287_v43 = vpack.c.b16 %v2271_v14, %v2270_v1  ;;  %v411_v1 = vld [vmem:[#allocation2 + $0x30] sm:$0x1]  ;;  %v831_v45 = vadd.f32 %v9312_v62, %v830_v35 }
 0x195   : > { %v9327_v2 = vrot.slane %v2561_v44, 7  ;;  %v412_v14 = vsel %vm8721_vm6, 0, %v411_v1 }
 0x196   : > { %7814 = vmatmul.msk.bf16.gmra.mxu3 %vm746_vm1, %v2286_v18  ;;  %v2564_v18 = vshll.u32 %v2468_v58, 16  ;;  %413 = vst [vmem:[#allocation2 + $0x30] sm:$0x1] %v412_v14  ;;  %v2913_v27 = vld [vmem:[#allocation2 + $0x14] sm:$0x1]  ;;  %v9363_v4 = vmax.f32 %v831_v45, 0.0 }
 0x197   : > { %v2923_v58 = vld [vmem:[#allocation2 + $0x24] sm:$0xf]  ;;  %v2920_v34 = vld [vmem:[#allocation2 + $0x20] sm:$0x1] }
 0x198   : > { %v9341_v6 = vor.u32 %v2564_v18, %v9327_v2  ;;  %12489 = vst [vmem:[#allocation42_spill] sm:$0xff] %v9363_v4 }
 0x199   : > { %v2916_v48 = vld [vmem:[#allocation2 + $0x18] sm:$0xf] }
 0x19a   : > { %2788 = vrot.lane.b32.xlu0 %v9341_v6, %s8507_s25 }
 0x19b   : > { %v833_v8 = vpop.f32.mrf.mxu0 }
 0x19e   : > { %7793 = vmatmul.msk.bf16.gmra.mxu0 %vm746_vm1, %v8025_v30 }
 0x1a4   : > { %v3483_v21 = vpop.permute.xlu2 %3482 }
 0x1a6   : > { %7815 = vmatmul.msk.bf16.gmra.mxu3 %vm746_vm1, %v2287_v43 }
 0x1aa   : > { %v3626_v59 = vpop.permute.xlu1 %3625 }
 0x1ac   : > { %v2767_v31 = vpop.permute.xlu2 %2766  ;;  %v3481_v10 = vpop.permute.xlu0 %3480 }
 0x1ad   : > { %2912 = vst.msk [vmem:[#allocation2 + $0x10] sm:$0xf] %vm509_vm9, %v2767_v31  ;;  %v3662_v3 = vsel %vm746_vm1, %v8865_v20, %v3481_v10 }
 0x1ae   : > { %v9330_v61 = vsel %vm3671_vm3, %v3662_v3, %v3626_v59  ;;  %v464_v59 = vld [vmem:[#allocation2 + $0x2c] sm:$0x1]  ;;  %v3664_v3 = vsel %vm746_vm1, %v8356_v47, %v3483_v21  ;;  %v2469_v21 = vpack.c.bf16 %v9363_v4, %v9363_v4 }
 0x1af   : > { %v465_v10 = vsel %vm8781_vm8, 0, %v464_v59 }
 0x1b0   : > { %466 = vst [vmem:[#allocation2 + $0x2c] sm:$0x1] %v465_v10 }
 0x1b2   : > { %v2765_v42 = vpop.permute.xlu1 %2764 }
 0x1b3   : > { %v2910_v20 = vsel %vm8793_vm10, %v2765_v42, %v2909_v7  ;;  %v835_v42 = vpop.f32.mrf.mxu0 }
 0x1b4   : > { %v9336_v41 = vpop.permute.xlu2 %3629  ;;  %2911 = vst [vmem:[#allocation2 + $0xc] sm:$0xf] %v2910_v20  ;;  %v8365_v43 = vld [vmem:[#allocation2 + $0xc] sm:$0xf0]  ;;  %v836_v45 = vadd.f32 %v9312_v62, %v835_v42 }
 0x1b6   : > { %7834 = vmatmul.msk.bf16.vlgmr.msra.gmra.mxu3 %vm3718_vm5, %v9330_v61 }
 0x1ba   : > { %v3628_v57 = vpop.permute.xlu0 %3627 }
 0x1bb   : > { %v9349_v23 = vld [vmem:[#allocation2 + $0xc] sm:$0xff]   ;;  %v9359_v18 = vsel %vm3671_vm3, %v3664_v3, %v3628_v57  ;;  %v8032_v3 = vld [vmem:[%s12329_s3] sm:$0x30] }
 0x1bc   : > { %v2773_v63 = vpop.permute.xlu2 %2772  ;;  %v8366_v44 = vld [vmem:[#allocation2 + $0xc] sm:$0xe]  ;;  %v3253_v14 = vshll.u32 %v9349_v23, 16 }
 0x1bd   : > { %2919 = vst.msk [vmem:[#allocation2 + $0x1c] sm:$0xf] %vm509_vm9, %v2773_v63  ;;  %v8367_v1 = vor.u32 %v8366_v44, %v8365_v43  ;;  %v7840_v44 = vld [vmem:[%s12329_s3] sm:$0xf] }
 0x1be   : > { %v3255_v47 = vrot.slane %v3253_v14, 1  ;;  %v9387_v14 = vmax.f32 %v836_v45, 0.0 }
 0x1bf   : > { %v3548_v10 = vrot.slane %v8367_v1, 1  ;;  %v838_v1 = vpop.f32.mrf.mxu0 }
 0x1c0   : > { %12490 = vst [vmem:[#allocation43_spill] sm:$0xff] %v9387_v14 }
 0x1c2   : > { %v2769_v13 = vpop.permute.xlu0 %2768 }
 0x1c3   : > { %v2914_v31 = vsel %vm8823_vm12, %v2769_v13, %v2913_v27  ;;  %v2569_v27 = vshrl.u32 %v2469_v21, 16  ;;  %v8026_v13 = vld [vmem:[%s8633_s16 + $0x50] sm:$0xff] }
 0x1c4   : > { %2915 = vst [vmem:[#allocation2 + $0x14] sm:$0x1] %v2914_v31  ;;  %v2777_v7 = vpop.permute.xlu2 %2776  ;;  %7794 = vmatmul.msk.bf16.gmra.mxu0 %vm746_vm1, %v8026_v13 }
 0x1c5   : > { %v2924_v35 = vsel %vm8793_vm10, %v2777_v7, %v2923_v58  ;;  %v467_v58 = vld [vmem:[#allocation2 + $0x38] sm:$0x1]  ;;  %v9399_v13 = vrot.slane %v2569_v27, 7 }
 0x1c6   : > { %7835 = vmatmul.msk.bf16.gmra.mxu3 %vm3718_vm5, %v9359_v18  ;;  %2925 = vst [vmem:[#allocation2 + $0x24] sm:$0xf] %v2924_v35  ;;  %v468_v43 = vsel %vm8781_vm8, 0, %v467_v58 }
 0x1c7   : > { %469 = vst [vmem:[#allocation2 + $0x38] sm:$0x1] %v468_v43 }
 0x1ca   : > { %v2775_v20 = vpop.permute.xlu0 %2774 }
 0x1cb   : > { %v2921_v57 = vsel %vm8823_vm12, %v2775_v20, %v2920_v34  ;;  %v3058_v63 = vld [vmem:[#allocation2 + $0x14] sm:$0x1]  ;;  %v3251_v34 = vshrl.u32 %v9349_v23, 16 }
 0x1cc   : > { %2922 = vst [vmem:[#allocation2 + $0x20] sm:$0x1] %v2921_v57  ;;  %v3202_v30 = vunpack.c.l.b16 %v3058_v63  ;;  %v3485_v59 = vpop.permute.xlu1 %3484  ;;  %v7841_v57 = vor.u32 %v8032_v3, %v7840_v44  ;;  %v834_v63 = vadd.f32 %v9312_v62, %v833_v8  ;;  %v2471_v8 = vpack.c.bf16 %v9387_v14, %v9387_v14  ;;  %v2930_v44 = vld [vmem:[#allocation2 + $0x30] sm:$0xf] }
 0x1cd   : > { %v3666_v7 = vsel %vm746_vm1, %v9034_v50, %v3485_v59  ;;  %v3256_v58 = vor.u32 %v3255_v47, %v3251_v34  ;;  %v2567_v3 = vrot.slane %v9327_v2, 4 }
 0x1ce   : > { %v3220_v31 = vpack.c.b16 %v3202_v30, %v3202_v30  ;;  %v9394_v50 = vsel %vm3671_vm3, %v3666_v7, %v9336_v41  ;;  %v3851_v59 = vsel %vm1808_vm0, %v7841_v57, 0  ;;  %v9404_v47 = vmax.f32 %v834_v63, 0.0 }
 0x1cf   : > { %3860 = vmatpush.bf16.msrb.mxu3 %v3851_v59  ;;  %v2586_v34 = vshrl.u32 %v2471_v8, 16 }
 0x1d0   : > { %v3549_v35 = vrot.slane %v3220_v31, 1  ;;  %v9384_v42 = vpop.permute.xlu2 %3454  ;;  %v3258_v20 = vshll.u32 %v3220_v31, 16  ;;  %v2572_v31 = vshll.u32 %v2469_v21, 16  ;;  %12491 = vst [vmem:[#allocation44_spill] sm:$0xff] %v9404_v47  ;;  %v2470_v63 = vpack.c.bf16 %v9404_v47, %v9404_v47 }
 0x1d1   : > { %v9427_v59 = vrot.slane %v2586_v34, 7 }
 0x1d2   : > { %v3550_v30 = vsel %vm1519_vm13, %v3548_v10, %v3549_v35  ;;  %v3260_v43 = vrot.slane %v3258_v20, 1  ;;  %v2574_v7 = vor.u32 %v2572_v31, %v9399_v13  ;;  %v12369_v20 = vrot.slane %v9399_v13, 4 }
 0x1d3   : > { %3601 = vrot.lane.b32.xlu2 %v3550_v30, %s12419_s29  ;;  %v3059_v10 = vld [vmem:[#allocation2 + $0x20] sm:$0x1]  ;;  %v840_v30 = vpop.f32.mrf.mxu0  ;;  %v2578_v31 = vshrl.u32 %v2470_v63, 16  ;;  %v12494_v4 = vrot.slane %v9427_v59, 4 }
 0x1d4   : > { %v3261_v45 = vsel %vm3237_vm15, %v3256_v58, %v3260_v43  ;;  %v3203_v35 = vunpack.c.l.b16 %v3059_v10  ;;  %v9422_v2 = vsel %vm8670_vm4, %v2567_v3, %v2574_v7  ;;  %v839_v43 = vadd.f32 %v9312_v62, %v838_v1  ;;  %v8205_v10 = vld [vmem:[#allocation2 + $0x18] sm:$0xf0] }
 0x1d5   : > { %3456 = vrot.lane.b32.xlu1 %v3261_v45, %s8509_s30  ;;  %v2771_v41 = vpop.permute.xlu1 %2770  ;;  %v2580_v36 = vrot.slane %v2578_v31, 7 }
 0x1d6   : > { %7836 = vmatmul.msk.bf16.gmra.mxu3 %vm3718_vm5, %v9394_v50  ;;  %v2917_v21 = vsel %vm8793_vm10, %v2771_v41, %v2916_v48  ;;  %v3221_v58 = vpack.c.b16 %v3203_v35, %v3203_v35 }
 0x1d7   : > { %2918 = vst [vmem:[#allocation2 + $0x18] sm:$0xf] %v2917_v21 }
 0x1d8   : > { %v2783_v27 = vpop.permute.xlu2 %2782  ;;  %v3270_v35 = vshll.u32 %v3221_v58, 16  ;;  %v3552_v34 = vrot.slane %v3221_v58, 1 }
 0x1d9   : > { %v2931_v57 = vsel %vm8793_vm10, %v2783_v27, %v2930_v44 }
 0x1da   : > { %2932 = vst [vmem:[#allocation2 + $0x30] sm:$0xf] %v2931_v57  ;;  %v9435_v57 = vmax.f32 %v839_v43, 0.0  ;;  %v2927_v43 = vld [vmem:[#allocation2 + $0x2c] sm:$0x1] }
 0x1db   : > { %2792 = vrot.lane.b32.xlu2 %v12369_v20, %s8507_s25  ;;  %v843_v47 = vpop.f32.mrf.mxu0 }
 0x1dc   : > { %v3487_v48 = vpop.permute.xlu0 %3486  ;;  %12492 = vst [vmem:[#allocation45_spill] sm:$0xff] %v9435_v57  ;;  %v2472_v58 = vpack.c.bf16 %v9435_v57, %v9435_v57  ;;  %v844_v46 = vadd.f32 %v9312_v62, %v843_v47 }
 0x1dd   : > { %2790 = vrot.lane.b32.xlu1 %v9422_v2, %s8507_s25  ;;  %v3632_v45 = vpop.permute.xlu1 %3631  ;;  %v3668_v27 = vsel %vm746_vm1, %v9102_v5, %v3487_v48  ;;  %v2589_v5 = vshll.u32 %v2471_v8, 16  ;;  %v841_v8 = vadd.f32 %v9312_v62, %v840_v30 }
 0x1de   : > { %v8206_v41 = vld [vmem:[#allocation2 + $0x18] sm:$0xe]  ;;  %v9439_v44 = vsel %vm3671_vm3, %v3668_v27, %v3632_v45  ;;  %v2581_v27 = vshll.u32 %v2470_v63, 16 }
 0x1df   : > { %v9430_v21 = vld [vmem:[#allocation2 + $0x18] sm:$0xff]   ;;  %v8207_v3 = vor.u32 %v8206_v41, %v8205_v10  ;;  %12493 = vst [vmem:[#allocation46_spill] sm:$0xff] %v9439_v44  ;;  %v2591_v45 = vor.u32 %v2589_v5, %v9427_v59 }
 0x1e0   : > { %v3265_v7 = vshll.u32 %v9430_v21, 16  ;;  %v3263_v20 = vshrl.u32 %v9430_v21, 16  ;;  %v9468_v63 = vor.u32 %v2581_v27, %v2580_v36 }
 0x1e1   : > { %v3551_v1 = vrot.slane %v8207_v3, 1  ;;  %v3272_v3 = vrot.slane %v3270_v35, 1  ;;  %v9457_v35 = vmax.f32 %v841_v8, 0.0 }
 0x1e2   : > { %v3267_v14 = vrot.slane %v3265_v7, 1  ;;  %v2595_v7 = vshrl.u32 %v2472_v58, 16 }
 0x1e3   : > { %2798 = vrot.lane.b32.xlu2 %v12494_v4, %s8507_s25  ;;  %v3553_v10 = vsel %vm1519_vm13, %v3551_v1, %v3552_v34  ;;  %12495 = vst [vmem:[#allocation47_spill] sm:$0xff] %v9457_v35  ;;  %v8369_v1 = vld [vmem:[#allocation2 + $0x24] sm:$0xe]  ;;  %v8027_v34 = vld [vmem:[%s8633_s16 + $0x58] sm:$0xff]  ;;  %v2473_v5 = vpack.c.bf16 %v9457_v35, %v9457_v35 }
 0x1e4   : > { %v2779_v48 = vpop.permute.xlu0 %2778  ;;  %v3268_v41 = vor.u32 %v3267_v14, %v3263_v20  ;;  %v2584_v20 = vrot.slane %v2580_v36, 4  ;;  %7795 = vmatmul.msk.bf16.gmra.mxu0 %vm746_vm1, %v8027_v34  ;;  %v3636_v36 = vsel %vm746_vm1, %v9203_v54, %v9384_v42 }
 0x1e5   : > { %2926 = vst.msk [vmem:[#allocation2 + $0x28] sm:$0xf] %vm509_vm9, %v2779_v48  ;;  %3603 = vrot.lane.b32.xlu1 %v3553_v10, %s12419_s29  ;;  %v2781_v31 = vpop.permute.xlu1 %2780  ;;  %v2598_v48 = vshll.u32 %v2472_v58, 16  ;;  %v2603_v35 = vshrl.u32 %v2473_v5, 16 }
 0x1e6   : > { %7837 = vmatmul.msk.bf16.gmra.mxu3 %vm3718_vm5, %v9439_v44  ;;  %v3273_v4 = vsel %vm3237_vm15, %v3268_v41, %v3272_v3  ;;  %v2928_v14 = vsel %vm8823_vm12, %v2781_v31, %v2927_v43  ;;  %v9462_v30 = vsel %vm8670_vm4, %v2584_v20, %v2591_v45  ;;  %v2934_v41 = vld [vmem:[#allocation2 + $0x38] sm:$0x1]  ;;  %v845_v31 = vpop.f32.mrf.mxu0 }
 0x1e7   : > { %3458 = vrot.lane.b32.xlu0 %v3273_v4, %s8509_s30  ;;  %2929 = vst [vmem:[#allocation2 + $0x2c] sm:$0x1] %v2928_v14  ;;  %v2597_v4 = vrot.slane %v2595_v7, 7  ;;  %v846_v20 = vadd.f32 %v9312_v62, %v845_v31 }
 0x1e9   : > { %v9481_v7 = vor.u32 %v2598_v48, %v2597_v4  ;;  %v9486_v40 = vmax.f32 %v846_v20, 0.0  ;;  %v9497_v20 = vmax.f32 %v844_v46, 0.0 }
 0x1eb   : > { %12496 = vst [vmem:[#allocation48_spill] sm:$0xff] %v9486_v40  ;;  %v2475_v47 = vpack.c.bf16 %v9486_v40, %v9486_v40  ;;  %v420_v40 = vld [vmem:[#allocation2 + $0x54] sm:$0x1] }
 0x1ec   : > { %v3600_v10 = vpop.permute.xlu0 %3599  ;;  %v9464_v43 = vld [vmem:[#allocation2 + $0x24] sm:$0xff]   ;;  %12497 = vst [vmem:[#allocation49_spill] sm:$0xff] %v9497_v20 }
 0x1ed   : > { %v8368_v3 = vld [vmem:[#allocation2 + $0x24] sm:$0xf0]  ;;  %2796 = vrot.lane.b32.xlu1 %v9462_v30, %s8507_s25  ;;  %v2787_v58 = vpop.permute.xlu1 %2786  ;;  %v3277_v34 = vshll.u32 %v9464_v43, 16  ;;  %v3673_v52 = vsel %vm3671_vm3, %v3636_v36, %v3600_v10  ;;  %v9500_v36 = vrot.slane %v2603_v35, 7 }
 0x1ee   : > { %v2935_v8 = vsel %vm8823_vm12, %v2787_v58, %v2934_v41  ;;  %v3060_v14 = vld [vmem:[#allocation2 + $0x2c] sm:$0x1]  ;;  %v8370_v27 = vor.u32 %v8369_v1, %v8368_v3  ;;  %v3275_v41 = vshrl.u32 %v9464_v43, 16  ;;  %v2606_v3 = vshll.u32 %v2473_v5, 16 }
 0x1ef   : > { %2794 = vrot.lane.b32.xlu0 %v9468_v63, %s8507_s25  ;;  %2936 = vst [vmem:[#allocation2 + $0x38] sm:$0x1] %v2935_v8  ;;  %v3204_v45 = vunpack.c.l.b16 %v3060_v14  ;;  %v3279_v58 = vrot.slane %v3277_v34, 1  ;;  %v2474_v5 = vpack.c.bf16 %v9497_v20, %v9497_v20  ;;  %v2601_v34 = vrot.slane %v2597_v4, 4 }
 0x1f0   : > { %v3554_v54 = vrot.slane %v8370_v27, 1  ;;  %v2620_v27 = vshrl.u32 %v2475_v47, 16  ;;  %v12379_v46 = vrot.slane %v9500_v36, 4 }
 0x1f1   : > { %v3222_v57 = vpack.c.b16 %v3204_v45, %v3204_v45  ;;  %v3280_v1 = vor.u32 %v3279_v58, %v3275_v41  ;;  %v2608_v41 = vor.u32 %v2606_v3, %v9500_v36 }
 0x1f2   : > { %v9514_v4 = vrot.slane %v2620_v27, 7 }
 0x1f3   : > { %v3555_v42 = vrot.slane %v3222_v57, 1  ;;  %v3282_v8 = vshll.u32 %v3222_v57, 16  ;;  %v9518_v3 = vsel %vm8670_vm4, %v2601_v34, %v2608_v41  ;;  %v2623_v34 = vshll.u32 %v2475_v47, 16  ;;  %v470_v47 = vld [vmem:[#allocation2 + $0x44] sm:$0x1] }
 0x1f4   : > { %v2785_v31 = vpop.permute.xlu0 %2784 }
 0x1f5   : > { %2933 = vst.msk [vmem:[#allocation2 + $0x34] sm:$0xf] %vm509_vm9, %v2785_v31  ;;  %2800 = vrot.lane.b32.xlu1 %v9481_v7, %s8507_s25  ;;  %v3556_v48 = vsel %vm1519_vm13, %v3554_v54, %v3555_v42  ;;  %v3284_v10 = vrot.slane %v3282_v8, 1 }
 0x1f6   : > { %7842 = vmatmul.msk.bf16.vlgmr.msrb.gmra.mxu3 %vm3718_vm5, %v3673_v52  ;;  %v3061_v14 = vld [vmem:[#allocation2 + $0x38] sm:$0x1] }
 0x1f7   : > { %3605 = vrot.lane.b32.xlu0 %v3556_v48, %s12419_s29  ;;  %v3285_v57 = vsel %vm3237_vm15, %v3280_v1, %v3284_v10  ;;  %v3205_v45 = vunpack.c.l.b16 %v3061_v14  ;;  %v8209_v48 = vld [vmem:[#allocation2 + $0x30] sm:$0xe]  ;;  %v2612_v10 = vshrl.u32 %v2474_v5, 16 }
 0x1f8   : > { %3460 = vrot.lane.b32.xlu2 %v3285_v57, %s8509_s30 }
 0x1f9   : > { %v3223_v52 = vpack.c.b16 %v3205_v45, %v3205_v45  ;;  %v2614_v20 = vrot.slane %v2612_v10, 7 }
 0x1fb   : > { %v3294_v31 = vshll.u32 %v3223_v52, 16 }
 0x1fc   : > { %v9506_v58 = vld [vmem:[#allocation2 + $0x30] sm:$0xff]  }
 0x1fd   : > { %v3289_v54 = vshll.u32 %v9506_v58, 16  ;;  %v8208_v35 = vld [vmem:[#allocation2 + $0x30] sm:$0xf0]  ;;  %v3287_v42 = vshrl.u32 %v9506_v58, 16  ;;  %v3296_v1 = vrot.slane %v3294_v31, 1  ;;  %v3558_v31 = vrot.slane %v3223_v52, 1 }
 0x1fe   : > { %v8210_v14 = vor.u32 %v8209_v48, %v8208_v35 }
 0x1ff   : > { %2804 = vrot.lane.b32.xlu0 %v12379_v46, %s8507_s25  ;;  %v3291_v8 = vrot.slane %v3289_v54, 1  ;;  %v12381_v46 = vrot.slane %v9514_v4, 4  ;;  %v2615_v54 = vshll.u32 %v2474_v5, 16  ;;  %v2625_v5 = vor.u32 %v2623_v34, %v9514_v4 }
 0x200   : > { %2802 = vrot.lane.b32.xlu2 %v9518_v3, %s8507_s25  ;;  %v3557_v27 = vrot.slane %v8210_v14, 1  ;;  %v9547_v14 = vpop.f32.mrf.mxu3 }
 0x201   : > { %v3292_v57 = vor.u32 %v3291_v8, %v3287_v42  ;;  %v9529_v35 = vor.u32 %v2615_v54, %v2614_v20  ;;  %v2618_v42 = vrot.slane %v2614_v20, 4  ;;  %v471_v8 = vsel %vm8781_vm8, 0, %v470_v47  ;;  %v414_v20 = vld [vmem:[#allocation2 + $0x3c] sm:$0x1]  ;;  %12498 = vst [vmem:[#allocation50_spill] sm:$0xff] %v9547_v14 }
 0x202   : > { %v3559_v41 = vsel %vm1519_vm13, %v3557_v27, %v3558_v31  ;;  %472 = vst [vmem:[#allocation2 + $0x44] sm:$0x1] %v471_v8  ;;  %v415_v10 = vsel %vm8721_vm6, 0, %v414_v20  ;;  %v8034_v20 = vld [vmem:[%s12329_s3 + $0x10] sm:$0x30] }
 0x203   : > { %v3297_v45 = vsel %vm3237_vm15, %v3292_v57, %v3296_v1  ;;  %v9537_v52 = vsel %vm8670_vm4, %v2618_v42, %v2625_v5  ;;  %v473_v1 = vld [vmem:[#allocation2 + $0x50] sm:$0x1]  ;;  %416 = vst [vmem:[#allocation2 + $0x3c] sm:$0x1] %v415_v10 }
 0x204   : > { %3462 = vrot.lane.b32.xlu1 %v3297_v45, %s8509_s30  ;;  %v474_v48 = vsel %vm8781_vm8, 0, %v473_v1 }
 0x205   : > { %475 = vst [vmem:[#allocation2 + $0x50] sm:$0x1] %v474_v48  ;;  %v7862_v48 = vld [vmem:[%s12329_s3 + $0x10] sm:$0xf] }
 0x206   : > { %v7863_v10 = vor.u32 %v8034_v20, %v7862_v48 }
 0x207   : > { %2810 = vrot.lane.b32.xlu0 %v12381_v46, %s8507_s25 }
 0x208   : > { %3607 = vrot.lane.b32.xlu2 %v3559_v41, %s12419_s29  ;;  %v9552_v41 = vpop.f32.mrf.mxu3 }
 0x209   : > { %12499 = vst [vmem:[#allocation51_spill] sm:$0xff] %v9552_v41  ;;  %v2941_v42 = vld [vmem:[#allocation2 + $0x44] sm:$0x1] }
 0x20a   : > { %v2937_v45 = vld [vmem:[#allocation2 + $0x3c] sm:$0xf] }
 0x20b   : > { %v848_v31 = vpop.f32.mrf.mxu0 }
 0x20c   : > { %2806 = vrot.lane.b32.xlu1 %v9529_v35, %s8507_s25  ;;  %v2789_v57 = vpop.permute.xlu0 %2788  ;;  %v849_v34 = vadd.f32 %v9312_v62, %v848_v31  ;;  %v3953_v31 = vsel %vm1808_vm0, %v7863_v10, 0  ;;  %v421_v10 = vsel %vm8721_vm6, 0, %v420_v40 }
 0x20d   : > { %v2938_v27 = vsel %vm8793_vm10, %v2789_v57, %v2937_v45  ;;  %v2948_v57 = vld [vmem:[#allocation2 + $0x50] sm:$0x1]  ;;  %3962 = vmatpush.bf16.msrb.mxu0 %v3953_v31  ;;  %422 = vst [vmem:[#allocation2 + $0x54] sm:$0x1] %v421_v10 }
 0x20e   : > { %2939 = vst [vmem:[#allocation2 + $0x3c] sm:$0xf] %v2938_v27  ;;  %v9554_v5 = vmax.f32 %v849_v34, 0.0 }
 0x210   : > { %2808 = vrot.lane.b32.xlu2 %v9537_v52, %s8507_s25  ;;  %12500 = vst [vmem:[#allocation52_spill] sm:$0xff] %v9554_v5  ;;  %v2476_v1 = vpack.c.bf16 %v9554_v5, %v9554_v5  ;;  %v9566_v27 = vpop.f32.mrf.mxu3 }
 0x211   : > { %12501 = vst [vmem:[#allocation53_spill] sm:$0xff] %v9566_v27 }
 0x212   : > { %v2629_v45 = vshrl.u32 %v2476_v1, 16  ;;  %v2632_v5 = vshll.u32 %v2476_v1, 16 }
 0x213   : > { %v850_v48 = vpop.f32.mrf.mxu0 }
 0x214   : > { %v9573_v46 = vrot.slane %v2629_v45, 7 }
 0x216   : > { %v9576_v20 = vor.u32 %v2632_v5, %v9573_v46  ;;  %v476_v5 = vld [vmem:[#allocation2 + $0x5c] sm:$0x1] }
 0x217   : > { %v477_v40 = vsel %vm8781_vm8, 0, %v476_v5 }
 0x218   : > { %2812 = vrot.lane.b32.xlu2 %v9576_v20, %s8507_s25  ;;  %478 = vst [vmem:[#allocation2 + $0x5c] sm:$0x1] %v477_v40  ;;  %v479_v40 = vld [vmem:[#allocation2 + $0x68] sm:$0x1] }
 0x22d   : > { %v3602_v54 = vpop.permute.xlu2 %3601 }
 0x235   : > { %v2793_v47 = vpop.permute.xlu2 %2792 }
 0x236   : > { %v2942_v8 = vsel %vm8823_vm12, %v2793_v47, %v2941_v42  ;;  %v417_v42 = vld [vmem:[#allocation2 + $0x48] sm:$0x1] }
 0x237   : > { %2943 = vst [vmem:[#allocation2 + $0x44] sm:$0x1] %v2942_v8  ;;  %v418_v8 = vsel %vm8721_vm6, 0, %v417_v42 }
 0x238   : > { %419 = vst [vmem:[#allocation2 + $0x48] sm:$0x1] %v418_v8 }
 0x23d   : > { %v2799_v34 = vpop.permute.xlu2 %2798 }
 0x23e   : > { %v2949_v47 = vsel %vm8823_vm12, %v2799_v34, %v2948_v57  ;;  %v9582_v57 = vpop.f32.mrf.mxu3  ;;  %v853_v34 = vpop.f32.mrf.mxu0  ;;  %v3062_v8 = vld [vmem:[#allocation2 + $0x44] sm:$0x1] }
 0x23f   : > { %2950 = vst [vmem:[#allocation2 + $0x50] sm:$0x1] %v2949_v47 }
 0x240   : > { %12502 = vst [vmem:[#allocation54_spill] sm:$0xff] %v9582_v57 }
 0x246   : > { %v9591_v47 = vpop.f32.mrf.mxu3 }
 0x247   : > { %v3457_v31 = vpop.permute.xlu1 %3456  ;;  %12503 = vst [vmem:[#allocation55_spill] sm:$0xff] %v9591_v47 }
 0x248   : > { %v3638_v45 = vsel %vm746_vm1, %v9349_v23, %v3457_v31  ;;  %v851_v23 = vadd.f32 %v9312_v62, %v850_v48  ;;  %v3206_v31 = vunpack.c.l.b16 %v3062_v8 }
 0x249   : > { %v3675_v1 = vsel %vm3671_vm3, %v3638_v45, %v3602_v54  ;;  %v855_v54 = vpop.f32.mrf.mxu0  ;;  %v8468_v45 = vld [vmem:[#allocation2 + $0x3c] sm:$0xe] }
 0x24a   : > { %7822 = vmatmul.msk.bf16.vlgmr.msra.gmra.mxu2 %vm3718_vm5, %v3675_v1  ;;  %7843 = vmatmul.msk.bf16.gmra.mxu3 %vm3718_vm5, %v3675_v1  ;;  %v9597_v57 = vmax.f32 %v851_v23, 0.0  ;;  %v3224_v14 = vpack.c.b16 %v3206_v31, %v3206_v31  ;;  %v856_v47 = vadd.f32 %v9312_v62, %v855_v54  ;;  %v424_v54 = vsel %vm8721_vm6, 0, %v423_v25 }
 0x24b   : > { %425 = vst [vmem:[#allocation2 + $0x60] sm:$0x1] %v424_v54 }
 0x24c   : > { %12504 = vst [vmem:[#allocation56_spill] sm:$0xff] %v9597_v57  ;;  %v2477_v8 = vpack.c.bf16 %v9597_v57, %v9597_v57  ;;  %v3561_v57 = vrot.slane %v3224_v14, 1 }
 0x24e   : > { %v9604_v48 = vpop.f32.mrf.mxu3 }
 0x24f   : > { %v2791_v42 = vpop.permute.xlu1 %2790  ;;  %12505 = vst [vmem:[#allocation57_spill] sm:$0xff] %v9604_v48 }
 0x250   : > { %2940 = vst.msk [vmem:[#allocation2 + $0x40] sm:$0xf] %vm509_vm9, %v2791_v42  ;;  %v480_v42 = vsel %vm8781_vm8, 0, %v479_v40 }
 0x251   : > { %481 = vst [vmem:[#allocation2 + $0x68] sm:$0x1] %v480_v42 }
 0x252   : > { %v9595_v10 = vpop.permute.xlu2 %3460 }
 0x257   : > { %v3604_v1 = vpop.permute.xlu1 %3603  ;;  %v9599_v27 = vld [vmem:[#allocation2 + $0x3c] sm:$0xff]  }
 0x258   : > { %v8467_v5 = vld [vmem:[#allocation2 + $0x3c] sm:$0xf0]  ;;  %v3301_v48 = vshll.u32 %v9599_v27, 16 }
 0x259   : > { %v3459_v41 = vpop.permute.xlu0 %3458  ;;  %v8469_v32 = vor.u32 %v8468_v45, %v8467_v5  ;;  %v858_v45 = vpop.f32.mrf.mxu0 }
 0x25a   : > { %v3640_v23 = vsel %vm746_vm1, %v9430_v21, %v3459_v41  ;;  %v2803_v19 = vpop.permute.xlu2 %2802  ;;  %v3306_v21 = vshll.u32 %v3224_v14, 16  ;;  %v9618_v41 = vmax.f32 %v856_v47, 0.0  ;;  %v3303_v5 = vrot.slane %v3301_v48, 1  ;;  %v3063_v47 = vld [vmem:[#allocation2 + $0x50] sm:$0x1] }
 0x25b   : > { %v3677_v31 = vsel %vm3671_vm3, %v3640_v23, %v3604_v1  ;;  %2954 = vst.msk [vmem:[#allocation2 + $0x58] sm:$0xf] %vm509_vm9, %v2803_v19  ;;  %v3560_v40 = vrot.slane %v8469_v32, 1  ;;  %v2637_v1 = vshrl.u32 %v2477_v8, 16  ;;  %v3299_v19 = vshrl.u32 %v9599_v27, 16 }
 0x25c   : > { %7823 = vmatmul.msk.bf16.gmra.mxu2 %vm3718_vm5, %v3677_v31  ;;  %7844 = vmatmul.msk.bf16.gmra.mxu3 %vm3718_vm5, %v3677_v31  ;;  %12506 = vst [vmem:[#allocation58_spill] sm:$0xff] %v9618_v41  ;;  %v2944_v32 = vld [vmem:[#allocation2 + $0x48] sm:$0xf]  ;;  %v854_v23 = vadd.f32 %v9312_v62, %v853_v34  ;;  %v9627_v54 = vpack.c.bf16 %v9618_v41, %v9618_v41  ;;  %v2951_v41 = vld [vmem:[#allocation2 + $0x54] sm:$0xf] }
 0x25d   : > { %7864 = vmatmul.msk.bf16.vlgmr.msrb.gmra.mxu0 %vm3718_vm5, %v3677_v31  ;;  %v3562_v25 = vsel %vm1519_vm13, %v3560_v40, %v3561_v57  ;;  %v3304_v14 = vor.u32 %v3303_v5, %v3299_v19  ;;  %v3308_v31 = vrot.slane %v3306_v21, 1  ;;  %v2640_v57 = vshll.u32 %v2477_v8, 16  ;;  %v9637_v19 = vpop.f32.mrf.mxu3 }
 0x25e   : > { %3609 = vrot.lane.b32.xlu1 %v3562_v25, %s12419_s29  ;;  %v9632_v25 = vrot.slane %v2637_v1, 7  ;;  %v3207_v21 = vunpack.c.l.b16 %v3063_v47  ;;  %12508 = vst [vmem:[#allocation60_spill] sm:$0xff] %v9637_v19  ;;  %v9639_v5 = vmax.f32 %v854_v23, 0.0 }
 0x25f   : > { %v2797_v42 = vpop.permute.xlu1 %2796  ;;  %v3309_v40 = vsel %vm3237_vm15, %v3304_v14, %v3308_v31 }
 0x260   : > { %2947 = vst.msk [vmem:[#allocation2 + $0x4c] sm:$0xf] %vm509_vm9, %v2797_v42  ;;  %3464 = vrot.lane.b32.xlu0 %v3309_v40, %s8509_s30  ;;  %v2654_v42 = vshrl.u32 %v9627_v54, 16  ;;  %v12390_v8 = vrot.slane %v9632_v25, 4  ;;  %v2642_v1 = vor.u32 %v2640_v57, %v9632_v25  ;;  %v3225_v14 = vpack.c.b16 %v3207_v21, %v3207_v21 }
 0x261   : > { %v2795_v37 = vpop.permute.xlu0 %2794  ;;  %12507 = vst [vmem:[#allocation59_spill] sm:$0xff] %v9632_v25  ;;  %v860_v31 = vpop.f32.mrf.mxu0  ;;  %v2478_v23 = vpack.c.bf16 %v9639_v5, %v9639_v5 }
 0x262   : > { %v2945_v48 = vsel %vm8793_vm10, %v2795_v37, %v2944_v32  ;;  %v9634_v34 = vpop.permute.xlu2 %3607  ;;  %12509 = vst [vmem:[#allocation61_spill] sm:$0xff] %v9639_v5  ;;  %v2635_v37 = vrot.slane %v9573_v46, 4  ;;  %v9655_v57 = vrot.slane %v2654_v42, 7  ;;  %v3564_v29 = vrot.slane %v3225_v14, 1 }
 0x263   : > { %2946 = vst [vmem:[#allocation2 + $0x48] sm:$0xf] %v2945_v48  ;;  %v3642_v48 = vsel %vm746_vm1, %v9464_v43, %v9595_v10  ;;  %v3318_v10 = vshll.u32 %v3225_v14, 16 }
 0x264   : > { %v9659_v40 = vsel %vm8670_vm4, %v2635_v37, %v2642_v1  ;;  %v859_v37 = vadd.f32 %v9312_v62, %v858_v45  ;;  %v8371_v45 = vld [vmem:[#allocation2 + $0x54] sm:$0xf0] }
 0x265   : > { %12510 = vst [vmem:[#allocation62_spill] sm:$0xff] %v9659_v40 }
 0x266   : > { %2816 = vrot.lane.b32.xlu1 %v12390_v8, %s8507_s25 }
 0x267   : > { %v2801_v32 = vpop.permute.xlu1 %2800  ;;  %v8211_v19 = vld [vmem:[#allocation2 + $0x48] sm:$0xf0] }
 0x268   : > { %v2952_v47 = vsel %vm8793_vm10, %v2801_v32, %v2951_v41  ;;  %2814 = vrot.lane.b32.xlu0 %v9659_v40, %s8507_s25  ;;  %v2646_v32 = vshrl.u32 %v2478_v23, 16  ;;  %v2955_v40 = vld [vmem:[#allocation2 + $0x5c] sm:$0x1] }
 0x269   : > { %2953 = vst [vmem:[#allocation2 + $0x54] sm:$0xf] %v2952_v47  ;;  %v3606_v46 = vpop.permute.xlu0 %3605 }
 0x26a   : > { %v3679_v21 = vsel %vm3671_vm3, %v3642_v48, %v3606_v46  ;;  %v9662_v8 = vld [vmem:[#allocation2 + $0x48] sm:$0xff]   ;;  %v2809_v25 = vpop.permute.xlu2 %2808  ;;  %v9674_v48 = vpop.f32.mrf.mxu3  ;;  %v2648_v0 = vrot.slane %v2646_v32, 7  ;;  %v861_v32 = vadd.f32 %v9312_v62, %v860_v31 }
 0x26b   : > { %v8212_v5 = vld [vmem:[#allocation2 + $0x48] sm:$0xe]  ;;  %v3313_v43 = vshll.u32 %v9662_v8, 16  ;;  %2961 = vst.msk [vmem:[#allocation2 + $0x64] sm:$0xf] %vm509_vm9, %v2809_v25  ;;  %v3311_v1 = vshrl.u32 %v9662_v8, 16 }
 0x26c   : > { %v8213_v42 = vor.u32 %v8212_v5, %v8211_v19  ;;  %7824 = vmatmul.msk.bf16.gmra.mxu2 %vm3718_vm5, %v3679_v21  ;;  %7845 = vmatmul.msk.bf16.gmra.mxu3 %vm3718_vm5, %v3679_v21  ;;  %12511 = vst [vmem:[#allocation63_spill] sm:$0xff] %v9674_v48  ;;  %v3320_v19 = vrot.slane %v3318_v10, 1  ;;  %v12512_v25 = vrot.slane %v9655_v57, 4  ;;  %v863_v5 = vpop.f32.mrf.mxu0 }
 0x26d   : > { %7865 = vmatmul.msk.bf16.gmra.mxu0 %vm3718_vm5, %v3679_v21  ;;  %v3315_v47 = vrot.slane %v3313_v43, 1  ;;  %v9681_v21 = vmax.f32 %v859_v37, 0.0  ;;  %v2649_v37 = vshll.u32 %v2478_v23, 16 }
 0x26e   : > { %v3563_v46 = vrot.slane %v8213_v42, 1  ;;  %2822 = vrot.lane.b32.xlu1 %v12512_v25, %s8507_s25  ;;  %v2657_v42 = vshll.u32 %v9627_v54, 16 }
 0x26f   : > { %v3316_v41 = vor.u32 %v3315_v47, %v3311_v1  ;;  %12513 = vst [vmem:[#allocation64_spill] sm:$0xff] %v9681_v21  ;;  %v2480_v47 = vpack.c.bf16 %v9681_v21, %v9681_v21  ;;  %v9700_v31 = vor.u32 %v2649_v37, %v2648_v0 }
 0x270   : > { %v9679_v22 = vld [vmem:[#allocation2 + $0x54] sm:$0xff]   ;;  %v3565_v1 = vsel %vm1519_vm13, %v3563_v46, %v3564_v29 }
 0x271   : > { %v2805_v44 = vpop.permute.xlu0 %2804  ;;  %v3321_v43 = vsel %vm3237_vm15, %v3316_v41, %v3320_v19  ;;  %3611 = vrot.lane.b32.xlu0 %v3565_v1, %s12419_s29  ;;  %v8372_v14 = vld [vmem:[#allocation2 + $0x54] sm:$0xe]  ;;  %v9693_v41 = vmax.f32 %v861_v32, 0.0  ;;  %v2652_v19 = vrot.slane %v2648_v0, 4  ;;  %v2663_v46 = vshrl.u32 %v2480_v47, 16 }
 0x272   : > { %v2956_v10 = vsel %vm8823_vm12, %v2805_v44, %v2955_v40  ;;  %3466 = vrot.lane.b32.xlu2 %v3321_v43, %s8509_s30  ;;  %v2659_v44 = vor.u32 %v2657_v42, %v9655_v57  ;;  %v2962_v40 = vld [vmem:[#allocation2 + $0x68] sm:$0x1]  ;;  %v9696_v25 = vpop.f32.mrf.mxu3  ;;  %v3325_v23 = vshll.u32 %v9679_v22, 16  ;;  %v8373_v32 = vor.u32 %v8372_v14, %v8371_v45 }
 0x273   : > { %2957 = vst [vmem:[#allocation2 + $0x5c] sm:$0x1] %v2956_v10  ;;  %v2481_v1 = vpack.c.bf16 %v9693_v41, %v9693_v41  ;;  %v2666_v21 = vshll.u32 %v2480_v47, 16  ;;  %v864_v47 = vadd.f32 %v9312_v62, %v863_v5 }
 0x274   : > { %12514 = vst [vmem:[#allocation65_spill] sm:$0xff] %v9693_v41  ;;  %v865_v10 = vpop.f32.mrf.mxu0  ;;  %v9709_v42 = vsel %vm8670_vm4, %v2652_v19, %v2659_v44  ;;  %v2958_v19 = vld [vmem:[#allocation2 + $0x60] sm:$0xf]  ;;  %v426_v41 = vld [vmem:[#allocation2 + $0x6c] sm:$0x1]  ;;  %v3327_v14 = vrot.slane %v3325_v23, 1 }
 0x275   : > { %12515 = vst [vmem:[#allocation66_spill] sm:$0xff] %v9709_v42  ;;  %v866_v44 = vadd.f32 %v9312_v62, %v865_v10  ;;  %v3323_v10 = vshrl.u32 %v9679_v22, 16 }
 0x276   : > { %v3463_v54 = vpop.permute.xlu1 %3462 }
 0x277   : > { %v3644_v29 = vsel %vm746_vm1, %v9506_v58, %v3463_v54 }
 0x278   : > { %v3681_v37 = vsel %vm3671_vm3, %v3644_v29, %v9634_v34  ;;  %v3566_v29 = vrot.slane %v8373_v32, 1  ;;  %v2674_v32 = vshll.u32 %v2481_v1, 16 }
 0x279   : > { %v2811_v43 = vpop.permute.xlu0 %2810  ;;  %2820 = vrot.lane.b32.xlu0 %v9709_v42, %s8507_s25 }
 0x27a   : > { %2818 = vrot.lane.b32.xlu2 %v9700_v31, %s8507_s25  ;;  %v2963_v58 = vsel %vm8823_vm12, %v2811_v43, %v2962_v40  ;;  %v3064_v0 = vld [vmem:[#allocation2 + $0x5c] sm:$0x1]  ;;  %v2665_v40 = vrot.slane %v2663_v46, 7  ;;  %v427_v43 = vsel %vm8721_vm6, 0, %v426_v41  ;;  %v3328_v41 = vor.u32 %v3327_v14, %v3323_v10  ;;  %v9733_v5 = vpop.f32.mrf.mxu3 }
 0x27b   : > { %2964 = vst [vmem:[#allocation2 + $0x68] sm:$0x1] %v2963_v58  ;;  %v3208_v54 = vunpack.c.l.b16 %v3064_v0  ;;  %v2671_v58 = vshrl.u32 %v2481_v1, 16 }
 0x27c   : > { %7825 = vmatmul.msk.bf16.gmra.mxu2 %vm3718_vm5, %v3681_v37  ;;  %7846 = vmatmul.msk.bf16.gmra.mxu3 %vm3718_vm5, %v3681_v37  ;;  %428 = vst [vmem:[#allocation2 + $0x6c] sm:$0x1] %v427_v43  ;;  %v2669_v43 = vrot.slane %v2665_v40, 4 }
 0x27d   : > { %7866 = vmatmul.msk.bf16.gmra.mxu0 %vm3718_vm5, %v3681_v37  ;;  %v3226_v45 = vpack.c.b16 %v3208_v54, %v3208_v54  ;;  %v9727_v37 = vmax.f32 %v866_v44, 0.0  ;;  %v9730_v54 = vor.u32 %v2666_v21, %v2665_v40  ;;  %12518 = vst [vmem:[#allocation69_spill] sm:$0xff] %v9733_v5  ;;  %v9740_v44 = vrot.slane %v2671_v58, 7  ;;  %v8214_v40 = vld [vmem:[#allocation2 + $0x60] sm:$0xf0] }
 0x27e   : > { %v2807_v34 = vpop.permute.xlu1 %2806 }
 0x27f   : > { %v2959_v0 = vsel %vm8793_vm10, %v2807_v34, %v2958_v19  ;;  %v3567_v48 = vrot.slane %v3226_v45, 1  ;;  %v3330_v46 = vshll.u32 %v3226_v45, 16  ;;  %12516 = vst [vmem:[#allocation67_spill] sm:$0xff] %v9727_v37  ;;  %v9738_v45 = vmax.f32 %v864_v47, 0.0 }
 0x280   : > { %2960 = vst [vmem:[#allocation2 + $0x60] sm:$0xf] %v2959_v0  ;;  %v2483_v21 = vpack.c.bf16 %v9727_v37, %v9727_v37  ;;  %v2676_v34 = vor.u32 %v2674_v32, %v9740_v44  ;;  %v12405_v47 = vrot.slane %v9740_v44, 4 }
 0x281   : > { %v3568_v23 = vsel %vm1519_vm13, %v3566_v29, %v3567_v48  ;;  %12517 = vst [vmem:[#allocation68_spill] sm:$0xff] %v9730_v54  ;;  %v3332_v42 = vrot.slane %v3330_v46, 1  ;;  %2824 = vrot.lane.b32.xlu0 %v9730_v54, %s8507_s25  ;;  %v2482_v14 = vpack.c.bf16 %v9738_v45, %v9738_v45 }
 0x282   : > { %3613 = vrot.lane.b32.xlu2 %v3568_v23, %s12419_s29  ;;  %v3065_v62 = vld [vmem:[#allocation2 + $0x68] sm:$0x1]  ;;  %12519 = vst [vmem:[#allocation70_spill] sm:$0xff] %v9738_v45  ;;  %v2688_v58 = vshrl.u32 %v2483_v21, 16  ;;  %v9758_v32 = vsel %vm8670_vm4, %v2669_v43, %v2676_v34  ;;  %v9764_v45 = vpop.f32.mrf.mxu3  ;;  %v2691_v34 = vshll.u32 %v2483_v21, 16 }
 0x283   : > { %v3333_v19 = vsel %vm3237_vm15, %v3328_v41, %v3332_v42  ;;  %12520 = vst [vmem:[#allocation71_spill] sm:$0xff] %v9740_v44  ;;  %v3209_v48 = vunpack.c.l.b16 %v3065_v62  ;;  %v2680_v62 = vshrl.u32 %v2482_v14, 16  ;;  %v2683_v5 = vshll.u32 %v2482_v14, 16 }
 0x284   : > { %3468 = vrot.lane.b32.xlu1 %v3333_v19, %s8509_s30  ;;  %12521 = vst [vmem:[#allocation72_spill] sm:$0xff] %v9758_v32  ;;  %v9762_v37 = vrot.slane %v2688_v58, 7 }
 0x285   : > { %v3227_v1 = vpack.c.b16 %v3209_v48, %v3209_v48 }
 0x286   : > { %12522 = vst [vmem:[#allocation73_spill] sm:$0xff] %v9762_v37 }
 0x287   : > { %v9748_v29 = vld [vmem:[#allocation2 + $0x60] sm:$0xff]   ;;  %v3342_v42 = vshll.u32 %v3227_v1, 16  ;;  %v3570_v43 = vrot.slane %v3227_v1, 1 }
 0x288   : > { %v3337_v0 = vshll.u32 %v9748_v29, 16  ;;  %v8215_v10 = vld [vmem:[#allocation2 + $0x60] sm:$0xe]  ;;  %v3335_v46 = vshrl.u32 %v9748_v29, 16 }
 0x289   : > { %v3344_v41 = vrot.slane %v3342_v42, 1  ;;  %v8216_v19 = vor.u32 %v8215_v10, %v8214_v40  ;;  %v2682_v42 = vrot.slane %v2680_v62, 7  ;;  %v429_v40 = vld [vmem:[#allocation2 + $0x78] sm:$0x1] }
 0x28a   : > { %2828 = vrot.lane.b32.xlu2 %v12405_v47, %s8507_s25  ;;  %v3339_v23 = vrot.slane %v3337_v0, 1  ;;  %v12407_v0 = vrot.slane %v9762_v37, 4  ;;  %v430_v62 = vsel %vm8721_vm6, 0, %v429_v40 }
 0x28b   : > { %v3569_v44 = vrot.slane %v8216_v19, 1  ;;  %v9773_v10 = vor.u32 %v2683_v5, %v2682_v42  ;;  %v2813_v5 = vpop.permute.xlu2 %2812  ;;  %431 = vst [vmem:[#allocation2 + $0x78] sm:$0x1] %v430_v62 }
 0x28c   : > { %2826 = vrot.lane.b32.xlu1 %v9758_v32, %s8507_s25  ;;  %v3340_v48 = vor.u32 %v3339_v23, %v3335_v46  ;;  %v2686_v46 = vrot.slane %v2682_v42, 4  ;;  %v2693_v23 = vor.u32 %v2691_v34, %v9762_v37  ;;  %v488_v34 = vld [vmem:[#allocation2 + $0x8c] sm:$0x1] }
 0x28d   : > { %v3571_v58 = vsel %vm1519_vm13, %v3569_v44, %v3570_v43  ;;  %12523 = vst [vmem:[#allocation74_spill] sm:$0xff] %v9773_v10  ;;  %v2965_v44 = vld [vmem:[#allocation2 + $0x6c] sm:$0xf] }
 0x28e   : > { %v3345_v47 = vsel %vm3237_vm15, %v3340_v48, %v3344_v41  ;;  %v9777_v41 = vpop.f32.mrf.mxu3  ;;  %v9783_v21 = vsel %vm8670_vm4, %v2686_v46, %v2693_v23  ;;  %v2966_v1 = vsel %vm8793_vm10, %v2813_v5, %v2965_v44  ;;  %v482_v48 = vld [vmem:[#allocation2 + $0x74] sm:$0x1]  ;;  %v485_v46 = vld [vmem:[#allocation2 + $0x80] sm:$0x1] }
 0x28f   : > { %3470 = vrot.lane.b32.xlu0 %v3345_v47, %s8509_s30  ;;  %12524 = vst [vmem:[#allocation75_spill] sm:$0xff] %v9777_v41  ;;  %v483_v42 = vsel %vm8781_vm8, 0, %v482_v48  ;;  %v486_v23 = vsel %vm8781_vm8, 0, %v485_v46  ;;  %v432_v48 = vld [vmem:[#allocation2 + $0x84] sm:$0x1] }
 0x290   : > { %12525 = vst [vmem:[#allocation76_spill] sm:$0xff] %v9783_v21 }
 0x291   : > { %2967 = vst [vmem:[#allocation2 + $0x6c] sm:$0xf] %v2966_v1 }
 0x292   : > { %2834 = vrot.lane.b32.xlu2 %v12407_v0, %s8507_s25  ;;  %484 = vst [vmem:[#allocation2 + $0x74] sm:$0x1] %v483_v42  ;;  %v2972_v42 = vld [vmem:[#allocation2 + $0x78] sm:$0xf]  ;;  %v433_v0 = vsel %vm8721_vm6, 0, %v432_v48 }
 0x293   : > { %487 = vst [vmem:[#allocation2 + $0x80] sm:$0x1] %v486_v23 }
 0x294   : > { %3615 = vrot.lane.b32.xlu1 %v3571_v58, %s12419_s29  ;;  %v489_v58 = vsel %vm8781_vm8, 0, %v488_v34  ;;  %434 = vst [vmem:[#allocation2 + $0x84] sm:$0x1] %v433_v0 }
 0x295   : > { %490 = vst [vmem:[#allocation2 + $0x8c] sm:$0x1] %v489_v58 }
 0x296   : > { %v9789_v14 = vpop.f32.mrf.mxu3 }
 0x297   : > { %2830 = vrot.lane.b32.xlu0 %v9773_v10, %s8507_s25  ;;  %12526 = vst [vmem:[#allocation77_spill] sm:$0xff] %v9789_v14 }
 0x299   : > { %v2969_v14 = vld [vmem:[#allocation2 + $0x74] sm:$0x1] }
 0x29c   : > { %2832 = vrot.lane.b32.xlu1 %v9783_v21, %s8507_s25  ;;  %s12416_s25 = smov 116  }
 0x29e   : > { %v9791_v47 = vpop.f32.mrf.mxu3 }
 0x29f   : > { %12527 = vst [vmem:[#allocation78_spill] sm:$0xff] %v9791_v47 }
 0x2a6   : > { %v9795_v19 = vpop.f32.mrf.mxu3 }
 0x2a7   : > { %12528 = vst [vmem:[#allocation79_spill] sm:$0xff] %v9795_v19 }
 0x2ae   : > { %v9799_v43 = vpop.f32.mrf.mxu3 }
 0x2af   : > { %12529 = vst [vmem:[#allocation80_spill] sm:$0xff] %v9799_v43  ;;  %v491_v43 = vld [vmem:[#allocation2 + $0x98] sm:$0x1] }
 0x2b0   : > { %v492_v34 = vsel %vm8781_vm8, 0, %v491_v43 }
 0x2b1   : > { %493 = vst [vmem:[#allocation2 + $0x98] sm:$0x1] %v492_v34 }
 0x2b6   : > { %v3862_v44 = vpop.f32.mrf.mxu3 }
 0x2be   : > { %v9805_v40 = vpop.f32.mrf.mxu3 }
 0x2bf   : > { %12530 = vst [vmem:[#allocation81_spill] sm:$0xff] %v9805_v40  ;;  %v2983_v40 = vld [vmem:[#allocation2 + $0x8c] sm:$0x1] }
 0x2cc   : > { %v3467_v5 = vpop.permute.xlu2 %3466 }
 0x2cd   : > { %v3763_v1 = vpop.f32.mrf.mxu2  ;;  %v3867_v0 = vpop.f32.mrf.mxu3 }
 0x2ce   : > { %v3863_v41 = vadd.f32 %v3862_v44, %v3763_v1  ;;  %v2976_v44 = vld [vmem:[#allocation2 + $0x80] sm:$0x1] }
 0x2d0   : > { %v3610_v62 = vpop.permute.xlu1 %3609 }
 0x2d2   : > { %v3465_v23 = vpop.permute.xlu0 %3464 }
 0x2d3   : > { %v3646_v47 = vsel %vm746_vm1, %v9599_v27, %v3465_v23 }
 0x2d4   : > { %v2819_v58 = vpop.permute.xlu2 %2818  ;;  %v3683_v48 = vsel %vm3671_vm3, %v3646_v47, %v3610_v62 }
 0x2d5   : > { %v2973_v46 = vsel %vm8793_vm10, %v2819_v58, %v2972_v42  ;;  %v9813_v19 = vpop.f32.mrf.mxu2  ;;  %7826 = vmatmul.msk.bf16.gmra.mxu2 %vm3718_vm5, %v3683_v48  ;;  %7847 = vmatmul.msk.bf16.gmra.mxu3 %vm3718_vm5, %v3683_v48 }
 0x2d6   : > { %2974 = vst [vmem:[#allocation2 + $0x78] sm:$0xf] %v2973_v46  ;;  %7867 = vmatmul.msk.bf16.gmra.mxu0 %vm3718_vm5, %v3683_v48 }
 0x2d7   : > { %12531 = vst [vmem:[#allocation82_spill] sm:$0xff] %v9813_v19 }
 0x2d8   : > { %v2817_v43 = vpop.permute.xlu1 %2816 }
 0x2d9   : > { %v2970_v34 = vsel %vm8823_vm12, %v2817_v43, %v2969_v14  ;;  %v9832_v14 = vpop.f32.mrf.mxu3 }
 0x2da   : > { %v3964_v42 = vpop.f32.mrf.mxu0  ;;  %2971 = vst [vmem:[#allocation2 + $0x74] sm:$0x1] %v2970_v34  ;;  %v2815_v46 = vpop.permute.xlu0 %2814 }
 0x2db   : > { %v9823_v58 = vadd.f32 %v3964_v42, %v3863_v41  ;;  %2968 = vst.msk [vmem:[#allocation2 + $0x70] sm:$0xf] %vm509_vm9, %v2815_v46  ;;  %v8375_v42 = vld [vmem:[#allocation2 + $0x6c] sm:$0xe] }
 0x2dc   : > { %v9825_v27 = vpop.permute.xlu2 %3613  ;;  %12534 = vst [vmem:[#allocation85_spill] sm:$0xff] %v9832_v14 }
 0x2dd   : > { %12532 = vst [vmem:[#allocation83_spill] sm:$0xff] %v9823_v58  ;;  %v8218_v21 = vld [vmem:[#allocation2 + $0x78] sm:$0xe] }
 0x2df   : > { %v3768_v47 = vpop.f32.mrf.mxu2 }
 0x2e0   : > { %v3868_v1 = vadd.f32 %v3867_v0, %v3768_v47  ;;  %v2823_v62 = vpop.permute.xlu1 %2822  ;;  %v3648_v0 = vsel %vm746_vm1, %v9662_v8, %v3467_v5 }
 0x2e1   : > { %v2977_v48 = vsel %vm8823_vm12, %v2823_v62, %v2976_v44  ;;  %v3066_v19 = vld [vmem:[#allocation2 + $0x74] sm:$0x1] }
 0x2e2   : > { %v9828_v23 = vpop.f32.mrf.mxu0  ;;  %2978 = vst [vmem:[#allocation2 + $0x80] sm:$0x1] %v2977_v48  ;;  %v3210_v41 = vunpack.c.l.b16 %v3066_v19  ;;  %v9838_v47 = vld [vmem:[#allocation2 + $0x6c] sm:$0xff]  }
 0x2e3   : > { %12533 = vst [vmem:[#allocation84_spill] sm:$0xff] %v9828_v23  ;;  %v3612_v46 = vpop.permute.xlu0 %3611  ;;  %v8374_v58 = vld [vmem:[#allocation2 + $0x6c] sm:$0xf0] }
 0x2e4   : > { %v2829_v43 = vpop.permute.xlu2 %2828  ;;  %v3228_v23 = vpack.c.b16 %v3210_v41, %v3210_v41  ;;  %v3685_v62 = vsel %vm3671_vm3, %v3648_v0, %v3612_v46  ;;  %v435_v48 = vld [vmem:[#allocation2 + $0x90] sm:$0x1]  ;;  %v8376_v19 = vor.u32 %v8375_v42, %v8374_v58  ;;  %v3872_v41 = vpop.f32.mrf.mxu3  ;;  %v3349_v0 = vshll.u32 %v9838_v47, 16 }
 0x2e5   : > { %v2984_v34 = vsel %vm8823_vm12, %v2829_v43, %v2983_v40  ;;  %7827 = vmatmul.msk.bf16.gmra.mxu2 %vm3718_vm5, %v3685_v62  ;;  %7848 = vmatmul.msk.bf16.gmra.mxu3 %vm3718_vm5, %v3685_v62  ;;  %v436_v40 = vsel %vm8721_vm6, 0, %v435_v48  ;;  %v2990_v43 = vld [vmem:[#allocation2 + $0x98] sm:$0x1]  ;;  %v3347_v58 = vshrl.u32 %v9838_v47, 16 }
 0x2e6   : > { %2985 = vst [vmem:[#allocation2 + $0x8c] sm:$0x1] %v2984_v34  ;;  %7868 = vmatmul.msk.bf16.gmra.mxu0 %vm3718_vm5, %v3685_v62  ;;  %v3573_v5 = vrot.slane %v3228_v23, 1  ;;  %v3572_v14 = vrot.slane %v8376_v19, 1  ;;  %v3354_v46 = vshll.u32 %v3228_v23, 16  ;;  %v3351_v42 = vrot.slane %v3349_v0, 1 }
 0x2e7   : > { %v9840_v44 = vpop.f32.mrf.mxu2  ;;  %437 = vst [vmem:[#allocation2 + $0x90] sm:$0x1] %v436_v40  ;;  %v2979_v0 = vld [vmem:[#allocation2 + $0x84] sm:$0xf] }
 0x2e8   : > { %12535 = vst [vmem:[#allocation86_spill] sm:$0xff] %v9840_v44  ;;  %v3574_v38 = vsel %vm1519_vm13, %v3572_v14, %v3573_v5  ;;  %v3352_v19 = vor.u32 %v3351_v42, %v3347_v58  ;;  %v3356_v40 = vrot.slane %v3354_v46, 1 }
 0x2e9   : > { %v3067_v48 = vld [vmem:[#allocation2 + $0x80] sm:$0x1]  ;;  %3617 = vrot.lane.b32.xlu0 %v3574_v38, %s12419_s29 }
 0x2ea   : > { %v3969_v8 = vpop.f32.mrf.mxu0  ;;  %v3357_v14 = vsel %vm3237_vm15, %v3352_v19, %v3356_v40 }
 0x2eb   : > { %v9848_v34 = vadd.f32 %v3969_v8, %v3868_v1  ;;  %v2821_v56 = vpop.permute.xlu0 %2820  ;;  %v3211_v8 = vunpack.c.l.b16 %v3067_v48  ;;  %3472 = vrot.lane.b32.xlu2 %v3357_v14, %s8509_s30 }
 0x2ec   : > { %v2835_v44 = vpop.permute.xlu2 %2834  ;;  %2975 = vst.msk [vmem:[#allocation2 + $0x7c] sm:$0xf] %vm509_vm9, %v2821_v56 }
 0x2ed   : > { %12536 = vst [vmem:[#allocation87_spill] sm:$0xff] %v9848_v34  ;;  %v2991_v62 = vsel %vm8823_vm12, %v2835_v44, %v2990_v43  ;;  %v3229_v44 = vpack.c.b16 %v3211_v8, %v3211_v8  ;;  %v9861_v43 = vpop.f32.mrf.mxu3 }
 0x2ee   : > { %2992 = vst [vmem:[#allocation2 + $0x98] sm:$0x1] %v2991_v62 }
 0x2ef   : > { %v3773_v1 = vpop.f32.mrf.mxu2  ;;  %12538 = vst [vmem:[#allocation89_spill] sm:$0xff] %v9861_v43  ;;  %v3366_v19 = vshll.u32 %v3229_v44, 16  ;;  %v3576_v8 = vrot.slane %v3229_v44, 1  ;;  %v632_v43 = vld [vmem:[%s8633_s16 + $0xc] sm:$0xf] }
 0x2f0   : > { %v3873_v23 = vadd.f32 %v3872_v41, %v3773_v1 }
 0x2f2   : > { %v9858_v5 = vpop.f32.mrf.mxu0 }
 0x2f3   : > { %12537 = vst [vmem:[#allocation88_spill] sm:$0xff] %v9858_v5  ;;  %v2825_v34 = vpop.permute.xlu0 %2824  ;;  %v8217_v62 = vld [vmem:[#allocation2 + $0x78] sm:$0xf0] }
 0x2f4   : > { %v9863_v56 = vld [vmem:[#allocation2 + $0x78] sm:$0xff]   ;;  %v2980_v41 = vsel %vm8793_vm10, %v2825_v34, %v2979_v0  ;;  %v8219_v42 = vor.u32 %v8218_v21, %v8217_v62 }
 0x2f5   : > { %2981 = vst [vmem:[#allocation2 + $0x84] sm:$0xf] %v2980_v41  ;;  %v3361_v1 = vshll.u32 %v9863_v56, 16 }
 0x2f6   : > { %v3469_v38 = vpop.permute.xlu1 %3468  ;;  %v3575_v40 = vrot.slane %v8219_v42, 1  ;;  %v3068_v42 = vld [vmem:[#allocation2 + $0x8c] sm:$0x1] }
 0x2f7   : > { %v3650_v46 = vsel %vm746_vm1, %v9679_v22, %v3469_v38  ;;  %v9869_v58 = vpop.f32.mrf.mxu2  ;;  %v3359_v22 = vshrl.u32 %v9863_v56, 16  ;;  %v3363_v14 = vrot.slane %v3361_v1, 1  ;;  %v3368_v38 = vrot.slane %v3366_v19, 1 }
 0x2f8   : > { %12539 = vst [vmem:[#allocation90_spill] sm:$0xff] %v9869_v58  ;;  %v3687_v48 = vsel %vm3671_vm3, %v3650_v46, %v9825_v27  ;;  %v3577_v0 = vsel %vm1519_vm13, %v3575_v40, %v3576_v8  ;;  %v3877_v46 = vpop.f32.mrf.mxu3  ;;  %v3212_v1 = vunpack.c.l.b16 %v3068_v42  ;;  %v3069_v42 = vld [vmem:[#allocation2 + $0x98] sm:$0x1] }
 0x2f9   : > { %7828 = vmatmul.msk.bf16.gmra.mxu2 %vm3718_vm5, %v3687_v48  ;;  %7849 = vmatmul.msk.bf16.gmra.mxu3 %vm3718_vm5, %v3687_v48  ;;  %v3364_v27 = vor.u32 %v3363_v14, %v3359_v22 }
 0x2fa   : > { %v3974_v34 = vpop.f32.mrf.mxu0  ;;  %7869 = vmatmul.msk.bf16.gmra.mxu0 %vm3718_vm5, %v3687_v48  ;;  %3619 = vrot.lane.b32.xlu2 %v3577_v0, %s12419_s29  ;;  %v3230_v14 = vpack.c.b16 %v3212_v1, %v3212_v1 }
 0x2fb   : > { %v9878_v21 = vadd.f32 %v3974_v34, %v3873_v23  ;;  %v3369_v62 = vsel %vm3237_vm15, %v3364_v27, %v3368_v38  ;;  %v2986_v27 = vld [vmem:[#allocation2 + $0x90] sm:$0xf] }
 0x2fc   : > { %3474 = vrot.lane.b32.xlu1 %v3369_v62, %s8509_s30  ;;  %v8471_v34 = vld [vmem:[#allocation2 + $0x84] sm:$0xe] }
 0x2fd   : > { %12540 = vst [vmem:[#allocation91_spill] sm:$0xff] %v9878_v21  ;;  %v520_v21 = vld [vmem:[#allocation3] sm:$0x1] }
 0x2fe   : > { %v2827_v41 = vpop.permute.xlu1 %2826 }
 0x2ff   : > { %2982 = vst.msk [vmem:[#allocation2 + $0x88] sm:$0xf] %vm509_vm9, %v2827_v41  ;;  %v3778_v44 = vpop.f32.mrf.mxu2  ;;  %v3579_v41 = vrot.slane %v3230_v14, 1 }
 0x300   : > { %v9885_v48 = vadd.f32 %v3877_v46, %v3778_v44  ;;  %v3378_v46 = vshll.u32 %v3230_v14, 16 }
 0x301   : > { %v3471_v23 = vpop.permute.xlu0 %3470 }
 0x302   : > { %v3652_v40 = vsel %vm746_vm1, %v9748_v29, %v3471_v23 }
 0x304   : > { %4144 = vrot.lane.b32.xlu1 %v8884_v15, %s12416_s25 }
 0x306   : > { %v3616_v8 = vpop.permute.xlu1 %3615  ;;  %v9889_v19 = vld [vmem:[#allocation2 + $0x84] sm:$0xff]  }
 0x307   : > { %v8470_v22 = vld [vmem:[#allocation2 + $0x84] sm:$0xf0]  ;;  %v3689_v0 = vsel %vm3671_vm3, %v3652_v40, %v3616_v8  ;;  %v3373_v15 = vshll.u32 %v9889_v19, 16  ;;  %v3371_v1 = vshrl.u32 %v9889_v19, 16  ;;  %v3213_v8 = vunpack.c.l.b16 %v3069_v42 }
 0x308   : > { %v8472_v62 = vor.u32 %v8471_v34, %v8470_v22  ;;  %v12541_v22 = vrot.slane %v8845_v55, 4 }
 0x309   : > { %7829 = vmatmul.msk.bf16.gmra.mxu2 %vm3718_vm5, %v3689_v0  ;;  %7850 = vmatmul.msk.bf16.gmra.mxu3 %vm3718_vm5, %v3689_v0  ;;  %v2831_v38 = vpop.permute.xlu0 %2830  ;;  %v3375_v40 = vrot.slane %v3373_v15, 1 }
 0x30a   : > { %7870 = vmatmul.msk.bf16.gmra.mxu0 %vm3718_vm5, %v3689_v0  ;;  %v2987_v29 = vsel %vm8793_vm10, %v2831_v38, %v2986_v27  ;;  %v3578_v44 = vrot.slane %v8472_v62, 1  ;;  %v3380_v0 = vrot.slane %v3378_v46, 1  ;;  %v3231_v38 = vpack.c.b16 %v3213_v8, %v3213_v8  ;;  %v526_v8 = vld [vmem:[#allocation3 + $0x18] sm:$0x1] }
 0x30b   : > { %2988 = vst [vmem:[#allocation2 + $0x90] sm:$0xf] %v2987_v29  ;;  %v3376_v14 = vor.u32 %v3375_v40, %v3371_v1  ;;  %v523_v29 = vld [vmem:[#allocation3 + $0xc] sm:$0x1]  ;;  %v12542_v46 = vrot.slane %v8912_v24, 4 }
 0x30c   : > { %v3580_v23 = vsel %vm1519_vm13, %v3578_v44, %v3579_v41  ;;  %4148 = vrot.lane.b32.xlu1 %v12541_v22, %s12416_s25  ;;  %v578_v41 = vld [vmem:[#allocation3 + $0x14] sm:$0x1]  ;;  %v524_v44 = vsel %vm8823_vm12, 4286578559, %v523_v29  ;;  %v3390_v42 = vshll.u32 %v3231_v38, 16 }
 0x30d   : > { %3621 = vrot.lane.b32.xlu2 %v3580_v23, %s12419_s29  ;;  %v3381_v27 = vsel %vm3237_vm15, %v3376_v14, %v3380_v0  ;;  %v579_v55 = vsel %vm8861_vm14, 4286578559, %v578_v41  ;;  %525 = vst [vmem:[#allocation3 + $0xc] sm:$0x1] %v524_v44  ;;  %v527_v22 = vsel %vm8823_vm12, 4286578559, %v526_v8 }
 0x30e   : > { %v2833_v34 = vpop.permute.xlu1 %2832  ;;  %3476 = vrot.lane.b32.xlu0 %v3381_v27, %s8509_s30  ;;  %580 = vst [vmem:[#allocation3 + $0x14] sm:$0x1] %v579_v55  ;;  %v581_v14 = vld [vmem:[#allocation3 + $0x20] sm:$0x1]  ;;  %v629_v0 = vld [vmem:[%s8633_s16] sm:$0xf] }
 0x30f   : > { %2989 = vst.msk [vmem:[#allocation2 + $0x94] sm:$0xf] %vm509_vm9, %v2833_v34  ;;  %v582_v24 = vsel %vm8861_vm14, 4286578559, %v581_v14  ;;  %v3582_v41 = vrot.slane %v3231_v38, 1  ;;  %v923_v58 = vshrl.u32 %v629_v0, 16 }
 0x310   : > { %528 = vst [vmem:[#allocation3 + $0x18] sm:$0x1] %v527_v22  ;;  %v4436_v44 = vld [vmem:[#allocation2 + $0x8] sm:$0x1]  ;;  %v630_v55 = vld [vmem:[%s8633_s16 + $0x4] sm:$0xf] }
 0x311   : > { %583 = vst [vmem:[#allocation3 + $0x20] sm:$0x1] %v582_v24  ;;  %v8238_v8 = vld [vmem:[#allocation2] sm:$0xe]  ;;  %v934_v22 = vshll.u32 %v630_v55, 16 }
 0x312   : > { %v8221_v62 = vld [vmem:[#allocation2 + $0x90] sm:$0xe]  ;;  %v521_v38 = vsel %vm8823_vm12, 4286578559, %v520_v21 }
 0x313   : > { %522 = vst [vmem:[#allocation3] sm:$0x1] %v521_v38 }
 0x314   : > { %4154 = vrot.lane.b32.xlu1 %v12542_v46, %s12416_s25  ;;  %v8237_v46 = vld [vmem:[#allocation2] sm:$0xf0] }
 0x315   : > { %v1245_v37 = vld [vmem:[#allocation3 + $0xc] sm:$0xf]  ;;  %v8239_v21 = vor.u32 %v8238_v8, %v8237_v46 }
 0x316   : > { %v8199_v15 = vld [vmem:[#allocation2 + $0x90] sm:$0xff]   ;;  %4146 = vrot.lane.b32.xlu0 %v9011_v12, %s12416_s25  ;;  %v575_v12 = vld [vmem:[#allocation3 + $0x8] sm:$0x1] }
 0x317   : > { %v8220_v23 = vld [vmem:[#allocation2 + $0x90] sm:$0xf0]  ;;  %v3383_v1 = vshrl.u32 %v8199_v15, 16  ;;  %v3385_v40 = vshll.u32 %v8199_v15, 16 }
 0x318   : > { %v8222_v34 = vor.u32 %v8221_v62, %v8220_v23  ;;  %v3392_v62 = vrot.slane %v3390_v42, 1  ;;  %v631_v23 = vld [vmem:[%s8633_s16 + $0x8] sm:$0xf] }
 0x319   : > { %v3387_v27 = vrot.slane %v3385_v40, 1  ;;  %v926_v40 = vshll.u32 %v629_v0, 16  ;;  %v940_v42 = vshrl.u32 %v631_v23, 16  ;;  %v4580_v0 = vunpack.c.l.b16 %v4436_v44 }
 0x31a   : > { %v3581_v29 = vrot.slane %v8222_v34, 1  ;;  %v931_v34 = vshrl.u32 %v630_v55, 16  ;;  %v951_v44 = vshll.u32 %v632_v43, 16  ;;  %v8043_v38 = vld [vmem:[#allocation3] sm:$0xff]  }
 0x31b   : > { %v3388_v15 = vor.u32 %v3387_v27, %v3383_v1  ;;  %v576_v1 = vsel %vm8861_vm14, 4286578559, %v575_v12  ;;  %v925_v27 = vrot.slane %v923_v58, 7  ;;  %v1249_v58 = vld [vmem:[#allocation3 + $0x14] sm:$0x1] }
 0x31c   : > { %v3583_v14 = vsel %vm1519_vm13, %v3581_v29, %v3582_v41  ;;  %v933_v24 = vrot.slane %v931_v34, 7  ;;  %4156 = vrot.lane.b32.xlu1 %v9077_v9, %s12416_s25  ;;  %v943_v29 = vshll.u32 %v631_v23, 16  ;;  %v948_v41 = vshrl.u32 %v632_v43, 16  ;;  %577 = vst [vmem:[#allocation3 + $0x8] sm:$0x1] %v576_v1 }
 0x31d   : > { %v3393_v5 = vsel %vm3237_vm15, %v3388_v15, %v3392_v62  ;;  %v942_v62 = vrot.slane %v940_v42, 7  ;;  %v928_v15 = vor.u32 %v926_v40, %v925_v27  ;;  %v929_v55 = vrot.slane %v925_v27, 4  ;;  %v1252_v34 = vld [vmem:[#allocation3 + $0x18] sm:$0xf] }
 0x31e   : > { %3478 = vrot.lane.b32.xlu2 %v3393_v5, %s8509_s30  ;;  %v936_v5 = vor.u32 %v934_v22, %v933_v24  ;;  %v938_v10 = vrot.slane %v933_v24, 4  ;;  %v950_v12 = vrot.slane %v948_v41, 7  ;;  %3623 = vrot.lane.b32.xlu0 %v3583_v14, %s12419_s29  ;;  %v1256_v22 = vld [vmem:[#allocation3 + $0x20] sm:$0x1]  ;;  %v9951_v43 = vrot.slane %v8239_v21, 1 }
 0x31f   : > { %v945_v32 = vor.u32 %v943_v29, %v942_v62  ;;  %v946_v54 = vrot.slane %v942_v62, 4  ;;  %v1246_v23 = vsel %vm8793_vm10, %v928_v15, %v1245_v37  ;;  %v9949_v37 = vpack.c.b16 %v4580_v0, %v4580_v0  ;;  %v1718_v29 = vld [vmem:[#allocation3] sm:$0xe] }
 0x320   : > { %v937_v9 = vsel %vm8670_vm4, %v929_v55, %v936_v5  ;;  %v1250_v40 = vsel %vm8823_vm12, %v938_v10, %v1249_v58  ;;  %v955_v42 = vrot.slane %v950_v12, 4  ;;  %1247 = vst [vmem:[#allocation3 + $0xc] sm:$0xf] %v1246_v23  ;;  %v953_v8 = vor.u32 %v951_v44, %v950_v12  ;;  %v634_v5 = vld [vmem:[%s8633_s16 + $0x14] sm:$0xf] }
 0x321   : > { %v1253_v46 = vsel %vm8793_vm10, %v945_v32, %v1252_v34  ;;  %1248 = vst.msk [vmem:[#allocation3 + $0x10] sm:$0xf] %vm509_vm9, %v937_v9  ;;  %v529_v32 = vld [vmem:[#allocation3 + $0x24] sm:$0x1]  ;;  %v12543_v1 = vrot.slane %v9218_v49, 4  ;;  %v8044_v27 = vunpack.c.l.bf16 %v8043_v38  ;;  %v9959_v24 = vunpack.c.h.bf16 %v8043_v38 }
 0x322   : > { %1251 = vst [vmem:[#allocation3 + $0x14] sm:$0x1] %v1250_v40  ;;  %v1257_v14 = vsel %vm8823_vm12, %v955_v42, %v1256_v22  ;;  %v954_v10 = vsel %vm8670_vm4, %v946_v54, %v953_v8  ;;  %v530_v0 = vsel %vm8823_vm12, 4286578559, %v529_v32  ;;  %v584_v54 = vld [vmem:[#allocation3 + $0x2c] sm:$0x1]  ;;  %v1772_v55 = vunpack.c.l.bf16 %v1718_v29 }
 0x323   : > { %1254 = vst [vmem:[#allocation3 + $0x18] sm:$0xf] %v1253_v46  ;;  %v1520_v41 = vrot.slane %v8044_v27, 1  ;;  %v1521_v15 = vrot.slane %v9959_v24, 1  ;;  %v585_v49 = vsel %vm8861_vm14, 4286578559, %v584_v54 }
 0x324   : > { %4166 = vrot.lane.b32.xlu1 %v12543_v1, %s12416_s25  ;;  %1255 = vst.msk [vmem:[#allocation3 + $0x1c] sm:$0xf] %vm509_vm9, %v954_v10  ;;  %v1809_v44 = vrot.slane %v1772_v55, 2  ;;  %v1810_v23 = vrot.slane %v9959_v24, 2 }
 0x325   : > { %1258 = vst [vmem:[#allocation3 + $0x20] sm:$0x1] %v1257_v14  ;;  %v1522_v34 = vsel %vm1519_vm13, %v1520_v41, %v1521_v15 }
 0x326   : > { %4150 = vrot.lane.b32.xlu2 %v9024_v39, %s12416_s25  ;;  %v1393_v39 = vld [vmem:[#allocation3 + $0x8] sm:$0x1]  ;;  %531 = vst [vmem:[#allocation3 + $0x24] sm:$0x1] %v530_v0  ;;  %4152 = vrot.lane.b32.xlu0 %v9040_v53, %s12416_s25  ;;  %v1646_v8 = vmax.f32 %v8044_v27, %v1522_v34  ;;  %v1811_v38 = vsel %vm1808_vm0, %v1809_v44, %v1810_v23 }
 0x327   : > { %v1447_v62 = vunpack.c.l.bf16 %v1393_v39  ;;  %v1719_v12 = vld [vmem:[#allocation3 + $0xc] sm:$0xe]  ;;  %586 = vst [vmem:[#allocation3 + $0x2c] sm:$0x1] %v585_v49 }
 0x328   : > { %v1359_v58 = vld [vmem:[#allocation3 + $0xc] sm:$0xff]   ;;  %v1773_v9 = vunpack.c.l.bf16 %v1719_v12 }
 0x329   : > { %v1523_v21 = vrot.slane %v1447_v62, 1  ;;  %v1394_v40 = vld [vmem:[#allocation3 + $0x14] sm:$0x1]  ;;  %v1413_v22 = vunpack.c.l.bf16 %v1359_v58  ;;  %v1414_v42 = vunpack.c.h.bf16 %v1359_v58  ;;  %v1812_v32 = vrot.slane %v1447_v62, 2 }
 0x32a   : > { %v1448_v14 = vunpack.c.l.bf16 %v1394_v40  ;;  %v1720_v10 = vld [vmem:[#allocation3 + $0x18] sm:$0xe]  ;;  %v1814_v54 = vrot.slane %v1773_v9, 2  ;;  %v12544_v9 = vrot.slane %v9013_v33, 4 }
 0x32b   : > { %v1524_v46 = vsel %vm1519_vm13, %v1521_v15, %v1523_v21  ;;  %v8186_v1 = vld [vmem:[#allocation3 + $0x18] sm:$0xff]   ;;  %v1525_v39 = vrot.slane %v1413_v22, 1  ;;  %v1526_v0 = vrot.slane %v1414_v42, 1  ;;  %v1774_v29 = vunpack.c.l.bf16 %v1720_v10 }
 0x32c   : > { %v1647_v53 = vmax.f32 %v9959_v24, %v1524_v46  ;;  %v8048_v41 = vunpack.c.l.bf16 %v8186_v1  ;;  %v8049_v55 = vunpack.c.h.bf16 %v8186_v1  ;;  %v1395_v49 = vld [vmem:[#allocation3 + $0x20] sm:$0x1]  ;;  %v1528_v15 = vrot.slane %v1448_v14, 1 }
 0x32d   : > { %v1813_v27 = vsel %vm1808_vm0, %v1810_v23, %v1812_v32  ;;  %v1449_v21 = vunpack.c.l.bf16 %v1395_v49  ;;  %v1527_v24 = vsel %vm1519_vm13, %v1525_v39, %v1526_v0  ;;  %v1815_v12 = vrot.slane %v1414_v42, 2 }
 0x32e   : > { %4158 = vrot.lane.b32.xlu2 %v9216_v28, %s12416_s25  ;;  %v1817_v62 = vrot.slane %v1448_v14, 2  ;;  %v1529_v58 = vsel %vm1519_vm13, %v1526_v0, %v1528_v15  ;;  %v1530_v28 = vrot.slane %v8048_v41, 1  ;;  %v1531_v34 = vrot.slane %v8049_v55, 1  ;;  %4160 = vrot.lane.b32.xlu0 %v12544_v9, %s12416_s25  ;;  %v633_v0 = vld [vmem:[%s8633_s16 + $0x10] sm:$0xf] }
 0x32f   : > { %v1648_v44 = vmax.f32 %v1413_v22, %v1527_v24  ;;  %v1533_v40 = vrot.slane %v1449_v21, 1  ;;  %v1649_v46 = vmax.f32 %v1414_v42, %v1529_v58  ;;  %v1816_v23 = vsel %vm1808_vm0, %v1814_v54, %v1815_v12  ;;  %v1259_v58 = vld [vmem:[#allocation3 + $0x24] sm:$0xf] }
 0x330   : > { %v1818_v10 = vsel %vm1808_vm0, %v1815_v12, %v1817_v62  ;;  %v1532_v32 = vsel %vm1519_vm13, %v1530_v28, %v1531_v34  ;;  %v1819_v1 = vrot.slane %v1774_v29, 2  ;;  %v1820_v14 = vrot.slane %v8049_v55, 2 }
 0x331   : > { %v1822_v39 = vrot.slane %v1449_v21, 2  ;;  %v1534_v49 = vsel %vm1519_vm13, %v1531_v34, %v1533_v40  ;;  %v1650_v15 = vmax.f32 %v8048_v41, %v1532_v32  ;;  %v1935_v22 = vmax.f32 %v1646_v8, %v1811_v38  ;;  %v532_v41 = vld [vmem:[#allocation3 + $0x30] sm:$0x1]  ;;  %v587_v8 = vld [vmem:[#allocation3 + $0x38] sm:$0x1] }
 0x332   : > { %v1936_v24 = vmax.f32 %v1647_v53, %v1813_v27  ;;  %v1651_v33 = vmax.f32 %v8049_v55, %v1534_v49  ;;  %v1821_v9 = vsel %vm1808_vm0, %v1819_v1, %v1820_v14  ;;  %v9990_v54 = vmax.f32 %v1648_v44, %v1816_v23  ;;  %v1263_v34 = vld [vmem:[#allocation3 + $0x2c] sm:$0x1]  ;;  %v635_v32 = vld [vmem:[%s8633_s16 + $0x18] sm:$0xf] }
 0x333   : > { %v1823_v42 = vsel %vm1808_vm0, %v1820_v14, %v1822_v39  ;;  %v9994_v29 = vmax.f32 %v1649_v46, %v1818_v10  ;;  %v9996_v21 = vmax.f32 %v1650_v15, %v1821_v9  ;;  %v957_v12 = vshrl.u32 %v633_v0, 16 }
 0x334   : > { %v960_v62 = vshll.u32 %v633_v0, 16  ;;  %v9998_v53 = vmax.f32 %v1651_v33, %v1823_v42  ;;  %v2041_v38 = vmax.f32 %v1935_v22, %v9990_v54  ;;  %v965_v55 = vshrl.u32 %v634_v5, 16  ;;  %v636_v0 = vld [vmem:[%s8633_s16 + $0x1c] sm:$0xf] }
 0x335   : > { %v968_v27 = vshll.u32 %v634_v5, 16  ;;  %v2042_v28 = vmax.f32 %v1936_v24, %v9994_v29  ;;  %v533_v44 = vsel %vm8823_vm12, 4286578559, %v532_v41  ;;  %v588_v40 = vsel %vm8861_vm14, 4286578559, %v587_v8 }
 0x336   : > { %4162 = vrot.lane.b32.xlu2 %v9258_v11, %s12416_s25  ;;  %v959_v11 = vrot.slane %v957_v12, 7  ;;  %v12545_v46 = vrot.slane %v9949_v37, 1  ;;  %v2139_v10 = vmax.f32 %v2041_v38, %v9996_v21  ;;  %v967_v5 = vrot.slane %v965_v55, 7  ;;  %534 = vst [vmem:[#allocation3 + $0x30] sm:$0x1] %v533_v44  ;;  %4164 = vrot.lane.b32.xlu0 %v9274_v60, %s12416_s25 }
 0x337   : > { %v2140_v1 = vmax.f32 %v2042_v28, %v9998_v53  ;;  %589 = vst [vmem:[#allocation3 + $0x38] sm:$0x1] %v588_v40  ;;  %v974_v49 = vshrl.u32 %v635_v32, 16  ;;  %v982_v33 = vshrl.u32 %v636_v0, 16  ;;  %v977_v12 = vshll.u32 %v635_v32, 16 }
 0x338   : > { %v4924_v23 = vsel %vm1519_vm13, %v9951_v43, %v12545_v46  ;;  %v962_v14 = vor.u32 %v960_v62, %v959_v11  ;;  %v963_v39 = vrot.slane %v959_v11, 4  ;;  %v2171_v15 = vpack.c.bf16 %v2139_v10, %v2139_v10 }
 0x339   : > { %v970_v22 = vor.u32 %v968_v27, %v967_v5  ;;  %v972_v24 = vrot.slane %v967_v5, 4  ;;  %v2172_v43 = vpack.c.bf16 %v2140_v1, %v2140_v1  ;;  %v976_v42 = vrot.slane %v974_v49, 7  ;;  %v535_v49 = vld [vmem:[#allocation3 + $0x3c] sm:$0x1] }
 0x33a   : > { %v1260_v9 = vsel %vm8793_vm10, %v962_v14, %v1259_v58  ;;  %v2240_v41 = vunpack.c.l.b16 %v2171_v15  ;;  %v984_v8 = vrot.slane %v982_v33, 7  ;;  %v985_v28 = vshll.u32 %v636_v0, 16  ;;  %v590_v15 = vld [vmem:[#allocation3 + $0x44] sm:$0x1] }
 0x33b   : > { %v971_v60 = vsel %vm8670_vm4, %v963_v39, %v970_v22  ;;  %1261 = vst [vmem:[#allocation3 + $0x24] sm:$0xf] %v1260_v9  ;;  %v1264_v62 = vsel %vm8823_vm12, %v972_v24, %v1263_v34  ;;  %v2241_v38 = vunpack.c.l.b16 %v2172_v43  ;;  %v979_v55 = vor.u32 %v977_v12, %v976_v42  ;;  %v10038_v9 = vpop.f32.mrf.mxu3 }
 0x33c   : > { %1262 = vst.msk [vmem:[#allocation3 + $0x28] sm:$0xf] %vm509_vm9, %v971_v60  ;;  %v980_v27 = vrot.slane %v976_v42, 4  ;;  %v989_v58 = vrot.slane %v984_v8, 4  ;;  %v987_v44 = vor.u32 %v985_v28, %v984_v8  ;;  %v536_v33 = vsel %vm8823_vm12, 4286578559, %v535_v49 }
 0x33d   : > { %1265 = vst [vmem:[#allocation3 + $0x2c] sm:$0x1] %v1264_v62  ;;  %v2272_v11 = vpack.c.b16 %v2241_v38, %v2240_v41  ;;  %v1266_v40 = vld [vmem:[#allocation3 + $0x30] sm:$0xf]  ;;  %v591_v43 = vsel %vm8861_vm14, 4286578559, %v590_v15  ;;  %v2043_v62 = vmax.f32 %v9990_v54, %v9996_v21 }
 0x33e   : > { %4976 = vrot.lane.b32.xlu2 %v4924_v23, %s12419_s29  ;;  %v1267_v46 = vsel %vm8793_vm10, %v979_v55, %v1266_v40  ;;  %v1270_v10 = vld [vmem:[#allocation3 + $0x38] sm:$0x1]  ;;  %v988_v34 = vsel %vm8670_vm4, %v980_v27, %v987_v44  ;;  %12546 = vst [vmem:[#allocation92_spill] sm:$0xff] %v10038_v9  ;;  %v637_v8 = vld [vmem:[%s8633_s16 + $0x20] sm:$0xf]  ;;  %v2044_v27 = vmax.f32 %v9994_v29, %v9998_v53 }
 0x33f   : > { %7800 = vmatmul.msk.bf16.vlgmr.msra.gmra.mxu1 %vm746_vm1, %v2272_v11  ;;  %1268 = vst [vmem:[#allocation3 + $0x30] sm:$0xf] %v1267_v46  ;;  %v1271_v23 = vsel %vm8823_vm12, %v989_v58, %v1270_v10  ;;  %v991_v11 = vshrl.u32 %v637_v8, 16  ;;  %v642_v9 = vld [vmem:[%s8633_s16 + $0x34] sm:$0xf] }
 0x340   : > { %1269 = vst.msk [vmem:[#allocation3 + $0x34] sm:$0xf] %vm509_vm9, %v988_v34 }
 0x341   : > { %1272 = vst [vmem:[#allocation3 + $0x38] sm:$0x1] %v1271_v23  ;;  %v993_v49 = vrot.slane %v991_v11, 7 }
 0x342   : > { %v1721_v5 = vld [vmem:[#allocation3 + $0x24] sm:$0xe]  ;;  %537 = vst [vmem:[#allocation3 + $0x3c] sm:$0x1] %v536_v33  ;;  %v10053_v33 = vpop.f32.mrf.mxu0 }
 0x343   : > { %v1363_v32 = vld [vmem:[#allocation3 + $0x24] sm:$0xff]   ;;  %v1775_v1 = vunpack.c.l.bf16 %v1721_v5  ;;  %592 = vst [vmem:[#allocation3 + $0x44] sm:$0x1] %v591_v43 }
 0x344   : > { %v1396_v14 = vld [vmem:[#allocation3 + $0x2c] sm:$0x1]  ;;  %v1417_v39 = vunpack.c.l.bf16 %v1363_v32  ;;  %v1418_v0 = vunpack.c.h.bf16 %v1363_v32 }
 0x345   : > { %v1450_v22 = vunpack.c.l.bf16 %v1396_v14  ;;  %v1824_v24 = vrot.slane %v1775_v1, 2 }
 0x346   : > { %4168 = vrot.lane.b32.xlu2 %v9341_v6, %s12416_s25  ;;  %v1535_v42 = vrot.slane %v1417_v39, 1  ;;  %v1536_v12 = vrot.slane %v1418_v0, 1  ;;  %v1825_v41 = vrot.slane %v1418_v0, 2  ;;  %v1722_v58 = vld [vmem:[#allocation3 + $0x30] sm:$0xe] }
 0x347   : > { %v1538_v6 = vrot.slane %v1450_v22, 1  ;;  %v1827_v60 = vrot.slane %v1450_v22, 2  ;;  %v8187_v28 = vld [vmem:[#allocation3 + $0x30] sm:$0xff]   ;;  %v1776_v32 = vunpack.c.l.bf16 %v1722_v58  ;;  %v638_v58 = vld [vmem:[%s8633_s16 + $0x24] sm:$0xf] }
 0x348   : > { %v1537_v38 = vsel %vm1519_vm13, %v1535_v42, %v1536_v12  ;;  %v1826_v55 = vsel %vm1808_vm0, %v1824_v24, %v1825_v41  ;;  %v8052_v10 = vunpack.c.l.bf16 %v8187_v28  ;;  %v1397_v34 = vld [vmem:[#allocation3 + $0x38] sm:$0x1]  ;;  %v8053_v23 = vunpack.c.h.bf16 %v8187_v28 }
 0x349   : > { %v1539_v44 = vsel %vm1519_vm13, %v1536_v12, %v1538_v6  ;;  %v1652_v40 = vmax.f32 %v1417_v39, %v1537_v38  ;;  %v1828_v46 = vsel %vm1808_vm0, %v1825_v41, %v1827_v60  ;;  %v1451_v5 = vunpack.c.l.bf16 %v1397_v34  ;;  %v1273_v11 = vld [vmem:[#allocation3 + $0x3c] sm:$0xf] }
 0x34a   : > { %v1653_v54 = vmax.f32 %v1418_v0, %v1539_v44  ;;  %v1540_v14 = vrot.slane %v8052_v10, 1  ;;  %v1541_v29 = vrot.slane %v8053_v23, 1  ;;  %v1829_v24 = vrot.slane %v1776_v32, 2  ;;  %v10061_v44 = vpop.f32.mrf.mxu3 }
 0x34b   : > { %v10049_v1 = vmax.f32 %v1652_v40, %v1826_v55  ;;  %v1543_v22 = vrot.slane %v1451_v5, 1  ;;  %v1830_v43 = vrot.slane %v8053_v23, 2  ;;  %v1832_v42 = vrot.slane %v1451_v5, 2 }
 0x34c   : > { %v10051_v15 = vmax.f32 %v1653_v54, %v1828_v46  ;;  %v994_v0 = vshll.u32 %v637_v8, 16  ;;  %v1542_v41 = vsel %vm1519_vm13, %v1540_v14, %v1541_v29  ;;  %v999_v32 = vshrl.u32 %v638_v58, 16 }
 0x34d   : > { %v2141_v39 = vmax.f32 %v2043_v62, %v10049_v1  ;;  %v1544_v6 = vsel %vm1519_vm13, %v1541_v29, %v1543_v22  ;;  %v1654_v38 = vmax.f32 %v8052_v10, %v1542_v41  ;;  %v1831_v28 = vsel %vm1808_vm0, %v1829_v24, %v1830_v43 }
 0x34e   : > { %v2142_v12 = vmax.f32 %v2044_v27, %v10051_v15  ;;  %v1655_v55 = vmax.f32 %v8053_v23, %v1544_v6  ;;  %v1833_v62 = vsel %vm1808_vm0, %v1830_v43, %v1832_v42  ;;  %v2045_v8 = vmax.f32 %v9996_v21, %v10049_v1  ;;  %v10072_v23 = vpop.f32.mrf.mxu2  ;;  %v593_v43 = vld [vmem:[#allocation3 + $0x50] sm:$0x1] }
 0x34f   : > { %v2173_v60 = vpack.c.bf16 %v2141_v39, %v2141_v39  ;;  %v996_v27 = vor.u32 %v994_v0, %v993_v49  ;;  %v10066_v34 = vmax.f32 %v1654_v38, %v1831_v28  ;;  %v2046_v10 = vmax.f32 %v9998_v53, %v10051_v15  ;;  %v538_v39 = vld [vmem:[#allocation3 + $0x48] sm:$0x1]  ;;  %v1277_v53 = vld [vmem:[#allocation3 + $0x44] sm:$0x1]  ;;  %v640_v28 = vld [vmem:[%s8633_s16 + $0x2c] sm:$0xf] }
 0x350   : > { %v2174_v40 = vpack.c.bf16 %v2142_v12, %v2142_v12  ;;  %v10068_v54 = vmax.f32 %v1655_v55, %v1833_v62  ;;  %v1002_v14 = vshll.u32 %v638_v58, 16  ;;  %v997_v21 = vrot.slane %v993_v49, 4  ;;  %v639_v55 = vld [vmem:[%s8633_s16 + $0x28] sm:$0xf] }
 0x351   : > { %v2242_v46 = vunpack.c.l.b16 %v2173_v60  ;;  %v1274_v29 = vsel %vm8793_vm10, %v996_v27, %v1273_v11  ;;  %v1001_v24 = vrot.slane %v999_v32, 7  ;;  %v2143_v0 = vmax.f32 %v2045_v8, %v10066_v34  ;;  %v3473_v32 = vpop.permute.xlu2 %3472 }
 0x352   : > { %v2243_v5 = vunpack.c.l.b16 %v2174_v40  ;;  %1275 = vst [vmem:[#allocation3 + $0x3c] sm:$0xf] %v1274_v29  ;;  %v539_v12 = vsel %vm8823_vm12, 4286578559, %v538_v39  ;;  %v594_v41 = vsel %vm8861_vm14, 4286578559, %v593_v43  ;;  %v2144_v49 = vmax.f32 %v2046_v10, %v10068_v54  ;;  %v10093_v62 = vpop.f32.mrf.mxu3 }
 0x353   : > { %v3979_v42 = vpop.f32.mrf.mxu0  ;;  %v1004_v60 = vor.u32 %v1002_v14, %v1001_v24  ;;  %v1006_v38 = vrot.slane %v1001_v24, 4  ;;  %540 = vst [vmem:[#allocation3 + $0x48] sm:$0x1] %v539_v12  ;;  %v1008_v40 = vshrl.u32 %v639_v55, 16  ;;  %v2175_v27 = vpack.c.bf16 %v2143_v0, %v2143_v0 }
 0x354   : > { %v2273_v22 = vpack.c.b16 %v2243_v5, %v2242_v46  ;;  %v10082_v6 = vadd.f32 %v3979_v42, %v9885_v48  ;;  %595 = vst [vmem:[#allocation3 + $0x50] sm:$0x1] %v594_v41  ;;  %v1016_v48 = vshrl.u32 %v640_v28, 16  ;;  %v2176_v46 = vpack.c.bf16 %v2144_v49, %v2144_v49 }
 0x355   : > { %v1005_v58 = vsel %vm8670_vm4, %v997_v21, %v1004_v60  ;;  %v1278_v11 = vsel %vm8823_vm12, %v1006_v38, %v1277_v53  ;;  %12548 = vst [vmem:[#allocation94_spill] sm:$0xff] %v10093_v62  ;;  %v1010_v5 = vrot.slane %v1008_v40, 7  ;;  %v1011_v14 = vshll.u32 %v639_v55, 16 }
 0x356   : > { %12547 = vst [vmem:[#allocation93_spill] sm:$0xff] %v10082_v6  ;;  %7801 = vmatmul.msk.bf16.gmra.mxu1 %vm746_vm1, %v2273_v22  ;;  %v1018_v29 = vrot.slane %v1016_v48, 7  ;;  %v1019_v21 = vshll.u32 %v640_v28, 16  ;;  %v3654_v12 = vsel %vm746_vm1, %v9838_v47, %v3473_v32  ;;  %v2244_v0 = vunpack.c.l.b16 %v2175_v27 }
 0x357   : > { %1276 = vst.msk [vmem:[#allocation3 + $0x40] sm:$0xf] %vm509_vm9, %v1005_v58  ;;  %v1014_v22 = vrot.slane %v1010_v5, 4  ;;  %v1013_v43 = vor.u32 %v1011_v14, %v1010_v5  ;;  %v2245_v49 = vunpack.c.l.b16 %v2176_v46 }
 0x358   : > { %v3783_v8 = vpop.f32.mrf.mxu2  ;;  %1279 = vst [vmem:[#allocation3 + $0x44] sm:$0x1] %v1278_v11  ;;  %v1023_v42 = vrot.slane %v1018_v29, 4  ;;  %v1021_v60 = vor.u32 %v1019_v21, %v1018_v29 }
 0x359   : > { %v1723_v10 = vld [vmem:[#allocation3 + $0x3c] sm:$0xe]  ;;  %v2274_v32 = vpack.c.b16 %v2245_v49, %v2244_v0 }
 0x35a   : > { %v1777_v39 = vunpack.c.l.bf16 %v1723_v10  ;;  %v1280_v53 = vld [vmem:[#allocation3 + $0x48] sm:$0xf]  ;;  %v1022_v47 = vsel %vm8670_vm4, %v1014_v22, %v1021_v60  ;;  %v3887_v10 = vpop.f32.mrf.mxu3  ;;  %v3883_v22 = vadd.f32 %v10061_v44, %v3783_v8 }
 0x35b   : > { %v10095_v24 = vpop.f32.mrf.mxu0  ;;  %v3618_v41 = vpop.permute.xlu0 %3617  ;;  %v1284_v38 = vld [vmem:[#allocation3 + $0x50] sm:$0x1]  ;;  %v1281_v55 = vsel %vm8793_vm10, %v1013_v43, %v1280_v53  ;;  %1283 = vst.msk [vmem:[#allocation3 + $0x4c] sm:$0xf] %vm509_vm9, %v1022_v47  ;;  %v2048_v47 = vmax.f32 %v10051_v15, %v10068_v54 }
 0x35c   : > { %12549 = vst [vmem:[#allocation95_spill] sm:$0xff] %v10095_v24  ;;  %v3691_v58 = vsel %vm3671_vm3, %v3654_v12, %v3618_v41  ;;  %v1285_v28 = vsel %vm8823_vm12, %v1023_v42, %v1284_v38  ;;  %v1834_v46 = vrot.slane %v1777_v39, 2  ;;  %v2047_v12 = vmax.f32 %v10049_v1, %v10066_v34  ;;  %v541_v41 = vld [vmem:[#allocation3 + $0x54] sm:$0x1]  ;;  %v596_v39 = vld [vmem:[#allocation3 + $0x5c] sm:$0x1] }
 0x35d   : > { %7830 = vmatmul.msk.bf16.gmra.mxu2 %vm3718_vm5, %v3691_v58  ;;  %7851 = vmatmul.msk.bf16.gmra.mxu3 %vm3718_vm5, %v3691_v58  ;;  %1282 = vst [vmem:[#allocation3 + $0x48] sm:$0xf] %v1281_v55  ;;  %v542_v0 = vsel %vm8823_vm12, 4286578559, %v541_v41  ;;  %v597_v49 = vsel %vm8861_vm14, 4286578559, %v596_v39  ;;  %v3620_v55 = vpop.permute.xlu2 %3619 }
 0x35e   : > { %v1367_v11 = vld [vmem:[#allocation3 + $0x3c] sm:$0xff]   ;;  %7871 = vmatmul.msk.bf16.gmra.mxu0 %vm3718_vm5, %v3691_v58  ;;  %1286 = vst [vmem:[#allocation3 + $0x50] sm:$0x1] %v1285_v28  ;;  %v641_v39 = vld [vmem:[%s8633_s16 + $0x30] sm:$0xf] }
 0x35f   : > { %v1398_v40 = vld [vmem:[#allocation3 + $0x44] sm:$0x1]  ;;  %v1421_v48 = vunpack.c.l.bf16 %v1367_v11  ;;  %v1422_v27 = vunpack.c.h.bf16 %v1367_v11  ;;  %543 = vst [vmem:[#allocation3 + $0x54] sm:$0x1] %v542_v0 }
 0x360   : > { %v10110_v5 = vpop.f32.mrf.mxu2  ;;  %v1452_v14 = vunpack.c.l.bf16 %v1398_v40  ;;  %598 = vst [vmem:[#allocation3 + $0x5c] sm:$0x1] %v597_v49 }
 0x361   : > { %12550 = vst [vmem:[#allocation96_spill] sm:$0xff] %v10110_v5  ;;  %v1545_v29 = vrot.slane %v1421_v48, 1  ;;  %v1546_v21 = vrot.slane %v1422_v27, 1  ;;  %v1835_v43 = vrot.slane %v1422_v27, 2 }
 0x362   : > { %v1548_v42 = vrot.slane %v1452_v14, 1  ;;  %v1837_v53 = vrot.slane %v1452_v14, 2 }
 0x363   : > { %v3984_v60 = vpop.f32.mrf.mxu0  ;;  %v1547_v38 = vsel %vm1519_vm13, %v1545_v29, %v1546_v21  ;;  %v1836_v58 = vsel %vm1808_vm0, %v1834_v46, %v1835_v43 }
 0x364   : > { %v10121_v44 = vadd.f32 %v3984_v60, %v3883_v22  ;;  %v1549_v1 = vsel %vm1519_vm13, %v1546_v21, %v1548_v42  ;;  %v1656_v8 = vmax.f32 %v1421_v48, %v1547_v38  ;;  %v1838_v28 = vsel %vm1808_vm0, %v1835_v43, %v1837_v53  ;;  %v8188_v46 = vld [vmem:[#allocation3 + $0x48] sm:$0xff]  }
 0x365   : > { %v1657_v11 = vmax.f32 %v1422_v27, %v1549_v1  ;;  %v1724_v14 = vld [vmem:[#allocation3 + $0x48] sm:$0xe]  ;;  %v8056_v22 = vunpack.c.l.bf16 %v8188_v46  ;;  %v8057_v41 = vunpack.c.h.bf16 %v8188_v46 }
 0x366   : > { %12551 = vst [vmem:[#allocation97_spill] sm:$0xff] %v10121_v44  ;;  %7802 = vmatmul.msk.bf16.gmra.mxu1 %vm746_vm1, %v2274_v32  ;;  %v10128_v40 = vmax.f32 %v1656_v8, %v1836_v58  ;;  %v1399_v32 = vld [vmem:[#allocation3 + $0x50] sm:$0x1]  ;;  %v8115_v43 = vld [vmem:[#allocation2] sm:$0xff]   ;;  %v1778_v42 = vunpack.c.l.bf16 %v1724_v14  ;;  %v10135_v58 = vpop.f32.mrf.mxu3  ;;  %v1025_v8 = vshrl.u32 %v641_v39, 16 }
 0x367   : > { %v10130_v29 = vmax.f32 %v1657_v11, %v1838_v28  ;;  %v1453_v27 = vunpack.c.l.bf16 %v1399_v32  ;;  %v4619_v60 = vshll.u32 %v8115_v43, 16  ;;  %v1550_v38 = vrot.slane %v8056_v22, 1  ;;  %12552 = vst [vmem:[#allocation98_spill] sm:$0xff] %v10135_v58  ;;  %v10140_v32 = vpop.permute.xlu2 %3621 }
 0x368   : > { %v3788_v21 = vpop.f32.mrf.mxu2  ;;  %v2145_v48 = vmax.f32 %v2047_v12, %v10128_v40  ;;  %v1551_v49 = vrot.slane %v8057_v41, 1  ;;  %v4617_v46 = vshrl.u32 %v8115_v43, 16  ;;  %v4624_v12 = vshll.u32 %v9949_v37, 16 }
 0x369   : > { %v3888_v53 = vadd.f32 %v3887_v10, %v3788_v21  ;;  %v2146_v15 = vmax.f32 %v2048_v47, %v10130_v29  ;;  %v1553_v1 = vrot.slane %v1453_v27, 1  ;;  %v4621_v44 = vrot.slane %v4619_v60, 1 }
 0x36a   : > { %v2177_v0 = vpack.c.bf16 %v2145_v48, %v2145_v48  ;;  %v1552_v47 = vsel %vm1519_vm13, %v1550_v38, %v1551_v49  ;;  %v1839_v21 = vrot.slane %v1778_v42, 2  ;;  %v4626_v5 = vrot.slane %v4624_v12, 1 }
 0x36b   : > { %v10137_v28 = vpop.f32.mrf.mxu0  ;;  %v2178_v11 = vpack.c.bf16 %v2146_v15, %v2146_v15  ;;  %v1554_v14 = vsel %vm1519_vm13, %v1551_v49, %v1553_v1  ;;  %v4622_v62 = vor.u32 %v4621_v44, %v4617_v46  ;;  %v1658_v24 = vmax.f32 %v8056_v22, %v1552_v47  ;;  %v1287_v49 = vld [vmem:[#allocation3 + $0x54] sm:$0xf]  ;;  %v544_v1 = vld [vmem:[#allocation3 + $0x60] sm:$0x1] }
 0x36c   : > { %12553 = vst [vmem:[#allocation99_spill] sm:$0xff] %v10137_v28  ;;  %v2246_v10 = vunpack.c.l.b16 %v2177_v0  ;;  %v1659_v15 = vmax.f32 %v8057_v41, %v1554_v14  ;;  %v1840_v60 = vrot.slane %v8057_v41, 2  ;;  %v1027_v37 = vrot.slane %v1025_v8, 7 }
 0x36d   : > { %v2247_v58 = vunpack.c.l.b16 %v2178_v11  ;;  %v4627_v38 = vsel %vm3237_vm15, %v4622_v62, %v4626_v5  ;;  %v1842_v6 = vrot.slane %v1453_v27, 2  ;;  %v2050_v41 = vmax.f32 %v10068_v54, %v10130_v29 }
 0x36e   : > { %v3475_v48 = vpop.permute.xlu1 %3474  ;;  %v1841_v22 = vsel %vm1808_vm0, %v1839_v21, %v1840_v60  ;;  %4832 = vrot.lane.b32.xlu1 %v4627_v38, %s8509_s30  ;;  %v1033_v42 = vshrl.u32 %v642_v9, 16  ;;  %v3892_v46 = vpop.f32.mrf.mxu3 }
 0x36f   : > { %v3656_v43 = vsel %vm746_vm1, %v9863_v56, %v3475_v48  ;;  %v2275_v0 = vpack.c.b16 %v2247_v58, %v2246_v10  ;;  %v2049_v56 = vmax.f32 %v10066_v34, %v10128_v40  ;;  %v1843_v62 = vsel %vm1808_vm0, %v1840_v60, %v1842_v6  ;;  %v4288_v34 = vld [vmem:[#allocation2 + $0xc] sm:$0xf]  ;;  %v643_v48 = vld [vmem:[%s8633_s16 + $0x38] sm:$0xf]  ;;  %v1291_v60 = vld [vmem:[#allocation3 + $0x5c] sm:$0x1] }
 0x370   : > { %v3693_v28 = vsel %vm3671_vm3, %v3656_v43, %v3620_v55  ;;  %v10151_v44 = vpop.f32.mrf.mxu2  ;;  %v10161_v5 = vmax.f32 %v1658_v24, %v1841_v22  ;;  %v1028_v55 = vshll.u32 %v641_v39, 16  ;;  %v10163_v27 = vmax.f32 %v1659_v15, %v1843_v62  ;;  %v599_v24 = vld [vmem:[#allocation3 + $0x68] sm:$0x1]  ;;  %v644_v43 = vld [vmem:[%s8633_s16 + $0x3c] sm:$0xf] }
 0x371   : > { %7831 = vmatmul.msk.bf16.gmra.mxu2 %vm3718_vm5, %v3693_v28  ;;  %7852 = vmatmul.msk.bf16.gmra.mxu3 %vm3718_vm5, %v3693_v28  ;;  %12554 = vst [vmem:[#allocation100_spill] sm:$0xff] %v10151_v44  ;;  %v1036_v58 = vshll.u32 %v642_v9, 16  ;;  %v545_v6 = vsel %vm8823_vm12, 4286578559, %v544_v1  ;;  %v1035_v10 = vrot.slane %v1033_v42, 7  ;;  %v1050_v38 = vshrl.u32 %v644_v43, 16 }
 0x372   : > { %7872 = vmatmul.msk.bf16.gmra.mxu0 %vm3718_vm5, %v3693_v28  ;;  %v2147_v11 = vmax.f32 %v2049_v56, %v10161_v5  ;;  %v1030_v54 = vor.u32 %v1028_v55, %v1027_v37  ;;  %v1031_v28 = vrot.slane %v1027_v37, 4  ;;  %v2148_v9 = vmax.f32 %v2050_v41, %v10163_v27  ;;  %546 = vst [vmem:[#allocation3 + $0x60] sm:$0x1] %v545_v6 }
 0x373   : > { %v600_v47 = vsel %vm8861_vm14, 4286578559, %v599_v24  ;;  %v1038_v15 = vor.u32 %v1036_v58, %v1035_v10  ;;  %v1040_v37 = vrot.slane %v1035_v10, 4  ;;  %v1045_v55 = vshll.u32 %v643_v48, 16 }
 0x374   : > { %v1288_v21 = vsel %vm8793_vm10, %v1030_v54, %v1287_v49  ;;  %601 = vst [vmem:[#allocation3 + $0x68] sm:$0x1] %v600_v47  ;;  %v2179_v56 = vpack.c.bf16 %v2147_v11, %v2147_v11  ;;  %v2180_v41 = vpack.c.bf16 %v2148_v9, %v2148_v9  ;;  %v1052_v1 = vrot.slane %v1050_v38, 7  ;;  %v4295_v9 = vld [vmem:[#allocation2 + $0x18] sm:$0xf] }
 0x375   : > { %1289 = vst [vmem:[#allocation3 + $0x54] sm:$0xf] %v1288_v21  ;;  %v1039_v62 = vsel %vm8670_vm4, %v1031_v28, %v1038_v15  ;;  %v1292_v49 = vsel %vm8823_vm12, %v1040_v37, %v1291_v60 }
 0x376   : > { %7803 = vmatmul.msk.bf16.gmra.mxu1 %vm746_vm1, %v2275_v0  ;;  %v4145_v14 = vpop.permute.xlu1 %4144  ;;  %v1042_v0 = vshrl.u32 %v643_v48, 16  ;;  %1290 = vst.msk [vmem:[#allocation3 + $0x58] sm:$0xf] %vm509_vm9, %v1039_v62  ;;  %v1057_v11 = vrot.slane %v1052_v1, 4  ;;  %v2248_v48 = vunpack.c.l.b16 %v2179_v56  ;;  %v10193_v60 = vpop.f32.mrf.mxu3 }
 0x377   : > { %v3989_v8 = vpop.f32.mrf.mxu0  ;;  %1293 = vst [vmem:[#allocation3 + $0x5c] sm:$0x1] %v1292_v49 }
 0x378   : > { %v10168_v39 = vadd.f32 %v3989_v8, %v3888_v53  ;;  %v10170_v12 = vpop.permute.xlu2 %3478  ;;  %v4289_v53 = vsel %vm8793_vm10, %v4145_v14, %v4288_v34  ;;  %v1044_v58 = vrot.slane %v1042_v0, 7  ;;  %v1053_v8 = vshll.u32 %v644_v43, 16 }
 0x379   : > { %4290 = vst [vmem:[#allocation2 + $0xc] sm:$0xf] %v4289_v53  ;;  %v1294_v24 = vld [vmem:[#allocation3 + $0x60] sm:$0xf]  ;;  %v2249_v53 = vunpack.c.l.b16 %v2180_v41 }
 0x37a   : > { %v1047_v54 = vor.u32 %v1045_v55, %v1044_v58  ;;  %v1048_v6 = vrot.slane %v1044_v58, 4  ;;  %v1055_v28 = vor.u32 %v1053_v8, %v1052_v1 }
 0x37b   : > { %v1298_v47 = vld [vmem:[#allocation3 + $0x68] sm:$0x1]  ;;  %v2276_v55 = vpack.c.b16 %v2249_v53, %v2248_v48 }
 0x37c   : > { %v3793_v22 = vpop.f32.mrf.mxu2  ;;  %v1725_v15 = vld [vmem:[#allocation3 + $0x54] sm:$0xe]  ;;  %v1295_v43 = vsel %vm8793_vm10, %v1047_v54, %v1294_v24  ;;  %v1056_v38 = vsel %vm8670_vm4, %v1048_v6, %v1055_v28  ;;  %v547_v24 = vld [vmem:[#allocation3 + $0x6c] sm:$0x1] }
 0x37d   : > { %v3893_v42 = vadd.f32 %v3892_v46, %v3793_v22  ;;  %v4292_v46 = vld [vmem:[#allocation2 + $0x14] sm:$0x1]  ;;  %v1779_v0 = vunpack.c.l.bf16 %v1725_v15  ;;  %v1299_v22 = vsel %vm8823_vm12, %v1057_v11, %v1298_v47  ;;  %v1371_v41 = vld [vmem:[#allocation3 + $0x54] sm:$0xff]   ;;  %1296 = vst [vmem:[#allocation3 + $0x60] sm:$0xf] %v1295_v43 }
 0x37e   : > { %v4149_v14 = vpop.permute.xlu1 %4148  ;;  %v1400_v49 = vld [vmem:[#allocation3 + $0x5c] sm:$0x1]  ;;  %v1425_v58 = vunpack.c.l.bf16 %v1371_v41  ;;  %v1426_v1 = vunpack.c.h.bf16 %v1371_v41  ;;  %1297 = vst.msk [vmem:[#allocation3 + $0x64] sm:$0xf] %vm509_vm9, %v1056_v38  ;;  %v548_v53 = vsel %vm8823_vm12, 4286578559, %v547_v24  ;;  %v2051_v41 = vmax.f32 %v10128_v40, %v10161_v5 }
 0x37f   : > { %v10187_v34 = vpop.f32.mrf.mxu0  ;;  %v4293_v37 = vsel %vm8823_vm12, %v4149_v14, %v4292_v46  ;;  %v1844_v8 = vrot.slane %v1779_v0, 2  ;;  %v1454_v6 = vunpack.c.l.bf16 %v1400_v49  ;;  %1300 = vst [vmem:[#allocation3 + $0x68] sm:$0x1] %v1299_v22  ;;  %v4299_v15 = vld [vmem:[#allocation2 + $0x20] sm:$0x1]  ;;  %v2052_v49 = vmax.f32 %v10130_v29, %v10163_v27 }
 0x380   : > { %12555 = vst [vmem:[#allocation101_spill] sm:$0xff] %v10187_v34  ;;  %v4151_v10 = vpop.permute.xlu2 %4150  ;;  %v3477_v62 = vpop.permute.xlu0 %3476  ;;  %v1555_v28 = vrot.slane %v1425_v58, 1  ;;  %v1556_v47 = vrot.slane %v1426_v1, 1  ;;  %v1845_v46 = vrot.slane %v1426_v1, 2 }
 0x381   : > { %v4296_v21 = vsel %vm8793_vm10, %v4151_v10, %v4295_v9  ;;  %4294 = vst [vmem:[#allocation2 + $0x14] sm:$0x1] %v4293_v37  ;;  %v3658_v54 = vsel %vm746_vm1, %v9889_v19, %v3477_v62  ;;  %v602_v9 = vld [vmem:[#allocation3 + $0x74] sm:$0x1]  ;;  %v1558_v48 = vrot.slane %v1454_v6, 1  ;;  %v1847_v19 = vrot.slane %v1454_v6, 2 }
 0x382   : > { %4297 = vst [vmem:[#allocation2 + $0x18] sm:$0xf] %v4296_v21  ;;  %v3695_v10 = vsel %vm3671_vm3, %v3658_v54, %v10140_v32  ;;  %v1557_v32 = vsel %vm1519_vm13, %v1555_v28, %v1556_v47  ;;  %v603_v37 = vsel %vm8861_vm14, 4286578559, %v602_v9  ;;  %v3897_v54 = vpop.f32.mrf.mxu3 }
 0x383   : > { %7832 = vmatmul.msk.bf16.gmra.mxu2 %vm3718_vm5, %v3695_v10  ;;  %7853 = vmatmul.msk.bf16.gmra.mxu3 %vm3718_vm5, %v3695_v10  ;;  %v1559_v38 = vsel %vm1519_vm13, %v1556_v47, %v1558_v48  ;;  %v1660_v22 = vmax.f32 %v1425_v58, %v1557_v32  ;;  %549 = vst [vmem:[#allocation3 + $0x6c] sm:$0x1] %v548_v53 }
 0x384   : > { %v10201_v56 = vpop.f32.mrf.mxu2  ;;  %7873 = vmatmul.msk.bf16.gmra.mxu0 %vm3718_vm5, %v3695_v10  ;;  %v1661_v62 = vmax.f32 %v1426_v1, %v1559_v38  ;;  %604 = vst [vmem:[#allocation3 + $0x74] sm:$0x1] %v603_v37  ;;  %v4302_v38 = vld [vmem:[#allocation2 + $0x24] sm:$0xf] }
 0x386   : > { %v4155_v43 = vpop.permute.xlu1 %4154  ;;  %7804 = vmatmul.msk.bf16.gmra.mxu1 %vm746_vm1, %v2276_v55  ;;  %v1848_v55 = vsel %vm1808_vm0, %v1845_v46, %v1847_v19  ;;  %v1401_v47 = vld [vmem:[#allocation3 + $0x68] sm:$0x1] }
 0x387   : > { %v3994_v11 = vpop.f32.mrf.mxu0  ;;  %v4300_v0 = vsel %vm8823_vm12, %v4155_v43, %v4299_v15  ;;  %v10233_v40 = vmax.f32 %v1661_v62, %v1848_v55  ;;  %v4309_v15 = vld [vmem:[#allocation2 + $0x30] sm:$0xf] }
 0x388   : > { %v10208_v14 = vadd.f32 %v3994_v11, %v3893_v42  ;;  %v4159_v21 = vpop.permute.xlu2 %4158  ;;  %v1846_v42 = vsel %vm1808_vm0, %v1844_v8, %v1845_v46  ;;  %4301 = vst [vmem:[#allocation2 + $0x20] sm:$0x1] %v4300_v0  ;;  %v1726_v8 = vld [vmem:[#allocation3 + $0x60] sm:$0xe]  ;;  %v4437_v24 = vld [vmem:[#allocation2 + $0x14] sm:$0x1]  ;;  %v4147_v58 = vpop.permute.xlu0 %4146 }
 0x389   : > { %4305 = vst.msk [vmem:[#allocation2 + $0x28] sm:$0xf] %vm509_vm9, %v4159_v21  ;;  %v10229_v9 = vmax.f32 %v1660_v22, %v1846_v42  ;;  %v8189_v11 = vld [vmem:[#allocation3 + $0x60] sm:$0xff]   ;;  %v1780_v10 = vunpack.c.l.bf16 %v1726_v8  ;;  %v1455_v21 = vunpack.c.l.bf16 %v1401_v47  ;;  %v4581_v48 = vunpack.c.l.b16 %v4437_v24  ;;  %v645_v24 = vld [vmem:[%s8633_s16 + $0x40] sm:$0xf] }
 0x38a   : > { %12556 = vst [vmem:[#allocation102_spill] sm:$0xff] %v10208_v14  ;;  %v8060_v1 = vunpack.c.l.bf16 %v8189_v11  ;;  %v8061_v46 = vunpack.c.h.bf16 %v8189_v11  ;;  %v2150_v19 = vmax.f32 %v2052_v49, %v10233_v40  ;;  %v8378_v49 = vld [vmem:[#allocation2 + $0xc] sm:$0xe] }
 0x38b   : > { %4291 = vst.msk [vmem:[#allocation2 + $0x10] sm:$0xf] %vm509_vm9, %v4147_v58  ;;  %v2149_v29 = vmax.f32 %v2051_v41, %v10229_v9  ;;  %v1563_v37 = vrot.slane %v1455_v21, 1  ;;  %v1849_v0 = vrot.slane %v1780_v10, 2  ;;  %v4599_v11 = vpack.c.b16 %v4581_v48, %v4581_v48 }
 0x38c   : > { %v3798_v6 = vpop.f32.mrf.mxu2  ;;  %v1560_v53 = vrot.slane %v8060_v1, 1  ;;  %v1561_v42 = vrot.slane %v8061_v46, 1  ;;  %v2182_v55 = vpack.c.bf16 %v2150_v19, %v2150_v19  ;;  %v1850_v41 = vrot.slane %v8061_v46, 2 }
 0x38d   : > { %v10231_v28 = vadd.f32 %v3897_v54, %v3798_v6  ;;  %v2181_v32 = vpack.c.bf16 %v2149_v29, %v2149_v29  ;;  %v8357_v29 = vld [vmem:[#allocation2 + $0x90] sm:$0xff]   ;;  %v1059_v48 = vshrl.u32 %v645_v24, 16 }
 0x38e   : > { %v4157_v22 = vpop.permute.xlu1 %4156  ;;  %v1562_v6 = vsel %vm1519_vm13, %v1560_v53, %v1561_v42  ;;  %v2251_v58 = vunpack.c.l.b16 %v2182_v55  ;;  %v1564_v10 = vsel %vm1519_vm13, %v1561_v42, %v1563_v37  ;;  %v3660_v19 = vsel %vm746_vm1, %v8357_v29, %v10170_v12 }
 0x38f   : > { %v4303_v8 = vsel %vm8793_vm10, %v4157_v22, %v4302_v38  ;;  %v2250_v54 = vunpack.c.l.b16 %v2181_v32  ;;  %v1662_v47 = vmax.f32 %v8060_v1, %v1562_v6  ;;  %v1851_v38 = vsel %vm1808_vm0, %v1849_v0, %v1850_v41 }
 0x390   : > { %v4163_v43 = vpop.permute.xlu2 %4162  ;;  %4304 = vst [vmem:[#allocation2 + $0x24] sm:$0xf] %v4303_v8  ;;  %v1852_v22 = vrot.slane %v1455_v21, 2  ;;  %v4926_v37 = vrot.slane %v4599_v11, 1  ;;  %v4313_v21 = vld [vmem:[#allocation2 + $0x38] sm:$0x1] }
 0x391   : > { %v4310_v62 = vsel %vm8793_vm10, %v4163_v43, %v4309_v15  ;;  %v4438_v15 = vld [vmem:[#allocation2 + $0x20] sm:$0x1]  ;;  %v1663_v43 = vmax.f32 %v8061_v46, %v1564_v10  ;;  %v2277_v14 = vpack.c.b16 %v2251_v58, %v2250_v54  ;;  %v10250_v8 = vmax.f32 %v1662_v47, %v1851_v38  ;;  %v8037_v10 = vld [vmem:[%s12331_s5 + $0x10] sm:$0x30] }
 0x392   : > { %4311 = vst [vmem:[#allocation2 + $0x30] sm:$0xf] %v4310_v62  ;;  %v3624_v62 = vpop.permute.xlu0 %3623  ;;  %v10248_v32 = vld [vmem:[#allocation2 + $0xc] sm:$0xff]   ;;  %v1853_v1 = vsel %vm1808_vm0, %v1850_v41, %v1852_v22  ;;  %v4582_v55 = vunpack.c.l.b16 %v4438_v15  ;;  %v2053_v46 = vmax.f32 %v10161_v5, %v10229_v9  ;;  %v4636_v6 = vshll.u32 %v4599_v11, 16 }
 0x393   : > { %v8377_v53 = vld [vmem:[#allocation2 + $0xc] sm:$0xf0]  ;;  %v3697_v42 = vsel %vm3671_vm3, %v3660_v19, %v3624_v62  ;;  %v10254_v12 = vmax.f32 %v1663_v43, %v1853_v1  ;;  %v2054_v58 = vmax.f32 %v10163_v27, %v10233_v40  ;;  %v10272_v47 = vrot.slane %v1059_v48, 7  ;;  %v10287_v1 = vld [vmem:[#allocation2 + $0x24] sm:$0xf0] }
 0x394   : > { %7833 = vmatmul.msk.bf16.gmra.mxu2 %vm3718_vm5, %v3697_v42  ;;  %7854 = vmatmul.msk.bf16.gmra.mxu3 %vm3718_vm5, %v3697_v42  ;;  %v8379_v54 = vor.u32 %v8378_v49, %v8377_v53  ;;  %v7926_v5 = vld [vmem:[%s12331_s5 + $0x10] sm:$0xf]  ;;  %v1062_v49 = vshll.u32 %v645_v24, 16  ;;  %v4631_v29 = vshll.u32 %v10248_v32, 16  ;;  %v10278_v19 = vpack.c.b16 %v4582_v55, %v4582_v55  ;;  %v646_v24 = vld [vmem:[%s8633_s16 + $0x44] sm:$0xf] }
 0x395   : > { %7874 = vmatmul.msk.bf16.gmra.mxu0 %vm3718_vm5, %v3697_v42  ;;  %v2152_v15 = vmax.f32 %v2054_v58, %v10254_v12  ;;  %v4629_v38 = vshrl.u32 %v10248_v32, 16  ;;  %v7927_v62 = vor.u32 %v8037_v10, %v7926_v5  ;;  %v4638_v48 = vrot.slane %v4636_v6, 1  ;;  %v550_v10 = vld [vmem:[#allocation3 + $0x78] sm:$0x1] }
 0x396   : > { %v4167_v41 = vpop.permute.xlu1 %4166  ;;  %7805 = vmatmul.msk.bf16.gmra.mxu1 %vm746_vm1, %v2277_v14  ;;  %v4925_v11 = vrot.slane %v8379_v54, 1  ;;  %v2151_v14 = vmax.f32 %v2053_v46, %v10250_v8  ;;  %v4633_v22 = vrot.slane %v4631_v29, 1  ;;  %v1064_v55 = vor.u32 %v1062_v49, %v10272_v47  ;;  %v1301_v46 = vld [vmem:[#allocation3 + $0x6c] sm:$0xf] }
 0x397   : > { %v4314_v27 = vsel %vm8823_vm12, %v4167_v41, %v4313_v21  ;;  %v10285_v42 = vld [vmem:[#allocation2 + $0x24] sm:$0xff]   ;;  %v2184_v58 = vpack.c.bf16 %v2152_v15, %v2152_v15  ;;  %v5328_v41 = vsel %vm1808_vm0, %v7927_v62, 0  ;;  %v4648_v5 = vshll.u32 %v10278_v19, 16 }
 0x398   : > { %v10260_v0 = vpop.permute.xlu2 %4976  ;;  %4315 = vst [vmem:[#allocation2 + $0x38] sm:$0x1] %v4314_v27  ;;  %v4927_v43 = vsel %vm1519_vm13, %v4925_v11, %v4926_v37  ;;  %v4316_v37 = vld [vmem:[#allocation2 + $0x3c] sm:$0xf]  ;;  %v4634_v21 = vor.u32 %v4633_v22, %v4629_v38  ;;  %v2183_v54 = vpack.c.bf16 %v2151_v14, %v2151_v14  ;;  %5337 = vmatpush.bf16.msra.mxu3 %v5328_v41  ;;  %v1067_v6 = vshrl.u32 %v646_v24, 16 }
 0x399   : > { %4978 = vrot.lane.b32.xlu1 %v4927_v43, %s12419_s29  ;;  %v605_v27 = vld [vmem:[#allocation3 + $0x80] sm:$0x1]  ;;  %v10294_v29 = vld [vmem:[#allocation2 + $0x24] sm:$0xe]  ;;  %v1070_v43 = vshll.u32 %v646_v24, 16  ;;  %v1302_v38 = vsel %vm8793_vm10, %v1064_v55, %v1301_v46  ;;  %v1065_v22 = vrot.slane %v10272_v47, 4 }
 0x39a   : > { %v4153_v53 = vpop.permute.xlu0 %4152  ;;  %v4639_v49 = vsel %vm3237_vm15, %v4634_v21, %v4638_v48  ;;  %v647_v14 = vld [vmem:[%s8633_s16 + $0x48] sm:$0xf]  ;;  %v1069_v62 = vrot.slane %v1067_v6, 7  ;;  %1303 = vst [vmem:[#allocation3 + $0x6c] sm:$0xf] %v1302_v38  ;;  %v2252_v41 = vunpack.c.l.b16 %v2183_v54  ;;  %v2253_v48 = vunpack.c.l.b16 %v2184_v58 }
 0x39b   : > { %4298 = vst.msk [vmem:[#allocation2 + $0x1c] sm:$0xf] %vm509_vm9, %v4153_v53  ;;  %4834 = vrot.lane.b32.xlu0 %v4639_v49, %s8509_s30  ;;  %v648_v53 = vld [vmem:[%s8633_s16 + $0x4c] sm:$0xf]  ;;  %v551_v24 = vsel %vm8823_vm12, 4286578559, %v550_v10 }
 0x39c   : > { %v1305_v21 = vld [vmem:[#allocation3 + $0x74] sm:$0x1]  ;;  %v4650_v34 = vrot.slane %v4648_v5, 1  ;;  %v1072_v46 = vor.u32 %v1070_v43, %v1069_v62  ;;  %v1074_v44 = vrot.slane %v1069_v62, 4  ;;  %552 = vst [vmem:[#allocation3 + $0x78] sm:$0x1] %v551_v24  ;;  %v2278_v24 = vpack.c.b16 %v2253_v48, %v2252_v41 }
 0x39d   : > { %v606_v47 = vsel %vm8861_vm14, 4286578559, %v605_v27  ;;  %v1076_v6 = vshrl.u32 %v647_v14, 16  ;;  %v12557_v54 = vrot.slane %v9399_v13, 4  ;;  %v1079_v38 = vshll.u32 %v647_v14, 16 }
 0x39e   : > { %v1073_v5 = vsel %vm8670_vm4, %v1065_v22, %v1072_v46  ;;  %v1306_v43 = vsel %vm8823_vm12, %v1074_v44, %v1305_v21  ;;  %607 = vst [vmem:[#allocation3 + $0x80] sm:$0x1] %v606_v47  ;;  %v8241_v62 = vld [vmem:[#allocation2 + $0x18] sm:$0xe]  ;;  %v1087_v13 = vshll.u32 %v648_v53, 16 }
 0x39f   : > { %1304 = vst.msk [vmem:[#allocation3 + $0x70] sm:$0xf] %vm509_vm9, %v1073_v5  ;;  %v1078_v55 = vrot.slane %v1076_v6, 7  ;;  %v553_v46 = vld [vmem:[#allocation3 + $0x84] sm:$0x1] }
 0x3a0   : > { %v4169_v11 = vpop.permute.xlu2 %4168  ;;  %1307 = vst [vmem:[#allocation3 + $0x74] sm:$0x1] %v1306_v43  ;;  %v608_v47 = vld [vmem:[#allocation3 + $0x8c] sm:$0x1]  ;;  %v10333_v6 = vld [vmem:[%s8633_s16 + $0x50] sm:$0xf] }
 0x3a1   : > { %v4317_v15 = vsel %vm8793_vm10, %v4169_v11, %v4316_v37  ;;  %v4306_v37 = vld [vmem:[#allocation2 + $0x2c] sm:$0x1]  ;;  %v1084_v11 = vshrl.u32 %v648_v53, 16  ;;  %4172 = vrot.lane.b32.xlu1 %v12557_v54, %s12416_s25  ;;  %v1727_v21 = vld [vmem:[#allocation3 + $0x6c] sm:$0xe]  ;;  %v4655_v53 = vshll.u32 %v10285_v42, 16  ;;  %v1081_v48 = vor.u32 %v1079_v38, %v1078_v55 }
 0x3a2   : > { %4318 = vst [vmem:[#allocation2 + $0x3c] sm:$0xf] %v4317_v15  ;;  %v4161_v49 = vpop.permute.xlu0 %4160  ;;  %v10312_v58 = vld [vmem:[#allocation2 + $0x18] sm:$0xff]   ;;  %v650_v43 = vld [vmem:[%s8633_s16 + $0x54] sm:$0xf]  ;;  %s8514_s16 = smov 24  }
 0x3a3   : > { %v8240_v10 = vld [vmem:[#allocation2 + $0x18] sm:$0xf0]  ;;  %v4307_v27 = vsel %vm8823_vm12, %v4161_v49, %v4306_v37  ;;  %v4643_v15 = vshll.u32 %v10312_v58, 16  ;;  %v1086_v22 = vrot.slane %v1084_v11, 7  ;;  %v4641_v44 = vshrl.u32 %v10312_v58, 16  ;;  %4170 = vrot.lane.b32.xlu0 %v9422_v2, %s12416_s25 }
 0x3a4   : > { %4308 = vst [vmem:[#allocation2 + $0x2c] sm:$0x1] %v4307_v27  ;;  %v8242_v54 = vor.u32 %v8241_v62, %v8240_v10  ;;  %7855 = vmatmul.msk.bf16.gmra.mxu3 %vm3718_vm5, %v9330_v61  ;;  %v1082_v37 = vrot.slane %v1078_v55, 4  ;;  %v1781_v49 = vunpack.c.l.bf16 %v1727_v21  ;;  %v609_v55 = vsel %vm8861_vm14, 4286578559, %v608_v47 }
 0x3a5   : > { %v4645_v14 = vrot.slane %v4643_v15, 1  ;;  %7875 = vmatmul.msk.bf16.gmra.mxu0 %vm3718_vm5, %v9330_v61  ;;  %v1089_v10 = vor.u32 %v1087_v13, %v1086_v22  ;;  %v1091_v5 = vrot.slane %v1086_v22, 4  ;;  %v1308_v61 = vld [vmem:[#allocation3 + $0x78] sm:$0xf]  ;;  %v554_v15 = vsel %vm8823_vm12, 4286578559, %v553_v46 }
 0x3a6   : > { %7806 = vmatmul.msk.bf16.gmra.mxu1 %vm746_vm1, %v2278_v24  ;;  %v4928_v27 = vrot.slane %v8242_v54, 1  ;;  %v1309_v2 = vsel %vm8793_vm10, %v1081_v48, %v1308_v61  ;;  %v4653_v62 = vshrl.u32 %v10285_v42, 16  ;;  %v1312_v13 = vld [vmem:[#allocation3 + $0x80] sm:$0x1]  ;;  %v1093_v54 = vshrl.u32 %v10333_v6, 16  ;;  %v1375_v46 = vld [vmem:[#allocation3 + $0x6c] sm:$0xff]  }
 0x3a7   : > { %v4646_v11 = vor.u32 %v4645_v14, %v4641_v44  ;;  %v1090_v24 = vsel %vm8670_vm4, %v1082_v37, %v1089_v10  ;;  %1310 = vst [vmem:[#allocation3 + $0x78] sm:$0xf] %v1309_v2  ;;  %v12558_v44 = vrot.slane %v9427_v59, 4  ;;  %v4657_v16 = vrot.slane %v4655_v53, 1  ;;  %v1402_v2 = vld [vmem:[#allocation3 + $0x74] sm:$0x1] }
 0x3a8   : > { %1311 = vst.msk [vmem:[#allocation3 + $0x7c] sm:$0xf] %vm509_vm9, %v1090_v24  ;;  %v1101_v14 = vshrl.u32 %v650_v43, 16  ;;  %v1104_v21 = vshll.u32 %v650_v43, 16  ;;  %v1429_v37 = vunpack.c.l.bf16 %v1375_v46  ;;  %v1430_v47 = vunpack.c.h.bf16 %v1375_v46 }
 0x3a9   : > { %v4651_v38 = vsel %vm3237_vm15, %v4646_v11, %v4650_v34  ;;  %4178 = vrot.lane.b32.xlu1 %v12558_v44, %s12416_s25  ;;  %v1313_v34 = vsel %vm8823_vm12, %v1091_v5, %v1312_v13  ;;  %v1854_v11 = vrot.slane %v1781_v49, 2  ;;  %v1095_v10 = vrot.slane %v1093_v54, 7  ;;  %555 = vst [vmem:[#allocation3 + $0x84] sm:$0x1] %v554_v15 }
 0x3aa   : > { %v4165_v22 = vpop.permute.xlu0 %4164  ;;  %4836 = vrot.lane.b32.xlu2 %v4651_v38, %s8509_s30  ;;  %v12559_v59 = vrot.slane %v10278_v19, 1  ;;  %v2055_v38 = vmax.f32 %v10229_v9, %v10250_v8  ;;  %1314 = vst [vmem:[#allocation3 + $0x80] sm:$0x1] %v1313_v34  ;;  %v10361_v5 = vrot.slane %v1101_v14, 7  ;;  %v1456_v43 = vunpack.c.l.bf16 %v1402_v2 }
 0x3ab   : > { %4312 = vst.msk [vmem:[#allocation2 + $0x34] sm:$0xf] %vm509_vm9, %v4165_v22  ;;  %v4439_v48 = vld [vmem:[#allocation2 + $0x2c] sm:$0x1]  ;;  %v1565_v24 = vrot.slane %v1429_v37, 1  ;;  %v1566_v13 = vrot.slane %v1430_v47, 1  ;;  %v2056_v19 = vmax.f32 %v10233_v40, %v10254_v12 }
 0x3ac   : > { %v4930_v61 = vsel %vm1519_vm13, %v4928_v27, %v12559_v59  ;;  %v4583_v53 = vunpack.c.l.b16 %v4439_v48  ;;  %v1855_v22 = vrot.slane %v1430_v47, 2  ;;  %v4440_v27 = vld [vmem:[#allocation2 + $0x38] sm:$0x1]  ;;  %610 = vst [vmem:[#allocation3 + $0x8c] sm:$0x1] %v609_v55  ;;  %v1099_v54 = vrot.slane %v1095_v10, 4 }
 0x3ad   : > { %4980 = vrot.lane.b32.xlu0 %v4930_v61, %s12419_s29  ;;  %v1106_v44 = vor.u32 %v1104_v21, %v10361_v5  ;;  %v1567_v9 = vsel %vm1519_vm13, %v1565_v24, %v1566_v13  ;;  %v1568_v46 = vrot.slane %v1456_v43, 1  ;;  %v1857_v14 = vrot.slane %v1456_v43, 2 }
 0x3ae   : > { %v4601_v49 = vpack.c.b16 %v4583_v53, %v4583_v53  ;;  %v1856_v34 = vsel %vm1808_vm0, %v1854_v11, %v1855_v22  ;;  %v4658_v48 = vor.u32 %v4657_v16, %v4653_v62  ;;  %v1664_v15 = vmax.f32 %v1429_v37, %v1567_v9  ;;  %v1728_v2 = vld [vmem:[#allocation3 + $0x78] sm:$0xe] }
 0x3af   : > { %v1107_v61 = vsel %vm8670_vm4, %v1099_v54, %v1106_v44  ;;  %v1569_v40 = vsel %vm1519_vm13, %v1566_v13, %v1568_v46  ;;  %v1858_v55 = vsel %vm1808_vm0, %v1855_v22, %v1857_v14  ;;  %v4584_v53 = vunpack.c.l.b16 %v4440_v27  ;;  %v8190_v41 = vld [vmem:[#allocation3 + $0x78] sm:$0xff]  }
 0x3b0   : > { %v4660_v59 = vshll.u32 %v4601_v49, 16  ;;  %v1096_v21 = vshll.u32 %v10333_v6, 16  ;;  %1318 = vst.msk [vmem:[#allocation3 + $0x88] sm:$0xf] %vm509_vm9, %v1107_v61  ;;  %v1665_v16 = vmax.f32 %v1430_v47, %v1569_v40  ;;  %v10377_v37 = vmax.f32 %v1664_v15, %v1856_v34  ;;  %v1315_v40 = vld [vmem:[#allocation3 + $0x84] sm:$0xf] }
 0x3b1   : > { %v1782_v11 = vunpack.c.l.bf16 %v1728_v2  ;;  %v12560_v43 = vor.u32 %v10294_v29, %v10287_v1  ;;  %v4932_v13 = vrot.slane %v4601_v49, 1  ;;  %v8064_v22 = vunpack.c.l.bf16 %v8190_v41  ;;  %v1403_v27 = vld [vmem:[#allocation3 + $0x80] sm:$0x1] }
 0x3b2   : > { %4174 = vrot.lane.b32.xlu2 %v9468_v63, %s12416_s25  ;;  %v4662_v62 = vrot.slane %v4660_v59, 1  ;;  %v10383_v6 = vmax.f32 %v1665_v16, %v1858_v55  ;;  %v2153_v44 = vmax.f32 %v2055_v38, %v10377_v37  ;;  %v8065_v9 = vunpack.c.h.bf16 %v8190_v41  ;;  %v10394_v38 = vld [vmem:[#allocation2 + $0x30] sm:$0xff]  }
 0x3b3   : > { %v4931_v24 = vrot.slane %v12560_v43, 1  ;;  %v4602_v63 = vpack.c.b16 %v4584_v53, %v4584_v53  ;;  %v1457_v47 = vunpack.c.l.bf16 %v1403_v27  ;;  %v1570_v46 = vrot.slane %v8064_v22, 1  ;;  %v8243_v55 = vld [vmem:[#allocation2 + $0x30] sm:$0xf0] }
 0x3b4   : > { %v4663_v54 = vsel %vm3237_vm15, %v4658_v48, %v4662_v62  ;;  %7856 = vmatmul.msk.bf16.gmra.mxu3 %vm3718_vm5, %v9359_v18  ;;  %v1098_v1 = vor.u32 %v1096_v21, %v1095_v10  ;;  %v2154_v29 = vmax.f32 %v2056_v19, %v10383_v6  ;;  %v2185_v49 = vpack.c.bf16 %v2153_v44, %v2153_v44 }
 0x3b5   : > { %4838 = vrot.lane.b32.xlu1 %v4663_v54, %s8509_s30  ;;  %7876 = vmatmul.msk.bf16.gmra.mxu0 %vm3718_vm5, %v9359_v18  ;;  %v1571_v41 = vrot.slane %v8065_v9, 1  ;;  %v1859_v34 = vrot.slane %v1782_v11, 2  ;;  %v4933_v14 = vsel %vm1519_vm13, %v4931_v24, %v4932_v13  ;;  %v1573_v48 = vrot.slane %v1457_v47, 1  ;;  %v8244_v24 = vld [vmem:[#allocation2 + $0x30] sm:$0xe] }
 0x3b6   : > { %4176 = vrot.lane.b32.xlu0 %v9462_v30, %s12416_s25  ;;  %v1860_v59 = vrot.slane %v8065_v9, 2  ;;  %v1108_v15 = vrot.slane %v10361_v5, 4  ;;  %v2186_v10 = vpack.c.bf16 %v2154_v29, %v2154_v29  ;;  %v2254_v2 = vunpack.c.l.b16 %v2185_v49  ;;  %v1319_v30 = vld [vmem:[#allocation3 + $0x8c] sm:$0x1] }
 0x3b7   : > { %v1572_v18 = vsel %vm1519_vm13, %v1570_v46, %v1571_v41  ;;  %v1862_v61 = vrot.slane %v1457_v47, 2  ;;  %v4667_v19 = vshll.u32 %v10394_v38, 16  ;;  %v1574_v53 = vsel %vm1519_vm13, %v1571_v41, %v1573_v48 }
 0x3b8   : > { %v1666_v21 = vmax.f32 %v8064_v22, %v1572_v18  ;;  %v1861_v62 = vsel %vm1808_vm0, %v1859_v34, %v1860_v59  ;;  %v2255_v16 = vunpack.c.l.b16 %v2186_v10  ;;  %v1667_v11 = vmax.f32 %v8065_v9, %v1574_v53 }
 0x3b9   : > { %v1863_v5 = vsel %vm1808_vm0, %v1860_v59, %v1862_v61  ;;  %v2057_v43 = vmax.f32 %v10250_v8, %v10377_v37  ;;  %v2058_v27 = vmax.f32 %v10254_v12, %v10383_v6  ;;  %v1316_v22 = vsel %vm8793_vm10, %v1098_v1, %v1315_v40 }
 0x3ba   : > { %4982 = vrot.lane.b32.xlu2 %v4933_v14, %s12419_s29  ;;  %v10406_v13 = vmax.f32 %v1666_v21, %v1861_v62  ;;  %v1320_v54 = vsel %vm8823_vm12, %v1108_v15, %v1319_v30  ;;  %v2279_v44 = vpack.c.b16 %v2255_v16, %v2254_v2  ;;  %v8245_v47 = vor.u32 %v8244_v24, %v8243_v55 }
 0x3bb   : > { %v10414_v9 = vmax.f32 %v1667_v11, %v1863_v5  ;;  %1317 = vst [vmem:[#allocation3 + $0x84] sm:$0xf] %v1316_v22  ;;  %v4669_v8 = vrot.slane %v4667_v19, 1  ;;  %v4665_v29 = vshrl.u32 %v10394_v38, 16  ;;  %v4672_v49 = vshll.u32 %v4602_v63, 16 }
 0x3bc   : > { %v2155_v46 = vmax.f32 %v2057_v43, %v10406_v13  ;;  %1321 = vst [vmem:[#allocation3 + $0x8c] sm:$0x1] %v1320_v54  ;;  %7807 = vmatmul.msk.bf16.gmra.mxu1 %vm746_vm1, %v2279_v44  ;;  %v10422_v12 = vpop.f32.mrf.mxu1  ;;  %v4934_v41 = vrot.slane %v8245_v47, 1  ;;  %v12562_v48 = vrot.slane %v9500_v36, 4  ;;  %v4935_v59 = vrot.slane %v4602_v63, 1 }
 0x3bd   : > { %4182 = vrot.lane.b32.xlu1 %v9518_v3, %s12416_s25  ;;  %12561 = vst [vmem:[#allocation103_spill] sm:$0xff] %v10422_v12  ;;  %v2156_v1 = vmax.f32 %v2058_v27, %v10414_v9  ;;  %v4670_v34 = vor.u32 %v4669_v8, %v4665_v29  ;;  %v4674_v15 = vrot.slane %v4672_v49, 1 }
 0x3be   : > { %4180 = vrot.lane.b32.xlu0 %v9481_v7, %s12416_s25  ;;  %v2187_v14 = vpack.c.bf16 %v2155_v46, %v2155_v46  ;;  %v4936_v2 = vsel %vm1519_vm13, %v4934_v41, %v4935_v59  ;;  %v2059_v46 = vmax.f32 %v10377_v37, %v10406_v13  ;;  %v10457_v37 = vpop.f32.mrf.mxu3  ;;  %v10465_v59 = vpop.f32.mrf.mxu2 }
 0x3bf   : > { %v2188_v3 = vpack.c.bf16 %v2156_v1, %v2156_v1  ;;  %v4675_v55 = vsel %vm3237_vm15, %v4670_v34, %v4674_v15  ;;  %v2060_v1 = vmax.f32 %v10383_v6, %v10414_v9  ;;  %v12566_v6 = vld [vmem:[#allocation46_spill] sm:$0xff] }
 0x3c0   : > { %v2256_v19 = vunpack.c.l.b16 %v2187_v14 }
 0x3c1   : > { %v2257_v36 = vunpack.c.l.b16 %v2188_v3 }
 0x3c2   : > { %4184 = vrot.lane.b32.xlu2 %v12562_v48, %s12416_s25  ;;  %v1379_v7 = vld [vmem:[#allocation3 + $0x84] sm:$0xff]   ;;  %v10459_v48 = vpop.f32.mrf.mxu0 }
 0x3c3   : > { %v1729_v10 = vld [vmem:[#allocation3 + $0x84] sm:$0xe]  ;;  %v1404_v18 = vld [vmem:[#allocation3 + $0x8c] sm:$0x1]  ;;  %v1433_v61 = vunpack.c.l.bf16 %v1379_v7  ;;  %v1434_v40 = vunpack.c.h.bf16 %v1379_v7  ;;  %v2280_v47 = vpack.c.b16 %v2257_v36, %v2256_v19 }
 0x3c4   : > { %v1783_v30 = vunpack.c.l.bf16 %v1729_v10  ;;  %7857 = vmatmul.msk.bf16.gmra.mxu3 %vm3718_vm5, %v9394_v50  ;;  %v1458_v53 = vunpack.c.l.bf16 %v1404_v18  ;;  %v10437_v43 = vpop.f32.mrf.mxu1  ;;  %v7904_v18 = vld [vmem:[%s12331_s5] sm:$0xf] }
 0x3c5   : > { %4984 = vrot.lane.b32.xlu1 %v4936_v2, %s12419_s29  ;;  %7877 = vmatmul.msk.bf16.gmra.mxu0 %vm3718_vm5, %v9394_v50  ;;  %v1575_v63 = vrot.slane %v1433_v61, 1  ;;  %v1576_v21 = vrot.slane %v1434_v40, 1  ;;  %v1865_v16 = vrot.slane %v1434_v40, 2  ;;  %12563 = vst [vmem:[#allocation104_spill] sm:$0xff] %v10437_v43  ;;  %v12564_v50 = vrot.slane %v9514_v4, 4  ;;  %v12568_v19 = vld [vmem:[#allocation37_spill] sm:$0xff] }
 0x3c6   : > { %4840 = vrot.lane.b32.xlu0 %v4675_v55, %s8509_s30  ;;  %v1864_v62 = vrot.slane %v1783_v30, 2  ;;  %v1578_v11 = vrot.slane %v1458_v53, 1  ;;  %v1867_v5 = vrot.slane %v1458_v53, 2  ;;  %v7884_v30 = vld [vmem:[%s12331_s5 + $0x8] sm:$0xf]  ;;  %v3902_v55 = vpop.f32.mrf.mxu3 }
 0x3c7   : > { %v1577_v24 = vsel %vm1519_vm13, %v1575_v63, %v1576_v21  ;;  %v12569_v53 = vld [vmem:[#allocation38_spill] sm:$0xff] }
 0x3c8   : > { %v1866_v27 = vsel %vm1808_vm0, %v1864_v62, %v1865_v16  ;;  %v1579_v22 = vsel %vm1519_vm13, %v1576_v21, %v1578_v11  ;;  %v1668_v54 = vmax.f32 %v1433_v61, %v1577_v24  ;;  %v1868_v44 = vsel %vm1808_vm0, %v1865_v16, %v1867_v5 }
 0x3c9   : > { %v1669_v8 = vmax.f32 %v1434_v40, %v1579_v22 }
 0x3ca   : > { %4190 = vrot.lane.b32.xlu2 %v12564_v50, %s12416_s25  ;;  %v1957_v29 = vmax.f32 %v1668_v54, %v1866_v27  ;;  %v8358_v54 = vld [vmem:[#allocation2] sm:$0xff]  }
 0x3cb   : > { %v1958_v49 = vmax.f32 %v1669_v8, %v1868_v44 }
 0x3cc   : > { %7808 = vmatmul.msk.bf16.gmra.mxu1 %vm746_vm1, %v2280_v47  ;;  %v2157_v4 = vmax.f32 %v2059_v46, %v1957_v29  ;;  %v2061_v10 = vmax.f32 %v10406_v13, %v1957_v29  ;;  %v8036_v13 = vld [vmem:[%s12331_s5 + $0x8] sm:$0x30] }
 0x3cd   : > { %4188 = vrot.lane.b32.xlu1 %v9537_v52, %s12416_s25  ;;  %v2158_v41 = vmax.f32 %v2060_v1, %v1958_v49  ;;  %v2062_v2 = vmax.f32 %v10414_v9, %v1958_v49  ;;  %v7885_v21 = vor.u32 %v8036_v13, %v7884_v30 }
 0x3ce   : > { %4186 = vrot.lane.b32.xlu0 %v9529_v35, %s12416_s25  ;;  %v2189_v14 = vpack.c.bf16 %v2157_v4, %v2157_v4  ;;  %v2159_v36 = vmax.f32 %v2061_v10, %v12568_v19  ;;  %v10499_v46 = vpop.f32.mrf.mxu3 }
 0x3cf   : > { %v2190_v3 = vpack.c.bf16 %v2158_v41, %v2158_v41  ;;  %v2160_v63 = vmax.f32 %v2062_v2, %v12569_v53  ;;  %v5127_v16 = vsel %vm1808_vm0, %v7885_v21, 0  ;;  %v2063_v41 = vmax.f32 %v1957_v29, %v12568_v19 }
 0x3d0   : > { %v2258_v52 = vunpack.c.l.b16 %v2189_v14  ;;  %5136 = vmatpush.bf16.msrb.mxu1 %v5127_v16  ;;  %v2191_v5 = vpack.c.bf16 %v2159_v36, %v2159_v36  ;;  %v2064_v14 = vmax.f32 %v1958_v49, %v12569_v53 }
 0x3d1   : > { %v2259_v35 = vunpack.c.l.b16 %v2190_v3  ;;  %v2192_v24 = vpack.c.bf16 %v2160_v63, %v2160_v63 }
 0x3d2   : > { %v2260_v50 = vunpack.c.l.b16 %v2191_v5 }
 0x3d3   : > { %v10455_v34 = vpop.f32.mrf.mxu1  ;;  %v2281_v15 = vpack.c.b16 %v2259_v35, %v2258_v52  ;;  %v2261_v47 = vunpack.c.l.b16 %v2192_v24  ;;  %v12572_v52 = vld [vmem:[#allocation39_spill] sm:$0xff] }
 0x3d4   : > { %12565 = vst [vmem:[#allocation105_spill] sm:$0xff] %v10455_v34  ;;  %v2161_v35 = vmax.f32 %v2063_v41, %v12572_v52 }
 0x3d5   : > { %4192 = vrot.lane.b32.xlu1 %v9576_v20, %s12416_s25  ;;  %7878 = vmatmul.msk.bf16.gmra.mxu0 %vm3718_vm5, %v12566_v6  ;;  %v8035_v20 = vld [vmem:[%s12331_s5] sm:$0x30]  ;;  %v2282_v4 = vpack.c.b16 %v2261_v47, %v2260_v50  ;;  %v4323_v50 = vld [vmem:[#allocation2 + $0x48] sm:$0xf]  ;;  %s12587_s25 = smov 116  }
 0x3d6   : > { %v7905_v40 = vor.u32 %v8035_v20, %v7904_v18  ;;  %v2193_v20 = vpack.c.bf16 %v2161_v35, %v2161_v35 }
 0x3d8   : > { %v5226_v62 = vsel %vm1808_vm0, %v7905_v40, 0  ;;  %v2262_v49 = vunpack.c.l.b16 %v2193_v20  ;;  %v4320_v20 = vld [vmem:[#allocation2 + $0x44] sm:$0x1] }
 0x3d9   : > { %5235 = vmatpush.bf16.msrb.mxu2 %v5226_v62 }
 0x3db   : > { %v10467_v7 = vpop.f32.mrf.mxu1  ;;  %v3999_v61 = vpop.f32.mrf.mxu0 }
 0x3dc   : > { %12567 = vst [vmem:[#allocation46_spill] sm:$0xff] %v10467_v7  ;;  %v10484_v9 = vadd.f32 %v3999_v61, %v10231_v28  ;;  %7809 = vmatmul.msk.bf16.gmra.mxu1 %vm746_vm1, %v2281_v15  ;;  %v12573_v15 = vld [vmem:[#allocation40_spill] sm:$0xff] }
 0x3e0   : > { %v3803_v11 = vpop.f32.mrf.mxu2  ;;  %v4833_v28 = vpop.permute.xlu1 %4832 }
 0x3e1   : > { %v5013_v44 = vsel %vm746_vm1, %v8358_v54, %v4833_v28  ;;  %v3903_v6 = vadd.f32 %v3902_v55, %v3803_v11  ;;  %v3907_v2 = vpop.f32.mrf.mxu3 }
 0x3e2   : > { %v5049_v8 = vsel %vm3671_vm3, %v5013_v44, %v10260_v0  ;;  %v2162_v0 = vmax.f32 %v2064_v14, %v12573_v15 }
 0x3e3   : > { %v10491_v27 = vpop.f32.mrf.mxu1  ;;  %v10493_v22 = vpop.f32.mrf.mxu0  ;;  %7906 = vmatmul.msk.bf16.vlgmr.msrb.gmra.mxu2 %vm3718_vm5, %v5049_v8 }
 0x3e4   : > { %12570 = vst [vmem:[#allocation37_spill] sm:$0xff] %v10491_v27  ;;  %v2194_v61 = vpack.c.bf16 %v2162_v0, %v2162_v0 }
 0x3e6   : > { %v2263_v13 = vunpack.c.l.b16 %v2194_v61 }
 0x3e8   : > { %v10501_v1 = vpop.f32.mrf.mxu2  ;;  %v2283_v55 = vpack.c.b16 %v2263_v13, %v2262_v49 }
 0x3e9   : > { %v10514_v19 = vpop.f32.mrf.mxu3 }
 0x3eb   : > { %v10505_v3 = vpop.f32.mrf.mxu1 }
 0x3ec   : > { %12571 = vst [vmem:[#allocation38_spill] sm:$0xff] %v10505_v3  ;;  %7810 = vmatmul.msk.bf16.gmra.mxu1 %vm746_vm1, %v2282_v4 }
 0x3ef   : > { %v4004_v10 = vpop.f32.mrf.mxu0 }
 0x3f0   : > { %v10510_v18 = vadd.f32 %v4004_v10, %v3903_v6 }
 0x3f3   : > { %v10512_v40 = vpop.f32.mrf.mxu1 }
 0x3f4   : > { %12574 = vst [vmem:[#allocation39_spill] sm:$0xff] %v10512_v40  ;;  %v3808_v29 = vpop.f32.mrf.mxu2  ;;  %v3912_v5 = vpop.f32.mrf.mxu3  ;;  %v4358_v40 = vld [vmem:[#allocation2 + $0x84] sm:$0xf] }
 0x3f5   : > { %v3908_v30 = vadd.f32 %v3907_v2, %v3808_v29 }
 0x3f7   : > { %v10516_v36 = vpop.f32.mrf.mxu0 }
 0x3fb   : > { %v10518_v53 = vpop.f32.mrf.mxu1 }
 0x3fc   : > { %12575 = vst [vmem:[#allocation40_spill] sm:$0xff] %v10518_v53  ;;  %7811 = vmatmul.msk.bf16.gmra.mxu1 %vm746_vm1, %v2283_v55  ;;  %v10521_v63 = vpop.f32.mrf.mxu2  ;;  %v10533_v41 = vpop.f32.mrf.mxu3 }
 0x3fd   : > { %12578 = vst [vmem:[#allocation108_spill] sm:$0xff] %v10533_v41 }
 0x401   : > { %v4009_v21 = vpop.f32.mrf.mxu0 }
 0x402   : > { %v10525_v16 = vadd.f32 %v4009_v21, %v3908_v30  ;;  %v4334_v21 = vld [vmem:[#allocation2 + $0x5c] sm:$0x1] }
 0x403   : > { %v10523_v62 = vpop.f32.mrf.mxu1 }
 0x404   : > { %12576 = vst [vmem:[#allocation106_spill] sm:$0xff] %v10523_v62  ;;  %v4837_v11 = vpop.permute.xlu2 %4836 }
 0x406   : > { %v3813_v24 = vpop.f32.mrf.mxu2 }
 0x407   : > { %v3913_v28 = vadd.f32 %v3912_v5, %v3813_v24  ;;  %v4327_v24 = vld [vmem:[#allocation2 + $0x50] sm:$0x1] }
 0x409   : > { %v10527_v54 = vpop.f32.mrf.mxu0 }
 0x40b   : > { %v10529_v44 = vpop.f32.mrf.mxu1  ;;  %v4979_v8 = vpop.permute.xlu1 %4978 }
 0x40c   : > { %12577 = vst [vmem:[#allocation107_spill] sm:$0xff] %v10529_v44  ;;  %v4175_v47 = vpop.permute.xlu2 %4174 }
 0x40d   : > { %v4324_v4 = vsel %vm8793_vm10, %v4175_v47, %v4323_v50  ;;  %v4835_v6 = vpop.permute.xlu0 %4834 }
 0x40e   : > { %4325 = vst [vmem:[#allocation2 + $0x48] sm:$0xf] %v4324_v4  ;;  %v10535_v14 = vpop.f32.mrf.mxu2  ;;  %v5015_v52 = vsel %vm746_vm1, %v10248_v32, %v4835_v6  ;;  %v3917_v32 = vpop.f32.mrf.mxu3  ;;  %v8384_v6 = vld [vmem:[#allocation2 + $0x3c] sm:$0xe] }
 0x40f   : > { %12579 = vst [vmem:[#allocation109_spill] sm:$0xff] %v10535_v14  ;;  %v5051_v35 = vsel %vm3671_vm3, %v5015_v52, %v4979_v8 }
 0x410   : > { %7886 = vmatmul.msk.bf16.vlgmr.msrb.gmra.mxu1 %vm3718_vm5, %v5051_v35  ;;  %7907 = vmatmul.msk.bf16.gmra.mxu2 %vm3718_vm5, %v5051_v35  ;;  %v5017_v35 = vsel %vm746_vm1, %v10312_v58, %v4837_v11 }
 0x412   : > { %v4014_v15 = vpop.f32.mrf.mxu0 }
 0x413   : > { %v10540_v0 = vpop.f32.mrf.mxu1  ;;  %v10542_v10 = vadd.f32 %v4014_v15, %v3913_v28  ;;  %v4173_v61 = vpop.permute.xlu1 %4172 }
 0x414   : > { %12580 = vst [vmem:[#allocation110_spill] sm:$0xff] %v10540_v0  ;;  %v10546_v2 = vpop.permute.xlu2 %4982  ;;  %v4321_v29 = vsel %vm8823_vm12, %v4173_v61, %v4320_v20 }
 0x415   : > { %4322 = vst [vmem:[#allocation2 + $0x44] sm:$0x1] %v4321_v29  ;;  %v4171_v13 = vpop.permute.xlu0 %4170 }
 0x416   : > { %4319 = vst.msk [vmem:[#allocation2 + $0x40] sm:$0xf] %vm509_vm9, %v4171_v13  ;;  %v10561_v15 = vpop.f32.mrf.mxu3 }
 0x417   : > { %v3818_v30 = vpop.f32.mrf.mxu2  ;;  %12583 = vst [vmem:[#allocation113_spill] sm:$0xff] %v10561_v15 }
 0x418   : > { %v3918_v49 = vadd.f32 %v3917_v32, %v3818_v30 }
 0x41a   : > { %v10551_v55 = vpop.f32.mrf.mxu0 }
 0x41b   : > { %12581 = vst [vmem:[#allocation111_spill] sm:$0xff] %v10551_v55  ;;  %v4179_v28 = vpop.permute.xlu1 %4178  ;;  %v10557_v4 = vpop.f32.mrf.mxu1 }
 0x41c   : > { %v4185_v5 = vpop.permute.xlu2 %4184  ;;  %v4328_v47 = vsel %vm8823_vm12, %v4179_v28, %v4327_v24  ;;  %v4441_v8 = vld [vmem:[#allocation2 + $0x44] sm:$0x1]  ;;  %12582 = vst [vmem:[#allocation112_spill] sm:$0xff] %v10557_v4 }
 0x41d   : > { %v4335_v50 = vsel %vm8823_vm12, %v4185_v5, %v4334_v21  ;;  %v4585_v52 = vunpack.c.l.b16 %v4441_v8  ;;  %4329 = vst [vmem:[#allocation2 + $0x50] sm:$0x1] %v4328_v47  ;;  %v10563_v61 = vld [vmem:[#allocation2 + $0x3c] sm:$0xff]   ;;  %v4341_v5 = vld [vmem:[#allocation2 + $0x68] sm:$0x1] }
 0x41e   : > { %4336 = vst [vmem:[#allocation2 + $0x5c] sm:$0x1] %v4335_v50  ;;  %v8383_v29 = vld [vmem:[#allocation2 + $0x3c] sm:$0xf0]  ;;  %v4679_v47 = vshll.u32 %v10563_v61, 16 }
 0x41f   : > { %v4981_v20 = vpop.permute.xlu0 %4980  ;;  %v4603_v30 = vpack.c.b16 %v4585_v52, %v4585_v52  ;;  %v8385_v11 = vor.u32 %v8384_v6, %v8383_v29 }
 0x420   : > { %v5053_v32 = vsel %vm3671_vm3, %v5017_v35, %v4981_v20 }
 0x421   : > { %7928 = vmatmul.msk.bf16.vlgmr.msra.gmra.mxu3 %vm3718_vm5, %v5053_v32  ;;  %7887 = vmatmul.msk.bf16.gmra.mxu1 %vm3718_vm5, %v5053_v32  ;;  %v4937_v28 = vrot.slane %v8385_v11, 1  ;;  %v4938_v50 = vrot.slane %v4603_v30, 1  ;;  %v4684_v8 = vshll.u32 %v4603_v30, 16 }
 0x422   : > { %v4019_v13 = vpop.f32.mrf.mxu0  ;;  %7908 = vmatmul.msk.bf16.gmra.mxu2 %vm3718_vm5, %v5053_v32  ;;  %v4677_v32 = vshrl.u32 %v10563_v61, 16 }
 0x423   : > { %v10567_v21 = vadd.f32 %v4019_v13, %v3918_v49  ;;  %v10574_v35 = vpop.f32.mrf.mxu1  ;;  %v4939_v20 = vsel %vm1519_vm13, %v4937_v28, %v4938_v50  ;;  %v4681_v13 = vrot.slane %v4679_v47, 1  ;;  %v4686_v29 = vrot.slane %v4684_v8, 1  ;;  %v12588_v8 = vld [vmem:[#allocation59_spill] sm:$0xff] }
 0x424   : > { %v4191_v58 = vpop.permute.xlu2 %4190  ;;  %12585 = vst [vmem:[#allocation115_spill] sm:$0xff] %v10574_v35  ;;  %v4442_v49 = vld [vmem:[#allocation2 + $0x50] sm:$0x1]  ;;  %4986 = vrot.lane.b32.xlu0 %v4939_v20, %s12419_s29 }
 0x425   : > { %12584 = vst [vmem:[#allocation114_spill] sm:$0xff] %v10567_v21  ;;  %v4342_v24 = vsel %vm8823_vm12, %v4191_v58, %v4341_v5  ;;  %v4682_v6 = vor.u32 %v4681_v13, %v4677_v32  ;;  %v4586_v5 = vunpack.c.l.b16 %v4442_v49  ;;  %v3922_v58 = vpop.f32.mrf.mxu3  ;;  %v12589_v49 = vrot.slane %v12588_v8, 4  ;;  %v4443_v8 = vld [vmem:[#allocation2 + $0x5c] sm:$0x1] }
 0x426   : > { %4343 = vst [vmem:[#allocation2 + $0x68] sm:$0x1] %v4342_v24  ;;  %v3923_v47 = vadd.f32 %v3922_v58, %v9696_v25  ;;  %v8247_v58 = vld [vmem:[#allocation2 + $0x48] sm:$0xe] }
 0x427   : > { %v4839_v52 = vpop.permute.xlu1 %4838  ;;  %v4687_v30 = vsel %vm3237_vm15, %v4682_v6, %v4686_v29  ;;  %v4604_v24 = vpack.c.b16 %v4586_v5, %v4586_v5 }
 0x428   : > { %v4177_v4 = vpop.permute.xlu0 %4176  ;;  %4842 = vrot.lane.b32.xlu2 %v4687_v30, %s8509_s30  ;;  %v5019_v28 = vsel %vm746_vm1, %v10285_v42, %v4839_v52 }
 0x429   : > { %4326 = vst.msk [vmem:[#allocation2 + $0x4c] sm:$0xf] %vm509_vm9, %v4177_v4  ;;  %v4330_v4 = vld [vmem:[#allocation2 + $0x54] sm:$0xf]  ;;  %v5055_v42 = vsel %vm3671_vm3, %v5019_v28, %v10546_v2  ;;  %v4696_v25 = vshll.u32 %v4604_v24, 16  ;;  %v12593_v28 = vld [vmem:[#allocation62_spill] sm:$0xff] }
 0x42a   : > { %v10580_v11 = vpop.f32.mrf.mxu0 }
 0x42b   : > { %12586 = vst [vmem:[#allocation116_spill] sm:$0xff] %v10580_v11  ;;  %v10593_v13 = vpop.f32.mrf.mxu1  ;;  %v5908_v11 = vld [vmem:[#allocation2 + $0x48] sm:$0xf] }
 0x42c   : > { %4196 = vrot.lane.b32.xlu0 %v12589_v49, %s12587_s25  ;;  %12590 = vst [vmem:[#allocation59_spill] sm:$0xff] %v10593_v13  ;;  %v4587_v13 = vunpack.c.l.b16 %v4443_v8 }
 0x42d   : > { %v10606_v2 = vpop.f32.mrf.mxu3 }
 0x42e   : > { %12592 = vst [vmem:[#allocation118_spill] sm:$0xff] %v10606_v2 }
 0x42f   : > { %v4183_v50 = vpop.permute.xlu1 %4182 }
 0x430   : > { %4333 = vst.msk [vmem:[#allocation2 + $0x58] sm:$0xf] %vm509_vm9, %v4183_v50  ;;  %v4181_v20 = vpop.permute.xlu0 %4180  ;;  %v10591_v32 = vld [vmem:[#allocation2 + $0x48] sm:$0xff]   ;;  %4194 = vrot.lane.b32.xlu2 %v12593_v28, %s12587_s25 }
 0x431   : > { %v8246_v6 = vld [vmem:[#allocation2 + $0x48] sm:$0xf0]  ;;  %v4331_v29 = vsel %vm8793_vm10, %v4181_v20, %v4330_v4  ;;  %v4691_v52 = vshll.u32 %v10591_v32, 16  ;;  %7929 = vmatmul.msk.bf16.gmra.mxu3 %vm3718_vm5, %v5055_v42  ;;  %7888 = vmatmul.msk.bf16.gmra.mxu1 %vm3718_vm5, %v5055_v42  ;;  %v4689_v50 = vshrl.u32 %v10591_v32, 16 }
 0x432   : > { %4332 = vst [vmem:[#allocation2 + $0x54] sm:$0xf] %v4331_v29  ;;  %v4024_v5 = vpop.f32.mrf.mxu0  ;;  %7909 = vmatmul.msk.bf16.gmra.mxu2 %vm3718_vm5, %v5055_v42  ;;  %v8248_v20 = vor.u32 %v8247_v58, %v8246_v6  ;;  %v4698_v29 = vrot.slane %v4696_v25, 1  ;;  %v12594_v42 = vrot.slane %v9655_v57, 4  ;;  %v4941_v6 = vrot.slane %v4604_v24, 1 }
 0x433   : > { %v10601_v30 = vadd.f32 %v4024_v5, %v3923_v47  ;;  %v4693_v4 = vrot.slane %v4691_v52, 1 }
 0x434   : > { %v4940_v5 = vrot.slane %v8248_v20, 1  ;;  %4202 = vrot.lane.b32.xlu0 %v12594_v42, %s12587_s25 }
 0x435   : > { %12591 = vst [vmem:[#allocation117_spill] sm:$0xff] %v10601_v30  ;;  %v4694_v49 = vor.u32 %v4693_v4, %v4689_v50  ;;  %v4605_v50 = vpack.c.b16 %v4587_v13, %v4587_v13  ;;  %v3927_v20 = vpop.f32.mrf.mxu3 }
 0x436   : > { %v4942_v4 = vsel %vm1519_vm13, %v4940_v5, %v4941_v6  ;;  %v3928_v6 = vadd.f32 %v3927_v20, %v9764_v45  ;;  %v12599_v20 = vld [vmem:[#allocation66_spill] sm:$0xff] }
 0x437   : > { %v4985_v35 = vpop.permute.xlu1 %4984  ;;  %v4699_v47 = vsel %vm3237_vm15, %v4694_v49, %v4698_v29  ;;  %v8386_v58 = vld [vmem:[#allocation2 + $0x54] sm:$0xf0]  ;;  %v4708_v49 = vshll.u32 %v4605_v50, 16 }
 0x438   : > { %v4841_v44 = vpop.permute.xlu0 %4840  ;;  %4844 = vrot.lane.b32.xlu1 %v4699_v47, %s8509_s30  ;;  %4988 = vrot.lane.b32.xlu2 %v4942_v4, %s12419_s29  ;;  %v4337_v47 = vld [vmem:[#allocation2 + $0x60] sm:$0xf] }
 0x439   : > { %v10615_v52 = vld [vmem:[#allocation2 + $0x54] sm:$0xff]   ;;  %v10619_v25 = vpop.f32.mrf.mxu1  ;;  %v5021_v57 = vsel %vm746_vm1, %v10394_v38, %v4841_v44 }
 0x43a   : > { %v8387_v0 = vld [vmem:[#allocation2 + $0x54] sm:$0xe]  ;;  %v10617_v28 = vpop.f32.mrf.mxu0  ;;  %12596 = vst [vmem:[#allocation119_spill] sm:$0xff] %v10619_v25  ;;  %v4703_v24 = vshll.u32 %v10615_v52, 16  ;;  %v4701_v13 = vshrl.u32 %v10615_v52, 16  ;;  %v5057_v44 = vsel %vm3671_vm3, %v5021_v57, %v4985_v35  ;;  %v4944_v57 = vrot.slane %v4605_v50, 1 }
 0x43b   : > { %12595 = vst [vmem:[#allocation62_spill] sm:$0xff] %v10617_v28  ;;  %v8388_v29 = vor.u32 %v8387_v0, %v8386_v58  ;;  %v4710_v58 = vrot.slane %v4708_v49, 1  ;;  %v4444_v25 = vld [vmem:[#allocation2 + $0x68] sm:$0x1]  ;;  %v4344_v49 = vld [vmem:[#allocation2 + $0x6c] sm:$0xf] }
 0x43c   : > { %v4705_v5 = vrot.slane %v4703_v24, 1  ;;  %v4588_v24 = vunpack.c.l.b16 %v4444_v25  ;;  %v12601_v25 = vld [vmem:[#allocation68_spill] sm:$0xff] }
 0x43d   : > { %v4943_v45 = vrot.slane %v8388_v29, 1 }
 0x43e   : > { %v4706_v0 = vor.u32 %v4705_v5, %v4701_v13  ;;  %v4606_v5 = vpack.c.b16 %v4588_v24, %v4588_v24 }
 0x43f   : > { %v4189_v8 = vpop.permute.xlu1 %4188  ;;  %v4945_v13 = vsel %vm1519_vm13, %v4943_v45, %v4944_v57  ;;  %v12603_v57 = vld [vmem:[#allocation71_spill] sm:$0xff] }
 0x440   : > { %4340 = vst.msk [vmem:[#allocation2 + $0x64] sm:$0xf] %vm509_vm9, %v4189_v8  ;;  %v4187_v42 = vpop.permute.xlu0 %4186  ;;  %4198 = vrot.lane.b32.xlu1 %v9700_v31, %s12587_s25  ;;  %4200 = vrot.lane.b32.xlu2 %v12599_v20, %s12587_s25  ;;  %v4711_v35 = vsel %vm3237_vm15, %v4706_v0, %v4710_v58  ;;  %v12602_v58 = vld [vmem:[#allocation72_spill] sm:$0xff]  ;;  %v4720_v20 = vshll.u32 %v4606_v5, 16  ;;  %v12604_v24 = vrot.slane %v12603_v57, 4 }
 0x441   : > { %v4338_v38 = vsel %vm8793_vm10, %v4187_v42, %v4337_v47  ;;  %7930 = vmatmul.msk.bf16.gmra.mxu3 %vm3718_vm5, %v5057_v44  ;;  %v10635_v8 = vpop.f32.mrf.mxu1  ;;  %7889 = vmatmul.msk.bf16.gmra.mxu1 %vm3718_vm5, %v5057_v44 }
 0x442   : > { %4339 = vst [vmem:[#allocation2 + $0x60] sm:$0xf] %v4338_v38  ;;  %v4029_v4 = vpop.f32.mrf.mxu0  ;;  %7910 = vmatmul.msk.bf16.gmra.mxu2 %vm3718_vm5, %v5057_v44  ;;  %4846 = vrot.lane.b32.xlu0 %v4711_v35, %s8509_s30 }
 0x443   : > { %12597 = vst [vmem:[#allocation120_spill] sm:$0xff] %v10635_v8  ;;  %v10637_v31 = vadd.f32 %v4029_v4, %v3928_v6 }
 0x445   : > { %12598 = vst [vmem:[#allocation121_spill] sm:$0xff] %v10637_v31 }
 0x447   : > { %v4193_v47 = vpop.permute.xlu1 %4192  ;;  %v8249_v50 = vld [vmem:[#allocation2 + $0x60] sm:$0xf0] }
 0x448   : > { %v4345_v42 = vsel %vm8793_vm10, %v4193_v47, %v4344_v49  ;;  %4990 = vrot.lane.b32.xlu1 %v4945_v13, %s12419_s29  ;;  %4204 = vrot.lane.b32.xlu2 %v12601_v25, %s12587_s25  ;;  %v4722_v47 = vrot.slane %v4720_v20, 1 }
 0x449   : > { %4346 = vst [vmem:[#allocation2 + $0x6c] sm:$0xf] %v4345_v42  ;;  %v10649_v29 = vld [vmem:[#allocation2 + $0x60] sm:$0xff]   ;;  %v10651_v38 = vpop.f32.mrf.mxu1  ;;  %v4947_v42 = vrot.slane %v4606_v5, 1  ;;  %v12610_v5 = vld [vmem:[#allocation76_spill] sm:$0xff] }
 0x44a   : > { %v8250_v6 = vld [vmem:[#allocation2 + $0x60] sm:$0xe]  ;;  %12600 = vst [vmem:[#allocation66_spill] sm:$0xff] %v10651_v38  ;;  %v4715_v44 = vshll.u32 %v10649_v29, 16  ;;  %4206 = vrot.lane.b32.xlu0 %v12602_v58, %s12587_s25  ;;  %v4713_v45 = vshrl.u32 %v10649_v29, 16 }
 0x44b   : > { %v8251_v0 = vor.u32 %v8250_v6, %v8249_v50  ;;  %v10716_v38 = vld [vmem:[%s12332_s6] ss:$0 sm:$0xff] }
 0x44c   : > { %v4717_v4 = vrot.slane %v4715_v44, 1  ;;  %v12606_v44 = vld [vmem:[#allocation73_spill] sm:$0xff] }
 0x44d   : > { %v4946_v49 = vrot.slane %v8251_v0, 1  ;;  %v12607_v50 = vrot.slane %v12606_v44, 4  ;;  %v12609_v0 = vld [vmem:[#allocation74_spill] sm:$0xff] }
 0x44e   : > { %v4718_v35 = vor.u32 %v4717_v4, %v4713_v45  ;;  %v12612_v45 = vld [vmem:[#allocation9_spill] sm:$0xff] }
 0x44f   : > { %v4948_v6 = vsel %vm1519_vm13, %v4946_v49, %v4947_v42 }
 0x450   : > { %4208 = vrot.lane.b32.xlu1 %v12604_v24, %s12587_s25  ;;  %v4723_v25 = vsel %vm3237_vm15, %v4718_v35, %v4722_v47  ;;  %v10683_v35 = vpop.f32.mrf.mxu3 }
 0x451   : > { %v10662_v13 = vpop.f32.mrf.mxu1  ;;  %4848 = vrot.lane.b32.xlu2 %v4723_v25, %s8509_s30  ;;  %12614 = vst [vmem:[#allocation74_spill] sm:$0xff] %v10683_v35 }
 0x452   : > { %12605 = vst [vmem:[#allocation68_spill] sm:$0xff] %v10662_v13  ;;  %4992 = vrot.lane.b32.xlu0 %v4948_v6, %s12419_s29  ;;  %v10695_v6 = vpop.f32.mrf.mxu2 }
 0x453   : > { %12620 = vst [vmem:[#allocation125_spill] sm:$0xff] %v10695_v6 }
 0x458   : > { %4214 = vrot.lane.b32.xlu1 %v12607_v50, %s12587_s25  ;;  %v10687_v24 = vpop.f32.mrf.mxu3 }
 0x459   : > { %v10671_v4 = vpop.f32.mrf.mxu1  ;;  %4210 = vrot.lane.b32.xlu2 %v12609_v0, %s12587_s25  ;;  %12616 = vst [vmem:[#allocation9_spill] sm:$0xff] %v10687_v24 }
 0x45a   : > { %12608 = vst [vmem:[#allocation72_spill] sm:$0xff] %v10671_v4  ;;  %4212 = vrot.lane.b32.xlu0 %v12610_v5, %s12587_s25 }
 0x460   : > { %v10691_v42 = vpop.f32.mrf.mxu3 }
 0x461   : > { %v10677_v58 = vpop.f32.mrf.mxu1  ;;  %12618 = vst [vmem:[#allocation123_spill] sm:$0xff] %v10691_v42 }
 0x462   : > { %12611 = vst [vmem:[#allocation71_spill] sm:$0xff] %v10677_v58  ;;  %4216 = vrot.lane.b32.xlu0 %v12612_v45, %s12587_s25 }
 0x466   : > { %v5237_v5 = vpop.f32.mrf.mxu2 }
 0x468   : > { %v10698_v50 = vpop.f32.mrf.mxu3 }
 0x469   : > { %v10681_v20 = vpop.f32.mrf.mxu1  ;;  %12621 = vst [vmem:[#allocation126_spill] sm:$0xff] %v10698_v50 }
 0x46a   : > { %12613 = vst [vmem:[#allocation73_spill] sm:$0xff] %v10681_v20 }
 0x46e   : > { %v5239_v58 = vpop.f32.mrf.mxu2 }
 0x471   : > { %v10685_v57 = vpop.f32.mrf.mxu1 }
 0x472   : > { %12615 = vst [vmem:[#allocation76_spill] sm:$0xff] %v10685_v57 }
 0x479   : > { %v10689_v49 = vpop.f32.mrf.mxu1 }
 0x47a   : > { %12617 = vst [vmem:[#allocation122_spill] sm:$0xff] %v10689_v49 }
 0x481   : > { %v10693_v25 = vpop.f32.mrf.mxu1 }
 0x482   : > { %v4843_v47 = vpop.permute.xlu2 %4842  ;;  %12619 = vst [vmem:[#allocation124_spill] sm:$0xff] %v10693_v25  ;;  %v10705_v25 = vpop.f32.mrf.mxu3 }
 0x483   : > { %v5023_v57 = vsel %vm746_vm1, %v10563_v61, %v4843_v47  ;;  %12622 = vst [vmem:[#allocation127_spill] sm:$0xff] %v10705_v25  ;;  %v4348_v61 = vld [vmem:[#allocation2 + $0x74] sm:$0x1] }
 0x48a   : > { %v4195_v44 = vpop.permute.xlu2 %4194 }
 0x48b   : > { %4347 = vst.msk [vmem:[#allocation2 + $0x70] sm:$0xf] %vm509_vm9, %v4195_v44 }
 0x48d   : > { %v5138_v0 = vpop.f32.mrf.mxu1 }
 0x492   : > { %v4989_v45 = vpop.permute.xlu2 %4988  ;;  %v10709_v13 = vld [vmem:[#allocation2 + $0x6c] sm:$0xff]  }
 0x493   : > { %v8389_v8 = vld [vmem:[#allocation2 + $0x6c] sm:$0xf0]  ;;  %v4727_v43 = vshll.u32 %v10709_v13, 16 }
 0x495   : > { %v5140_v44 = vpop.f32.mrf.mxu1 }
 0x496   : > { %v4987_v20 = vpop.permute.xlu0 %4986 }
 0x497   : > { %v5059_v49 = vsel %vm3671_vm3, %v5023_v57, %v4987_v20  ;;  %v5238_v57 = vadd.f32 %v5237_v5, %v5138_v0  ;;  %v4355_v5 = vld [vmem:[#allocation2 + $0x80] sm:$0x1] }
 0x498   : > { %7890 = vmatmul.msk.bf16.gmra.mxu1 %vm3718_vm5, %v5059_v49  ;;  %7911 = vmatmul.msk.bf16.gmra.mxu2 %vm3718_vm5, %v5059_v49 }
 0x499   : > { %7931 = vmatmul.msk.bf16.gmra.mxu3 %vm3718_vm5, %v5059_v49 }
 0x49a   : > { %v4201_v4 = vpop.permute.xlu2 %4200 }
 0x49b   : > { %4354 = vst.msk [vmem:[#allocation2 + $0x7c] sm:$0xf] %vm509_vm9, %v4201_v4  ;;  %v8390_v4 = vld [vmem:[#allocation2 + $0x6c] sm:$0xe] }
 0x49c   : > { %v8391_v12 = vor.u32 %v8390_v4, %v8389_v8 }
 0x49e   : > { %v4197_v47 = vpop.permute.xlu0 %4196  ;;  %v5143_v7 = vpop.f32.mrf.mxu1 }
 0x49f   : > { %v4349_v20 = vsel %vm8823_vm12, %v4197_v47, %v4348_v61  ;;  %v5242_v61 = vpop.f32.mrf.mxu2 }
 0x4a0   : > { %4350 = vst [vmem:[#allocation2 + $0x74] sm:$0x1] %v4349_v20  ;;  %v5243_v42 = vadd.f32 %v5242_v61, %v5143_v7 }
 0x4a2   : > { %v4205_v53 = vpop.permute.xlu2 %4204 }
 0x4a3   : > { %v4359_v3 = vsel %vm8793_vm10, %v4205_v53, %v4358_v40  ;;  %v5240_v40 = vadd.f32 %v5239_v58, %v5140_v44  ;;  %v4729_v58 = vrot.slane %v4727_v43, 1  ;;  %v5873_v43 = vld [vmem:[#allocation2 + $0xc] sm:$0xf] }
 0x4a4   : > { %v5339_v49 = vpop.f32.mrf.mxu3  ;;  %4360 = vst [vmem:[#allocation2 + $0x84] sm:$0xf] %v4359_v3 }
 0x4a5   : > { %v5419_v62 = vadd.f32 %v5339_v49, %v5238_v57 }
 0x4a6   : > { %v4203_v47 = vpop.permute.xlu0 %4202 }
 0x4a7   : > { %v5455_v27 = vadd.f32 %v10716_v38, %v5419_v62  ;;  %v4356_v34 = vsel %vm8823_vm12, %v4203_v47, %v4355_v5  ;;  %v4445_v49 = vld [vmem:[#allocation2 + $0x74] sm:$0x1]  ;;  %v4949_v47 = vrot.slane %v8391_v12, 1  ;;  %v5244_v50 = vpop.f32.mrf.mxu2 }
 0x4a8   : > { %4357 = vst [vmem:[#allocation2 + $0x80] sm:$0x1] %v4356_v34  ;;  %v4589_v62 = vunpack.c.l.b16 %v4445_v49 }
 0x4a9   : > { %v5487_v0 = vmax.f32 %v5455_v27, 0.0 }
 0x4aa   : > { %v4845_v20 = vpop.permute.xlu1 %4844  ;;  %v4607_v8 = vpack.c.b16 %v4589_v62, %v4589_v62  ;;  %v4351_v62 = vld [vmem:[#allocation2 + $0x78] sm:$0xf] }
 0x4ab   : > { %v5025_v57 = vsel %vm746_vm1, %v10591_v32, %v4845_v20  ;;  %v5519_v53 = vpack.c.bf16 %v5487_v0, %v5487_v0  ;;  %v10730_v32 = vpop.permute.xlu2 %4848 }
 0x4ac   : > { %v5061_v3 = vsel %vm3671_vm3, %v5025_v57, %v4989_v45  ;;  %v5341_v27 = vpop.f32.mrf.mxu3  ;;  %v4950_v45 = vrot.slane %v4607_v8, 1  ;;  %v4732_v0 = vshll.u32 %v4607_v8, 16  ;;  %v4725_v57 = vshrl.u32 %v10709_v13, 16 }
 0x4ad   : > { %7891 = vmatmul.msk.bf16.gmra.mxu1 %vm3718_vm5, %v5061_v3  ;;  %7912 = vmatmul.msk.bf16.gmra.mxu2 %vm3718_vm5, %v5061_v3  ;;  %v5552_v25 = vshrl.u32 %v5519_v53, 16  ;;  %v5420_v5 = vadd.f32 %v5341_v27, %v5240_v40  ;;  %v5555_v4 = vshll.u32 %v5519_v53, 16  ;;  %v5145_v40 = vpop.f32.mrf.mxu1 }
 0x4ae   : > { %7932 = vmatmul.msk.bf16.gmra.mxu3 %vm3718_vm5, %v5061_v3  ;;  %v4951_v12 = vsel %vm1519_vm13, %v4949_v47, %v4950_v45  ;;  %v4730_v27 = vor.u32 %v4729_v58, %v4725_v57 }
 0x4af   : > { %v5554_v44 = vrot.slane %v5552_v25, 7  ;;  %v5456_v34 = vadd.f32 %v10716_v38, %v5420_v5  ;;  %4994 = vrot.lane.b32.xlu2 %v4951_v12, %s12419_s29  ;;  %v4734_v5 = vrot.slane %v4732_v0, 1  ;;  %v4446_v8 = vld [vmem:[#allocation2 + $0x80] sm:$0x1] }
 0x4b0   : > { %v4590_v45 = vunpack.c.l.b16 %v4446_v8 }
 0x4b1   : > { %v5557_v49 = vor.u32 %v5555_v4, %v5554_v44  ;;  %v5488_v3 = vmax.f32 %v5456_v34, 0.0  ;;  %v4735_v47 = vsel %vm3237_vm15, %v4730_v27, %v4734_v5  ;;  %v5877_v5 = vld [vmem:[#allocation2 + $0x14] sm:$0x1] }
 0x4b2   : > { %v4199_v53 = vpop.permute.xlu1 %4198  ;;  %4850 = vrot.lane.b32.xlu1 %v4735_v47, %s8509_s30 }
 0x4b3   : > { %v4352_v25 = vsel %vm8793_vm10, %v4199_v53, %v4351_v62  ;;  %v5874_v4 = vsel %vm10735_vm11, %v5557_v49, %v5873_v43  ;;  %v5520_v24 = vpack.c.bf16 %v5488_v3, %v5488_v3  ;;  %v4365_v62 = vld [vmem:[#allocation2 + $0x90] sm:$0xf]  ;;  %v4211_v58 = vpop.permute.xlu2 %4210  ;;  %v5558_v3 = vrot.slane %v5554_v44, 4 }
 0x4b4   : > { %4353 = vst [vmem:[#allocation2 + $0x78] sm:$0xf] %v4352_v25  ;;  %v5344_v34 = vpop.f32.mrf.mxu3  ;;  %v4366_v0 = vsel %vm8793_vm10, %v4211_v58, %v4365_v62  ;;  %v4847_v7 = vpop.permute.xlu0 %4846  ;;  %v4608_v53 = vpack.c.b16 %v4590_v45, %v4590_v45  ;;  %v8252_v58 = vld [vmem:[#allocation2 + $0x78] sm:$0xf0] }
 0x4b5   : > { %5875 = vst [vmem:[#allocation2 + $0xc] sm:$0xf] %v5874_v4  ;;  %v5560_v35 = vshrl.u32 %v5520_v24, 16  ;;  %v5421_v31 = vadd.f32 %v5344_v34, %v5243_v42  ;;  %v5563_v57 = vshll.u32 %v5520_v24, 16  ;;  %v5027_v42 = vsel %vm746_vm1, %v10615_v52, %v4847_v7  ;;  %v12625_v4 = vld [vmem:[#allocation10_spill] sm:$0xff]  ;;  %v5148_v62 = vpop.f32.mrf.mxu1 }
 0x4b6   : > { %4367 = vst [vmem:[#allocation2 + $0x90] sm:$0xf] %v4366_v0  ;;  %v12626_v34 = vrot.slane %v12625_v4, 4  ;;  %v5245_v24 = vadd.f32 %v5244_v50, %v5145_v40  ;;  %v5247_v40 = vpop.f32.mrf.mxu2 }
 0x4b7   : > { %v5562_v61 = vrot.slane %v5560_v35, 7  ;;  %v5457_v49 = vadd.f32 %v10716_v38, %v5421_v31 }
 0x4b8   : > { %4220 = vrot.lane.b32.xlu2 %v12626_v34, %s12587_s25 }
 0x4b9   : > { %v5565_v12 = vor.u32 %v5563_v57, %v5562_v61  ;;  %v5567_v43 = vrot.slane %v5562_v61, 4  ;;  %v5489_v25 = vmax.f32 %v5457_v49, 0.0  ;;  %v4744_v61 = vshll.u32 %v4608_v53, 16 }
 0x4ba   : > { %v4991_v27 = vpop.permute.xlu1 %4990 }
 0x4bb   : > { %v5063_v8 = vsel %vm3671_vm3, %v5027_v42, %v4991_v27  ;;  %v10757_v35 = vld [vmem:[#allocation2 + $0x78] sm:$0xff]   ;;  %v5566_v44 = vsel %vm8670_vm4, %v5558_v3, %v5565_v12  ;;  %v5878_v45 = vsel %vm8721_vm6, %v5567_v43, %v5877_v5  ;;  %v5521_v52 = vpack.c.bf16 %v5489_v25, %v5489_v25 }
 0x4bc   : > { %v8253_v31 = vld [vmem:[#allocation2 + $0x78] sm:$0xe]  ;;  %5876 = vst.msk [vmem:[#allocation2 + $0x10] sm:$0xf] %vm387_vm2, %v5566_v44  ;;  %v5346_v0 = vpop.f32.mrf.mxu3  ;;  %v4739_v7 = vshll.u32 %v10757_v35, 16  ;;  %v4207_v12 = vpop.permute.xlu0 %4206  ;;  %v4737_v43 = vshrl.u32 %v10757_v35, 16 }
 0x4bd   : > { %7892 = vmatmul.msk.bf16.gmra.mxu1 %vm3718_vm5, %v5063_v8  ;;  %7913 = vmatmul.msk.bf16.gmra.mxu2 %vm3718_vm5, %v5063_v8  ;;  %v8254_v50 = vor.u32 %v8253_v31, %v8252_v58  ;;  %5879 = vst [vmem:[#allocation2 + $0x14] sm:$0x1] %v5878_v45  ;;  %v5569_v57 = vshrl.u32 %v5521_v52, 16  ;;  %v5422_v49 = vadd.f32 %v5346_v0, %v5245_v24  ;;  %v12628_v3 = vld [vmem:[#allocation12_spill] sm:$0xff]  ;;  %v5572_v27 = vshll.u32 %v5521_v52, 16 }
 0x4be   : > { %4218 = vrot.lane.b32.xlu1 %v12628_v3, %s12587_s25  ;;  %7933 = vmatmul.msk.bf16.gmra.mxu3 %vm3718_vm5, %v5063_v8  ;;  %v4741_v25 = vrot.slane %v4739_v7, 1  ;;  %4361 = vst.msk [vmem:[#allocation2 + $0x88] sm:$0xf] %vm509_vm9, %v4207_v12  ;;  %v4746_v34 = vrot.slane %v4744_v61, 1  ;;  %v4362_v45 = vld [vmem:[#allocation2 + $0x8c] sm:$0x1] }
 0x4bf   : > { %v5571_v42 = vrot.slane %v5569_v57, 7  ;;  %v5458_v5 = vadd.f32 %v10716_v38, %v5422_v49  ;;  %v4952_v31 = vrot.slane %v8254_v50, 1  ;;  %v5880_v0 = vld [vmem:[#allocation2 + $0x18] sm:$0xf]  ;;  %v12629_v3 = vld [vmem:[#allocation15_spill] sm:$0xff]  ;;  %v4953_v57 = vrot.slane %v4608_v53, 1 }
 0x4c0   : > { %v4742_v4 = vor.u32 %v4741_v25, %v4737_v43  ;;  %v12630_v7 = vrot.slane %v12629_v3, 4  ;;  %v5248_v49 = vadd.f32 %v5247_v40, %v5148_v62  ;;  %v5150_v25 = vpop.f32.mrf.mxu1  ;;  %v5249_v40 = vpop.f32.mrf.mxu2 }
 0x4c1   : > { %v5574_v44 = vor.u32 %v5572_v27, %v5571_v42  ;;  %v5490_v24 = vmax.f32 %v5458_v5, 0.0  ;;  %v4954_v43 = vsel %vm1519_vm13, %v4952_v31, %v4953_v57  ;;  %v5250_v31 = vadd.f32 %v5249_v40, %v5150_v25  ;;  %v12632_v40 = vld [vmem:[#allocation17_spill] sm:$0xff] }
 0x4c2   : > { %v4209_v58 = vpop.permute.xlu1 %4208  ;;  %4226 = vrot.lane.b32.xlu2 %v12630_v7, %s12587_s25  ;;  %v4747_v52 = vsel %vm3237_vm15, %v4742_v4, %v4746_v34 }
 0x4c3   : > { %v4363_v8 = vsel %vm8823_vm12, %v4209_v58, %v4362_v45  ;;  %v5881_v61 = vsel %vm10735_vm11, %v5574_v44, %v5880_v0  ;;  %v5522_v50 = vpack.c.bf16 %v5490_v24, %v5490_v24  ;;  %4852 = vrot.lane.b32.xlu0 %v4747_v52, %s8509_s30  ;;  %v8393_v45 = vld [vmem:[#allocation2 + $0x84] sm:$0xe]  ;;  %v5029_v58 = vsel %vm746_vm1, %v10649_v29, %v10730_v32  ;;  %v4369_v52 = vld [vmem:[#allocation2 + $0x98] sm:$0x1] }
 0x4c4   : > { %4364 = vst [vmem:[#allocation2 + $0x8c] sm:$0x1] %v4363_v8  ;;  %v5349_v12 = vpop.f32.mrf.mxu3  ;;  %v4993_v4 = vpop.permute.xlu0 %4992  ;;  %v5575_v0 = vrot.slane %v5571_v42, 4  ;;  %v12631_v42 = vld [vmem:[#allocation14_spill] sm:$0xff] }
 0x4c5   : > { %5882 = vst [vmem:[#allocation2 + $0x18] sm:$0xf] %v5881_v61  ;;  %v5577_v27 = vshrl.u32 %v5522_v50, 16  ;;  %v5423_v5 = vadd.f32 %v5349_v12, %v5248_v49  ;;  %v10784_v53 = vld [vmem:[#allocation2 + $0x84] sm:$0xff]   ;;  %v5580_v44 = vshll.u32 %v5522_v50, 16  ;;  %v5065_v61 = vsel %vm3671_vm3, %v5029_v58, %v4993_v4 }
 0x4c6   : > { %4996 = vrot.lane.b32.xlu1 %v4954_v43, %s12419_s29  ;;  %v8392_v62 = vld [vmem:[#allocation2 + $0x84] sm:$0xf0]  ;;  %v5884_v49 = vld [vmem:[#allocation2 + $0x20] sm:$0x1] }
 0x4c7   : > { %v5579_v34 = vrot.slane %v5577_v27, 7  ;;  %v5459_v24 = vadd.f32 %v10716_v38, %v5423_v5  ;;  %v8394_v43 = vor.u32 %v8393_v45, %v8392_v62  ;;  %v4751_v45 = vshll.u32 %v10784_v53, 16 }
 0x4c9   : > { %v5582_v8 = vor.u32 %v5580_v44, %v5579_v34  ;;  %v5584_v3 = vrot.slane %v5579_v34, 4  ;;  %v5491_v7 = vmax.f32 %v5459_v24, 0.0  ;;  %v4955_v58 = vrot.slane %v8394_v43, 1 }
 0x4ca   : > { %v4215_v57 = vpop.permute.xlu1 %4214 }
 0x4cb   : > { %v4370_v12 = vsel %vm8823_vm12, %v4215_v57, %v4369_v52  ;;  %v4447_v50 = vld [vmem:[#allocation2 + $0x8c] sm:$0x1]  ;;  %v5583_v27 = vsel %vm8670_vm4, %v5575_v0, %v5582_v8  ;;  %v5885_v29 = vsel %vm8721_vm6, %v5584_v3, %v5884_v49  ;;  %v5523_v32 = vpack.c.bf16 %v5491_v7, %v5491_v7  ;;  %4222 = vrot.lane.b32.xlu0 %v12631_v42, %s12587_s25 }
 0x4cc   : > { %4371 = vst [vmem:[#allocation2 + $0x98] sm:$0x1] %v4370_v12  ;;  %v4591_v25 = vunpack.c.l.b16 %v4447_v50  ;;  %v5351_v5 = vpop.f32.mrf.mxu3  ;;  %v4213_v24 = vpop.permute.xlu0 %4212  ;;  %v4753_v0 = vrot.slane %v4751_v45, 1  ;;  %v4749_v57 = vshrl.u32 %v10784_v53, 16  ;;  %v5887_v50 = vld [vmem:[#allocation2 + $0x24] sm:$0xf] }
 0x4cd   : > { %5883 = vst.msk [vmem:[#allocation2 + $0x1c] sm:$0xf] %vm387_vm2, %v5583_v27  ;;  %7893 = vmatmul.msk.bf16.gmra.mxu1 %vm3718_vm5, %v5065_v61  ;;  %7914 = vmatmul.msk.bf16.gmra.mxu2 %vm3718_vm5, %v5065_v61  ;;  %v5586_v4 = vshrl.u32 %v5523_v32, 16  ;;  %v5424_v62 = vadd.f32 %v5351_v5, %v5250_v31  ;;  %v5589_v44 = vshll.u32 %v5523_v32, 16  ;;  %v12633_v45 = vld [vmem:[#allocation20_spill] sm:$0xff] }
 0x4ce   : > { %5886 = vst [vmem:[#allocation2 + $0x20] sm:$0x1] %v5885_v29  ;;  %4224 = vrot.lane.b32.xlu1 %v12632_v40, %s12587_s25  ;;  %7934 = vmatmul.msk.bf16.gmra.mxu3 %vm3718_vm5, %v5065_v61  ;;  %v4609_v34 = vpack.c.b16 %v4591_v25, %v4591_v25  ;;  %v4754_v61 = vor.u32 %v4753_v0, %v4749_v57 }
 0x4cf   : > { %v5588_v8 = vrot.slane %v5586_v4, 7  ;;  %v5460_v3 = vadd.f32 %v10716_v38, %v5424_v62  ;;  %4368 = vst.msk [vmem:[#allocation2 + $0x94] sm:$0xf] %vm509_vm9, %v4213_v24  ;;  %v4372_v62 = vld [vmem:[#allocation2 + $0x9c] sm:$0xf] }
 0x4d0   : > { %v4956_v7 = vrot.slane %v4609_v34, 1  ;;  %v4756_v52 = vshll.u32 %v4609_v34, 16 }
 0x4d1   : > { %v5591_v31 = vor.u32 %v5589_v44, %v5588_v8  ;;  %v5492_v49 = vmax.f32 %v5460_v3, 0.0  ;;  %v5592_v3 = vrot.slane %v5588_v8, 4 }
 0x4d2   : > { %v4957_v12 = vsel %vm1519_vm13, %v4955_v58, %v4956_v7  ;;  %v4758_v27 = vrot.slane %v4756_v52, 1 }
 0x4d3   : > { %v4448_v29 = vld [vmem:[#allocation2 + $0x98] sm:$0x1]  ;;  %v5888_v43 = vsel %vm10735_vm11, %v5591_v31, %v5887_v50  ;;  %v5524_v32 = vpack.c.bf16 %v5492_v49, %v5492_v49  ;;  %4998 = vrot.lane.b32.xlu0 %v4957_v12, %s12419_s29  ;;  %v5891_v50 = vld [vmem:[#allocation2 + $0x2c] sm:$0x1] }
 0x4d4   : > { %v4592_v42 = vunpack.c.l.b16 %v4448_v29  ;;  %5889 = vst [vmem:[#allocation2 + $0x24] sm:$0xf] %v5888_v43  ;;  %v4759_v25 = vsel %vm3237_vm15, %v4754_v61, %v4758_v27  ;;  %v4217_v40 = vpop.permute.xlu0 %4216  ;;  %v12634_v29 = vld [vmem:[#allocation21_spill] sm:$0xff] }
 0x4d5   : > { %v5594_v5 = vshrl.u32 %v5524_v32, 16  ;;  %4854 = vrot.lane.b32.xlu2 %v4759_v25, %s8509_s30  ;;  %v5597_v24 = vshll.u32 %v5524_v32, 16  ;;  %v4373_v58 = vsel %vm8793_vm10, %v4217_v40, %v4372_v62  ;;  %v12635_v43 = vrot.slane %v12634_v29, 4 }
 0x4d6   : > { %4228 = vrot.lane.b32.xlu1 %v12633_v45, %s12587_s25  ;;  %v4610_v4 = vpack.c.b16 %v4592_v42, %v4592_v42  ;;  %v10817_v34 = vld [vmem:[#allocation2 + $0x90] sm:$0xff]   ;;  %4374 = vst [vmem:[#allocation2 + $0x9c] sm:$0xf] %v4373_v58 }
 0x4d7   : > { %v5596_v44 = vrot.slane %v5594_v5, 7  ;;  %v4763_v0 = vshll.u32 %v10817_v34, 16  ;;  %v4761_v31 = vshrl.u32 %v10817_v34, 16  ;;  %v8255_v12 = vld [vmem:[#allocation2 + $0x90] sm:$0xf0] }
 0x4d8   : > { %v4768_v7 = vshll.u32 %v4610_v4, 16  ;;  %v8256_v42 = vld [vmem:[#allocation2 + $0x90] sm:$0xe]  ;;  %v4959_v40 = vrot.slane %v4610_v4, 1 }
 0x4d9   : > { %v5599_v52 = vor.u32 %v5597_v24, %v5596_v44  ;;  %v5601_v57 = vrot.slane %v5596_v44, 4  ;;  %v4765_v49 = vrot.slane %v4763_v0, 1  ;;  %v8257_v25 = vor.u32 %v8256_v42, %v8255_v12  ;;  %v12636_v5 = vld [vmem:[#allocation23_spill] sm:$0xff]  ;;  %v12637_v44 = vld [vmem:[#allocation26_spill] sm:$0xff]  ;;  %v12639_v0 = vld [vmem:[#allocation25_spill] sm:$0xff] }
 0x4da   : > { %v4770_v32 = vrot.slane %v4768_v7, 1  ;;  %v12638_v24 = vrot.slane %v12637_v44, 4  ;;  %v5153_v7 = vpop.f32.mrf.mxu1 }
 0x4db   : > { %v5600_v61 = vsel %vm8670_vm4, %v5592_v3, %v5599_v52  ;;  %v5892_v27 = vsel %vm8721_vm6, %v5601_v57, %v5891_v50  ;;  %4232 = vrot.lane.b32.xlu0 %v12635_v43, %s12587_s25  ;;  %v4766_v8 = vor.u32 %v4765_v49, %v4761_v31  ;;  %v4958_v62 = vrot.slane %v8257_v25, 1  ;;  %v12640_v3 = vld [vmem:[#allocation27_spill] sm:$0xff]  ;;  %v5252_v57 = vpop.f32.mrf.mxu2  ;;  %v4376_v31 = vld [vmem:[#allocation2 + $0xa4] sm:$0x1] }
 0x4dc   : > { %5890 = vst.msk [vmem:[#allocation2 + $0x28] sm:$0xf] %vm387_vm2, %v5600_v61  ;;  %v4383_v61 = vld [vmem:[#allocation2 + $0xb0] sm:$0x1]  ;;  %v5253_v43 = vadd.f32 %v5252_v57, %v5153_v7  ;;  %v7989_v57 = vld [vmem:[%s12333_s7 + $0x20] sm:$0xf] }
 0x4dd   : > { %5893 = vst [vmem:[#allocation2 + $0x2c] sm:$0x1] %v5892_v27  ;;  %4230 = vrot.lane.b32.xlu2 %v12636_v5, %s12587_s25  ;;  %v4771_v45 = vsel %vm3237_vm15, %v4766_v8, %v4770_v32  ;;  %v4960_v58 = vsel %vm1519_vm13, %v4958_v62, %v4959_v40 }
 0x4de   : > { %4856 = vrot.lane.b32.xlu1 %v4771_v45, %s8509_s30 }
 0x4e2   : > { %v5155_v12 = vpop.f32.mrf.mxu1 }
 0x4e3   : > { %4238 = vrot.lane.b32.xlu0 %v12638_v24, %s12587_s25  ;;  %v5254_v50 = vpop.f32.mrf.mxu2 }
 0x4e4   : > { %v5255_v62 = vadd.f32 %v5254_v50, %v5155_v12  ;;  %v6924_v12 = vunpack.c.l.b16 %v7989_v57 }
 0x4e5   : > { %5000 = vrot.lane.b32.xlu2 %v4960_v58, %s12419_s29 }
 0x4e6   : > { %4234 = vrot.lane.b32.xlu1 %v12639_v0, %s12587_s25 }
 0x4eb   : > { %v5257_v25 = vpop.f32.mrf.mxu2 }
 0x4ed   : > { %4236 = vrot.lane.b32.xlu2 %v12640_v3, %s12587_s25 }
 0x4f3   : > { %v5259_v50 = vpop.f32.mrf.mxu2 }
 0x509   : > { %v4995_v52 = vpop.permute.xlu2 %4994 }
 0x512   : > { %v4221_v49 = vpop.permute.xlu2 %4220 }
 0x513   : > { %v4377_v4 = vsel %vm8823_vm12, %v4221_v49, %v4376_v31 }
 0x514   : > { %4378 = vst [vmem:[#allocation2 + $0xa4] sm:$0x1] %v4377_v4 }
 0x515   : > { %v5158_v8 = vpop.f32.mrf.mxu1 }
 0x51c   : > { %v4227_v27 = vpop.permute.xlu2 %4226  ;;  %v5354_v32 = vpop.f32.mrf.mxu3 }
 0x51d   : > { %v4384_v29 = vsel %vm8823_vm12, %v4227_v27, %v4383_v61  ;;  %v5425_v42 = vadd.f32 %v5354_v32, %v5253_v43  ;;  %v5160_v0 = vpop.f32.mrf.mxu1 }
 0x51e   : > { %4385 = vst [vmem:[#allocation2 + $0xb0] sm:$0x1] %v4384_v29  ;;  %v5894_v29 = vld [vmem:[#allocation2 + $0x30] sm:$0xf] }
 0x51f   : > { %v5461_v5 = vadd.f32 %v10716_v38, %v5425_v42 }
 0x521   : > { %v5493_v45 = vmax.f32 %v5461_v5, 0.0  ;;  %v5258_v5 = vadd.f32 %v5257_v25, %v5158_v8  ;;  %v6672_v8 = vld [vmem:[%s12333_s7 + $0x8] sm:$0xf] }
 0x523   : > { %v5525_v40 = vpack.c.bf16 %v5493_v45, %v5493_v45 }
 0x524   : > { %v5356_v44 = vpop.f32.mrf.mxu3  ;;  %v4851_v24 = vpop.permute.xlu1 %4850 }
 0x525   : > { %v5603_v58 = vshrl.u32 %v5525_v40, 16  ;;  %v5426_v3 = vadd.f32 %v5356_v44, %v5255_v62  ;;  %v5031_v31 = vsel %vm746_vm1, %v10709_v13, %v4851_v24  ;;  %v5606_v4 = vshll.u32 %v5525_v40, 16  ;;  %v4449_v40 = vld [vmem:[#allocation2 + $0xa4] sm:$0x1] }
 0x526   : > { %v5067_v7 = vsel %vm3671_vm3, %v5031_v31, %v4995_v52  ;;  %v6926_v52 = vpack.c.b16 %v6924_v12, %v6924_v12  ;;  %v4593_v12 = vunpack.c.l.b16 %v4449_v40 }
 0x527   : > { %v5605_v49 = vrot.slane %v5603_v58, 7  ;;  %v5462_v61 = vadd.f32 %v10716_v38, %v5426_v3  ;;  %7894 = vmatmul.msk.bf16.gmra.mxu1 %vm3718_vm5, %v5067_v7  ;;  %7915 = vmatmul.msk.bf16.gmra.mxu2 %vm3718_vm5, %v5067_v7  ;;  %v7946_v58 = vld [vmem:[%s12333_s7 + $0x14] sm:$0xf] }
 0x528   : > { %7935 = vmatmul.msk.bf16.gmra.mxu3 %vm3718_vm5, %v5067_v7  ;;  %v6931_v42 = vsel %vm6719_vm7, %v6926_v52, 0  ;;  %v6682_v31 = vunpack.c.l.b16 %v7946_v58 }
 0x529   : > { %v5608_v13 = vor.u32 %v5606_v4, %v5605_v49  ;;  %v5494_v27 = vmax.f32 %v5462_v61, 0.0  ;;  %6939 = vmatpush.bf16.msra.mxu2 %v6931_v42  ;;  %v6817_v4 = vunpack.c.l.b16 %v6672_v8  ;;  %v5609_v52 = vrot.slane %v5605_v49, 4  ;;  %v8474_v42 = vld [vmem:[#allocation2 + $0x9c] sm:$0xe]  ;;  %v506_v8 = vld [vmem:[#allocation2 + $0xd4] sm:$0x1] }
 0x52a   : > { %v10871_v57 = vpop.f32.mrf.mxu1 }
 0x52b   : > { %v5895_v43 = vsel %vm10735_vm11, %v5608_v13, %v5894_v29  ;;  %v5526_v32 = vpack.c.bf16 %v5494_v27, %v5494_v27  ;;  %v6684_v13 = vpack.c.b16 %v6682_v31, %v6682_v31  ;;  %v5262_v27 = vpop.f32.mrf.mxu2 }
 0x52c   : > { %5896 = vst [vmem:[#allocation2 + $0x30] sm:$0xf] %v5895_v43 }
 0x52d   : > { %v5611_v44 = vshrl.u32 %v5526_v32, 16  ;;  %v5614_v7 = vshll.u32 %v5526_v32, 16 }
 0x52f   : > { %v10862_v45 = vpop.permute.xlu2 %4854  ;;  %v5613_v25 = vrot.slane %v5611_v44, 7  ;;  %v6721_v44 = vsel %vm6719_vm7, %v6684_v13, 0 }
 0x530   : > { %v4219_v62 = vpop.permute.xlu1 %4218  ;;  %6729 = vmatpush.bf16.msra.mxu0 %v6721_v44 }
 0x531   : > { %4375 = vst.msk [vmem:[#allocation2 + $0xa0] sm:$0xf] %vm509_vm9, %v4219_v62  ;;  %v5359_v24 = vpop.f32.mrf.mxu3  ;;  %v5616_v29 = vor.u32 %v5614_v7, %v5613_v25  ;;  %v5618_v43 = vrot.slane %v5613_v25, 4  ;;  %v450_v62 = vld [vmem:[#allocation2 + $0xcc] sm:$0x1]  ;;  %v5260_v25 = vadd.f32 %v5259_v50, %v5160_v0 }
 0x532   : > { %v5427_v3 = vadd.f32 %v5359_v24, %v5258_v5  ;;  %v6819_v5 = vpack.c.b16 %v6817_v4, %v6817_v4  ;;  %v5898_v24 = vld [vmem:[#allocation2 + $0x38] sm:$0x1]  ;;  %v451_v32 = vsel %vm8721_vm6, 0, %v450_v62 }
 0x533   : > { %v5899_v40 = vsel %vm8721_vm6, %v5618_v43, %v5898_v24  ;;  %452 = vst [vmem:[#allocation2 + $0xcc] sm:$0x1] %v451_v32  ;;  %v507_v43 = vsel %vm8781_vm8, 0, %v506_v8  ;;  %v4450_v24 = vld [vmem:[#allocation2 + $0xb0] sm:$0x1]  ;;  %vm6633_vm8 = vcmask 130048  }
 0x534   : > { %v5463_v61 = vadd.f32 %v10716_v38, %v5427_v3  ;;  %v5617_v3 = vsel %vm8670_vm4, %v5609_v52, %v5616_v29  ;;  %v6824_v31 = vsel %vm6719_vm7, %v6819_v5, 0  ;;  %5900 = vst [vmem:[#allocation2 + $0x38] sm:$0x1] %v5899_v40  ;;  %v4611_v5 = vpack.c.b16 %v4593_v12, %v4593_v12 }
 0x535   : > { %v4853_v30 = vpop.permute.xlu0 %4852  ;;  %5897 = vst.msk [vmem:[#allocation2 + $0x34] sm:$0xf] %vm387_vm2, %v5617_v3  ;;  %6832 = vmatpush.bf16.msra.mxu1 %v6824_v31  ;;  %v5165_v3 = vpop.f32.mrf.mxu1 }
 0x536   : > { %v5495_v58 = vmax.f32 %v5463_v61, 0.0  ;;  %v5033_v49 = vsel %vm746_vm1, %v10757_v35, %v4853_v30  ;;  %508 = vst [vmem:[#allocation2 + $0xd4] sm:$0x1] %v507_v43  ;;  %v4962_v12 = vrot.slane %v4611_v5, 1  ;;  %v4780_v31 = vshll.u32 %v4611_v5, 16  ;;  %v5264_v43 = vpop.f32.mrf.mxu2 }
 0x537   : > { %v4231_v4 = vpop.permute.xlu2 %4230  ;;  %v5263_v5 = vadd.f32 %v5262_v27, %v10871_v57 }
 0x538   : > { %v5527_v7 = vpack.c.bf16 %v5495_v58, %v5495_v58  ;;  %v4997_v61 = vpop.permute.xlu1 %4996  ;;  %v10885_v13 = vld [vmem:[#allocation2 + $0x9c] sm:$0xff]   ;;  %4389 = vst.msk [vmem:[#allocation2 + $0xb8] sm:$0xf] %vm509_vm9, %v4231_v4  ;;  %v4379_v4 = vld [vmem:[#allocation2 + $0xa8] sm:$0xf]  ;;  %v4782_v21 = vrot.slane %v4780_v31, 1 }
 0x539   : > { %v8473_v52 = vld [vmem:[#allocation2 + $0x9c] sm:$0xf0]  ;;  %v5069_v30 = vsel %vm3671_vm3, %v5033_v49, %v4997_v61  ;;  %v5361_v35 = vpop.f32.mrf.mxu3  ;;  %v4775_v49 = vshll.u32 %v10885_v13, 16 }
 0x53a   : > { %v5620_v62 = vshrl.u32 %v5527_v7, 16  ;;  %v5428_v0 = vadd.f32 %v5361_v35, %v5260_v25  ;;  %7895 = vmatmul.msk.bf16.gmra.mxu1 %vm3718_vm5, %v5069_v30  ;;  %7916 = vmatmul.msk.bf16.gmra.mxu2 %vm3718_vm5, %v5069_v30  ;;  %v8475_v50 = vor.u32 %v8474_v42, %v8473_v52  ;;  %v5623_v44 = vshll.u32 %v5527_v7, 16  ;;  %v10897_v29 = vld [vmem:[#allocation2 + $0xcc] sm:$0xff]   ;;  %v5901_v35 = vld [vmem:[#allocation2 + $0x3c] sm:$0xf] }
 0x53b   : > { %7936 = vmatmul.msk.bf16.gmra.mxu3 %vm3718_vm5, %v5069_v30  ;;  %v4773_v42 = vshrl.u32 %v10885_v13, 16  ;;  %v4594_v52 = vunpack.c.l.b16 %v4450_v24  ;;  %v10899_v7 = vld [vmem:[#allocation2 + $0xcc] sm:$0xf0] }
 0x53c   : > { %v5622_v58 = vrot.slane %v5620_v62, 7  ;;  %v5464_v32 = vadd.f32 %v10716_v38, %v5428_v0  ;;  %v4961_v40 = vrot.slane %v8475_v50, 1  ;;  %v4777_v0 = vrot.slane %v4775_v49, 1 }
 0x53d   : > { %v4223_v61 = vpop.permute.xlu0 %4222  ;;  %v4612_v27 = vpack.c.b16 %v4594_v52, %v4594_v52 }
 0x53e   : > { %v5625_v8 = vor.u32 %v5623_v44, %v5622_v58  ;;  %v5496_v25 = vmax.f32 %v5464_v32, 0.0  ;;  %v4380_v30 = vsel %vm8793_vm10, %v4223_v61, %v4379_v4  ;;  %v4963_v62 = vsel %vm1519_vm13, %v4961_v40, %v4962_v12  ;;  %v3074_v12 = vld [vmem:[#allocation2 + $0xd4] sm:$0x1] }
 0x53f   : > { %4381 = vst [vmem:[#allocation2 + $0xa8] sm:$0xf] %v4380_v30  ;;  %v10907_v24 = vpop.permute.xlu2 %5000  ;;  %5002 = vrot.lane.b32.xlu1 %v4963_v62, %s12419_s29  ;;  %v4778_v2 = vor.u32 %v4777_v0, %v4773_v42  ;;  %v3218_v49 = vunpack.c.l.b16 %v3074_v12  ;;  %v5905_v0 = vld [vmem:[#allocation2 + $0x44] sm:$0x1] }
 0x540   : > { %v5902_v50 = vsel %vm10735_vm11, %v5625_v8, %v5901_v35  ;;  %v5528_v44 = vpack.c.bf16 %v5496_v25, %v5496_v25  ;;  %v4225_v32 = vpop.permute.xlu1 %4224  ;;  %v5626_v35 = vrot.slane %v5622_v58, 4 }
 0x541   : > { %5903 = vst [vmem:[#allocation2 + $0x3c] sm:$0xf] %v5902_v50  ;;  %v5364_v28 = vpop.f32.mrf.mxu3  ;;  %v4783_v57 = vsel %vm3237_vm15, %v4778_v2, %v4782_v21  ;;  %v5168_v50 = vpop.f32.mrf.mxu1  ;;  %v3445_v21 = vshll.u32 %v10897_v29, 16  ;;  %v5265_v2 = vadd.f32 %v5264_v43, %v5165_v3 }
 0x542   : > { %v5628_v4 = vshrl.u32 %v5528_v44, 16  ;;  %4382 = vst.msk [vmem:[#allocation2 + $0xac] sm:$0xf] %vm509_vm9, %v4225_v32  ;;  %v5429_v40 = vadd.f32 %v5364_v28, %v5263_v5  ;;  %v5631_v25 = vshll.u32 %v5528_v44, 16  ;;  %4858 = vrot.lane.b32.xlu0 %v4783_v57, %s8509_s30  ;;  %v4965_v28 = vrot.slane %v4612_v27, 1 }
 0x543   : > { %v10914_v5 = vpack.c.b16 %v3218_v49, %v3218_v49  ;;  %v5035_v57 = vsel %vm746_vm1, %v10784_v53, %v10862_v45  ;;  %v3443_v45 = vshrl.u32 %v10897_v29, 16 }
 0x544   : > { %v5630_v8 = vrot.slane %v5628_v4, 7  ;;  %v5465_v61 = vadd.f32 %v10716_v38, %v5429_v40  ;;  %v4386_v40 = vld [vmem:[#allocation2 + $0xb4] sm:$0xf] }
 0x545   : > { %v4999_v31 = vpop.permute.xlu0 %4998 }
 0x546   : > { %v5633_v30 = vor.u32 %v5631_v25, %v5630_v8  ;;  %v5635_v62 = vrot.slane %v5630_v8, 4  ;;  %v5497_v42 = vmax.f32 %v5465_v61, 0.0  ;;  %v8259_v32 = vld [vmem:[#allocation2 + $0xa8] sm:$0xe]  ;;  %v4792_v25 = vshll.u32 %v4612_v27, 16  ;;  %v5267_v61 = vpop.f32.mrf.mxu2 }
 0x547   : > { %v4237_v4 = vpop.permute.xlu2 %4236  ;;  %v3450_v27 = vshll.u32 %v10914_v5, 16 }
 0x548   : > { %v5634_v52 = vsel %vm8670_vm4, %v5626_v35, %v5633_v30  ;;  %v5906_v44 = vsel %vm8721_vm6, %v5635_v62, %v5905_v0  ;;  %v5529_v58 = vpack.c.bf16 %v5497_v42, %v5497_v42  ;;  %v4229_v12 = vpop.permute.xlu1 %4228  ;;  %v5071_v30 = vsel %vm3671_vm3, %v5035_v57, %v4999_v31  ;;  %4396 = vst.msk [vmem:[#allocation2 + $0xc4] sm:$0xf] %vm509_vm9, %v4237_v4  ;;  %v4390_v57 = vld [vmem:[#allocation2 + $0xbc] sm:$0x1] }
 0x549   : > { %5904 = vst.msk [vmem:[#allocation2 + $0x40] sm:$0xf] %vm387_vm2, %v5634_v52  ;;  %v4387_v49 = vsel %vm8793_vm10, %v4229_v12, %v4386_v40  ;;  %v5366_v3 = vpop.f32.mrf.mxu3  ;;  %v8258_v43 = vld [vmem:[#allocation2 + $0xa8] sm:$0xf0]  ;;  %v3447_v0 = vrot.slane %v3445_v21, 1  ;;  %v4794_v21 = vrot.slane %v4792_v25, 1  ;;  %v5170_v25 = vpop.f32.mrf.mxu1 }
 0x54a   : > { %v10927_v8 = vld [vmem:[#allocation2 + $0xa8] sm:$0xff]   ;;  %5907 = vst [vmem:[#allocation2 + $0x44] sm:$0x1] %v5906_v44  ;;  %v5637_v35 = vshrl.u32 %v5529_v58, 16  ;;  %v5430_v62 = vadd.f32 %v5366_v3, %v5265_v2  ;;  %v8260_v42 = vor.u32 %v8259_v32, %v8258_v43  ;;  %7896 = vmatmul.msk.bf16.gmra.mxu1 %vm3718_vm5, %v5071_v30  ;;  %7917 = vmatmul.msk.bf16.gmra.mxu2 %vm3718_vm5, %v5071_v30  ;;  %v5640_v44 = vshll.u32 %v5529_v58, 16 }
 0x54b   : > { %v4787_v53 = vshll.u32 %v10927_v8, 16  ;;  %4388 = vst [vmem:[#allocation2 + $0xb4] sm:$0xf] %v4387_v49  ;;  %7937 = vmatmul.msk.bf16.gmra.mxu3 %vm3718_vm5, %v5071_v30  ;;  %v4785_v2 = vshrl.u32 %v10927_v8, 16  ;;  %v3452_v30 = vrot.slane %v3450_v27, 1  ;;  %vm6686_vm9 = vcmask 195584  }
 0x54c   : > { %v5639_v52 = vrot.slane %v5637_v35, 7  ;;  %v5466_v31 = vadd.f32 %v10716_v38, %v5430_v62  ;;  %v4964_v32 = vrot.slane %v8260_v42, 1  ;;  %v3448_v35 = vor.u32 %v3447_v0, %v3443_v45 }
 0x54d   : > { %v4789_v4 = vrot.slane %v4787_v53, 1  ;;  %v4233_v3 = vpop.permute.xlu0 %4232  ;;  %v5268_v62 = vadd.f32 %v5267_v61, %v5168_v50  ;;  %v8476_v61 = vld [vmem:[#allocation2 + $0xb4] sm:$0xf0] }
 0x54e   : > { %v5642_v40 = vor.u32 %v5640_v44, %v5639_v52  ;;  %v5498_v12 = vmax.f32 %v5466_v31, 0.0  ;;  %v4966_v43 = vsel %vm1519_vm13, %v4964_v32, %v4965_v28  ;;  %v4391_v58 = vsel %vm8823_vm12, %v4233_v3, %v4390_v57  ;;  %v10947_v3 = vld [vmem:[#allocation2 + $0xcc] sm:$0xe]  ;;  %v5269_v0 = vpop.f32.mrf.mxu2 }
 0x54f   : > { %5004 = vrot.lane.b32.xlu0 %v4966_v43, %s12419_s29  ;;  %v4790_v49 = vor.u32 %v4789_v4, %v4785_v2  ;;  %4392 = vst [vmem:[#allocation2 + $0xbc] sm:$0x1] %v4391_v58  ;;  %v3453_v45 = vsel %vm3237_vm15, %v3448_v35, %v3452_v30 }
 0x550   : > { %v5909_v42 = vsel %vm10735_vm11, %v5642_v40, %v5908_v11  ;;  %v5530_v53 = vpack.c.bf16 %v5498_v12, %v5498_v12  ;;  %v4857_v57 = vpop.permute.xlu1 %4856  ;;  %v5270_v40 = vadd.f32 %v5269_v0, %v5170_v25  ;;  %v5643_v12 = vrot.slane %v5639_v52, 4 }
 0x551   : > { %5910 = vst [vmem:[#allocation2 + $0x48] sm:$0xf] %v5909_v42  ;;  %v4795_v44 = vsel %vm3237_vm15, %v4790_v49, %v4794_v21  ;;  %v5369_v28 = vpop.f32.mrf.mxu3  ;;  %v4397_v49 = vld [vmem:[#allocation2 + $0xc8] sm:$0x1]  ;;  %v5912_v42 = vld [vmem:[#allocation2 + $0x50] sm:$0x1]  ;;  %v5037_v35 = vsel %vm746_vm1, %v10817_v34, %v4857_v57 }
 0x552   : > { %v5645_v31 = vshrl.u32 %v5530_v53, 16  ;;  %4860 = vrot.lane.b32.xlu2 %v4795_v44, %s8509_s30  ;;  %v5431_v32 = vadd.f32 %v5369_v28, %v5268_v62  ;;  %v10950_v50 = vld [vmem:[#allocation2 + $0xb4] sm:$0xff]   ;;  %v5648_v2 = vshll.u32 %v5530_v53, 16  ;;  %v4393_v34 = vld [vmem:[#allocation2 + $0xc0] sm:$0xf] }
 0x553   : > { %v8477_v11 = vld [vmem:[#allocation2 + $0xb4] sm:$0xe]  ;;  %v4799_v17 = vshll.u32 %v10950_v50, 16 }
 0x554   : > { %v5647_v27 = vrot.slane %v5645_v31, 7  ;;  %v5467_v4 = vadd.f32 %v10716_v38, %v5431_v32  ;;  %v8478_v53 = vor.u32 %v8477_v11, %v8476_v61  ;;  %v8397_v32 = vor.u32 %v10947_v3, %v10899_v7  ;;  %v6023_v7 = vld [vmem:[#allocation2 + $0x20] sm:$0x1] }
 0x555   : > { %v4239_v62 = vpop.permute.xlu0 %4238  ;;  %v5073_v11 = vsel %vm3671_vm3, %v5037_v35, %v10907_v24  ;;  %v5915_v35 = vld [vmem:[#allocation2 + $0x54] sm:$0xf] }
 0x556   : > { %v5650_v43 = vor.u32 %v5648_v2, %v5647_v27  ;;  %v5652_v21 = vrot.slane %v5647_v27, 4  ;;  %v5499_v58 = vmax.f32 %v5467_v4, 0.0  ;;  %v4398_v30 = vsel %vm8823_vm12, %v4239_v62, %v4397_v49  ;;  %v4451_v44 = vld [vmem:[#allocation2 + $0xbc] sm:$0x1]  ;;  %v6021_v27 = vld [vmem:[#allocation2 + $0x8] sm:$0x1] }
 0x557   : > { %3488 = vrot.lane.b32.xlu0 %v3453_v45, %s8509_s30  ;;  %4399 = vst [vmem:[#allocation2 + $0xc8] sm:$0x1] %v4398_v30  ;;  %v4595_v25 = vunpack.c.l.b16 %v4451_v44  ;;  %v10980_v49 = vld [vmem:[#allocation2] sm:$0xff]   ;;  %v6165_v62 = vunpack.c.l.b16 %v6021_v27 }
 0x558   : > { %v5651_v38 = vsel %vm8670_vm4, %v5643_v12, %v5650_v43  ;;  %v5913_v52 = vsel %vm8721_vm6, %v5652_v21, %v5912_v42  ;;  %v5531_v28 = vpack.c.bf16 %v5499_v58, %v5499_v58  ;;  %v4235_v61 = vpop.permute.xlu1 %4234  ;;  %v4967_v12 = vrot.slane %v8478_v53, 1 }
 0x559   : > { %5911 = vst.msk [vmem:[#allocation2 + $0x4c] sm:$0xf] %vm387_vm2, %v5651_v38  ;;  %v5371_v31 = vpop.f32.mrf.mxu3  ;;  %v4613_v0 = vpack.c.b16 %v4595_v25, %v4595_v25  ;;  %v4394_v4 = vsel %vm8793_vm10, %v4235_v61, %v4393_v34  ;;  %v4801_v43 = vrot.slane %v4799_v17, 1  ;;  %v4797_v58 = vshrl.u32 %v10950_v50, 16  ;;  %v10985_v34 = vld [vmem:[#allocation2 + $0xc] sm:$0xff]  }
 0x55a   : > { %5914 = vst [vmem:[#allocation2 + $0x50] sm:$0x1] %v5913_v52  ;;  %v5654_v57 = vshrl.u32 %v5531_v28, 16  ;;  %v5432_v45 = vadd.f32 %v5371_v31, %v5270_v40  ;;  %v5657_v2 = vshll.u32 %v5531_v28, 16  ;;  %7897 = vmatmul.msk.bf16.gmra.mxu1 %vm3718_vm5, %v5073_v11  ;;  %7918 = vmatmul.msk.bf16.gmra.mxu2 %vm3718_vm5, %v5073_v11  ;;  %v10975_v40 = vld [vmem:[%s12332_s6] ss:$0 sm:$0xff]  ;;  %v6167_v53 = vunpack.c.l.b16 %v6023_v7 }
 0x55b   : > { %4395 = vst [vmem:[#allocation2 + $0xc0] sm:$0xf] %v4394_v4  ;;  %7938 = vmatmul.msk.bf16.gmra.mxu3 %vm3718_vm5, %v5073_v11  ;;  %v4968_v51 = vrot.slane %v4613_v0, 1  ;;  %v4804_v21 = vshll.u32 %v4613_v0, 16  ;;  %v4802_v38 = vor.u32 %v4801_v43, %v4797_v58  ;;  %v3596_v28 = vrot.slane %v8397_v32, 1 }
 0x55c   : > { %v5656_v3 = vrot.slane %v5654_v57, 7  ;;  %v5468_v24 = vadd.f32 %v10975_v40, %v5432_v45  ;;  %v3597_v25 = vrot.slane %v10914_v5, 1  ;;  %v10987_v17 = vld [vmem:[#allocation2 + $0xc] sm:$0xf0]  ;;  %v6204_v11 = vshll.u32 %v10980_v49, 16 }
 0x55d   : > { %v4969_v44 = vsel %vm1519_vm13, %v4967_v12, %v4968_v51  ;;  %v4806_v52 = vrot.slane %v4804_v21, 1  ;;  %v10993_v27 = vpack.c.b16 %v6165_v62, %v6165_v62  ;;  %v8261_v4 = vld [vmem:[#allocation2 + $0xc0] sm:$0xf0]  ;;  %v6185_v7 = vpack.c.b16 %v6167_v53, %v6167_v53  ;;  %v6022_v53 = vld [vmem:[#allocation2 + $0x14] sm:$0x1] }
 0x55e   : > { %v5659_v42 = vor.u32 %v5657_v2, %v5656_v3  ;;  %v5500_v30 = vmax.f32 %v5468_v24, 0.0  ;;  %5006 = vrot.lane.b32.xlu2 %v4969_v44, %s12419_s29  ;;  %v4452_v31 = vld [vmem:[#allocation2 + $0xc8] sm:$0x1]  ;;  %v3598_v2 = vsel %vm1519_vm13, %v3596_v28, %v3597_v25  ;;  %v6202_v24 = vshrl.u32 %v10980_v49, 16  ;;  %v8275_v44 = vld [vmem:[#allocation2 + $0x18] sm:$0xf0] }
 0x55f   : > { %v4596_v61 = vunpack.c.l.b16 %v4452_v31  ;;  %v4807_v0 = vsel %vm3237_vm15, %v4802_v38, %v4806_v52  ;;  %v6209_v38 = vshll.u32 %v10993_v27, 16  ;;  %v6166_v55 = vunpack.c.l.b16 %v6022_v53 }
 0x560   : > { %v5916_v57 = vsel %vm10735_vm11, %v5659_v42, %v5915_v35  ;;  %v5532_v45 = vpack.c.bf16 %v5500_v30, %v5500_v30  ;;  %4862 = vrot.lane.b32.xlu1 %v4807_v0, %s8509_s30  ;;  %v6206_v42 = vrot.slane %v6204_v11, 1  ;;  %v5660_v35 = vrot.slane %v5656_v3, 4  ;;  %v8276_v3 = vld [vmem:[#allocation2 + $0x18] sm:$0xe]  ;;  %v11060_v41 = vld [vmem:[#allocation2 + $0x48] sm:$0xff]  }
 0x561   : > { %5917 = vst [vmem:[#allocation2 + $0x54] sm:$0xf] %v5916_v57  ;;  %v4614_v5 = vpack.c.b16 %v4596_v61, %v4596_v61  ;;  %v11002_v57 = vld [vmem:[#allocation2 + $0x18] sm:$0xff]   ;;  %v6233_v15 = vshll.u32 %v6185_v7, 16 }
 0x562   : > { %v5662_v32 = vshrl.u32 %v5532_v45, 16  ;;  %v8262_v12 = vld [vmem:[#allocation2 + $0xc0] sm:$0xe]  ;;  %v5665_v21 = vshll.u32 %v5532_v45, 16  ;;  %v5919_v61 = vld [vmem:[#allocation2 + $0x5c] sm:$0x1] }
 0x563   : > { %v10997_v43 = vld [vmem:[#allocation2 + $0xc0] sm:$0xff]   ;;  %v8263_v58 = vor.u32 %v8262_v12, %v8261_v4  ;;  %v4816_v30 = vshll.u32 %v4614_v5, 16  ;;  %v4971_v31 = vrot.slane %v4614_v5, 1  ;;  %v8277_v12 = vor.u32 %v8276_v3, %v8275_v44 }
 0x564   : > { %v5664_v51 = vrot.slane %v5662_v32, 7  ;;  %v4811_v62 = vshll.u32 %v10997_v43, 16  ;;  %v4809_v45 = vshrl.u32 %v10997_v43, 16  ;;  %v8272_v5 = vld [vmem:[#allocation2] sm:$0xf0]  ;;  %v6211_v44 = vrot.slane %v6209_v38, 1 }
 0x565   : > { %v4970_v25 = vrot.slane %v8263_v58, 1  ;;  %v11013_v58 = vld [vmem:[#allocation2 + $0x24] sm:$0xf0]  ;;  %v6216_v38 = vshll.u32 %v10985_v34, 16 }
 0x566   : > { %v5667_v52 = vor.u32 %v5665_v21, %v5664_v51  ;;  %v5669_v28 = vrot.slane %v5664_v51, 4  ;;  %3633 = vrot.lane.b32.xlu2 %v3598_v2, %s12419_s29  ;;  %v4813_v11 = vrot.slane %v4811_v62, 1  ;;  %v8399_v51 = vld [vmem:[#allocation2 + $0xc] sm:$0xe]  ;;  %v11011_v21 = vld [vmem:[#allocation2 + $0x24] sm:$0xff]   ;;  %v4818_v62 = vrot.slane %v4816_v30, 1 }
 0x567   : > { %v4972_v4 = vsel %vm1519_vm13, %v4970_v25, %v4971_v31  ;;  %v6207_v25 = vor.u32 %v6206_v42, %v6202_v24  ;;  %v11018_v31 = vld [vmem:[#allocation2 + $0xcc] sm:$0xff]   ;;  %v4453_v30 = vld [vmem:[#allocation2 + $0xd4] sm:$0x1]  ;;  %v8400_v24 = vor.u32 %v8399_v51, %v10987_v17  ;;  %v6226_v42 = vshrl.u32 %v11002_v57, 16 }
 0x568   : > { %v5668_v0 = vsel %vm8670_vm4, %v5660_v35, %v5667_v52  ;;  %v5920_v32 = vsel %vm8721_vm6, %v5669_v28, %v5919_v61  ;;  %5008 = vrot.lane.b32.xlu0 %v4972_v4, %s12419_s29  ;;  %v4814_v2 = vor.u32 %v4813_v11, %v4809_v45  ;;  %v6228_v35 = vshll.u32 %v11002_v57, 16  ;;  %v8273_v52 = vld [vmem:[#allocation2] sm:$0xe]  ;;  %v8401_v61 = vld [vmem:[#allocation2 + $0xcc] sm:$0xf0] }
 0x569   : > { %5918 = vst.msk [vmem:[#allocation2 + $0x58] sm:$0xf] %vm387_vm2, %v5668_v0  ;;  %v6514_v28 = vrot.slane %v6185_v7, 1  ;;  %v6513_v0 = vrot.slane %v8277_v12, 1  ;;  %v8274_v4 = vor.u32 %v8273_v52, %v8272_v5  ;;  %v8402_v11 = vld [vmem:[#allocation2 + $0xcc] sm:$0xe]  ;;  %v6212_v53 = vsel %vm3237_vm15, %v6207_v25, %v6211_v44 }
 0x56a   : > { %5921 = vst [vmem:[#allocation2 + $0x5c] sm:$0x1] %v5920_v32  ;;  %v4819_v3 = vsel %vm3237_vm15, %v4814_v2, %v4818_v62  ;;  %v6230_v45 = vrot.slane %v6228_v35, 1  ;;  %v6184_v32 = vpack.c.b16 %v6166_v55, %v6166_v55  ;;  %v6235_v7 = vrot.slane %v6233_v15, 1  ;;  %v6024_v12 = vld [vmem:[#allocation2 + $0x2c] sm:$0x1] }
 0x56b   : > { %4864 = vrot.lane.b32.xlu1 %v4819_v3, %s8509_s30  ;;  %v6515_v6 = vsel %vm1519_vm13, %v6513_v0, %v6514_v28  ;;  %v6507_v5 = vrot.slane %v8274_v4, 1  ;;  %v6508_v2 = vrot.slane %v10993_v27, 1  ;;  %v4597_v62 = vunpack.c.l.b16 %v4453_v30  ;;  %v6025_v28 = vld [vmem:[#allocation2 + $0x38] sm:$0x1] }
 0x56c   : > { %v6231_v35 = vor.u32 %v6230_v45, %v6226_v42  ;;  %v6510_v52 = vrot.slane %v8400_v24, 1  ;;  %v6168_v55 = vunpack.c.l.b16 %v6024_v12  ;;  %v6511_v51 = vrot.slane %v6184_v32, 1  ;;  %v11040_v12 = vld [vmem:[#allocation2 + $0x30] sm:$0xff]  }
 0x56d   : > { %v6221_v25 = vshll.u32 %v6184_v32, 16  ;;  %v6509_v15 = vsel %vm1519_vm13, %v6507_v5, %v6508_v2  ;;  %v4615_v44 = vpack.c.b16 %v4597_v62, %v4597_v62  ;;  %v8403_v3 = vor.u32 %v8402_v11, %v8401_v61 }
 0x56e   : > { %6565 = vrot.lane.b32.xlu2 %v6515_v6, %s8513_s15  ;;  %v6236_v17 = vsel %vm3237_vm15, %v6231_v35, %v6235_v7  ;;  %v6218_v6 = vrot.slane %v6216_v38, 1  ;;  %v6240_v27 = vshll.u32 %v11011_v21, 16  ;;  %v6214_v0 = vshrl.u32 %v10985_v34, 16 }
 0x56f   : > { %v4823_v4 = vshll.u32 %v11018_v31, 16  ;;  %v6169_v45 = vunpack.c.l.b16 %v6025_v28  ;;  %v11036_v30 = vpack.c.b16 %v6168_v55, %v6168_v55  ;;  %v6223_v24 = vrot.slane %v6221_v25, 1 }
 0x570   : > { %6417 = vrot.lane.b32.xlu0 %v6212_v53, %s12419_s29  ;;  %v6512_v53 = vsel %vm1519_vm13, %v6510_v52, %v6511_v51  ;;  %v6219_v32 = vor.u32 %v6218_v6, %v6214_v0  ;;  %v4973_v42 = vrot.slane %v8403_v3, 1  ;;  %v4974_v7 = vrot.slane %v4615_v44, 1  ;;  %v11050_v51 = vld [vmem:[#allocation2 + $0x3c] sm:$0xff]   ;;  %v8405_v3 = vld [vmem:[#allocation2 + $0x24] sm:$0xe] }
 0x571   : > { %v6242_v38 = vrot.slane %v6240_v27, 1  ;;  %v4821_v61 = vshrl.u32 %v11018_v31, 16  ;;  %v4825_v11 = vrot.slane %v4823_v4, 1  ;;  %v4828_v5 = vshll.u32 %v4615_v44, 16  ;;  %v8407_v6 = vld [vmem:[#allocation2 + $0x3c] sm:$0xf0] }
 0x572   : > { %v6187_v2 = vpack.c.b16 %v6169_v45, %v6169_v45  ;;  %v6238_v62 = vshrl.u32 %v11011_v21, 16  ;;  %v6245_v35 = vshll.u32 %v11036_v30, 16  ;;  %v6224_v52 = vsel %vm3237_vm15, %v6219_v32, %v6223_v24  ;;  %v6027_v27 = vld [vmem:[#allocation2 + $0x50] sm:$0x1]  ;;  %v8278_v4 = vld [vmem:[#allocation2 + $0x30] sm:$0xf0] }
 0x573   : > { %6421 = vrot.lane.b32.xlu1 %v6236_v17, %s12419_s29  ;;  %v6252_v55 = vshll.u32 %v11040_v12, 16  ;;  %v4975_v28 = vsel %vm1519_vm13, %v4973_v42, %v4974_v7  ;;  %v4826_v25 = vor.u32 %v4825_v11, %v4821_v61  ;;  %v11053_v32 = vld [vmem:[#allocation2 + $0x54] sm:$0xff]   ;;  %v8279_v7 = vld [vmem:[#allocation2 + $0x30] sm:$0xe]  ;;  %v6250_v11 = vshrl.u32 %v11040_v12, 16 }
 0x574   : > { %v6243_v17 = vor.u32 %v6242_v38, %v6238_v62  ;;  %v6257_v44 = vshll.u32 %v6187_v2, 16  ;;  %v6247_v0 = vrot.slane %v6245_v35, 1  ;;  %v8410_v24 = vld [vmem:[#allocation2 + $0x54] sm:$0xf0]  ;;  %v6171_v38 = vunpack.c.l.b16 %v6027_v27  ;;  %v8408_v35 = vld [vmem:[#allocation2 + $0x3c] sm:$0xe] }
 0x575   : > { %v6254_v45 = vrot.slane %v6252_v55, 1  ;;  %v8280_v62 = vor.u32 %v8279_v7, %v8278_v4  ;;  %v8406_v55 = vor.u32 %v8405_v3, %v11013_v58  ;;  %v6028_v14 = vld [vmem:[#allocation2 + $0x5c] sm:$0x1]  ;;  %v6264_v58 = vshll.u32 %v11050_v51, 16 }
 0x576   : > { %6561 = vrot.lane.b32.xlu2 %v6509_v15, %s8513_s15  ;;  %v4830_v15 = vrot.slane %v4828_v5, 1  ;;  %v6248_v42 = vsel %vm3237_vm15, %v6243_v17, %v6247_v0  ;;  %v6259_v5 = vrot.slane %v6257_v44, 1  ;;  %v6520_v17 = vrot.slane %v6187_v2, 1 }
 0x577   : > { %v6189_v0 = vpack.c.b16 %v6171_v38, %v6171_v38  ;;  %v6276_v44 = vshll.u32 %v11060_v41, 16  ;;  %v6516_v4 = vrot.slane %v8406_v55, 1  ;;  %v6172_v2 = vunpack.c.l.b16 %v6028_v14 }
 0x578   : > { %6563 = vrot.lane.b32.xlu0 %v6512_v53, %s8513_s15  ;;  %v6026_v53 = vld [vmem:[#allocation2 + $0x44] sm:$0x1]  ;;  %v4831_v61 = vsel %vm3237_vm15, %v4826_v25, %v4830_v15  ;;  %v8409_v15 = vor.u32 %v8408_v35, %v8407_v6  ;;  %v6288_v6 = vshll.u32 %v11053_v32, 16 }
 0x57a   : > { %v6522_v7 = vrot.slane %v8409_v15, 1 }
 0x57b   : > { %6419 = vrot.lane.b32.xlu1 %v6224_v52, %s12419_s29  ;;  %v6170_v52 = vunpack.c.l.b16 %v6026_v53  ;;  %v6281_v53 = vshll.u32 %v6189_v0, 16 }
 0x57d   : > { %v6188_v25 = vpack.c.b16 %v6170_v52, %v6170_v52  ;;  %v6283_v35 = vrot.slane %v6281_v53, 1  ;;  %v6190_v52 = vpack.c.b16 %v6172_v2, %v6172_v2  ;;  %v8281_v53 = vld [vmem:[#allocation2 + $0x48] sm:$0xf0] }
 0x57e   : > { %5010 = vrot.lane.b32.xlu2 %v4975_v28, %s12419_s29  ;;  %v6255_v28 = vor.u32 %v6254_v45, %v6250_v11  ;;  %v6517_v45 = vrot.slane %v11036_v30, 1  ;;  %v6274_v30 = vshrl.u32 %v11060_v41, 16 }
 0x57f   : > { %v6523_v38 = vrot.slane %v6188_v25, 1  ;;  %v6269_v14 = vshll.u32 %v6188_v25, 16 }
 0x580   : > { %6423 = vrot.lane.b32.xlu0 %v6248_v42, %s12419_s29  ;;  %v6260_v27 = vsel %vm3237_vm15, %v6255_v28, %v6259_v5  ;;  %v6519_v42 = vrot.slane %v8280_v62, 1  ;;  %v6518_v11 = vsel %vm1519_vm13, %v6516_v4, %v6517_v45  ;;  %v6266_v5 = vrot.slane %v6264_v58, 1  ;;  %v8411_v62 = vld [vmem:[#allocation2 + $0x54] sm:$0xe] }
 0x581   : > { %v6262_v28 = vshrl.u32 %v11050_v51, 16  ;;  %v6524_v55 = vsel %vm1519_vm13, %v6522_v7, %v6523_v38  ;;  %v6293_v4 = vshll.u32 %v6190_v52, 16  ;;  %v8412_v45 = vor.u32 %v8411_v62, %v8410_v24 }
 0x582   : > { %v6521_v3 = vsel %vm1519_vm13, %v6519_v42, %v6520_v17  ;;  %v6271_v58 = vrot.slane %v6269_v14, 1  ;;  %v6529_v38 = vrot.slane %v6190_v52, 1 }
 0x583   : > { %4866 = vrot.lane.b32.xlu1 %v4831_v61, %s8509_s30  ;;  %v6278_v61 = vrot.slane %v6276_v44, 1  ;;  %v6267_v42 = vor.u32 %v6266_v5, %v6262_v28  ;;  %v6286_v44 = vshrl.u32 %v11053_v32, 16  ;;  %v6295_v2 = vrot.slane %v6293_v4, 1  ;;  %v5272_v28 = vpop.f32.mrf.mxu2  ;;  %s7636_s30 = scalar_lea.sflag [#allocation5], %s377_s22 }
 0x584   : > { %v6528_v7 = vrot.slane %v8412_v45, 1  ;;  %v6526_v5 = vrot.slane %v6189_v0, 1  ;;  %v8040_v0 = vld [vmem:[%s12333_s7 + $0x18] sm:$0xff] }
 0x585   : > { %v6279_v17 = vor.u32 %v6278_v61, %v6274_v30  ;;  %v6272_v25 = vsel %vm3237_vm15, %v6267_v42, %v6271_v58  ;;  %v8282_v61 = vld [vmem:[#allocation2 + $0x48] sm:$0xe]  ;;  %v5173_v30 = vpop.f32.mrf.mxu1  ;;  %v8039_v42 = vld [vmem:[%s12333_s7 + $0xc] sm:$0xff]  ;;  %6940 = vmatpush.bf16.msra.mxu2 %v8040_v0 }
 0x586   : > { %6425 = vrot.lane.b32.xlu2 %v6260_v27, %s12419_s29  ;;  %v6290_v27 = vrot.slane %v6288_v6, 1  ;;  %v8283_v6 = vor.u32 %v8282_v61, %v8281_v53  ;;  %v6530_v24 = vsel %vm1519_vm13, %v6528_v7, %v6529_v38  ;;  %6730 = vmatpush.bf16.msra.mxu0 %v8039_v42 }
 0x587   : > { %v6284_v15 = vsel %vm3237_vm15, %v6279_v17, %v6283_v35  ;;  %v5273_v17 = vadd.f32 %v5272_v28, %v5173_v30 }
 0x588   : > { %6569 = vrot.lane.b32.xlu0 %v6521_v3, %s8513_s15  ;;  %v6291_v3 = vor.u32 %v6290_v27, %v6286_v44  ;;  %v6525_v62 = vrot.slane %v8283_v6, 1 }
 0x58a   : > { %v6527_v35 = vsel %vm1519_vm13, %v6525_v62, %v6526_v5 }
 0x58b   : > { %6567 = vrot.lane.b32.xlu1 %v6518_v11, %s8513_s15  ;;  %v6296_v11 = vsel %vm3237_vm15, %v6291_v3, %v6295_v2  ;;  %v5274_v52 = vpop.f32.mrf.mxu2 }
 0x58d   : > { %v5175_v14 = vpop.f32.mrf.mxu1 }
 0x58e   : > { %6571 = vrot.lane.b32.xlu2 %v6524_v55, %s8513_s15  ;;  %v5275_v3 = vadd.f32 %v5274_v52, %v5175_v14 }
 0x590   : > { %6429 = vrot.lane.b32.xlu0 %v6284_v15, %s12419_s29  ;;  %v8038_v15 = vld [vmem:[%s12333_s7] sm:$0xff] }
 0x591   : > { %6833 = vmatpush.bf16.msra.mxu1 %v8038_v15 }
 0x593   : > { %6427 = vrot.lane.b32.xlu1 %v6272_v25, %s12419_s29  ;;  %v5277_v44 = vpop.f32.mrf.mxu2 }
 0x596   : > { %6431 = vrot.lane.b32.xlu2 %v6296_v11, %s12419_s29 }
 0x598   : > { %6575 = vrot.lane.b32.xlu0 %v6530_v24, %s8513_s15 }
 0x59b   : > { %6573 = vrot.lane.b32.xlu1 %v6527_v35, %s8513_s15  ;;  %v5279_v62 = vpop.f32.mrf.mxu2 }
 0x5a4   : > { %v5178_v55 = vpop.f32.mrf.mxu1 }
 0x5ab   : > { %v5374_v27 = vpop.f32.mrf.mxu3 }
 0x5ac   : > { %v5433_v4 = vadd.f32 %v5374_v27, %v5273_v17  ;;  %v5180_v25 = vpop.f32.mrf.mxu1  ;;  %v4861_v6 = vpop.permute.xlu2 %4860  ;;  %v5922_v17 = vld [vmem:[#allocation2 + $0x60] sm:$0xf] }
 0x5ae   : > { %v5469_v45 = vadd.f32 %v10975_v40, %v5433_v4 }
 0x5b0   : > { %v5501_v58 = vmax.f32 %v5469_v45, 0.0 }
 0x5b1   : > { %v5003_v7 = vpop.permute.xlu1 %5002 }
 0x5b2   : > { %v5533_v53 = vpack.c.bf16 %v5501_v58, %v5501_v58 }
 0x5b3   : > { %v5376_v38 = vpop.f32.mrf.mxu3 }
 0x5b4   : > { %v4859_v2 = vpop.permute.xlu0 %4858  ;;  %v5671_v11 = vshrl.u32 %v5533_v53, 16  ;;  %v5434_v5 = vadd.f32 %v5376_v38, %v5275_v3  ;;  %v5674_v35 = vshll.u32 %v5533_v53, 16  ;;  %v5282_v53 = vpop.f32.mrf.mxu2 }
 0x5b5   : > { %v5039_v61 = vsel %vm746_vm1, %v10885_v13, %v4859_v2  ;;  %v5278_v13 = vadd.f32 %v5277_v44, %v5178_v55 }
 0x5b6   : > { %v5075_v24 = vsel %vm3671_vm3, %v5039_v61, %v5003_v7  ;;  %v5673_v30 = vrot.slane %v5671_v11, 7  ;;  %v5470_v28 = vadd.f32 %v10975_v40, %v5434_v5  ;;  %v5926_v5 = vld [vmem:[#allocation2 + $0x68] sm:$0x1] }
 0x5b7   : > { %7898 = vmatmul.msk.bf16.gmra.mxu1 %vm3718_vm5, %v5075_v24  ;;  %7919 = vmatmul.msk.bf16.gmra.mxu2 %vm3718_vm5, %v5075_v24  ;;  %v5183_v4 = vpop.f32.mrf.mxu1 }
 0x5b8   : > { %7939 = vmatmul.msk.bf16.gmra.mxu3 %vm3718_vm5, %v5075_v24  ;;  %v5676_v14 = vor.u32 %v5674_v35, %v5673_v30  ;;  %v5502_v52 = vmax.f32 %v5470_v28, 0.0  ;;  %v11107_v45 = vpop.permute.xlu2 %5006  ;;  %v5677_v61 = vrot.slane %v5673_v30, 4  ;;  %v5280_v24 = vadd.f32 %v5279_v62, %v5180_v25 }
 0x5ba   : > { %v5923_v27 = vsel %vm10735_vm11, %v5676_v14, %v5922_v17  ;;  %v5534_v0 = vpack.c.bf16 %v5502_v52, %v5502_v52  ;;  %v5041_v52 = vsel %vm746_vm1, %v10927_v8, %v4861_v6 }
 0x5bb   : > { %5924 = vst [vmem:[#allocation2 + $0x60] sm:$0xf] %v5923_v27 }
 0x5bc   : > { %v5679_v15 = vshrl.u32 %v5534_v0, 16  ;;  %v5682_v7 = vshll.u32 %v5534_v0, 16 }
 0x5be   : > { %v5379_v42 = vpop.f32.mrf.mxu3  ;;  %v5681_v2 = vrot.slane %v5679_v15, 7 }
 0x5bf   : > { %v5435_v58 = vadd.f32 %v5379_v42, %v5278_v13  ;;  %v5185_v42 = vpop.f32.mrf.mxu1 }
 0x5c0   : > { %v5684_v11 = vor.u32 %v5682_v7, %v5681_v2  ;;  %v5686_v55 = vrot.slane %v5681_v2, 4  ;;  %v3634_v15 = vpop.permute.xlu2 %3633 }
 0x5c1   : > { %v5005_v3 = vpop.permute.xlu0 %5004  ;;  %v5471_v38 = vadd.f32 %v10975_v40, %v5435_v58 }
 0x5c2   : > { %v5685_v35 = vsel %vm8670_vm4, %v5677_v61, %v5684_v11  ;;  %v5927_v28 = vsel %vm8721_vm6, %v5686_v55, %v5926_v5  ;;  %v5077_v13 = vsel %vm3671_vm3, %v5041_v52, %v5005_v3  ;;  %v5284_v3 = vpop.f32.mrf.mxu2  ;;  %v5283_v61 = vadd.f32 %v5282_v53, %v5183_v4  ;;  %v8285_v5 = vld [vmem:[#allocation2 + $0x60] sm:$0xe] }
 0x5c3   : > { %v5503_v44 = vmax.f32 %v5471_v38, 0.0  ;;  %5925 = vst.msk [vmem:[#allocation2 + $0x64] sm:$0xf] %vm387_vm2, %v5685_v35  ;;  %v5929_v38 = vld [vmem:[#allocation2 + $0x6c] sm:$0xf] }
 0x5c4   : > { %5928 = vst [vmem:[#allocation2 + $0x68] sm:$0x1] %v5927_v28 }
 0x5c5   : > { %v5535_v14 = vpack.c.bf16 %v5503_v44, %v5503_v44 }
 0x5c6   : > { %v5381_v17 = vpop.f32.mrf.mxu3 }
 0x5c7   : > { %v5688_v30 = vshrl.u32 %v5535_v14, 16  ;;  %v5436_v27 = vadd.f32 %v5381_v17, %v5280_v24  ;;  %7920 = vmatmul.msk.bf16.gmra.mxu2 %vm3718_vm5, %v5077_v13  ;;  %7899 = vmatmul.msk.bf16.gmra.mxu1 %vm3718_vm5, %v5077_v13  ;;  %v5691_v62 = vshll.u32 %v5535_v14, 16 }
 0x5c8   : > { %7940 = vmatmul.msk.bf16.gmra.mxu3 %vm3718_vm5, %v5077_v13 }
 0x5c9   : > { %v3489_v0 = vpop.permute.xlu0 %3488  ;;  %v5690_v25 = vrot.slane %v5688_v30, 7  ;;  %v5472_v58 = vadd.f32 %v10975_v40, %v5436_v27 }
 0x5ca   : > { %v3670_v8 = vsel %vm746_vm1, %v10897_v29, %v3489_v0  ;;  %v8284_v44 = vld [vmem:[#allocation2 + $0x60] sm:$0xf0] }
 0x5cb   : > { %v3707_v6 = vsel %vm3671_vm3, %v3670_v8, %v3634_v15  ;;  %v5693_v2 = vor.u32 %v5691_v62, %v5690_v25  ;;  %v5504_v7 = vmax.f32 %v5472_v58, 0.0  ;;  %v11128_v24 = vld [vmem:[#allocation2 + $0x60] sm:$0xff]   ;;  %v6029_v35 = vld [vmem:[#allocation2 + $0x68] sm:$0x1]  ;;  %v8286_v28 = vor.u32 %v8285_v5, %v8284_v44  ;;  %v5933_v44 = vld [vmem:[#allocation2 + $0x74] sm:$0x1] }
 0x5cc   : > { %7879 = vmatmul.msk.bf16.gmra.mxu0 %vm3718_vm5, %v3707_v6  ;;  %v6300_v14 = vshll.u32 %v11128_v24, 16  ;;  %v6173_v30 = vunpack.c.l.b16 %v6029_v35  ;;  %v5694_v0 = vrot.slane %v5690_v25, 4  ;;  %v5188_v6 = vpop.f32.mrf.mxu1  ;;  %v6298_v5 = vshrl.u32 %v11128_v24, 16 }
 0x5cd   : > { %v5930_v11 = vsel %vm10735_vm11, %v5693_v2, %v5929_v38  ;;  %v5536_v55 = vpack.c.bf16 %v5504_v7, %v5504_v7  ;;  %v6531_v62 = vrot.slane %v8286_v28, 1 }
 0x5ce   : > { %5931 = vst [vmem:[#allocation2 + $0x6c] sm:$0xf] %v5930_v11  ;;  %v5384_v29 = vpop.f32.mrf.mxu3  ;;  %v6191_v53 = vpack.c.b16 %v6173_v30, %v6173_v30  ;;  %v6302_v15 = vrot.slane %v6300_v14, 1  ;;  %v5285_v11 = vadd.f32 %v5284_v3, %v5185_v42 }
 0x5cf   : > { %v5696_v52 = vshrl.u32 %v5536_v55, 16  ;;  %v5437_v17 = vadd.f32 %v5384_v29, %v5283_v61  ;;  %v5699_v27 = vshll.u32 %v5536_v55, 16  ;;  %v5287_v29 = vpop.f32.mrf.mxu2 }
 0x5d0   : > { %v6532_v38 = vrot.slane %v6191_v53, 1  ;;  %v6305_v55 = vshll.u32 %v6191_v53, 16  ;;  %v6303_v3 = vor.u32 %v6302_v15, %v6298_v5 }
 0x5d1   : > { %v5698_v13 = vrot.slane %v5696_v52, 7  ;;  %v5473_v4 = vadd.f32 %v10975_v40, %v5437_v17 }
 0x5d2   : > { %v4863_v7 = vpop.permute.xlu1 %4862  ;;  %v6533_v14 = vsel %vm1519_vm13, %v6531_v62, %v6532_v38 }
 0x5d3   : > { %v5701_v58 = vor.u32 %v5699_v27, %v5698_v13  ;;  %v5703_v8 = vrot.slane %v5698_v13, 4  ;;  %v5505_v2 = vmax.f32 %v5473_v4, 0.0  ;;  %v5043_v61 = vsel %vm746_vm1, %v10950_v50, %v4863_v7  ;;  %6577 = vrot.lane.b32.xlu2 %v6533_v14, %s8513_s15 }
 0x5d4   : > { %v6307_v50 = vrot.slane %v6305_v55, 1  ;;  %v5079_v30 = vsel %vm3671_vm3, %v5043_v61, %v11107_v45  ;;  %v5288_v45 = vadd.f32 %v5287_v29, %v5188_v6  ;;  %v5190_v7 = vpop.f32.mrf.mxu1 }
 0x5d5   : > { %v5702_v25 = vsel %vm8670_vm4, %v5694_v0, %v5701_v58  ;;  %v5934_v35 = vsel %vm8721_vm6, %v5703_v8, %v5933_v44  ;;  %v5537_v28 = vpack.c.bf16 %v5505_v2, %v5505_v2  ;;  %v8480_v58 = vld [vmem:[#allocation2 + $0x6c] sm:$0xe]  ;;  %v5936_v8 = vld [vmem:[#allocation2 + $0x78] sm:$0xf] }
 0x5d6   : > { %5932 = vst.msk [vmem:[#allocation2 + $0x70] sm:$0xf] %vm387_vm2, %v5702_v25  ;;  %v5386_v42 = vpop.f32.mrf.mxu3  ;;  %v6308_v13 = vsel %vm3237_vm15, %v6303_v3, %v6307_v50 }
 0x5d7   : > { %5935 = vst [vmem:[#allocation2 + $0x74] sm:$0x1] %v5934_v35  ;;  %v5705_v52 = vshrl.u32 %v5537_v28, 16  ;;  %v5438_v17 = vadd.f32 %v5386_v42, %v5285_v11  ;;  %7921 = vmatmul.msk.bf16.gmra.mxu2 %vm3718_vm5, %v5079_v30  ;;  %7900 = vmatmul.msk.bf16.gmra.mxu1 %vm3718_vm5, %v5079_v30  ;;  %v5708_v4 = vshll.u32 %v5537_v28, 16  ;;  %v5289_v25 = vpop.f32.mrf.mxu2 }
 0x5d8   : > { %6433 = vrot.lane.b32.xlu1 %v6308_v13, %s12419_s29  ;;  %7941 = vmatmul.msk.bf16.gmra.mxu3 %vm3718_vm5, %v5079_v30  ;;  %v5290_v42 = vadd.f32 %v5289_v25, %v5190_v7 }
 0x5d9   : > { %v5707_v27 = vrot.slane %v5705_v52, 7  ;;  %v5474_v53 = vadd.f32 %v10975_v40, %v5438_v17  ;;  %v6566_v17 = vpop.permute.xlu2 %6565 }
 0x5da   : > { %v5009_v0 = vpop.permute.xlu0 %5008 }
 0x5db   : > { %v5710_v62 = vor.u32 %v5708_v4, %v5707_v27  ;;  %v5506_v15 = vmax.f32 %v5474_v53, 0.0  ;;  %v5711_v30 = vrot.slane %v5707_v27, 4 }
 0x5dd   : > { %v5937_v2 = vsel %vm10735_vm11, %v5710_v62, %v5936_v8  ;;  %v5538_v38 = vpack.c.bf16 %v5506_v15, %v5506_v15  ;;  %v4865_v11 = vpop.permute.xlu1 %4864  ;;  %v11152_v44 = vld [vmem:[#allocation2 + $0x6c] sm:$0xff]  }
 0x5de   : > { %v8479_v61 = vld [vmem:[#allocation2 + $0x6c] sm:$0xf0]  ;;  %5938 = vst [vmem:[#allocation2 + $0x78] sm:$0xf] %v5937_v2  ;;  %v5389_v5 = vpop.f32.mrf.mxu3  ;;  %v6030_v55 = vld [vmem:[#allocation2 + $0x74] sm:$0x1]  ;;  %v5045_v15 = vsel %vm746_vm1, %v10997_v43, %v4865_v11 }
 0x5df   : > { %v5713_v35 = vshrl.u32 %v5538_v38, 16  ;;  %v5439_v28 = vadd.f32 %v5389_v5, %v5288_v45  ;;  %v6174_v14 = vunpack.c.l.b16 %v6030_v55  ;;  %v8481_v3 = vor.u32 %v8480_v58, %v8479_v61  ;;  %v5940_v45 = vld [vmem:[#allocation2 + $0x80] sm:$0x1] }
 0x5e0   : > { %v5716_v6 = vshll.u32 %v5538_v38, 16  ;;  %v6312_v4 = vshll.u32 %v11152_v44, 16  ;;  %v6310_v7 = vshrl.u32 %v11152_v44, 16 }
 0x5e1   : > { %v5715_v50 = vrot.slane %v5713_v35, 7  ;;  %v5475_v29 = vadd.f32 %v10975_v40, %v5439_v28  ;;  %v6192_v52 = vpack.c.b16 %v6174_v14, %v6174_v14  ;;  %v6534_v13 = vrot.slane %v8481_v3, 1 }
 0x5e2   : > { %v6418_v2 = vpop.permute.xlu0 %6417  ;;  %v6314_v38 = vrot.slane %v6312_v4, 1 }
 0x5e3   : > { %v5718_v53 = vor.u32 %v5716_v6, %v5715_v50  ;;  %v5720_v62 = vrot.slane %v5715_v50, 4  ;;  %v5507_v8 = vmax.f32 %v5475_v29, 0.0  ;;  %v6535_v58 = vrot.slane %v6192_v52, 1 }
 0x5e4   : > { %v6317_v61 = vshll.u32 %v6192_v52, 16  ;;  %v6315_v28 = vor.u32 %v6314_v38, %v6310_v7  ;;  %v5081_v29 = vsel %vm3671_vm3, %v5045_v15, %v5009_v0 }
 0x5e5   : > { %v5719_v27 = vsel %vm8670_vm4, %v5711_v30, %v5718_v53  ;;  %v5941_v5 = vsel %vm8721_vm6, %v5720_v62, %v5940_v45  ;;  %v5539_v55 = vpack.c.bf16 %v5507_v8, %v5507_v8  ;;  %v6422_v25 = vpop.permute.xlu1 %6421  ;;  %v6536_v11 = vsel %vm1519_vm13, %v6534_v13, %v6535_v58  ;;  %v5943_v53 = vld [vmem:[#allocation2 + $0x84] sm:$0xf]  ;;  %v8288_v45 = vld [vmem:[#allocation2 + $0x78] sm:$0xe] }
 0x5e6   : > { %5939 = vst.msk [vmem:[#allocation2 + $0x7c] sm:$0xf] %vm387_vm2, %v5719_v27  ;;  %v6602_v43 = vsel %vm3671_vm3, %v11002_v57, %v6422_v25  ;;  %v5391_v35 = vpop.f32.mrf.mxu3  ;;  %v6319_v14 = vrot.slane %v6317_v61, 1  ;;  %6579 = vrot.lane.b32.xlu1 %v6536_v11, %s8513_s15 }
 0x5e7   : > { %5942 = vst [vmem:[#allocation2 + $0x80] sm:$0x1] %v5941_v5  ;;  %v5722_v3 = vshrl.u32 %v5539_v55, 16  ;;  %v11168_v50 = vsel %vm6633_vm8, %v6602_v43, %v6566_v17  ;;  %v5440_v6 = vadd.f32 %v5391_v35, %v5290_v42  ;;  %7901 = vmatmul.msk.bf16.gmra.mxu1 %vm3718_vm5, %v5081_v29  ;;  %v5725_v30 = vshll.u32 %v5539_v55, 16  ;;  %v6562_v42 = vpop.permute.xlu2 %6561 }
 0x5e8   : > { %7994 = vmatmul.msk.bf16.vlgmr.msra.gmra.mxu2 %vm6686_vm9, %v11168_v50  ;;  %v6320_v57 = vsel %vm3237_vm15, %v6315_v28, %v6319_v14  ;;  %7942 = vmatmul.msk.bf16.gmra.mxu3 %vm3718_vm5, %v5081_v29 }
 0x5e9   : > { %v5724_v52 = vrot.slane %v5722_v3, 7  ;;  %v5476_v13 = vadd.f32 %v10975_v40, %v5440_v6  ;;  %6435 = vrot.lane.b32.xlu0 %v6320_v57, %s12419_s29 }
 0x5ea   : > { %v6564_v7 = vpop.permute.xlu0 %6563 }
 0x5eb   : > { %v5727_v17 = vor.u32 %v5725_v30, %v5724_v52  ;;  %v5508_v4 = vmax.f32 %v5476_v13, 0.0  ;;  %v5728_v28 = vrot.slane %v5724_v52, 4  ;;  %v5947_v30 = vld [vmem:[#allocation2 + $0x8c] sm:$0x1] }
 0x5ed   : > { %v5944_v0 = vsel %vm10735_vm11, %v5727_v17, %v5943_v53  ;;  %v5540_v62 = vpack.c.bf16 %v5508_v4, %v5508_v4  ;;  %v6420_v15 = vpop.permute.xlu1 %6419  ;;  %v8287_v8 = vld [vmem:[#allocation2 + $0x78] sm:$0xf0] }
 0x5ee   : > { %v11181_v58 = vld [vmem:[#allocation2 + $0x78] sm:$0xff]   ;;  %5945 = vst [vmem:[#allocation2 + $0x84] sm:$0xf] %v5944_v0  ;;  %v6600_v40 = vsel %vm3671_vm3, %v10985_v34, %v6420_v15  ;;  %v6031_v38 = vld [vmem:[#allocation2 + $0x80] sm:$0x1]  ;;  %v8289_v25 = vor.u32 %v8288_v45, %v8287_v8  ;;  %v6598_v34 = vsel %vm3671_vm3, %v10980_v49, %v6418_v2 }
 0x5ef   : > { %v6324_v61 = vshll.u32 %v11181_v58, 16  ;;  %v5730_v27 = vshrl.u32 %v5540_v62, 16  ;;  %v6637_v5 = vsel %vm6633_vm8, %v6600_v40, %v6564_v7  ;;  %v6175_v55 = vunpack.c.l.b16 %v6031_v38 }
 0x5f0   : > { %7951 = vmatmul.msk.bf16.vlgmr.msra.gmra.mxu0 %vm6686_vm9, %v6637_v5  ;;  %v5733_v11 = vshll.u32 %v5540_v62, 16  ;;  %v6537_v29 = vrot.slane %v8289_v25, 1  ;;  %v6322_v13 = vshrl.u32 %v11181_v58, 16  ;;  %v5011_v62 = vpop.permute.xlu2 %5010  ;;  %v6635_v8 = vsel %vm6633_vm8, %v6598_v34, %v6562_v42  ;;  %v12643_v34 = vld [vmem:[#allocation81_spill] sm:$0xff] }
 0x5f1   : > { %v5732_v43 = vrot.slane %v5730_v27, 7  ;;  %v6193_v35 = vpack.c.b16 %v6175_v55, %v6175_v55  ;;  %v6326_v14 = vrot.slane %v6324_v61, 1 }
 0x5f2   : > { %v6424_v40 = vpop.permute.xlu0 %6423 }
 0x5f3   : > { %v5735_v3 = vor.u32 %v5733_v11, %v5732_v43  ;;  %v5737_v6 = vrot.slane %v5732_v43, 4  ;;  %v6538_v57 = vrot.slane %v6193_v35, 1  ;;  %v6329_v17 = vshll.u32 %v6193_v35, 16 }
 0x5f4   : > { %v6327_v49 = vor.u32 %v6326_v14, %v6322_v13 }
 0x5f5   : > { %v5736_v4 = vsel %vm8670_vm4, %v5728_v28, %v5735_v3  ;;  %v5948_v53 = vsel %vm8721_vm6, %v5737_v6, %v5947_v30  ;;  %v4867_v0 = vpop.permute.xlu1 %4866  ;;  %v6539_v52 = vsel %vm1519_vm13, %v6537_v29, %v6538_v57  ;;  %v6331_v2 = vrot.slane %v6329_v17, 1  ;;  %v8483_v38 = vld [vmem:[#allocation2 + $0x84] sm:$0xe]  ;;  %v12642_v57 = vld [vmem:[#allocation82_spill] sm:$0xff] }
 0x5f6   : > { %5946 = vst.msk [vmem:[#allocation2 + $0x88] sm:$0xf] %vm387_vm2, %v5736_v4  ;;  %v5047_v15 = vsel %vm746_vm1, %v11018_v31, %v4867_v0  ;;  %6581 = vrot.lane.b32.xlu0 %v6539_v52, %s8513_s15  ;;  %v6604_v31 = vsel %vm3671_vm3, %v11011_v21, %v6424_v40  ;;  %v3865_v30 = vadd.f32 %v12643_v34, %v12642_v57  ;;  %vm7602_vm1 = vcmask 261120  }
 0x5f7   : > { %5949 = vst [vmem:[#allocation2 + $0x8c] sm:$0x1] %v5948_v53  ;;  %v5083_v45 = vsel %vm3671_vm3, %v5047_v15, %v5011_v62  ;;  %v6332_v7 = vsel %vm3237_vm15, %v6327_v49, %v6331_v2  ;;  %7971 = vmatmul.msk.bf16.vlgmr.msra.gmra.mxu1 %vm6686_vm9, %v6635_v8  ;;  %v12644_v53 = vld [vmem:[#allocation84_spill] sm:$0xff]  ;;  %v11226_v62 = vld [vmem:[%s12330_s4] ss:$0 sm:$0xff] }
 0x5f8   : > { %6437 = vrot.lane.b32.xlu2 %v6332_v7, %s12419_s29  ;;  %7943 = vmatmul.msk.bf16.gmra.mxu3 %vm3718_vm5, %v5083_v45  ;;  %v4045_v0 = vadd.f32 %v12644_v53, %v3865_v30  ;;  %v6426_v15 = vpop.permute.xlu2 %6425  ;;  %v4096_v47 = vadd.f32 %v11226_v62, %v10510_v18 }
 0x5f9   : > { %v6606_v8 = vsel %vm3671_vm3, %v11040_v12, %v6426_v15  ;;  %v11274_v15 = vld [vmem:[%s12332_s6] ss:$0 sm:$0xff] }
 0x5fa   : > { %v4081_v49 = vadd.f32 %v11226_v62, %v4045_v0  ;;  %v6570_v2 = vpop.permute.xlu0 %6569  ;;  %v11269_v0 = vld [vmem:[#allocation2 + $0xcc] sm:$0xff]  }
 0x5fb   : > { %v6643_v45 = vsel %vm6633_vm8, %v6606_v8, %v6570_v2 }
 0x5fc   : > { %v4113_v7 = vmax.f32 %v4081_v49, 0.0 }
 0x5fd   : > { %v6568_v61 = vpop.permute.xlu1 %6567  ;;  %v11208_v27 = vld [vmem:[#allocation2 + $0x84] sm:$0xff]  }
 0x5fe   : > { %v8482_v42 = vld [vmem:[#allocation2 + $0x84] sm:$0xf0]  ;;  %v6641_v55 = vsel %vm6633_vm8, %v6604_v31, %v6568_v61  ;;  %v6032_v25 = vld [vmem:[#allocation2 + $0x8c] sm:$0x1]  ;;  %v6336_v14 = vshll.u32 %v11208_v27, 16  ;;  %v6334_v6 = vshrl.u32 %v11208_v27, 16 }
 0x5ff   : > { %7995 = vmatmul.msk.bf16.gmra.mxu2 %vm6686_vm9, %v6641_v55  ;;  %v6176_v43 = vunpack.c.l.b16 %v6032_v25  ;;  %v8484_v11 = vor.u32 %v8483_v38, %v8482_v42  ;;  %v5292_v38 = vpop.f32.mrf.mxu2 }
 0x600   : > { %7952 = vmatmul.msk.bf16.gmra.mxu0 %vm6686_vm9, %v11168_v50  ;;  %v6338_v29 = vrot.slane %v6336_v14, 1  ;;  %v6572_v42 = vpop.permute.xlu2 %6571 }
 0x601   : > { %v6194_v35 = vpack.c.b16 %v6176_v43, %v6176_v43  ;;  %v6540_v28 = vrot.slane %v8484_v11, 1  ;;  %v5193_v11 = vpop.f32.mrf.mxu1 }
 0x602   : > { %v6339_v17 = vor.u32 %v6338_v29, %v6334_v6  ;;  %v5293_v29 = vadd.f32 %v5292_v38, %v5193_v11  ;;  %v6408_v38 = vshll.u32 %v11269_v0, 16  ;;  %v6406_v11 = vshrl.u32 %v11269_v0, 16 }
 0x603   : > { %v6541_v3 = vrot.slane %v6194_v35, 1  ;;  %v6341_v21 = vshll.u32 %v6194_v35, 16 }
 0x605   : > { %v6542_v13 = vsel %vm1519_vm13, %v6540_v28, %v6541_v3  ;;  %v6343_v4 = vrot.slane %v6341_v21, 1  ;;  %v6428_v61 = vpop.permute.xlu1 %6427  ;;  %v6430_v28 = vpop.permute.xlu0 %6429 }
 0x606   : > { %6583 = vrot.lane.b32.xlu0 %v6542_v13, %s8513_s15  ;;  %v6608_v12 = vsel %vm3671_vm3, %v11050_v51, %v6428_v61  ;;  %v6610_v3 = vsel %vm3671_vm3, %v11060_v41, %v6430_v28  ;;  %v6410_v28 = vrot.slane %v6408_v38, 1 }
 0x607   : > { %7972 = vmatmul.msk.bf16.gmra.mxu1 %vm6686_vm9, %v6637_v5  ;;  %v6344_v52 = vsel %vm3237_vm15, %v6339_v17, %v6343_v4  ;;  %v12645_v5 = vld [vmem:[#allocation91_spill] sm:$0xff]  ;;  %v6645_v25 = vsel %vm6633_vm8, %v6608_v12, %v6572_v42  ;;  %v5294_v43 = vpop.f32.mrf.mxu2  ;;  %v11264_v4 = vpop.f32.mrf.mxu0 }
 0x608   : > { %6439 = vrot.lane.b32.xlu1 %v6344_v52, %s12419_s29  ;;  %v4084_v40 = vadd.f32 %v11226_v62, %v12645_v5  ;;  %v8413_v52 = vld [vmem:[#allocation2 + $0xcc] sm:$0xf0] }
 0x60a   : > { %v4116_v31 = vmax.f32 %v4084_v40, 0.0 }
 0x60d   : > { %v6574_v14 = vpop.permute.xlu1 %6573  ;;  %v6576_v57 = vpop.permute.xlu0 %6575 }
 0x60e   : > { %v11250_v51 = vsel %vm6633_vm8, %v6610_v3, %v6574_v14 }
 0x60f   : > { %7996 = vmatmul.msk.bf16.gmra.mxu2 %vm6686_vm9, %v6643_v45  ;;  %v5297_v35 = vpop.f32.mrf.mxu2 }
 0x610   : > { %7953 = vmatmul.msk.bf16.gmra.mxu0 %vm6686_vm9, %v6641_v55  ;;  %7156 = vrot.lane.b32.xlu1 %v4113_v7, %s12419_s29 }
 0x617   : > { %7973 = vmatmul.msk.bf16.gmra.mxu1 %vm6686_vm9, %v11168_v50  ;;  %v5195_v50 = vpop.f32.mrf.mxu1  ;;  %v11255_v21 = vpop.f32.mrf.mxu2 }
 0x618   : > { %7162 = vrot.lane.b32.xlu1 %v4116_v31, %s12419_s29 }
 0x61f   : > { %7997 = vmatmul.msk.bf16.gmra.mxu2 %vm6686_vm9, %v6645_v25 }
 0x620   : > { %7954 = vmatmul.msk.bf16.gmra.mxu0 %vm6686_vm9, %v6643_v45 }
 0x627   : > { %7974 = vmatmul.msk.bf16.gmra.mxu1 %vm6686_vm9, %v6641_v55  ;;  %v6432_v55 = vpop.permute.xlu2 %6431 }
 0x628   : > { %v6612_v41 = vsel %vm3671_vm3, %v11053_v32, %v6432_v55  ;;  %v6038_v32 = vld [vmem:[#allocation2 + $0xd4] sm:$0x1] }
 0x629   : > { %v11267_v53 = vsel %vm6633_vm8, %v6612_v41, %v6576_v57  ;;  %v6182_v8 = vunpack.c.l.b16 %v6038_v32  ;;  %v8414_v32 = vld [vmem:[#allocation2 + $0xcc] sm:$0xe] }
 0x62b   : > { %v6200_v40 = vpack.c.b16 %v6182_v8, %v6182_v8 }
 0x62d   : > { %v6413_v14 = vshll.u32 %v6200_v40, 16 }
 0x62f   : > { %7998 = vmatmul.msk.bf16.gmra.mxu2 %vm6686_vm9, %v11250_v51  ;;  %v6415_v57 = vrot.slane %v6413_v14, 1  ;;  %v6559_v14 = vrot.slane %v6200_v40, 1 }
 0x630   : > { %7955 = vmatmul.msk.bf16.gmra.mxu0 %vm6686_vm9, %v6645_v25 }
 0x634   : > { %v5198_v6 = vpop.f32.mrf.mxu1 }
 0x637   : > { %7975 = vmatmul.msk.bf16.gmra.mxu1 %vm6686_vm9, %v6643_v45  ;;  %v5295_v45 = vadd.f32 %v5294_v43, %v5195_v50  ;;  %v11288_v43 = vpop.f32.mrf.mxu0  ;;  %v6411_v50 = vor.u32 %v6410_v28, %v6406_v11 }
 0x63a   : > { %v11258_v34 = vpop.f32.mrf.mxu2 }
 0x63b   : > { %v5394_v30 = vpop.f32.mrf.mxu3 }
 0x63c   : > { %v5441_v13 = vadd.f32 %v5394_v30, %v5293_v29  ;;  %v11262_v17 = vpop.f32.mrf.mxu1 }
 0x63d   : > { %v5300_v40 = vadd.f32 %v11255_v21, %v11262_v17 }
 0x63e   : > { %v5477_v49 = vadd.f32 %v11274_v15, %v5441_v13  ;;  %v5950_v13 = vld [vmem:[#allocation2 + $0x90] sm:$0xf] }
 0x63f   : > { %7999 = vmatmul.msk.bf16.gmra.mxu2 %vm6686_vm9, %v11267_v53 }
 0x640   : > { %7956 = vmatmul.msk.bf16.gmra.mxu0 %vm6686_vm9, %v11250_v51  ;;  %v5509_v2 = vmax.f32 %v5477_v49, 0.0  ;;  %v6416_v49 = vsel %vm3237_vm15, %v6411_v50, %v6415_v57 }
 0x641   : > { %6451 = vrot.lane.b32.xlu2 %v6416_v49, %s12419_s29  ;;  %v11309_v49 = vpop.f32.mrf.mxu0 }
 0x642   : > { %v5541_v7 = vpack.c.bf16 %v5509_v2, %v5509_v2  ;;  %v11281_v5 = vpop.f32.mrf.mxu2  ;;  %v5298_v2 = vadd.f32 %v5297_v35, %v5198_v6  ;;  %v8415_v6 = vor.u32 %v8414_v32, %v8413_v52 }
 0x643   : > { %v5396_v31 = vpop.f32.mrf.mxu3 }
 0x644   : > { %v5739_v61 = vshrl.u32 %v5541_v7, 16  ;;  %v5442_v12 = vadd.f32 %v5396_v31, %v5295_v45  ;;  %v11284_v42 = vpop.f32.mrf.mxu1  ;;  %v5742_v55 = vshll.u32 %v5541_v7, 16 }
 0x646   : > { %v5741_v3 = vrot.slane %v5739_v61, 7  ;;  %v5478_v29 = vadd.f32 %v11274_v15, %v5442_v12  ;;  %v6578_v61 = vpop.permute.xlu2 %6577 }
 0x647   : > { %7976 = vmatmul.msk.bf16.gmra.mxu1 %vm6686_vm9, %v6645_v25 }
 0x648   : > { %v5744_v30 = vor.u32 %v5742_v55, %v5741_v3  ;;  %v5510_v41 = vmax.f32 %v5478_v29, 0.0  ;;  %v5745_v57 = vrot.slane %v5741_v3, 4 }
 0x64a   : > { %v5951_v8 = vsel %vm10735_vm11, %v5744_v30, %v5950_v13  ;;  %v5542_v45 = vpack.c.bf16 %v5510_v41, %v5510_v41  ;;  %v6434_v7 = vpop.permute.xlu1 %6433  ;;  %v11294_v38 = vpop.f32.mrf.mxu2 }
 0x64b   : > { %5952 = vst [vmem:[#allocation2 + $0x90] sm:$0xf] %v5951_v8  ;;  %v6614_v25 = vsel %vm3671_vm3, %v11128_v24, %v6434_v7  ;;  %v5399_v31 = vpop.f32.mrf.mxu3  ;;  %v6558_v24 = vrot.slane %v8415_v6, 1 }
 0x64c   : > { %v5747_v12 = vshrl.u32 %v5542_v45, 16  ;;  %v5443_v11 = vadd.f32 %v5399_v31, %v5298_v2  ;;  %v11299_v28 = vpop.f32.mrf.mxu1  ;;  %v11302_v35 = vsel %vm6633_vm8, %v6614_v25, %v6578_v61  ;;  %v5750_v29 = vshll.u32 %v5542_v45, 16  ;;  %v5954_v2 = vld [vmem:[#allocation2 + $0x98] sm:$0x1] }
 0x64d   : > { %v6560_v52 = vsel %vm1519_vm13, %v6558_v24, %v6559_v14  ;;  %v11327_v14 = vpop.f32.mrf.mxu0 }
 0x64e   : > { %v5749_v55 = vrot.slane %v5747_v12, 7  ;;  %v5479_v50 = vadd.f32 %v11274_v15, %v5443_v11  ;;  %6595 = vrot.lane.b32.xlu2 %v6560_v52, %s8513_s15 }
 0x64f   : > { %8000 = vmatmul.msk.bf16.gmra.mxu2 %vm6686_vm9, %v11302_v35 }
 0x650   : > { %7957 = vmatmul.msk.bf16.gmra.mxu0 %vm6686_vm9, %v11267_v53  ;;  %v5752_v30 = vor.u32 %v5750_v29, %v5749_v55  ;;  %v5754_v41 = vrot.slane %v5749_v55, 4  ;;  %v5511_v13 = vmax.f32 %v5479_v50, 0.0  ;;  %v5957_v55 = vld [vmem:[#allocation2 + $0x9c] sm:$0xf]  ;;  %v5303_v29 = vadd.f32 %v11258_v34, %v11284_v42 }
 0x652   : > { %v5753_v32 = vsel %vm8670_vm4, %v5745_v57, %v5752_v30  ;;  %v5955_v8 = vsel %vm8721_vm6, %v5754_v41, %v5954_v2  ;;  %v5543_v45 = vpack.c.bf16 %v5511_v13, %v5511_v13  ;;  %v11318_v7 = vpop.f32.mrf.mxu2 }
 0x653   : > { %5953 = vst.msk [vmem:[#allocation2 + $0x94] sm:$0xf] %vm387_vm2, %v5753_v32  ;;  %v5401_v3 = vpop.f32.mrf.mxu3 }
 0x654   : > { %5956 = vst [vmem:[#allocation2 + $0x98] sm:$0x1] %v5955_v8  ;;  %v5756_v25 = vshrl.u32 %v5543_v45, 16  ;;  %v5444_v31 = vadd.f32 %v5401_v3, %v5300_v40  ;;  %v11322_v61 = vpop.f32.mrf.mxu1  ;;  %v5759_v17 = vshll.u32 %v5543_v45, 16  ;;  %v8291_v3 = vld [vmem:[#allocation2 + $0x90] sm:$0xe] }
 0x656   : > { %v5758_v21 = vrot.slane %v5756_v25, 7  ;;  %v5480_v12 = vadd.f32 %v11274_v15, %v5444_v31 }
 0x657   : > { %7977 = vmatmul.msk.bf16.gmra.mxu1 %vm6686_vm9, %v11250_v51 }
 0x658   : > { %v5761_v11 = vor.u32 %v5759_v17, %v5758_v21  ;;  %v5512_v6 = vmax.f32 %v5480_v12, 0.0  ;;  %v6580_v57 = vpop.permute.xlu1 %6579 }
 0x65a   : > { %v5958_v50 = vsel %vm10735_vm11, %v5761_v11, %v5957_v55  ;;  %v5544_v24 = vpack.c.bf16 %v5512_v6, %v5512_v6  ;;  %v8290_v41 = vld [vmem:[#allocation2 + $0x90] sm:$0xf0]  ;;  %v11337_v2 = vpop.f32.mrf.mxu2  ;;  %v5762_v55 = vrot.slane %v5758_v21, 4 }
 0x65b   : > { %v6436_v30 = vpop.permute.xlu0 %6435  ;;  %v11333_v13 = vld [vmem:[#allocation2 + $0x90] sm:$0xff]   ;;  %5959 = vst [vmem:[#allocation2 + $0x9c] sm:$0xf] %v5958_v50  ;;  %v5404_v52 = vpop.f32.mrf.mxu3  ;;  %v6033_v40 = vld [vmem:[#allocation2 + $0x98] sm:$0x1]  ;;  %v8292_v31 = vor.u32 %v8291_v3, %v8290_v41 }
 0x65c   : > { %12646 = vst [vmem:[#allocation10_spill] sm:$0xff] %v11333_v13  ;;  %v6616_v51 = vsel %vm3671_vm3, %v11152_v44, %v6436_v30  ;;  %v6348_v32 = vshll.u32 %v11333_v13, 16  ;;  %v5764_v34 = vshrl.u32 %v5544_v24, 16  ;;  %v5445_v42 = vadd.f32 %v5404_v52, %v5303_v29  ;;  %v11340_v8 = vpop.f32.mrf.mxu1  ;;  %v5961_v30 = vld [vmem:[#allocation2 + $0xa4] sm:$0x1] }
 0x65d   : > { %v11343_v45 = vsel %vm6633_vm8, %v6616_v51, %v6580_v57  ;;  %v6177_v25 = vunpack.c.l.b16 %v6033_v40  ;;  %v5767_v12 = vshll.u32 %v5544_v24, 16  ;;  %v6543_v51 = vrot.slane %v8292_v31, 1 }
 0x65e   : > { %v5766_v17 = vrot.slane %v5764_v34, 7  ;;  %v5481_v44 = vadd.f32 %v11274_v15, %v5445_v42  ;;  %v6350_v6 = vrot.slane %v6348_v32, 1  ;;  %v6346_v41 = vshrl.u32 %v11333_v13, 16 }
 0x65f   : > { %8001 = vmatmul.msk.bf16.gmra.mxu2 %vm6686_vm9, %v11343_v45  ;;  %v6195_v11 = vpack.c.b16 %v6177_v25, %v6177_v25  ;;  %v5305_v40 = vadd.f32 %v11281_v5, %v11299_v28 }
 0x660   : > { %7958 = vmatmul.msk.bf16.gmra.mxu0 %vm6686_vm9, %v11302_v35  ;;  %v5769_v29 = vor.u32 %v5767_v12, %v5766_v17  ;;  %v5771_v50 = vrot.slane %v5766_v17, 4  ;;  %v5513_v57 = vmax.f32 %v5481_v44, 0.0  ;;  %v6351_v25 = vor.u32 %v6350_v6, %v6346_v41  ;;  %v11359_v17 = vpop.f32.mrf.mxu0  ;;  %v12647_v44 = vld [vmem:[#allocation83_spill] sm:$0xff]  ;;  %v12650_v41 = vld [vmem:[#allocation85_spill] sm:$0xff] }
 0x661   : > { %v6544_v52 = vrot.slane %v6195_v11, 1  ;;  %v6353_v24 = vshll.u32 %v6195_v11, 16  ;;  %v4080_v11 = vadd.f32 %v11226_v62, %v12647_v44  ;;  %v12653_v44 = vld [vmem:[#allocation89_spill] sm:$0xff] }
 0x662   : > { %v5770_v34 = vsel %vm8670_vm4, %v5762_v55, %v5769_v29  ;;  %v5962_v42 = vsel %vm8721_vm6, %v5771_v50, %v5961_v30  ;;  %v5545_v32 = vpack.c.bf16 %v5513_v57, %v5513_v57  ;;  %v11366_v55 = vpop.f32.mrf.mxu2  ;;  %v12648_v50 = vld [vmem:[#allocation87_spill] sm:$0xff] }
 0x663   : > { %5960 = vst.msk [vmem:[#allocation2 + $0xa0] sm:$0xf] %vm387_vm2, %v5770_v34  ;;  %v6545_v21 = vsel %vm1519_vm13, %v6543_v51, %v6544_v52  ;;  %v5406_v3 = vpop.f32.mrf.mxu3  ;;  %v6355_v31 = vrot.slane %v6353_v24, 1  ;;  %v4082_v6 = vadd.f32 %v11226_v62, %v12648_v50  ;;  %v12649_v52 = vld [vmem:[#allocation86_spill] sm:$0xff] }
 0x664   : > { %5963 = vst [vmem:[#allocation2 + $0xa4] sm:$0x1] %v5962_v42  ;;  %v5773_v12 = vshrl.u32 %v5545_v32, 16  ;;  %6585 = vrot.lane.b32.xlu0 %v6545_v21, %s8513_s15  ;;  %v5446_v5 = vadd.f32 %v5406_v3, %v5305_v40  ;;  %v11362_v28 = vpop.f32.mrf.mxu1  ;;  %v5776_v30 = vshll.u32 %v5545_v32, 16  ;;  %v3870_v24 = vadd.f32 %v12650_v41, %v12649_v52  ;;  %v8486_v42 = vld [vmem:[#allocation2 + $0x9c] sm:$0xe]  ;;  %v6438_v32 = vpop.permute.xlu2 %6437 }
 0x665   : > { %v6356_v29 = vsel %vm3237_vm15, %v6351_v25, %v6355_v31  ;;  %v4112_v21 = vmax.f32 %v4080_v11, 0.0  ;;  %v12651_v3 = vld [vmem:[#allocation88_spill] sm:$0xff]  ;;  %v12652_v31 = vld [vmem:[#allocation90_spill] sm:$0xff] }
 0x666   : > { %v5775_v57 = vrot.slane %v5773_v12, 7  ;;  %v5482_v51 = vadd.f32 %v11274_v15, %v5446_v5  ;;  %6441 = vrot.lane.b32.xlu2 %v6356_v29, %s12419_s29  ;;  %v4047_v25 = vadd.f32 %v12651_v3, %v3870_v24  ;;  %v3875_v12 = vadd.f32 %v12653_v44, %v12652_v31  ;;  %v5964_v50 = vld [vmem:[#allocation2 + $0xa8] sm:$0xf] }
 0x667   : > { %7978 = vmatmul.msk.bf16.gmra.mxu1 %vm6686_vm9, %v11267_v53  ;;  %v4114_v5 = vmax.f32 %v4082_v6, 0.0  ;;  %v5308_v29 = vadd.f32 %v11294_v38, %v11322_v61  ;;  %v6618_v31 = vsel %vm3671_vm3, %v11181_v58, %v6438_v32 }
 0x668   : > { %v5778_v40 = vor.u32 %v5776_v30, %v5775_v57  ;;  %v5514_v34 = vmax.f32 %v5482_v51, 0.0  ;;  %v6582_v53 = vpop.permute.xlu0 %6581  ;;  %v4049_v11 = vadd.f32 %v10053_v33, %v3875_v12  ;;  %v5779_v32 = vrot.slane %v5775_v57, 4 }
 0x66a   : > { %v5965_v52 = vsel %vm10735_vm11, %v5778_v40, %v5964_v50  ;;  %v5546_v41 = vpack.c.bf16 %v5514_v34, %v5514_v34  ;;  %v11384_v30 = vld [vmem:[#allocation2 + $0x9c] sm:$0xff]   ;;  %v4083_v34 = vadd.f32 %v11226_v62, %v4047_v25  ;;  %v11394_v50 = vsel %vm6633_vm8, %v6618_v31, %v6582_v53  ;;  %v5968_v31 = vld [vmem:[#allocation2 + $0xb0] sm:$0x1] }
 0x66b   : > { %v8485_v51 = vld [vmem:[#allocation2 + $0x9c] sm:$0xf0]  ;;  %5966 = vst [vmem:[#allocation2 + $0xa8] sm:$0xf] %v5965_v52  ;;  %v5409_v24 = vpop.f32.mrf.mxu3  ;;  %v6034_v3 = vld [vmem:[#allocation2 + $0xa4] sm:$0x1] }
 0x66c   : > { %v5781_v6 = vshrl.u32 %v5546_v41, 16  ;;  %7154 = vrot.lane.b32.xlu0 %v4112_v21, %s12419_s29  ;;  %v5447_v38 = vadd.f32 %v5409_v24, %v5308_v29  ;;  %v11390_v44 = vpop.f32.mrf.mxu1  ;;  %v6178_v40 = vunpack.c.l.b16 %v6034_v3  ;;  %v8487_v33 = vor.u32 %v8486_v42, %v8485_v51  ;;  %v6942_v29 = vpop.f32.mrf.mxu2 }
 0x66d   : > { %v6732_v61 = vpop.f32.mrf.mxu0  ;;  %v5784_v52 = vshll.u32 %v5546_v41, 16  ;;  %v4085_v21 = vadd.f32 %v11226_v62, %v4049_v11  ;;  %v6360_v42 = vshll.u32 %v11384_v30, 16  ;;  %v4115_v3 = vmax.f32 %v4083_v34, 0.0 }
 0x66e   : > { %v5783_v12 = vrot.slane %v5781_v6, 7  ;;  %v5483_v13 = vadd.f32 %v11274_v15, %v5447_v38  ;;  %7158 = vrot.lane.b32.xlu2 %v4114_v5, %s12419_s29  ;;  %v6196_v58 = vpack.c.b16 %v6178_v40, %v6178_v40  ;;  %v6546_v25 = vrot.slane %v8487_v33, 1 }
 0x66f   : > { %8002 = vmatmul.msk.bf16.gmra.mxu2 %vm6686_vm9, %v11394_v50  ;;  %v5310_v5 = vadd.f32 %v11318_v7, %v11340_v8  ;;  %v6362_v6 = vrot.slane %v6360_v42, 1  ;;  %v4117_v33 = vmax.f32 %v4085_v21, 0.0  ;;  %v12654_v42 = vld [vmem:[#allocation92_spill] sm:$0xff]  ;;  %v12655_v21 = vld [vmem:[#allocation93_spill] sm:$0xff] }
 0x670   : > { %7959 = vmatmul.msk.bf16.gmra.mxu0 %vm6686_vm9, %v11343_v45  ;;  %v5786_v53 = vor.u32 %v5784_v52, %v5783_v12  ;;  %v5788_v41 = vrot.slane %v5783_v12, 4  ;;  %v5515_v51 = vmax.f32 %v5483_v13, 0.0  ;;  %v6547_v24 = vrot.slane %v6196_v58, 1 }
 0x671   : > { %v6358_v52 = vshrl.u32 %v11384_v30, 16 }
 0x672   : > { %v5787_v57 = vsel %vm8670_vm4, %v5779_v32, %v5786_v53  ;;  %v5969_v11 = vsel %vm8721_vm6, %v5788_v41, %v5968_v31  ;;  %v5547_v38 = vpack.c.bf16 %v5515_v51, %v5515_v51  ;;  %v6548_v40 = vsel %vm1519_vm13, %v6546_v25, %v6547_v24 }
 0x673   : > { %5967 = vst.msk [vmem:[#allocation2 + $0xac] sm:$0xf] %vm387_vm2, %v5787_v57  ;;  %6587 = vrot.lane.b32.xlu1 %v6548_v40, %s8513_s15  ;;  %v5411_v13 = vpop.f32.mrf.mxu3  ;;  %v6365_v32 = vshll.u32 %v6196_v58, 16  ;;  %v3880_v25 = vadd.f32 %v12654_v42, %v10072_v23  ;;  %v4086_v53 = vadd.f32 %v11226_v62, %v12655_v21  ;;  %v12658_v40 = vld [vmem:[#allocation94_spill] sm:$0xff] }
 0x674   : > { %5970 = vst [vmem:[#allocation2 + $0xb0] sm:$0x1] %v5969_v11  ;;  %v5790_v34 = vshrl.u32 %v5547_v38, 16  ;;  %7160 = vrot.lane.b32.xlu0 %v4115_v3, %s12419_s29  ;;  %v5448_v7 = vadd.f32 %v5411_v13, %v5310_v5  ;;  %v6835_v12 = vpop.f32.mrf.mxu1  ;;  %v5793_v24 = vshll.u32 %v5547_v38, 16  ;;  %v6363_v3 = vor.u32 %v6362_v6, %v6358_v52  ;;  %v12656_v5 = vld [vmem:[#allocation95_spill] sm:$0xff]  ;;  %v12657_v11 = vld [vmem:[#allocation96_spill] sm:$0xff]  ;;  %v11431_v21 = vpop.f32.mrf.mxu2 }
 0x675   : > { %v11414_v8 = vpop.f32.mrf.mxu0  ;;  %v6836_v41 = vadd.f32 %v6835_v12, %v6732_v61  ;;  %v4051_v57 = vadd.f32 %v12656_v5, %v3880_v25  ;;  %v3885_v13 = vadd.f32 %v12658_v40, %v12657_v11  ;;  %v6367_v61 = vrot.slane %v6365_v32, 1  ;;  %v12659_v38 = vld [vmem:[#allocation99_spill] sm:$0xff] }
 0x676   : > { %v5792_v51 = vrot.slane %v5790_v34, 7  ;;  %v5484_v31 = vadd.f32 %v11274_v15, %v5448_v7  ;;  %7164 = vrot.lane.b32.xlu2 %v4117_v33, %s12419_s29  ;;  %v4118_v34 = vmax.f32 %v4086_v53, 0.0  ;;  %v5971_v7 = vld [vmem:[#allocation2 + $0xb4] sm:$0xf]  ;;  %v5313_v6 = vadd.f32 %v11337_v2, %v11362_v28 }
 0x677   : > { %v11426_v58 = vadd.f32 %v6942_v29, %v6836_v41  ;;  %7979 = vmatmul.msk.bf16.gmra.mxu1 %vm6686_vm9, %v11302_v35  ;;  %v4053_v12 = vadd.f32 %v12659_v38, %v3885_v13  ;;  %v6368_v25 = vsel %vm3237_vm15, %v6363_v3, %v6367_v61  ;;  %v4087_v41 = vadd.f32 %v11226_v62, %v4051_v57  ;;  %v8294_v57 = vld [vmem:[#allocation2 + $0xa8] sm:$0xe] }
 0x678   : > { %v5795_v23 = vor.u32 %v5793_v24, %v5792_v51  ;;  %v5516_v42 = vmax.f32 %v5484_v31, 0.0  ;;  %v6584_v32 = vpop.permute.xlu0 %6583 }
 0x679   : > { %v4089_v40 = vadd.f32 %v11226_v62, %v4053_v12  ;;  %v4119_v38 = vmax.f32 %v4087_v41, 0.0 }
 0x67a   : > { %v5972_v33 = vsel %vm10735_vm11, %v5795_v23, %v5971_v7  ;;  %v5548_v29 = vpack.c.bf16 %v5516_v42, %v5516_v42  ;;  %v6440_v52 = vpop.permute.xlu1 %6439  ;;  %v8293_v35 = vld [vmem:[#allocation2 + $0xa8] sm:$0xf0] }
 0x67b   : > { %5973 = vst [vmem:[#allocation2 + $0xb4] sm:$0xf] %v5972_v33  ;;  %v6620_v53 = vsel %vm3671_vm3, %v11208_v27, %v6440_v52  ;;  %6443 = vrot.lane.b32.xlu1 %v6368_v25, %s12419_s29  ;;  %v5414_v24 = vpop.f32.mrf.mxu3  ;;  %v6035_v31 = vld [vmem:[#allocation2 + $0xb0] sm:$0x1]  ;;  %v8295_v23 = vor.u32 %v8294_v57, %v8293_v35  ;;  %v4121_v25 = vmax.f32 %v4089_v40, 0.0 }
 0x67c   : > { %v5798_v2 = vshrl.u32 %v5548_v29, 16  ;;  %7166 = vrot.lane.b32.xlu0 %v4118_v34, %s12419_s29  ;;  %v5449_v28 = vadd.f32 %v5414_v24, %v5313_v6  ;;  %v11443_v11 = vpop.f32.mrf.mxu1  ;;  %v11446_v3 = vsel %vm6633_vm8, %v6620_v53, %v6584_v32  ;;  %v6179_v13 = vunpack.c.l.b16 %v6035_v31  ;;  %v11452_v34 = vld [vmem:[#allocation2 + $0xa8] sm:$0xff]   ;;  %v5975_v35 = vld [vmem:[#allocation2 + $0xbc] sm:$0x1] }
 0x67d   : > { %v6737_v5 = vpop.f32.mrf.mxu0  ;;  %v5801_v42 = vshll.u32 %v5548_v29, 16  ;;  %v5796_v6 = vrot.slane %v5792_v51, 4  ;;  %v6549_v29 = vrot.slane %v8295_v23, 1  ;;  %v6372_v24 = vshll.u32 %v11452_v34, 16 }
 0x67e   : > { %v5800_v27 = vrot.slane %v5798_v2, 7  ;;  %v5485_v61 = vadd.f32 %v11274_v15, %v5449_v28  ;;  %v6197_v7 = vpack.c.b16 %v6179_v13, %v6179_v13  ;;  %v5315_v31 = vadd.f32 %v11366_v55, %v11390_v44 }
 0x67f   : > { %8003 = vmatmul.msk.bf16.gmra.mxu2 %vm6686_vm9, %v11446_v3 }
 0x680   : > { %7960 = vmatmul.msk.bf16.gmra.mxu0 %vm6686_vm9, %v11394_v50  ;;  %v5803_v33 = vor.u32 %v5801_v42, %v5800_v27  ;;  %v5805_v52 = vrot.slane %v5800_v27, 4  ;;  %v5517_v12 = vmax.f32 %v5485_v61, 0.0  ;;  %v6550_v53 = vrot.slane %v6197_v7, 1 }
 0x681   : > { %v6377_v40 = vshll.u32 %v6197_v7, 16  ;;  %v4090_v27 = vadd.f32 %v11226_v62, %v10168_v39  ;;  %v6374_v61 = vrot.slane %v6372_v24, 1  ;;  %v3895_v7 = vadd.f32 %v10193_v60, %v10201_v56  ;;  %v5978_v24 = vld [vmem:[#allocation2 + $0xc0] sm:$0xf] }
 0x682   : > { %v6947_v32 = vpop.f32.mrf.mxu2  ;;  %v5804_v41 = vsel %vm8670_vm4, %v5796_v6, %v5803_v33  ;;  %v5976_v2 = vsel %vm8721_vm6, %v5805_v52, %v5975_v35  ;;  %v5549_v51 = vpack.c.bf16 %v5517_v12, %v5517_v12  ;;  %v6551_v28 = vsel %vm1519_vm13, %v6549_v29, %v6550_v53  ;;  %v8489_v39 = vld [vmem:[#allocation2 + $0xb4] sm:$0xe] }
 0x683   : > { %5974 = vst.msk [vmem:[#allocation2 + $0xb8] sm:$0xf] %vm387_vm2, %v5804_v41  ;;  %7168 = vrot.lane.b32.xlu1 %v4119_v38, %s12419_s29  ;;  %v5416_v57 = vpop.f32.mrf.mxu3  ;;  %6589 = vrot.lane.b32.xlu2 %v6551_v28, %s8513_s15  ;;  %v6370_v12 = vshrl.u32 %v11452_v34, 16  ;;  %v4057_v53 = vadd.f32 %v10459_v48, %v3895_v7 }
 0x684   : > { %5977 = vst [vmem:[#allocation2 + $0xbc] sm:$0x1] %v5976_v2  ;;  %v5807_v13 = vshrl.u32 %v5549_v51, 16  ;;  %7172 = vrot.lane.b32.xlu0 %v4121_v25, %s12419_s29  ;;  %v5450_v55 = vadd.f32 %v5416_v57, %v5315_v31  ;;  %v6840_v23 = vpop.f32.mrf.mxu1  ;;  %v5810_v6 = vshll.u32 %v5549_v51, 16  ;;  %v6379_v25 = vrot.slane %v6377_v40, 1  ;;  %v12660_v40 = vld [vmem:[#allocation97_spill] sm:$0xff] }
 0x685   : > { %v11468_v44 = vpop.f32.mrf.mxu0  ;;  %v6841_v42 = vadd.f32 %v6840_v23, %v6737_v5  ;;  %v4122_v5 = vmax.f32 %v4090_v27, 0.0  ;;  %v4088_v20 = vadd.f32 %v11226_v62, %v12660_v40 }
 0x686   : > { %v5809_v38 = vrot.slane %v5807_v13, 7  ;;  %v5486_v33 = vadd.f32 %v11274_v15, %v5450_v55  ;;  %v6375_v15 = vor.u32 %v6374_v61, %v6370_v12  ;;  %v4093_v13 = vadd.f32 %v11226_v62, %v4057_v53  ;;  %v12661_v61 = vld [vmem:[#allocation100_spill] sm:$0xff] }
 0x687   : > { %v11475_v52 = vadd.f32 %v6947_v32, %v6841_v42  ;;  %7980 = vmatmul.msk.bf16.gmra.mxu1 %vm6686_vm9, %v11343_v45 }
 0x688   : > { %v5812_v35 = vor.u32 %v5810_v6, %v5809_v38  ;;  %v5518_v29 = vmax.f32 %v5486_v33, 0.0  ;;  %v6380_v41 = vsel %vm3237_vm15, %v6375_v15, %v6379_v25  ;;  %v12662_v6 = vld [vmem:[#allocation98_spill] sm:$0xff]  ;;  %v5813_v25 = vrot.slane %v5809_v38, 4  ;;  %v12663_v15 = vld [vmem:[#allocation101_spill] sm:$0xff] }
 0x689   : > { %v3890_v33 = vadd.f32 %v12662_v6, %v12661_v61  ;;  %v4128_v61 = vmax.f32 %v4096_v47, 0.0 }
 0x68a   : > { %v11481_v31 = vpop.f32.mrf.mxu2  ;;  %v5979_v60 = vsel %vm10735_vm11, %v5812_v35, %v5978_v24  ;;  %v5550_v56 = vpack.c.bf16 %v5518_v29, %v5518_v29  ;;  %v11485_v32 = vld [vmem:[#allocation2 + $0xb4] sm:$0xff]   ;;  %v4120_v24 = vmax.f32 %v4088_v20, 0.0 }
 0x68b   : > { %v8488_v45 = vld [vmem:[#allocation2 + $0xb4] sm:$0xf0]  ;;  %5980 = vst [vmem:[#allocation2 + $0xc0] sm:$0xf] %v5979_v60  ;;  %7174 = vrot.lane.b32.xlu1 %v4122_v5, %s12419_s29  ;;  %v6036_v2 = vld [vmem:[#allocation2 + $0xbc] sm:$0x1]  ;;  %6445 = vrot.lane.b32.xlu2 %v6380_v41, %s12419_s29  ;;  %v4055_v53 = vadd.f32 %v12663_v15, %v3890_v33 }
 0x68c   : > { %v5815_v51 = vshrl.u32 %v5550_v56, 16  ;;  %v11490_v28 = vpop.f32.mrf.mxu1  ;;  %v6180_v57 = vunpack.c.l.b16 %v6036_v2  ;;  %v8490_v55 = vor.u32 %v8489_v39, %v8488_v45  ;;  %v5818_v27 = vshll.u32 %v5550_v56, 16  ;;  %v5982_v60 = vld [vmem:[#allocation2 + $0xc8] sm:$0x1] }
 0x68d   : > { %v6742_v48 = vpop.f32.mrf.mxu0  ;;  %v6384_v12 = vshll.u32 %v11485_v32, 16  ;;  %v4125_v39 = vmax.f32 %v4093_v13, 0.0  ;;  %v4091_v20 = vadd.f32 %v11226_v62, %v4055_v53  ;;  %v3900_v53 = vadd.f32 %v10457_v37, %v10465_v59 }
 0x68e   : > { %v5817_v23 = vrot.slane %v5815_v51, 7  ;;  %v6198_v42 = vpack.c.b16 %v6180_v57, %v6180_v57  ;;  %v6552_v7 = vrot.slane %v8490_v55, 1  ;;  %v6382_v57 = vshrl.u32 %v11485_v32, 16 }
 0x68f   : > { %v6386_v51 = vrot.slane %v6384_v12, 1  ;;  %v4123_v33 = vmax.f32 %v4091_v20, 0.0 }
 0x690   : > { %7961 = vmatmul.msk.bf16.gmra.mxu0 %vm6686_vm9, %v11446_v3  ;;  %v5820_v35 = vor.u32 %v5818_v27, %v5817_v23  ;;  %v5822_v29 = vrot.slane %v5817_v23, 4  ;;  %v6553_v5 = vrot.slane %v6198_v42, 1  ;;  %v6389_v26 = vshll.u32 %v6198_v42, 16 }
 0x691   : > { %v6387_v55 = vor.u32 %v6386_v51, %v6382_v57  ;;  %v4059_v51 = vadd.f32 %v10493_v22, %v3900_v53  ;;  %v12666_v53 = vld [vmem:[#allocation108_spill] sm:$0xff] }
 0x692   : > { %v6952_v56 = vpop.f32.mrf.mxu2  ;;  %v5821_v45 = vsel %vm8670_vm4, %v5813_v25, %v5820_v35  ;;  %v5983_v41 = vsel %vm8721_vm6, %v5822_v29, %v5982_v60  ;;  %v6554_v2 = vsel %vm1519_vm13, %v6552_v7, %v6553_v5  ;;  %v6391_v27 = vrot.slane %v6389_v26, 1  ;;  %v12664_v35 = vld [vmem:[#allocation102_spill] sm:$0xff] }
 0x693   : > { %5981 = vst.msk [vmem:[#allocation2 + $0xc4] sm:$0xf] %vm387_vm2, %v5821_v45  ;;  %7180 = vrot.lane.b32.xlu1 %v4125_v39, %s12419_s29  ;;  %6591 = vrot.lane.b32.xlu0 %v6554_v2, %s8513_s15  ;;  %v4092_v29 = vadd.f32 %v11226_v62, %v12664_v35  ;;  %v3905_v39 = vadd.f32 %v10499_v46, %v10501_v1 }
 0x694   : > { %5984 = vst [vmem:[#allocation2 + $0xc8] sm:$0x1] %v5983_v41  ;;  %7170 = vrot.lane.b32.xlu2 %v4120_v24, %s12419_s29  ;;  %v6845_v38 = vpop.f32.mrf.mxu1  ;;  %v6392_v42 = vsel %vm3237_vm15, %v6387_v55, %v6391_v27  ;;  %v4094_v24 = vadd.f32 %v11226_v62, %v10484_v9  ;;  %v4095_v46 = vadd.f32 %v11226_v62, %v4059_v51 }
 0x695   : > { %v6846_v40 = vadd.f32 %v6845_v38, %v6742_v48  ;;  %v11514_v13 = vpop.f32.mrf.mxu0  ;;  %v8297_v48 = vld [vmem:[#allocation2 + $0xc0] sm:$0xe]  ;;  %v4124_v2 = vmax.f32 %v4092_v29, 0.0  ;;  %v4061_v57 = vadd.f32 %v10516_v36, %v3905_v39  ;;  %v3910_v55 = vadd.f32 %v10514_v19, %v10521_v63 }
 0x696   : > { %v4126_v38 = vmax.f32 %v4094_v24, 0.0  ;;  %v4100_v29 = vadd.f32 %v11226_v62, %v10542_v10 }
 0x697   : > { %v11516_v23 = vadd.f32 %v6952_v56, %v6846_v40  ;;  %7981 = vmatmul.msk.bf16.gmra.mxu1 %vm6686_vm9, %v11394_v50  ;;  %v4097_v22 = vadd.f32 %v11226_v62, %v4061_v57  ;;  %v12670_v57 = vld [vmem:[#allocation116_spill] sm:$0xff] }
 0x69a   : > { %v11520_v6 = vpop.f32.mrf.mxu2  ;;  %v8296_v7 = vld [vmem:[#allocation2 + $0xc0] sm:$0xf0] }
 0x69b   : > { %7186 = vrot.lane.b32.xlu1 %v4128_v61, %s12419_s29  ;;  %6447 = vrot.lane.b32.xlu0 %v6392_v42, %s12419_s29  ;;  %v6037_v18 = vld [vmem:[#allocation2 + $0xc8] sm:$0x1]  ;;  %v8298_v50 = vor.u32 %v8297_v48, %v8296_v7  ;;  %v11530_v5 = vld [vmem:[#allocation2 + $0xc0] sm:$0xff]   ;;  %v6452_v40 = vpop.permute.xlu2 %6451  ;;  %v4063_v42 = vadd.f32 %v10527_v54, %v3910_v55  ;;  %v4129_v7 = vmax.f32 %v4097_v22, 0.0 }
 0x69c   : > { %7176 = vrot.lane.b32.xlu2 %v4123_v33, %s12419_s29  ;;  %v11526_v12 = vpop.f32.mrf.mxu1  ;;  %v6181_v25 = vunpack.c.l.b16 %v6037_v18  ;;  %v6396_v41 = vshll.u32 %v11530_v5, 16  ;;  %v6394_v36 = vshrl.u32 %v11530_v5, 16  ;;  %v4127_v33 = vmax.f32 %v4095_v46, 0.0  ;;  %v12672_v22 = vld [vmem:[#allocation69_spill] sm:$0xff] }
 0x69d   : > { %v6747_v60 = vpop.f32.mrf.mxu0  ;;  %v6555_v56 = vrot.slane %v8298_v50, 1  ;;  %v6632_v19 = vsel %vm3671_vm3, %v11269_v0, %v6452_v40  ;;  %v4099_v54 = vadd.f32 %v11226_v62, %v4063_v42  ;;  %v12674_v42 = vld [vmem:[#allocation62_spill] sm:$0xff] }
 0x69e   : > { %v6199_v15 = vpack.c.b16 %v6181_v25, %v6181_v25  ;;  %v6398_v59 = vrot.slane %v6396_v41, 1 }
 0x6a0   : > { %v6556_v45 = vrot.slane %v6199_v15, 1  ;;  %v6401_v47 = vshll.u32 %v6199_v15, 16  ;;  %v6399_v61 = vor.u32 %v6398_v59, %v6394_v36  ;;  %v12665_v15 = vld [vmem:[#allocation109_spill] sm:$0xff]  ;;  %v12673_v36 = vld [vmem:[#allocation118_spill] sm:$0xff] }
 0x6a1   : > { %v3915_v0 = vadd.f32 %v12666_v53, %v12665_v15  ;;  %v12680_v15 = vld [vmem:[#allocation9_spill] sm:$0xff] }
 0x6a2   : > { %v6957_v26 = vpop.f32.mrf.mxu2  ;;  %v6557_v9 = vsel %vm1519_vm13, %v6555_v56, %v6556_v45  ;;  %v6403_v20 = vrot.slane %v6401_v47, 1  ;;  %v12668_v56 = vld [vmem:[#allocation113_spill] sm:$0xff] }
 0x6a3   : > { %7178 = vrot.lane.b32.xlu0 %v4124_v2, %s12419_s29  ;;  %6593 = vrot.lane.b32.xlu1 %v6557_v9, %s8513_s15  ;;  %v12669_v2 = vld [vmem:[#allocation111_spill] sm:$0xff] }
 0x6a4   : > { %7182 = vrot.lane.b32.xlu2 %v4126_v38, %s12419_s29  ;;  %v6850_v37 = vpop.f32.mrf.mxu1  ;;  %v6404_v48 = vsel %vm3237_vm15, %v6399_v61, %v6403_v20  ;;  %v4065_v51 = vadd.f32 %v12669_v2, %v3915_v0  ;;  %v4132_v38 = vmax.f32 %v4100_v29, 0.0  ;;  %v3925_v20 = vadd.f32 %v12673_v36, %v12672_v22  ;;  %v12679_v29 = vld [vmem:[#allocation77_spill] sm:$0xff]  ;;  %v12681_v0 = vld [vmem:[#allocation78_spill] sm:$0xff] }
 0x6a5   : > { %v6851_v1 = vadd.f32 %v6850_v37, %v6747_v60  ;;  %v6749_v18 = vpop.f32.mrf.mxu0  ;;  %v12667_v60 = vld [vmem:[#allocation125_spill] sm:$0xff]  ;;  %v12671_v37 = vld [vmem:[#allocation114_spill] sm:$0xff]  ;;  %v3933_v53 = vadd.f32 %v12680_v15, %v12679_v29 }
 0x6a6   : > { %v3920_v45 = vadd.f32 %v12668_v56, %v12667_v60  ;;  %v4101_v47 = vadd.f32 %v11226_v62, %v4065_v51  ;;  %v4102_v59 = vadd.f32 %v11226_v62, %v12671_v37  ;;  %v12682_v60 = vld [vmem:[#allocation123_spill] sm:$0xff]  ;;  %v12685_v37 = vld [vmem:[#allocation80_spill] sm:$0xff]  ;;  %v12691_v29 = vld [vmem:[#allocation10_spill] sm:$0xff] }
 0x6a7   : > { %v11550_v27 = vadd.f32 %v6957_v26, %v6851_v1  ;;  %7982 = vmatmul.msk.bf16.gmra.mxu1 %vm6686_vm9, %v11446_v3  ;;  %v4098_v3 = vadd.f32 %v11226_v62, %v10525_v16  ;;  %v4131_v16 = vmax.f32 %v4099_v54, 0.0  ;;  %v12677_v54 = vld [vmem:[#allocation75_spill] sm:$0xff]  ;;  %v3935_v56 = vadd.f32 %v12682_v60, %v12681_v0 }
 0x6a8   : > { %v6596_v35 = vpop.permute.xlu2 %6595  ;;  %v4067_v26 = vadd.f32 %v12670_v57, %v3920_v45  ;;  %v4133_v61 = vmax.f32 %v4101_v47, 0.0  ;;  %v4072_v2 = vadd.f32 %v11288_v43, %v3933_v53  ;;  %v12684_v47 = vld [vmem:[#allocation126_spill] sm:$0xff] }
 0x6a9   : > { %v11567_v24 = vsel %vm6633_vm8, %v6632_v19, %v6596_v35  ;;  %v4130_v41 = vmax.f32 %v4098_v3, 0.0 }
 0x6aa   : > { %v6959_v63 = vpop.f32.mrf.mxu2  ;;  %v4103_v1 = vadd.f32 %v11226_v62, %v4067_v26 }
 0x6ab   : > { %7184 = vrot.lane.b32.xlu0 %v4127_v33, %s12419_s29  ;;  %6449 = vrot.lane.b32.xlu1 %v6404_v48, %s12419_s29  ;;  %v4134_v33 = vmax.f32 %v4102_v59, 0.0  ;;  %v12675_v48 = vld [vmem:[#allocation117_spill] sm:$0xff]  ;;  %v12686_v59 = vld [vmem:[#allocation127_spill] sm:$0xff] }
 0x6ac   : > { %7188 = vrot.lane.b32.xlu2 %v4129_v7, %s12419_s29  ;;  %v6852_v25 = vpop.f32.mrf.mxu1  ;;  %v4069_v7 = vadd.f32 %v12674_v42, %v3925_v20  ;;  %v4104_v19 = vadd.f32 %v11226_v62, %v12675_v48  ;;  %v11623_v20 = vld [vmem:[%s12336_s10] ss:$0 sm:$0xff] }
 0x6ad   : > { %v6853_v50 = vadd.f32 %v6852_v25, %v6749_v18  ;;  %v6752_v10 = vpop.f32.mrf.mxu0  ;;  %v4135_v18 = vmax.f32 %v4103_v1, 0.0  ;;  %v12676_v25 = vld [vmem:[#allocation121_spill] sm:$0xff] }
 0x6ae   : > { %v4106_v3 = vadd.f32 %v11226_v62, %v12676_v25  ;;  %v4136_v45 = vmax.f32 %v4104_v19, 0.0  ;;  %v11630_v19 = vpop.permute.xlu1 %7156 }
 0x6af   : > { %v11571_v39 = vadd.f32 %v6959_v63, %v6853_v50  ;;  %v4105_v63 = vadd.f32 %v11226_v62, %v4069_v7  ;;  %v12678_v50 = vld [vmem:[#allocation74_spill] sm:$0xff]  ;;  %v8361_v62 = vld [vmem:[%s12330_s4] ss:$0 sm:$0xff]  ;;  %v12687_v7 = vld [vmem:[#allocation104_spill] sm:$0xff] }
 0x6b0   : > { %v3930_v35 = vadd.f32 %v12678_v50, %v12677_v54  ;;  %v4138_v51 = vmax.f32 %v4106_v3, 0.0  ;;  %v12689_v3 = vld [vmem:[#allocation105_spill] sm:$0xff] }
 0x6b1   : > { %v2354_v54 = vadd.f32 %v11623_v20, %v12689_v3  ;;  %v12690_v50 = vld [vmem:[#allocation37_spill] sm:$0xff]  ;;  %v12698_v3 = vld [vmem:[#allocation107_spill] sm:$0xff] }
 0x6b2   : > { %v6962_v40 = vpop.f32.mrf.mxu2 }
 0x6b3   : > { %7190 = vrot.lane.b32.xlu0 %v4130_v41, %s12419_s29  ;;  %7192 = vrot.lane.b32.xlu1 %v4131_v16, %s12419_s29  ;;  %v4137_v41 = vmax.f32 %v4105_v63, 0.0  ;;  %v4071_v16 = vadd.f32 %v11264_v4, %v3930_v35  ;;  %v12683_v4 = vld [vmem:[#allocation79_spill] sm:$0xff]  ;;  %v2359_v35 = vadd.f32 %v11623_v20, %v12690_v50  ;;  %v12699_v50 = vld [vmem:[#allocation112_spill] sm:$0xff] }
 0x6b4   : > { %7194 = vrot.lane.b32.xlu2 %v4132_v38, %s12419_s29  ;;  %v6855_v9 = vpop.f32.mrf.mxu1  ;;  %v4073_v38 = vadd.f32 %v11309_v49, %v3935_v56  ;;  %v3938_v43 = vadd.f32 %v12684_v47, %v12683_v4  ;;  %v3940_v49 = vadd.f32 %v12686_v59, %v12685_v37  ;;  %v12688_v63 = vld [vmem:[#allocation103_spill] sm:$0xff] }
 0x6b5   : > { %v6856_v46 = vadd.f32 %v6855_v9, %v6752_v10  ;;  %v4107_v26 = vadd.f32 %v8361_v62, %v4071_v16  ;;  %v4108_v10 = vadd.f32 %v8361_v62, %v4072_v2  ;;  %v2349_v25 = vadd.f32 %v11623_v20, %v12688_v63  ;;  %v11651_v16 = vpop.f32.mrf.mxu0  ;;  %v12692_v2 = vld [vmem:[#allocation46_spill] sm:$0xff] }
 0x6b6   : > { %v4109_v9 = vadd.f32 %v8361_v62, %v4073_v38  ;;  %v4075_v22 = vadd.f32 %v11359_v17, %v3940_v49  ;;  %v12693_v38 = vld [vmem:[#allocation38_spill] sm:$0xff] }
 0x6b7   : > { %v11586_v55 = vadd.f32 %v6962_v40, %v6856_v46  ;;  %v4139_v46 = vmax.f32 %v4107_v26, 0.0  ;;  %v4140_v1 = vmax.f32 %v4108_v10, 0.0  ;;  %v4074_v40 = vadd.f32 %v11327_v14, %v3938_v43  ;;  %v12694_v26 = vld [vmem:[#allocation40_spill] sm:$0xff] }
 0x6b8   : > { %v4141_v36 = vmax.f32 %v4109_v9, 0.0  ;;  %v4111_v42 = vadd.f32 %v8361_v62, %v4075_v22  ;;  %v2351_v14 = vadd.f32 %v11623_v20, %v12687_v7  ;;  %v2428_v56 = vmax.f32 %v2349_v25, 0.0 }
 0x6b9   : > { %v2366_v10 = vadd.f32 %v11623_v20, %v12694_v26 }
 0x6ba   : > { %v2429_v48 = vmax.f32 %v2351_v14, 0.0  ;;  %v11670_v49 = vpop.f32.mrf.mxu2 }
 0x6bb   : > { %7196 = vrot.lane.b32.xlu0 %v4133_v61, %s12419_s29  ;;  %7198 = vrot.lane.b32.xlu1 %v4134_v33, %s12419_s29  ;;  %v4110_v33 = vadd.f32 %v8361_v62, %v4074_v40  ;;  %v11658_v62 = vpop.permute.xlu1 %7162  ;;  %v2435_v59 = vmax.f32 %v2366_v10, 0.0  ;;  %v12696_v40 = vld [vmem:[#allocation106_spill] sm:$0xff] }
 0x6bc   : > { %7200 = vrot.lane.b32.xlu2 %v4135_v18, %s12419_s29  ;;  %v4143_v18 = vmax.f32 %v4111_v42, 0.0  ;;  %v11662_v9 = vpop.f32.mrf.mxu1  ;;  %v2369_v22 = vadd.f32 %v11623_v20, %v12696_v40 }
 0x6bd   : > { %v4142_v17 = vmax.f32 %v4110_v33, 0.0  ;;  %v12697_v33 = vld [vmem:[#allocation110_spill] sm:$0xff]  ;;  %v11679_v7 = vpop.f32.mrf.mxu0 }
 0x6be   : > { %v2374_v42 = vadd.f32 %v11623_v20, %v12697_v33 }
 0x6c0   : > { %v6442_v57 = vpop.permute.xlu2 %6441  ;;  %v2438_v25 = vmax.f32 %v2374_v42, 0.0 }
 0x6c1   : > { %v6622_v15 = vsel %vm3671_vm3, %v12691_v29, %v6442_v57  ;;  %v2361_v57 = vadd.f32 %v11623_v20, %v12693_v38 }
 0x6c3   : > { %7202 = vrot.lane.b32.xlu0 %v4136_v45, %s12419_s29  ;;  %7204 = vrot.lane.b32.xlu1 %v4137_v41, %s12419_s29  ;;  %v2430_v45 = vmax.f32 %v2354_v54, 0.0  ;;  %v2432_v41 = vmax.f32 %v2359_v35, 0.0  ;;  %v2433_v37 = vmax.f32 %v2361_v57, 0.0  ;;  %v2371_v54 = vadd.f32 %v11623_v20, %v12698_v3 }
 0x6c4   : > { %7206 = vrot.lane.b32.xlu2 %v4138_v51, %s12419_s29  ;;  %v2356_v51 = vadd.f32 %v11623_v20, %v12692_v2  ;;  %v2376_v35 = vadd.f32 %v11623_v20, %v12699_v50 }
 0x6c5   : > { %v11701_v2 = vpop.f32.mrf.mxu0 }
 0x6c6   : > { %v2431_v43 = vmax.f32 %v2356_v51, 0.0  ;;  %v2437_v51 = vmax.f32 %v2371_v54, 0.0  ;;  %v2439_v38 = vmax.f32 %v2376_v35, 0.0  ;;  %v12705_v54 = vld [vmem:[#allocation120_spill] sm:$0xff] }
 0x6c7   : > { %v2386_v50 = vadd.f32 %v11623_v20, %v12705_v54  ;;  %v12706_v35 = vld [vmem:[#allocation68_spill] sm:$0xff] }
 0x6c8   : > { %v11625_v61 = vpop.permute.xlu2 %7158 }
 0x6cb   : > { %7208 = vrot.lane.b32.xlu0 %v4139_v46, %s12419_s29  ;;  %7210 = vrot.lane.b32.xlu1 %v4140_v1, %s12419_s29  ;;  %v12695_v46 = vld [vmem:[#allocation39_spill] sm:$0xff] }
 0x6cc   : > { %7212 = vrot.lane.b32.xlu2 %v4141_v36, %s12419_s29  ;;  %v2364_v1 = vadd.f32 %v11623_v20, %v12695_v46 }
 0x6d0   : > { %v11643_v53 = vpop.permute.xlu2 %7164 }
 0x6d3   : > { %7214 = vrot.lane.b32.xlu0 %v4142_v17, %s12419_s29  ;;  %7216 = vrot.lane.b32.xlu1 %v4143_v18, %s12419_s29  ;;  %v11681_v17 = vpop.f32.mrf.mxu1  ;;  %v2434_v18 = vmax.f32 %v2364_v1, 0.0  ;;  %v12703_v1 = vld [vmem:[#allocation66_spill] sm:$0xff] }
 0x6d4   : > { %7412 = vrot.lane.b32.xlu2 %v2429_v48, %s8514_s16  ;;  %v2436_v48 = vmax.f32 %v2369_v22, 0.0  ;;  %v2389_v40 = vadd.f32 %v11623_v20, %v12703_v1 }
 0x6d6   : > { %v6586_v0 = vpop.permute.xlu0 %6585 }
 0x6d7   : > { %v6659_v60 = vsel %vm6633_vm8, %v6622_v15, %v6586_v0  ;;  %v12700_v15 = vld [vmem:[#allocation59_spill] sm:$0xff] }
 0x6d8   : > { %7962 = vmatmul.msk.bf16.gmra.mxu0 %vm6686_vm9, %v6659_v60  ;;  %7983 = vmatmul.msk.bf16.gmra.mxu1 %vm6686_vm9, %v6659_v60  ;;  %v2381_v0 = vadd.f32 %v11623_v20, %v12700_v15 }
 0x6d9   : > { %8004 = vmatmul.msk.bf16.gmra.mxu2 %vm6686_vm9, %v6659_v60  ;;  %v11694_v60 = vpop.f32.mrf.mxu2 }
 0x6da   : > { %v2441_v57 = vmax.f32 %v2381_v0, 0.0 }
 0x6db   : > { %7414 = vrot.lane.b32.xlu0 %v2430_v45, %s8514_s16  ;;  %7410 = vrot.lane.b32.xlu1 %v2428_v56, %s8514_s16  ;;  %v11706_v26 = vpop.f32.mrf.mxu1 }
 0x6dc   : > { %7418 = vrot.lane.b32.xlu2 %v2432_v41, %s8514_s16 }
 0x6dd   : > { %v11664_v4 = vpop.permute.xlu2 %6589 }
 0x6de   : > { %v11666_v47 = vpop.permute.xlu0 %7154 }
 0x6e3   : > { %7420 = vrot.lane.b32.xlu0 %v2433_v37, %s8514_s16  ;;  %7416 = vrot.lane.b32.xlu1 %v2431_v43, %s8514_s16  ;;  %v12702_v37 = vld [vmem:[#allocation119_spill] sm:$0xff] }
 0x6e4   : > { %7424 = vrot.lane.b32.xlu2 %v2435_v59, %s8514_s16  ;;  %v2384_v59 = vadd.f32 %v11623_v20, %v12702_v37 }
 0x6e5   : > { %v6588_v36 = vpop.permute.xlu1 %6587  ;;  %v6446_v14 = vpop.permute.xlu2 %6445 }
 0x6e6   : > { %v11683_v63 = vpop.permute.xlu0 %7160  ;;  %v2442_v42 = vmax.f32 %v2384_v59, 0.0  ;;  %v6626_v3 = vsel %vm3671_vm3, %v11452_v34, %v6446_v14  ;;  %v2443_v14 = vmax.f32 %v2386_v50, 0.0  ;;  %v12710_v59 = vld [vmem:[#allocation73_spill] sm:$0xff] }
 0x6e7   : > { %v6663_v34 = vsel %vm6633_vm8, %v6626_v3, %v11664_v4  ;;  %v12709_v4 = vld [vmem:[#allocation72_spill] sm:$0xff]  ;;  %v2399_v1 = vadd.f32 %v11623_v20, %v12710_v59 }
 0x6e8   : > { %v2394_v37 = vadd.f32 %v11623_v20, %v12709_v4 }
 0x6ea   : > { %v2446_v50 = vmax.f32 %v2394_v37, 0.0  ;;  %v12716_v37 = vld [vmem:[#allocation51_spill] sm:$0xff] }
 0x6eb   : > { %7426 = vrot.lane.b32.xlu0 %v2436_v48, %s8514_s16  ;;  %7422 = vrot.lane.b32.xlu1 %v2434_v18, %s8514_s16  ;;  %v2444_v18 = vmax.f32 %v2389_v40, 0.0  ;;  %v11725_v48 = vpop.f32.mrf.mxu0  ;;  %v2411_v59 = vadd.f32 %v11623_v20, %v12716_v37 }
 0x6ec   : > { %7430 = vrot.lane.b32.xlu2 %v2438_v25, %s8514_s16  ;;  %v11729_v25 = vpop.f32.mrf.mxu1 }
 0x6ed   : > { %v6444_v29 = vpop.permute.xlu1 %6443 }
 0x6ee   : > { %v6624_v56 = vsel %vm3671_vm3, %v11384_v30, %v6444_v29  ;;  %v11698_v45 = vpop.permute.xlu2 %7170  ;;  %v11708_v10 = vpop.permute.xlu0 %7166  ;;  %v12701_v30 = vld [vmem:[#allocation115_spill] sm:$0xff]  ;;  %v2391_v29 = vadd.f32 %v11623_v20, %v12706_v35  ;;  %v2448_v35 = vmax.f32 %v2399_v1, 0.0 }
 0x6ef   : > { %v6661_v41 = vsel %vm6633_vm8, %v6624_v56, %v6588_v36  ;;  %v2379_v43 = vadd.f32 %v11623_v20, %v12701_v30  ;;  %v11723_v36 = vpop.f32.mrf.mxu2  ;;  %v12707_v56 = vld [vmem:[#allocation71_spill] sm:$0xff] }
 0x6f0   : > { %7963 = vmatmul.msk.bf16.gmra.mxu0 %vm6686_vm9, %v6661_v41  ;;  %7984 = vmatmul.msk.bf16.gmra.mxu1 %vm6686_vm9, %v6661_v41 }
 0x6f1   : > { %8005 = vmatmul.msk.bf16.gmra.mxu2 %vm6686_vm9, %v6661_v41  ;;  %v2440_v33 = vmax.f32 %v2379_v43, 0.0  ;;  %v2396_v41 = vadd.f32 %v11623_v20, %v12707_v56 }
 0x6f3   : > { %7432 = vrot.lane.b32.xlu0 %v2439_v38, %s8514_s16  ;;  %7428 = vrot.lane.b32.xlu1 %v2437_v51, %s8514_s16  ;;  %v2445_v38 = vmax.f32 %v2391_v29, 0.0  ;;  %v11755_v43 = vpop.f32.mrf.mxu0 }
 0x6f4   : > { %7436 = vrot.lane.b32.xlu2 %v2441_v57, %s8514_s16  ;;  %v2447_v57 = vmax.f32 %v2396_v41, 0.0  ;;  %v11766_v3 = vpop.f32.mrf.mxu1  ;;  %v12713_v41 = vld [vmem:[#allocation76_spill] sm:$0xff] }
 0x6f5   : > { %v11717_v46 = vpop.permute.xlu1 %7168 }
 0x6f6   : > { %v11721_v22 = vpop.permute.xlu2 %7176  ;;  %v11738_v15 = vpop.permute.xlu0 %7172 }
 0x6f7   : > { %12704 = vst [vmem:[#allocation18_spill] sm:$0xff] %v11721_v22  ;;  %v11751_v30 = vpop.f32.mrf.mxu2 }
 0x6fb   : > { %7438 = vrot.lane.b32.xlu0 %v2442_v42, %s8514_s16  ;;  %7434 = vrot.lane.b32.xlu1 %v2440_v33, %s8514_s16  ;;  %v12711_v42 = vld [vmem:[#allocation122_spill] sm:$0xff]  ;;  %v11783_v1 = vpop.f32.mrf.mxu0 }
 0x6fc   : > { %7442 = vrot.lane.b32.xlu2 %v2444_v18, %s8514_s16  ;;  %v2404_v18 = vadd.f32 %v11623_v20, %v12711_v42 }
 0x6fd   : > { %v11740_v0 = vpop.permute.xlu1 %7174 }
 0x6fe   : > { %v11744_v51 = vpop.permute.xlu2 %7182  ;;  %v2450_v29 = vmax.f32 %v2404_v18, 0.0 }
 0x6ff   : > { %12708 = vst [vmem:[#allocation12_spill] sm:$0xff] %v11744_v51  ;;  %v11772_v56 = vpop.f32.mrf.mxu2 }
 0x700   : > { %7964 = vmatmul.msk.bf16.gmra.mxu0 %vm6686_vm9, %v6663_v34  ;;  %7985 = vmatmul.msk.bf16.gmra.mxu1 %vm6686_vm9, %v6663_v34 }
 0x701   : > { %8006 = vmatmul.msk.bf16.gmra.mxu2 %vm6686_vm9, %v6663_v34  ;;  %v2401_v34 = vadd.f32 %v11623_v20, %v12713_v41 }
 0x703   : > { %7444 = vrot.lane.b32.xlu0 %v2445_v38, %s8514_s16  ;;  %7440 = vrot.lane.b32.xlu1 %v2443_v14, %s8514_s16  ;;  %v12714_v14 = vld [vmem:[#allocation124_spill] sm:$0xff] }
 0x704   : > { %7448 = vrot.lane.b32.xlu2 %v2447_v57, %s8514_s16  ;;  %v2406_v38 = vadd.f32 %v11623_v20, %v12714_v14  ;;  %v2453_v14 = vmax.f32 %v2411_v59, 0.0 }
 0x705   : > { %v11762_v40 = vpop.permute.xlu1 %7180  ;;  %v6592_v33 = vpop.permute.xlu0 %6591 }
 0x706   : > { %v11768_v54 = vpop.permute.xlu2 %7188  ;;  %v2451_v41 = vmax.f32 %v2406_v38, 0.0 }
 0x707   : > { %12712 = vst [vmem:[#allocation15_spill] sm:$0xff] %v11768_v54 }
 0x70b   : > { %7450 = vrot.lane.b32.xlu0 %v2448_v35, %s8514_s16  ;;  %7446 = vrot.lane.b32.xlu1 %v2446_v50, %s8514_s16  ;;  %v11790_v35 = vpop.f32.mrf.mxu1 }
 0x70c   : > { %7454 = vrot.lane.b32.xlu2 %v2450_v29, %s8514_s16  ;;  %v2449_v29 = vmax.f32 %v2401_v34, 0.0 }
 0x70d   : > { %v11779_v57 = vpop.permute.xlu1 %7186  ;;  %v6448_v4 = vpop.permute.xlu0 %6447 }
 0x70e   : > { %12715 = vst [vmem:[#allocation14_spill] sm:$0xff] %v11779_v57  ;;  %v11785_v42 = vpop.permute.xlu2 %7194  ;;  %v6628_v18 = vsel %vm3671_vm3, %v11485_v32, %v6448_v4  ;;  %v12718_v32 = vld [vmem:[#allocation50_spill] sm:$0xff]  ;;  %v12719_v4 = vld [vmem:[#allocation53_spill] sm:$0xff] }
 0x70f   : > { %12717 = vst [vmem:[#allocation17_spill] sm:$0xff] %v11785_v42  ;;  %v6665_v50 = vsel %vm6633_vm8, %v6628_v18, %v6592_v33  ;;  %v2409_v33 = vadd.f32 %v11623_v20, %v12718_v32  ;;  %v2414_v37 = vadd.f32 %v11623_v20, %v12719_v4  ;;  %v6838_v18 = vadd.f32 %v11443_v11, %v11414_v8  ;;  %v11818_v8 = vld [vmem:[%s12334_s8] ss:$0 sm:$0xff] }
 0x710   : > { %7965 = vmatmul.msk.bf16.gmra.mxu0 %vm6686_vm9, %v6665_v50  ;;  %7986 = vmatmul.msk.bf16.gmra.mxu1 %vm6686_vm9, %v6665_v50 }
 0x711   : > { %8007 = vmatmul.msk.bf16.gmra.mxu2 %vm6686_vm9, %v6665_v50  ;;  %v12720_v50 = vld [vmem:[#allocation55_spill] sm:$0xff]  ;;  %v2452_v42 = vmax.f32 %v2409_v33, 0.0  ;;  %v2454_v32 = vmax.f32 %v2414_v37, 0.0  ;;  %v7023_v54 = vadd.f32 %v11431_v21, %v6838_v18 }
 0x712   : > { %v2419_v59 = vadd.f32 %v11623_v20, %v12720_v50  ;;  %v12722_v50 = vld [vmem:[#allocation54_spill] sm:$0xff] }
 0x713   : > { %7456 = vrot.lane.b32.xlu0 %v2451_v41, %s8514_s16  ;;  %7452 = vrot.lane.b32.xlu1 %v2449_v29, %s8514_s16  ;;  %v11808_v41 = vpop.f32.mrf.mxu2  ;;  %v11820_v11 = vpop.f32.mrf.mxu1  ;;  %v2416_v33 = vadd.f32 %v11623_v20, %v12722_v50  ;;  %v7059_v37 = vadd.f32 %v11818_v8, %v7023_v54 }
 0x714   : > { %7460 = vrot.lane.b32.xlu2 %v2453_v14, %s8514_s16  ;;  %v11812_v14 = vpop.f32.mrf.mxu0  ;;  %v2456_v4 = vmax.f32 %v2419_v59, 0.0  ;;  %v7058_v59 = vadd.f32 %v11818_v8, %v11426_v58 }
 0x715   : > { %v11804_v34 = vpop.permute.xlu0 %7178  ;;  %v6594_v38 = vpop.permute.xlu1 %6593  ;;  %v2455_v54 = vmax.f32 %v2416_v33, 0.0  ;;  %v7091_v50 = vmax.f32 %v7059_v37, 0.0 }
 0x716   : > { %v11810_v29 = vpop.permute.xlu2 %7200  ;;  %v7090_v57 = vmax.f32 %v7058_v59, 0.0 }
 0x717   : > { %12721 = vst [vmem:[#allocation20_spill] sm:$0xff] %v11810_v29  ;;  %v6843_v29 = vadd.f32 %v11490_v28, %v11468_v44  ;;  %v7060_v28 = vadd.f32 %v11818_v8, %v11475_v52 }
 0x719   : > { %v7025_v58 = vadd.f32 %v11481_v31, %v6843_v29 }
 0x71b   : > { %7462 = vrot.lane.b32.xlu0 %v2454_v32, %s8514_s16  ;;  %7458 = vrot.lane.b32.xlu1 %v2452_v42, %s8514_s16  ;;  %v6875_v44 = vpop.f32.mrf.mxu1  ;;  %v7061_v29 = vadd.f32 %v11818_v8, %v7025_v58  ;;  %v6858_v58 = vadd.f32 %v11662_v9, %v11651_v16  ;;  %v7066_v16 = vadd.f32 %v11818_v8, %v11586_v55 }
 0x71c   : > { %7466 = vrot.lane.b32.xlu2 %v2456_v4, %s8514_s16  ;;  %v11839_v4 = vpop.f32.mrf.mxu2  ;;  %v11844_v22 = vpop.f32.mrf.mxu0 }
 0x71d   : > { %v11828_v21 = vpop.permute.xlu0 %7184  ;;  %v6450_v18 = vpop.permute.xlu1 %6449 }
 0x71e   : > { %v11834_v51 = vpop.permute.xlu2 %7206  ;;  %v6630_v42 = vsel %vm3671_vm3, %v11530_v5, %v6450_v18  ;;  %v7062_v5 = vadd.f32 %v11818_v8, %v11516_v23  ;;  %v7092_v18 = vmax.f32 %v7060_v28, 0.0 }
 0x71f   : > { %v6667_v32 = vsel %vm6633_vm8, %v6630_v42, %v6594_v38  ;;  %v6848_v38 = vadd.f32 %v11526_v12, %v11514_v13  ;;  %v7093_v42 = vmax.f32 %v7061_v29, 0.0  ;;  %v7065_v12 = vadd.f32 %v11818_v8, %v11571_v39 }
 0x720   : > { %7966 = vmatmul.msk.bf16.gmra.mxu0 %vm6686_vm9, %v6667_v32  ;;  %v7094_v59 = vmax.f32 %v7062_v5, 0.0 }
 0x721   : > { %8008 = vmatmul.msk.bf16.gmra.mxu2 %vm6686_vm9, %v6667_v32  ;;  %v6861_v32 = vadd.f32 %v11681_v17, %v11679_v7  ;;  %v7097_v29 = vmax.f32 %v7065_v12, 0.0  ;;  %v7031_v17 = vadd.f32 %v11670_v49, %v6858_v58  ;;  %v7098_v12 = vmax.f32 %v7066_v16, 0.0 }
 0x723   : > { %7284 = vrot.lane.b32.xlu0 %v7091_v50, %s8513_s15  ;;  %7464 = vrot.lane.b32.xlu1 %v2455_v54, %s8514_s16  ;;  %v7064_v50 = vadd.f32 %v11818_v8, %v11550_v27  ;;  %v6877_v28 = vpop.f32.mrf.mxu1  ;;  %v7032_v39 = vadd.f32 %v11694_v60, %v6861_v32  ;;  %v6863_v60 = vadd.f32 %v11706_v26, %v11701_v2 }
 0x724   : > { %7282 = vrot.lane.b32.xlu2 %v7090_v57, %s8513_s15  ;;  %v7027_v57 = vadd.f32 %v11520_v6, %v6848_v38  ;;  %v6982_v52 = vpop.f32.mrf.mxu2  ;;  %v11865_v23 = vpop.f32.mrf.mxu0 }
 0x725   : > { %v11855_v33 = vpop.permute.xlu0 %7190  ;;  %v11857_v31 = vpop.permute.xlu1 %7192  ;;  %v7096_v7 = vmax.f32 %v7064_v50, 0.0  ;;  %v7068_v9 = vadd.f32 %v11818_v8, %v7032_v39  ;;  %v7033_v2 = vadd.f32 %v11723_v36, %v6863_v60  ;;  %v6871_v50 = vadd.f32 %v11790_v35, %v11783_v1 }
 0x726   : > { %v11860_v37 = vpop.permute.xlu2 %7212  ;;  %v7063_v13 = vadd.f32 %v11818_v8, %v7027_v57  ;;  %v6866_v57 = vadd.f32 %v11729_v25, %v11725_v48  ;;  %v6876_v36 = vadd.f32 %v6875_v44, %v11844_v22  ;;  %v6878_v60 = vadd.f32 %v6877_v28, %v11865_v23 }
 0x727   : > { %12723 = vst [vmem:[#allocation21_spill] sm:$0xff] %v11860_v37  ;;  %v7100_v32 = vmax.f32 %v7068_v9, 0.0  ;;  %v7069_v48 = vadd.f32 %v11818_v8, %v7033_v2  ;;  %v7036_v16 = vadd.f32 %v11808_v41, %v6871_v50 }
 0x728   : > { %v7095_v38 = vmax.f32 %v7063_v13, 0.0  ;;  %v7038_v9 = vadd.f32 %v6982_v52, %v6876_v36 }
 0x72b   : > { %7290 = vrot.lane.b32.xlu0 %v7094_v59, %s8513_s15  ;;  %7286 = vrot.lane.b32.xlu1 %v7092_v18, %s8513_s15  ;;  %v7067_v59 = vadd.f32 %v11818_v8, %v7031_v17  ;;  %v6880_v13 = vpop.f32.mrf.mxu1 }
 0x72c   : > { %7288 = vrot.lane.b32.xlu2 %v7093_v42, %s8513_s15  ;;  %v6984_v27 = vpop.f32.mrf.mxu2  ;;  %v6777_v55 = vpop.f32.mrf.mxu0 }
 0x72d   : > { %v11873_v54 = vpop.permute.xlu0 %7196  ;;  %v11875_v6 = vpop.permute.xlu1 %7198 }
 0x72e   : > { %v11881_v5 = vpop.permute.xlu2 %7412 }
 0x731   : > { %8009 = vmatmul.msk.bf16.gmra.mxu2 %vm6686_vm9, %v11567_v24  ;;  %v6868_v24 = vadd.f32 %v11766_v3, %v11755_v43  ;;  %v7099_v43 = vmax.f32 %v7067_v59, 0.0  ;;  %v7034_v3 = vadd.f32 %v11751_v30, %v6866_v57  ;;  %v6881_v59 = vadd.f32 %v6880_v13, %v6777_v55 }
 0x733   : > { %7296 = vrot.lane.b32.xlu0 %v7097_v29, %s8513_s15  ;;  %7292 = vrot.lane.b32.xlu1 %v7095_v38, %s8513_s15  ;;  %v7035_v26 = vadd.f32 %v11772_v56, %v6868_v24  ;;  %v7070_v30 = vadd.f32 %v11818_v8, %v7034_v3  ;;  %v6873_v38 = vadd.f32 %v11820_v11, %v11812_v14  ;;  %v6882_v44 = vpop.f32.mrf.mxu1 }
 0x734   : > { %7294 = vrot.lane.b32.xlu2 %v7096_v7, %s8513_s15  ;;  %v6987_v29 = vpop.f32.mrf.mxu2  ;;  %v7101_v7 = vmax.f32 %v7069_v48, 0.0  ;;  %v6779_v35 = vpop.f32.mrf.mxu0  ;;  %v7072_v14 = vadd.f32 %v11818_v8, %v7036_v16  ;;  %v7074_v11 = vadd.f32 %v11818_v8, %v7038_v9 }
 0x735   : > { %v11897_v18 = vpop.permute.xlu0 %7202  ;;  %v11899_v49 = vpop.permute.xlu1 %7204  ;;  %v7071_v25 = vadd.f32 %v11818_v8, %v7035_v26  ;;  %v7102_v1 = vmax.f32 %v7070_v30, 0.0  ;;  %v7037_v22 = vadd.f32 %v11839_v4, %v6873_v38  ;;  %v6883_v24 = vadd.f32 %v6882_v44, %v6779_v35 }
 0x736   : > { %v11904_v42 = vpop.permute.xlu2 %7418  ;;  %v7106_v2 = vmax.f32 %v7074_v11, 0.0  ;;  %v7039_v26 = vadd.f32 %v6984_v27, %v6878_v60  ;;  %v7040_v48 = vadd.f32 %v6987_v29, %v6881_v59 }
 0x737   : > { %v7103_v17 = vmax.f32 %v7071_v25, 0.0  ;;  %v7073_v4 = vadd.f32 %v11818_v8, %v7037_v22 }
 0x738   : > { %v7075_v28 = vadd.f32 %v11818_v8, %v7039_v26  ;;  %v7076_v27 = vadd.f32 %v11818_v8, %v7040_v48 }
 0x739   : > { %v7105_v3 = vmax.f32 %v7073_v4, 0.0 }
 0x73a   : > { %v7107_v30 = vmax.f32 %v7075_v28, 0.0  ;;  %v7108_v29 = vmax.f32 %v7076_v27, 0.0 }
 0x73b   : > { %7302 = vrot.lane.b32.xlu0 %v7100_v32, %s8513_s15  ;;  %7298 = vrot.lane.b32.xlu1 %v7098_v12, %s8513_s15  ;;  %v7104_v32 = vmax.f32 %v7072_v14, 0.0  ;;  %v6885_v36 = vpop.f32.mrf.mxu1 }
 0x73c   : > { %7300 = vrot.lane.b32.xlu2 %v7099_v43, %s8513_s15  ;;  %v6989_v12 = vpop.f32.mrf.mxu2  ;;  %v6782_v23 = vpop.f32.mrf.mxu0 }
 0x73d   : > { %v11917_v58 = vpop.permute.xlu0 %7208  ;;  %v11919_v56 = vpop.permute.xlu1 %7210  ;;  %v7041_v43 = vadd.f32 %v6989_v12, %v6883_v24  ;;  %v6886_v22 = vadd.f32 %v6885_v36, %v6782_v23 }
 0x73e   : > { %v11924_v39 = vpop.permute.xlu2 %7424 }
 0x73f   : > { %v7077_v55 = vadd.f32 %v11818_v8, %v7041_v43 }
 0x741   : > { %v7109_v38 = vmax.f32 %v7077_v55, 0.0 }
 0x743   : > { %7308 = vrot.lane.b32.xlu0 %v7103_v17, %s8513_s15  ;;  %7304 = vrot.lane.b32.xlu1 %v7101_v7, %s8513_s15 }
 0x744   : > { %7306 = vrot.lane.b32.xlu2 %v7102_v1, %s8513_s15  ;;  %v6784_v16 = vpop.f32.mrf.mxu0  ;;  %v6887_v1 = vpop.f32.mrf.mxu1 }
 0x745   : > { %v11934_v41 = vpop.permute.xlu0 %7214  ;;  %v11936_v52 = vpop.permute.xlu1 %7216  ;;  %v6888_v12 = vadd.f32 %v6887_v1, %v6784_v16 }
 0x746   : > { %12724 = vst [vmem:[#allocation23_spill] sm:$0xff] %v11934_v41  ;;  %v11939_v57 = vpop.permute.xlu2 %7430 }
 0x747   : > { %12725 = vst [vmem:[#allocation26_spill] sm:$0xff] %v11936_v52 }
 0x74b   : > { %7314 = vrot.lane.b32.xlu0 %v7106_v2, %s8513_s15  ;;  %7310 = vrot.lane.b32.xlu1 %v7104_v32, %s8513_s15 }
 0x74c   : > { %7312 = vrot.lane.b32.xlu2 %v7105_v3, %s8513_s15  ;;  %v6890_v32 = vpop.f32.mrf.mxu1 }
 0x74d   : > { %v11946_v13 = vpop.permute.xlu0 %7414  ;;  %v11948_v25 = vpop.permute.xlu1 %7410 }
 0x74e   : > { %v11951_v50 = vpop.permute.xlu2 %7436 }
 0x753   : > { %7320 = vrot.lane.b32.xlu0 %v7109_v38, %s8513_s15  ;;  %7316 = vrot.lane.b32.xlu1 %v7107_v30, %s8513_s15 }
 0x754   : > { %7318 = vrot.lane.b32.xlu2 %v7108_v29, %s8513_s15  ;;  %v6892_v27 = vpop.f32.mrf.mxu1 }
 0x755   : > { %v11956_v7 = vpop.permute.xlu0 %7420  ;;  %v11960_v9 = vpop.permute.xlu1 %7416 }
 0x756   : > { %v11958_v17 = vpop.permute.xlu2 %7442  ;;  %v6787_v60 = vpop.f32.mrf.mxu0 }
 0x757   : > { %v6891_v16 = vadd.f32 %v6890_v32, %v6787_v60 }
 0x75c   : > { %v6992_v35 = vpop.f32.mrf.mxu2 }
 0x75d   : > { %v7042_v44 = vadd.f32 %v6992_v35, %v6886_v22  ;;  %v11962_v14 = vpop.permute.xlu0 %7426  ;;  %v11967_v4 = vpop.permute.xlu1 %7422 }
 0x75e   : > { %v11964_v11 = vpop.permute.xlu2 %7448  ;;  %v6789_v28 = vpop.f32.mrf.mxu0 }
 0x75f   : > { %v7078_v24 = vadd.f32 %v11818_v8, %v7042_v44  ;;  %v6895_v22 = vpop.f32.mrf.mxu1 }
 0x761   : > { %v7110_v59 = vmax.f32 %v7078_v24, 0.0 }
 0x763   : > { %7322 = vrot.lane.b32.xlu1 %v7110_v59, %s8513_s15 }
 0x764   : > { %v6994_v2 = vpop.f32.mrf.mxu2 }
 0x765   : > { %v7043_v26 = vadd.f32 %v6994_v2, %v6888_v12  ;;  %v11970_v43 = vpop.permute.xlu0 %7432  ;;  %v11975_v23 = vpop.permute.xlu1 %7428 }
 0x766   : > { %v11972_v3 = vpop.permute.xlu2 %7454 }
 0x767   : > { %v7079_v48 = vadd.f32 %v11818_v8, %v7043_v26  ;;  %v6893_v26 = vadd.f32 %v6892_v27, %v6789_v28  ;;  %v6897_v37 = vpop.f32.mrf.mxu1 }
 0x769   : > { %v7111_v55 = vmax.f32 %v7079_v48, 0.0 }
 0x76b   : > { %7324 = vrot.lane.b32.xlu2 %v7111_v55, %s8513_s15  ;;  %v12727_v55 = vld [vmem:[#allocation29_spill] sm:$0xff] }
 0x76d   : > { %v11978_v36 = vpop.permute.xlu0 %7438  ;;  %v11982_v38 = vpop.permute.xlu1 %7434 }
 0x76e   : > { %v11980_v30 = vpop.permute.xlu2 %7460  ;;  %v6792_v29 = vpop.f32.mrf.mxu0 }
 0x774   : > { %v6997_v1 = vpop.f32.mrf.mxu2 }
 0x775   : > { %v7044_v35 = vadd.f32 %v6997_v1, %v6891_v16  ;;  %v11984_v44 = vpop.permute.xlu0 %7444  ;;  %v11989_v12 = vpop.permute.xlu1 %7440  ;;  %v7506_v16 = vsel %vm3671_vm3, %v12727_v55, %v11666_v47  ;;  %v6896_v47 = vadd.f32 %v6895_v22, %v6792_v29  ;;  %v12728_v55 = vld [vmem:[#allocation32_spill] sm:$0xff] }
 0x776   : > { %v11986_v24 = vpop.permute.xlu2 %7466  ;;  %v6794_v48 = vpop.f32.mrf.mxu0 }
 0x777   : > { %12726 = vst [vmem:[#allocation25_spill] sm:$0xff] %v11986_v24  ;;  %v7080_v59 = vadd.f32 %v11818_v8, %v7044_v35 }
 0x779   : > { %v7112_v2 = vmax.f32 %v7080_v59, 0.0 }
 0x77b   : > { %7326 = vrot.lane.b32.xlu0 %v7112_v2, %s8513_s15 }
 0x77c   : > { %v6999_v60 = vpop.f32.mrf.mxu2 }
 0x77d   : > { %v7045_v32 = vadd.f32 %v6999_v60, %v6893_v26  ;;  %v11998_v1 = vpop.permute.xlu0 %7450  ;;  %v12002_v27 = vpop.permute.xlu1 %7446 }
 0x77e   : > { %v7283_v35 = vpop.permute.xlu2 %7282  ;;  %v6797_v60 = vpop.f32.mrf.mxu0 }
 0x77f   : > { %v7081_v52 = vadd.f32 %v11818_v8, %v7045_v32  ;;  %v7538_v28 = vsel %vm6633_vm8, %v7506_v16, %v7283_v35  ;;  %v7509_v16 = vsel %vm3671_vm3, %v12728_v55, %v11683_v63 }
 0x780   : > { %v7570_v59 = vsel %vm6686_vm9, %v7538_v28, %v11948_v25 }
 0x781   : > { %v7113_v2 = vmax.f32 %v7081_v52, 0.0  ;;  %7603 = vst.msk [vmem:[%s12006_s12] sm:$0xff] %vm7602_vm1, %v7570_v59  ;;  %v6900_v52 = vpop.f32.mrf.mxu1  ;;  %v6898_v59 = vadd.f32 %v6897_v37, %v6794_v48 }
 0x783   : > { %7328 = vrot.lane.b32.xlu1 %v7113_v2, %s8513_s15 }
 0x784   : > { %v7002_v26 = vpop.f32.mrf.mxu2 }
 0x785   : > { %v7046_v32 = vadd.f32 %v7002_v26, %v6896_v47  ;;  %v12014_v35 = vpop.permute.xlu0 %7456  ;;  %v12018_v24 = vpop.permute.xlu1 %7452  ;;  %v12729_v47 = vld [vmem:[#allocation35_spill] sm:$0xff] }
 0x786   : > { %v7289_v25 = vpop.permute.xlu2 %7288  ;;  %v7512_v26 = vsel %vm3671_vm3, %v12729_v47, %v11708_v10 }
 0x787   : > { %v7082_v28 = vadd.f32 %v11818_v8, %v7046_v32  ;;  %v7541_v41 = vsel %vm6633_vm8, %v7509_v16, %v7289_v25  ;;  %v6799_v16 = vpop.f32.mrf.mxu0 }
 0x788   : > { %v7573_v29 = vsel %vm6686_vm9, %v7541_v41, %v11960_v9 }
 0x789   : > { %v7114_v22 = vmax.f32 %v7082_v28, 0.0  ;;  %7606 = vst.msk [vmem:[%s12006_s12 + $0x18] sm:$0xff] %vm7602_vm1, %v7573_v29  ;;  %v6902_v48 = vpop.f32.mrf.mxu1  ;;  %v6901_v29 = vadd.f32 %v6900_v52, %v6797_v60 }
 0x78b   : > { %7330 = vrot.lane.b32.xlu2 %v7114_v22, %s8513_s15 }
 0x78c   : > { %v7004_v63 = vpop.f32.mrf.mxu2 }
 0x78d   : > { %v7047_v2 = vadd.f32 %v7004_v63, %v6898_v59  ;;  %v12028_v32 = vpop.permute.xlu0 %7462  ;;  %v12032_v9 = vpop.permute.xlu1 %7458  ;;  %v12730_v59 = vld [vmem:[#allocation30_spill] sm:$0xff] }
 0x78e   : > { %v7295_v55 = vpop.permute.xlu2 %7294  ;;  %v7507_v63 = vsel %vm3671_vm3, %v12730_v59, %v11630_v19  ;;  %v12732_v59 = vld [vmem:[#allocation33_spill] sm:$0xff] }
 0x78f   : > { %v7083_v25 = vadd.f32 %v11818_v8, %v7047_v2  ;;  %v7544_v41 = vsel %vm6633_vm8, %v7512_v26, %v7295_v55  ;;  %v12731_v2 = vld [vmem:[#allocation42_spill] sm:$0xff] }
 0x790   : > { %v7576_v37 = vsel %vm6686_vm9, %v7544_v41, %v11967_v4  ;;  %v7515_v47 = vsel %vm3671_vm3, %v12731_v2, %v11738_v15 }
 0x791   : > { %v7115_v28 = vmax.f32 %v7083_v25, 0.0  ;;  %7609 = vst.msk [vmem:[%s12006_s12 + $0x30] sm:$0xff] %vm7602_vm1, %v7576_v37  ;;  %v6802_v37 = vpop.f32.mrf.mxu0  ;;  %v6905_v15 = vpop.f32.mrf.mxu1 }
 0x793   : > { %7332 = vrot.lane.b32.xlu0 %v7115_v28, %s8513_s15 }
 0x794   : > { %v7007_v10 = vpop.f32.mrf.mxu2 }
 0x795   : > { %v7048_v22 = vadd.f32 %v7007_v10, %v6901_v29  ;;  %v7285_v4 = vpop.permute.xlu0 %7284  ;;  %v12048_v25 = vpop.permute.xlu1 %7464  ;;  %v6903_v29 = vadd.f32 %v6902_v48, %v6799_v16 }
 0x796   : > { %v7301_v26 = vpop.permute.xlu2 %7300  ;;  %v7539_v60 = vsel %vm6633_vm8, %v7507_v63, %v7285_v4  ;;  %v12734_v4 = vld [vmem:[#allocation31_spill] sm:$0xff] }
 0x797   : > { %v7084_v55 = vadd.f32 %v11818_v8, %v7048_v22  ;;  %v7547_v52 = vsel %vm6633_vm8, %v7515_v47, %v7301_v26  ;;  %v7571_v41 = vsel %vm6686_vm9, %v7539_v60, %v11881_v5  ;;  %v7510_v5 = vsel %vm3671_vm3, %v12732_v59, %v11658_v62  ;;  %v12736_v59 = vld [vmem:[#allocation48_spill] sm:$0xff] }
 0x798   : > { %v7579_v19 = vsel %vm6686_vm9, %v7547_v52, %v11975_v23  ;;  %7604 = vst.msk [vmem:[%s12006_s12 + $0x8] sm:$0xff] %vm7602_vm1, %v7571_v41  ;;  %v12733_v23 = vld [vmem:[#allocation45_spill] sm:$0xff]  ;;  %v7508_v16 = vsel %vm3671_vm3, %v12734_v4, %v11625_v61 }
 0x799   : > { %v7116_v28 = vmax.f32 %v7084_v55, 0.0  ;;  %7612 = vst.msk [vmem:[%s12006_s12 + $0x48] sm:$0xff] %vm7602_vm1, %v7579_v19  ;;  %v7518_v63 = vsel %vm3671_vm3, %v12733_v23, %v11804_v34  ;;  %v6906_v19 = vadd.f32 %v6905_v15, %v6802_v37 }
 0x79b   : > { %7334 = vrot.lane.b32.xlu1 %v7116_v28, %s8513_s15  ;;  %v6804_v28 = vpop.f32.mrf.mxu0 }
 0x79c   : > { %v7009_v10 = vpop.f32.mrf.mxu2 }
 0x79d   : > { %v7049_v22 = vadd.f32 %v7009_v10, %v6903_v29  ;;  %v7291_v2 = vpop.permute.xlu0 %7290  ;;  %v7287_v60 = vpop.permute.xlu1 %7286  ;;  %v12735_v10 = vld [vmem:[#allocation36_spill] sm:$0xff] }
 0x79e   : > { %v7307_v47 = vpop.permute.xlu2 %7306  ;;  %v7542_v26 = vsel %vm6633_vm8, %v7510_v5, %v7291_v2  ;;  %v7540_v52 = vsel %vm6633_vm8, %v7508_v16, %v7287_v60  ;;  %v6907_v29 = vpop.f32.mrf.mxu1  ;;  %v12737_v5 = vld [vmem:[#allocation34_spill] sm:$0xff] }
 0x79f   : > { %v7085_v48 = vadd.f32 %v11818_v8, %v7049_v22  ;;  %v7550_v55 = vsel %vm6633_vm8, %v7518_v63, %v7307_v47  ;;  %v7574_v62 = vsel %vm6686_vm9, %v7542_v26, %v11904_v42  ;;  %v7572_v61 = vsel %vm6686_vm9, %v7540_v52, %v11946_v13 }
 0x7a0   : > { %v7582_v34 = vsel %vm6686_vm9, %v7550_v55, %v11982_v38  ;;  %7607 = vst.msk [vmem:[%s12006_s12 + $0x20] sm:$0xff] %vm7602_vm1, %v7574_v62  ;;  %v7513_v22 = vsel %vm3671_vm3, %v12735_v10, %v11717_v46  ;;  %v7521_v13 = vsel %vm3671_vm3, %v12736_v59, %v11828_v21  ;;  %v7511_v23 = vsel %vm3671_vm3, %v12737_v5, %v11643_v53  ;;  %v12742_v5 = vld [vmem:[#allocation47_spill] sm:$0xff] }
 0x7a1   : > { %v7117_v41 = vmax.f32 %v7085_v48, 0.0  ;;  %7615 = vst.msk [vmem:[%s12006_s12 + $0x60] sm:$0xff] %vm7602_vm1, %v7582_v34  ;;  %v6908_v26 = vadd.f32 %v6907_v29, %v6804_v28  ;;  %v12739_v34 = vld [vmem:[#allocation61_spill] sm:$0xff] }
 0x7a2   : > { %7605 = vst.msk [vmem:[%s12006_s12 + $0x10] sm:$0xff] %vm7602_vm1, %v7572_v61  ;;  %v12740_v61 = vld [vmem:[#allocation41_spill] sm:$0xff] }
 0x7a3   : > { %7336 = vrot.lane.b32.xlu2 %v7117_v41, %s8513_s15 }
 0x7a4   : > { %v7012_v42 = vpop.f32.mrf.mxu2 }
 0x7a5   : > { %v7050_v38 = vadd.f32 %v7012_v42, %v6906_v19  ;;  %v7297_v37 = vpop.permute.xlu0 %7296  ;;  %v7293_v4 = vpop.permute.xlu1 %7292  ;;  %v7514_v19 = vsel %vm3671_vm3, %v12740_v61, %v11698_v45  ;;  %v12748_v61 = vld [vmem:[#allocation12_spill] sm:$0xff] }
 0x7a6   : > { %v7313_v15 = vpop.permute.xlu2 %7312  ;;  %v7545_v2 = vsel %vm6633_vm8, %v7513_v22, %v7297_v37  ;;  %v7543_v16 = vsel %vm6633_vm8, %v7511_v23, %v7293_v4  ;;  %v12741_v37 = vld [vmem:[#allocation60_spill] sm:$0xff]  ;;  %v7519_v23 = vsel %vm3671_vm3, %v12742_v5, %v11762_v40  ;;  %v12753_v5 = vld [vmem:[#allocation15_spill] sm:$0xff] }
 0x7a7   : > { %v7086_v63 = vadd.f32 %v11818_v8, %v7050_v38  ;;  %v7553_v47 = vsel %vm6633_vm8, %v7521_v13, %v7313_v15  ;;  %v7577_v46 = vsel %vm6686_vm9, %v7545_v2, %v11924_v39  ;;  %v7575_v53 = vsel %vm6686_vm9, %v7543_v16, %v11956_v7  ;;  %v6807_v39 = vpop.f32.mrf.mxu0  ;;  %v12744_v2 = vld [vmem:[#allocation43_spill] sm:$0xff] }
 0x7a8   : > { %v7585_v21 = vsel %vm6686_vm9, %v7553_v47, %v11989_v12  ;;  %7610 = vst.msk [vmem:[%s12006_s12 + $0x38] sm:$0xff] %vm7602_vm1, %v7577_v46  ;;  %v12738_v12 = vld [vmem:[#allocation44_spill] sm:$0xff]  ;;  %v7524_v7 = vsel %vm3671_vm3, %v12739_v34, %v11855_v33 }
 0x7a9   : > { %v7118_v48 = vmax.f32 %v7086_v63, 0.0  ;;  %7618 = vst.msk [vmem:[%s12006_s12 + $0x78] sm:$0xff] %vm7602_vm1, %v7585_v21  ;;  %v7516_v62 = vsel %vm3671_vm3, %v12738_v12, %v11740_v0  ;;  %v6910_v0 = vpop.f32.mrf.mxu1  ;;  %v12745_v12 = vld [vmem:[#allocation63_spill] sm:$0xff] }
 0x7aa   : > { %7608 = vst.msk [vmem:[%s12006_s12 + $0x28] sm:$0xff] %vm7602_vm1, %v7575_v53  ;;  %v6911_v13 = vadd.f32 %v6910_v0, %v6807_v39 }
 0x7ab   : > { %7338 = vrot.lane.b32.xlu0 %v7118_v48, %s8513_s15 }
 0x7ac   : > { %v7014_v55 = vpop.f32.mrf.mxu2 }
 0x7ad   : > { %v7051_v60 = vadd.f32 %v7014_v55, %v6908_v26  ;;  %v7303_v52 = vpop.permute.xlu0 %7302  ;;  %v7299_v38 = vpop.permute.xlu1 %7298 }
 0x7ae   : > { %v7319_v41 = vpop.permute.xlu2 %7318  ;;  %v7548_v42 = vsel %vm6633_vm8, %v7516_v62, %v7303_v52  ;;  %v7546_v22 = vsel %vm6633_vm8, %v7514_v19, %v7299_v38  ;;  %v2426_v62 = vadd.f32 %v11623_v20, %v12745_v12  ;;  %v12747_v52 = vld [vmem:[#allocation52_spill] sm:$0xff]  ;;  %v12749_v19 = vld [vmem:[#allocation49_spill] sm:$0xff] }
 0x7af   : > { %v7087_v28 = vadd.f32 %v11818_v8, %v7051_v60  ;;  %v7556_v29 = vsel %vm6633_vm8, %v7524_v7, %v7319_v41  ;;  %v7580_v10 = vsel %vm6686_vm9, %v7548_v42, %v11939_v57  ;;  %v7578_v45 = vsel %vm6686_vm9, %v7546_v22, %v11962_v14  ;;  %v12743_v14 = vld [vmem:[#allocation18_spill] sm:$0xff]  ;;  %v6809_v16 = vpop.f32.mrf.mxu0 }
 0x7b0   : > { %v7588_v33 = vsel %vm6686_vm9, %v7556_v29, %v12002_v27  ;;  %7613 = vst.msk [vmem:[%s12006_s12 + $0x50] sm:$0xff] %vm7602_vm1, %v7580_v10  ;;  %v2424_v27 = vadd.f32 %v11623_v20, %v12741_v37  ;;  %v7517_v47 = vsel %vm3671_vm3, %v12744_v2, %v12743_v14  ;;  %v12746_v7 = vld [vmem:[#allocation14_spill] sm:$0xff] }
 0x7b1   : > { %v7119_v59 = vmax.f32 %v7087_v28, 0.0  ;;  %7621 = vst.msk [vmem:[%s12006_s12 + $0x90] sm:$0xff] %vm7602_vm1, %v7588_v33  ;;  %v6912_v39 = vpop.f32.mrf.mxu1  ;;  %v7522_v41 = vsel %vm3671_vm3, %v12747_v52, %v12746_v7  ;;  %v7520_v28 = vsel %vm3671_vm3, %v12749_v19, %v12748_v61  ;;  %v2459_v33 = vmax.f32 %v2426_v62, 0.0  ;;  %v12752_v37 = vld [vmem:[#allocation58_spill] sm:$0xff]  ;;  %v12760_v62 = vld [vmem:[#allocation67_spill] sm:$0xff]  ;;  %v12762_v19 = vld [vmem:[#allocation8_spill] sm:$0xff] }
 0x7b2   : > { %7611 = vst.msk [vmem:[%s12006_s12 + $0x40] sm:$0xff] %vm7602_vm1, %v7578_v45  ;;  %v2458_v26 = vmax.f32 %v2424_v27, 0.0  ;;  %v6913_v60 = vadd.f32 %v6912_v39, %v6809_v16  ;;  %v12751_v45 = vld [vmem:[#allocation65_spill] sm:$0xff]  ;;  %v12758_v39 = vld [vmem:[#allocation70_spill] sm:$0xff] }
 0x7b3   : > { %7340 = vrot.lane.b32.xlu1 %v7119_v59, %s8513_s15 }
 0x7b4   : > { %v7017_v57 = vpop.f32.mrf.mxu2 }
 0x7b5   : > { %v7052_v15 = vadd.f32 %v7017_v57, %v6911_v13  ;;  %v7309_v63 = vpop.permute.xlu0 %7308  ;;  %v7305_v21 = vpop.permute.xlu1 %7304  ;;  %v7527_v13 = vsel %vm3671_vm3, %v12751_v45, %v11873_v54  ;;  %v12766_v45 = vld [vmem:[#allocation23_spill] sm:$0xff] }
 0x7b6   : > { %v7551_v46 = vsel %vm6633_vm8, %v7519_v23, %v7309_v63  ;;  %v7549_v53 = vsel %vm6633_vm8, %v7517_v47, %v7305_v21  ;;  %v12754_v23 = vld [vmem:[#allocation56_spill] sm:$0xff] }
 0x7b7   : > { %v7088_v4 = vadd.f32 %v11818_v8, %v7052_v15  ;;  %v7583_v48 = vsel %vm6686_vm9, %v7551_v46, %v11951_v50  ;;  %v7581_v40 = vsel %vm6686_vm9, %v7549_v53, %v11970_v43  ;;  %v7523_v63 = vsel %vm3671_vm3, %v12754_v23, %v12753_v5  ;;  %v12756_v46 = vld [vmem:[#allocation64_spill] sm:$0xff] }
 0x7b8   : > { %7616 = vst.msk [vmem:[%s12006_s12 + $0x68] sm:$0xff] %vm7602_vm1, %v7583_v48 }
 0x7b9   : > { %v7120_v55 = vmax.f32 %v7088_v4, 0.0  ;;  %7614 = vst.msk [vmem:[%s12006_s12 + $0x58] sm:$0xff] %vm7602_vm1, %v7581_v40 }
 0x7bb   : > { %7342 = vrot.lane.b32.xlu2 %v7120_v55, %s8513_s15  ;;  %7470 = vrot.lane.b32.xlu1 %v2458_v26, %s8514_s16 }
 0x7bc   : > { %v7019_v50 = vpop.f32.mrf.mxu2 }
 0x7bd   : > { %v7053_v34 = vadd.f32 %v7019_v50, %v6913_v60  ;;  %v7315_v43 = vpop.permute.xlu0 %7314  ;;  %v7311_v38 = vpop.permute.xlu1 %7310 }
 0x7be   : > { %v7554_v29 = vsel %vm6633_vm8, %v7522_v41, %v7315_v43  ;;  %v7552_v10 = vsel %vm6633_vm8, %v7520_v28, %v7311_v38 }
 0x7bf   : > { %v7089_v42 = vadd.f32 %v11818_v8, %v7053_v34  ;;  %v7586_v0 = vsel %vm6686_vm9, %v7554_v29, %v11958_v17  ;;  %v7584_v59 = vsel %vm6686_vm9, %v7552_v10, %v11978_v36  ;;  %v12750_v8 = vld [vmem:[#allocation57_spill] sm:$0xff]  ;;  %v7525_v36 = vsel %vm3671_vm3, %v12752_v37, %v11857_v31  ;;  %v12764_v10 = vld [vmem:[#allocation16_spill] sm:$0xff] }
 0x7c0   : > { %7619 = vst.msk [vmem:[%s12006_s12 + $0x80] sm:$0xff] %vm7602_vm1, %v7586_v0  ;;  %v2421_v17 = vadd.f32 %v11623_v20, %v12750_v8 }
 0x7c1   : > { %v7121_v22 = vmax.f32 %v7089_v42, 0.0  ;;  %7617 = vst.msk [vmem:[%s12006_s12 + $0x70] sm:$0xff] %vm7602_vm1, %v7584_v59  ;;  %v12765_v59 = vld [vmem:[#allocation25_spill] sm:$0xff] }
 0x7c2   : > { %v2457_v47 = vmax.f32 %v2421_v17, 0.0 }
 0x7c3   : > { %7344 = vrot.lane.b32.xlu0 %v7121_v22, %s8513_s15  ;;  %7472 = vrot.lane.b32.xlu2 %v2459_v33, %s8514_s16  ;;  %s8041_s15 = sshll.u32 %s8597_s21, 8  ;;  %s7648_s21 = sshll.u32 %s12006_s12, 4  ;;  %s7649_s21 = int_to_ptr.vmem [resolvable:$true] %s7648_s21 }
 0x7c5   : > { %v7325_v57 = vpop.permute.xlu2 %7324  ;;  %v7321_v15 = vpop.permute.xlu0 %7320 }
 0x7c6   : > { %v7559_v27 = vsel %vm6633_vm8, %v7527_v13, %v7325_v57  ;;  %v7557_v14 = vsel %vm6633_vm8, %v7525_v36, %v7321_v15  ;;  %v7317_v2 = vpop.permute.xlu1 %7316  ;;  %v12768_v36 = vld [vmem:[#allocation26_spill] sm:$0xff] }
 0x7c7   : > { %v7591_v20 = vsel %vm6686_vm9, %v7559_v27, %v12018_v24  ;;  %v7589_v54 = vsel %vm6686_vm9, %v7557_v14, %v11964_v11  ;;  %v7555_v31 = vsel %vm6633_vm8, %v7523_v63, %v7317_v2  ;;  %v12755_v24 = vld [vmem:[#allocation17_spill] sm:$0xff]  ;;  %v12769_v27 = vld [vmem:[#allocation24_spill] sm:$0xff]  ;;  %v12771_v2 = vld [vmem:[#allocation19_spill] sm:$0xff] }
 0x7c8   : > { %7624 = vst.msk [vmem:[%s12006_s12 + $0xa8] sm:$0xff] %vm7602_vm1, %v7591_v20  ;;  %v7587_v4 = vsel %vm6686_vm9, %v7555_v31, %v11984_v44  ;;  %v7526_v21 = vsel %vm3671_vm3, %v12756_v46, %v12755_v24  ;;  %v12757_v44 = vld [vmem:[#allocation7_spill] sm:$0xff]  ;;  %v7537_v15 = vsel %vm3671_vm3, %v12769_v27, %v12768_v36  ;;  %v12770_v14 = vld [vmem:[#allocation21_spill] sm:$0xff] }
 0x7c9   : > { %7622 = vst.msk [vmem:[%s12006_s12 + $0x98] sm:$0xff] %vm7602_vm1, %v7589_v54  ;;  %v7530_v53 = vsel %vm3671_vm3, %v12757_v44, %v11897_v18  ;;  %v12759_v18 = vld [vmem:[#allocation20_spill] sm:$0xff]  ;;  %v7535_v54 = vsel %vm3671_vm3, %v12771_v2, %v12770_v14 }
 0x7ca   : > { %7620 = vst.msk [vmem:[%s12006_s12 + $0x88] sm:$0xff] %vm7602_vm1, %v7587_v4 }
 0x7cb   : > { %7468 = vrot.lane.b32.xlu0 %v2457_v47, %s8514_s16  ;;  %s7647_s16 = scalar_lea.hbm %s12337_s11, %s8041_s15 }
 0x7cc   : > { %s7650_s14 = sshll.u32 %s7647_s16, 4  ;;  %s8436_s16 = scalar_lea.hbm %s12337_s11, 512  ;;  %s7651_s14 = int_to_ptr.hbm [resolvable:$true] %s7650_s14 }
 0x7cd   : > { %s8430_s24 = sshra.s32 %s7651_s14, 4  ;;  %s8431_s24 = int_to_ptr.hbm [resolvable:$true] %s8430_s24 }
 0x7ce   : > { %s8432_s15 = scalar_lea.hbm %s8431_s24, 256  ;;  %p8437_p0 = scmp.lt.s32.totalorder %s8431_s24, %s12337_s11 }
 0x7cf   : > { %p8433_p11 = scmp.ne.s32.totalorder %s8431_s24, %s8432_s15  ;;  %p8438_p1 = scmp.lt.s32.totalorder %s8436_s16, %s8432_s15 }
 0x7d1   : > { %p8434_p12 = pnand %p8433_p11, %p8614_p5  ;;  %p8439_p2 = por %p8438_p1, %p8437_p0 }
 0x7d3   : > { %p8435_p13 = pneg %p8434_p12 }
 0x7d5   : > { %v7323_v16 = vpop.permute.xlu1 %7322  ;;  %p8440_p3 = pnand %p8439_p2, %p8435_p13 }
 0x7d6   : > { %v7558_v11 = vsel %vm6633_vm8, %v7526_v21, %v7323_v16 }
 0x7d7   : > { %v7590_v48 = vsel %vm6686_vm9, %v7558_v11, %v11998_v1  ;;  %v7528_v1 = vsel %vm3671_vm3, %v12758_v39, %v11875_v6  ;;  %v12761_v6 = vld [vmem:[#allocation13_spill] sm:$0xff] }
 0x7d8   : > { %7623 = vst.msk [vmem:[%s12006_s12 + $0xa0] sm:$0xff] %vm7602_vm1, %v7590_v48 }
 0x7e5   : > { %v7331_v26 = vpop.permute.xlu2 %7330 }
 0x7e6   : > { %v7562_v55 = vsel %vm6633_vm8, %v7530_v53, %v7331_v26 }
 0x7e7   : > { %v7594_v40 = vsel %vm6686_vm9, %v7562_v55, %v12032_v9  ;;  %v7529_v9 = vsel %vm3671_vm3, %v12760_v62, %v12759_v18 }
 0x7e8   : > { %7627 = vst.msk [vmem:[%s12006_s12 + $0xc0] sm:$0xff] %vm7602_vm1, %v7594_v40 }
 0x7ed   : > { %v7327_v60 = vpop.permute.xlu0 %7326 }
 0x7ee   : > { %v7560_v50 = vsel %vm6633_vm8, %v7528_v1, %v7327_v60 }
 0x7ef   : > { %v7592_v12 = vsel %vm6686_vm9, %v7560_v50, %v11972_v3  ;;  %v7533_v3 = vsel %vm3671_vm3, %v12761_v6, %v11917_v58  ;;  %v12763_v58 = vld [vmem:[#allocation11_spill] sm:$0xff] }
 0x7f0   : > { %7625 = vst.msk [vmem:[%s12006_s12 + $0xb0] sm:$0xff] %vm7602_vm1, %v7592_v12  ;;  %v7532_v38 = vsel %vm3671_vm3, %v12763_v58, %v11834_v51 }
 0x7f5   : > { %v7329_v34 = vpop.permute.xlu1 %7328 }
 0x7f6   : > { %v7561_v7 = vsel %vm6633_vm8, %v7529_v9, %v7329_v34 }
 0x7f7   : > { %v7593_v52 = vsel %vm6686_vm9, %v7561_v7, %v12014_v35  ;;  %v7531_v35 = vsel %vm3671_vm3, %v12762_v19, %v11899_v49 }
 0x7f8   : > { %7626 = vst.msk [vmem:[%s12006_s12 + $0xb8] sm:$0xff] %vm7602_vm1, %v7593_v52 }
 0x7fd   : > { %v7337_v41 = vpop.permute.xlu2 %7336 }
 0x7fe   : > { %v7565_v43 = vsel %vm6633_vm8, %v7533_v3, %v7337_v41 }
 0x7ff   : > { %v7597_v61 = vsel %vm6686_vm9, %v7565_v43, %v12048_v25 }
 0x800   : > { %7630 = vst.msk [vmem:[%s12006_s12 + $0xd8] sm:$0xff] %vm7602_vm1, %v7597_v61 }
 0x805   : > { %v7333_v28 = vpop.permute.xlu0 %7332 }
 0x806   : > { %v7563_v42 = vsel %vm6633_vm8, %v7531_v35, %v7333_v28 }
 0x807   : > { %v7595_v29 = vsel %vm6686_vm9, %v7563_v42, %v11980_v30  ;;  %v7534_v30 = vsel %vm3671_vm3, %v12764_v10, %v11919_v56 }
 0x808   : > { %7628 = vst.msk [vmem:[%s12006_s12 + $0xc8] sm:$0xff] %vm7602_vm1, %v7595_v29 }
 0x80d   : > { %v7335_v25 = vpop.permute.xlu1 %7334 }
 0x80e   : > { %v7564_v0 = vsel %vm6633_vm8, %v7532_v38, %v7335_v25 }
 0x80f   : > { %v7596_v49 = vsel %vm6686_vm9, %v7564_v0, %v12028_v32  ;;  %v12767_v32 = vld [vmem:[#allocation22_spill] sm:$0xff] }
 0x810   : > { %7629 = vst.msk [vmem:[%s12006_s12 + $0xd0] sm:$0xff] %vm7602_vm1, %v7596_v49  ;;  %v7536_v13 = vsel %vm3671_vm3, %v12767_v32, %v12766_v45 }
 0x815   : > { %v7343_v17 = vpop.permute.xlu2 %7342 }
 0x816   : > { %v7568_v57 = vsel %vm6633_vm8, %v7536_v13, %v7343_v17 }
 0x81d   : > { %v7339_v33 = vpop.permute.xlu0 %7338  ;;  %v7473_v23 = vpop.permute.xlu2 %7472 }
 0x81e   : > { %v7566_v22 = vsel %vm6633_vm8, %v7534_v30, %v7339_v33 }
 0x81f   : > { %v7598_v51 = vsel %vm6686_vm9, %v7566_v22, %v12765_v59 }
 0x820   : > { %7631 = vst.msk [vmem:[%s12006_s12 + $0xe0] sm:$0xff] %vm7602_vm1, %v7598_v51 }
 0x825   : > { %v7341_v8 = vpop.permute.xlu1 %7340 }
 0x826   : > { %v7567_v31 = vsel %vm6633_vm8, %v7535_v54, %v7341_v8 }
 0x82d   : > { %v7471_v37 = vpop.permute.xlu1 %7470 }
 0x82e   : > { %v7600_v56 = vsel %vm6686_vm9, %v7568_v57, %v7471_v37 }
 0x82f   : > { %7633 = vst.msk [vmem:[%s12006_s12 + $0xf0] sm:$0xff] %vm7602_vm1, %v7600_v56 }
 0x835   : > { %v7345_v5 = vpop.permute.xlu0 %7344 }
 0x836   : > { %v7569_v63 = vsel %vm6633_vm8, %v7537_v15, %v7345_v5 }
 0x837   : > { %v7601_v20 = vsel %vm6686_vm9, %v7569_v63, %v7473_v23 }
 0x838   : > { %7634 = vst.msk [vmem:[%s12006_s12 + $0xf8] sm:$0xff] %vm7602_vm1, %v7601_v20 }
 0x83d   : > { %v7469_v47 = vpop.permute.xlu0 %7468 }
 0x83e   : > { %v7599_v4 = vsel %vm6686_vm9, %v7567_v31, %v7469_v47 }
 0x83f   : > { %7632 = vst.msk [vmem:[%s12006_s12 + $0xe8] sm:$0xff] %vm7602_vm1, %v7599_v4 }
 0x840   : > { %8443 = shalt.err (!%p8440_p3)
}
 0x841   : > { %s8515_s22 = smov 128   ;;  %s12772_s12 = smov 8  }
 0x842   : > { %8302 = dma.vmem_to_hbm [thread:$0]  (%p8614_p5), %s7649_s21, 4096, %s7651_s14, %s7636_s30, %s8515_s22, %s8515_s22, %s12772_s12  }
 0x843 PF: > { %p8308_p4 = scmp.ge.s32.totalorder %s8505_s20, 2  ;;  %s7665_s13 = sand.u32 1, %s8493_s17  }
 0x844   : > { %s7666_s0 = scalar_lea.sflag [#allocation5], %s7665_s13 }
 0x845   : > { %p8305_p7 = pnand %p8308_p4, %p8618_p6 }
 0x847   : > { %p8306_p8 = pneg %p8305_p7 }
 0x849   : > { %8461 = dma.done.wait (%p8306_p8), %s7666_s0, 4096  }
 0x84a   : > { %8463 = vsyncadd (%p8306_p8), %s7666_s0, 4294963200  ;;  %p21_p9 = scmp.ge.s32.totalorder %s8601_s23, 4   ;;  %s12773_s17 = smov %s8497_s18 }
 0x84b   : > { %s12774_s18 = smov %s8501_s19  ;;  %s12775_s19 = smov %s8612_s26 }
 0x84c   : > { %s12776_s20 = smov %s8601_s23  ;;  %23 = sbr.rel (!%p21_p9) target bundleno = 5 (0x5), region = 109 }
 0x851   :  { %7672 = vsyncpa [#allocation5], 1 }
 0x852   :  { %7674 = vsyncpa [#allocation5 + $0x1], 1 }

</bundles_post_ra>
